<compile_context>
chip_gen: v7x
topology: tpu7x:2x2x1
jax: 0.10.0
libtpu: 0.0.40
codegen_flags: <defaults>
</compile_context>

<pallas_src>
import numpy as np

import jax
import jax.numpy as jnp
from jax.experimental import pallas as pl
from jax.experimental.pallas import tpu as pltpu


def _ru(n, m):
    return ((n + m - 1) // m) * m


# ------------------------------ fused kernel ------------------------------- #

def _net_fused_kernel(patches1_ref, w1_ref, b1_ref,
                      pool1_sel_ref, w2_ref, b2_ref,
                      conv2_sel_ref, pool2_sel_ref,
                      fcw_ref, fcb_ref, out_ref):
    f32 = jnp.float32

    # ---- conv1: im2col matmul + bias + ReLU (MXU) -------------------------- #
    a1 = jnp.dot(patches1_ref[...], w1_ref[...], preferred_element_type=f32)
    a1 = jnp.maximum(a1 + b1_ref[...], 0.0)                       # [M1, C1]

    # ---- maxpool1: 9 one-hot row-gather matmuls + elementwise max ---------- #
    pool1 = jnp.dot(pool1_sel_ref[0].astype(f32), a1, preferred_element_type=f32)
    for t in range(1, pool1_sel_ref.shape[0]):
        tap = jnp.dot(pool1_sel_ref[t].astype(f32), a1, preferred_element_type=f32)
        pool1 = jnp.maximum(pool1, tap)                           # [R1, C1]

    # ---- conv2: sum over 25 taps of (row-gather @ tap weight) + bias + ReLU - #
    m2 = conv2_sel_ref.shape[1]
    c2 = w2_ref.shape[2]
    acc2 = jnp.zeros((m2, c2), f32)
    for t in range(conv2_sel_ref.shape[0]):
        g = jnp.dot(conv2_sel_ref[t].astype(f32), pool1, preferred_element_type=f32)
        acc2 = acc2 + jnp.dot(g, w2_ref[t], preferred_element_type=f32)
    a2 = jnp.maximum(acc2 + b2_ref[...], 0.0)                     # [M2, C2]

    # ---- maxpool2 -> flattened features (final spatial is 1x1) ------------- #
    feats = jnp.dot(pool2_sel_ref[0].astype(f32), a2, preferred_element_type=f32)
    for t in range(1, pool2_sel_ref.shape[0]):
        tap = jnp.dot(pool2_sel_ref[t].astype(f32), a2, preferred_element_type=f32)
        feats = jnp.maximum(feats, tap)                           # [M3, C2]

    # ---- fc: lane-padded to 128 output columns (unmasked store) ------------ #
    out = jnp.dot(feats, fcw_ref[...], preferred_element_type=f32) + fcb_ref[...]
    out_ref[...] = out.astype(out_ref.dtype)


# --------------------------- host-side operand prep ------------------------- #

def _im2col(x, kh, kw, stride, padding):
    """PyTorch-order im2col: rows (b, oh, ow), columns (cin, kh, kw)."""
    B, Cin, H, W = x.shape
    xp = jnp.pad(x, ((0, 0), (0, 0), (padding, padding), (padding, padding)))
    OH = (H + 2 * padding - kh) // stride + 1
    OW = (W + 2 * padding - kw) // stride + 1
    cols = []
    for di in range(kh):
        for dj in range(kw):
            cols.append(xp[:, :,
                           di:di + stride * (OH - 1) + 1:stride,
                           dj:dj + stride * (OW - 1) + 1:stride])   # [B,Cin,OH,OW]
    patches = jnp.stack(cols, axis=2)                                # [B,Cin,kh*kw,OH,OW]
    patches = patches.transpose(0, 3, 4, 1, 2).reshape(B * OH * OW, Cin * kh * kw)
    return patches


def _pool_select(B, H, W, k, s, rows_in, rows_out):
    """One-hot [k*k, rows_out, rows_in]: tap (di,dj) gathers the pool-window
    element for each output row (b, ph, pw) from input row b*H*W + (ph*s+di)*W
    + (pw*s+dj).  Padded rows/cols stay zero."""
    OH = (H - k) // s + 1
    OW = (W - k) // s + 1
    m = np.zeros((k * k, rows_out, rows_in), np.float32)
    for di in range(k):
        for dj in range(k):
            t = di * k + dj
            for b in range(B):
                for ph in range(OH):
                    for pw in range(OW):
                        m[t, b * OH * OW + ph * OW + pw,
                          b * H * W + (ph * s + di) * W + (pw * s + dj)] = 1.0
    return m


def _conv_select(B, H, W, k, s, pad, rows_in, rows_out):
    """One-hot [k*k, rows_out, rows_in]: tap (di,dj) gathers the conv input row
    for each output position; taps that land in the zero-padding region get an
    all-zero row (== zero padding)."""
    OH = (H + 2 * pad - k) // s + 1
    OW = (W + 2 * pad - k) // s + 1
    m = np.zeros((k * k, rows_out, rows_in), np.float32)
    for di in range(k):
        for dj in range(k):
            t = di * k + dj
            for b in range(B):
                for oh in range(OH):
                    for ow in range(OW):
                        h = oh * s + di - pad
                        w = ow * s + dj - pad
                        if 0 <= h < H and 0 <= w < W:
                            m[t, b * OH * OW + oh * OW + ow,
                              b * H * W + h * W + w] = 1.0
    return m


# --------------------------------- the Net ---------------------------------- #

def init_params(key, net_width, num_classes, gamma):
    c1 = net_width // 2
    k1, k2, k3, k4, k5, k6 = jax.random.split(key, 6)
    # Conv / bias inits: uniform(-1/sqrt(fan_in), 1/sqrt(fan_in)) (PyTorch-like).
    fan1 = 3 * 5 * 5
    conv1_w = jax.random.uniform(k1, (c1, 3, 5, 5), jnp.float32, -1.0, 1.0) / jnp.sqrt(fan1)
    conv1_b = jax.random.uniform(k2, (c1,), jnp.float32, -1.0, 1.0) / jnp.sqrt(fan1)
    fan2 = c1 * 5 * 5
    conv2_w = jax.random.uniform(k3, (net_width, c1, 5, 5), jnp.float32, -1.0, 1.0) / jnp.sqrt(fan2)
    conv2_b = jax.random.uniform(k4, (net_width,), jnp.float32, -1.0, 1.0) / jnp.sqrt(fan2)
    # fc.weight ~ Normal(0, sqrt(last_layer_var)), last_layer_var = gamma*(6/net_width)**0.5
    std = jnp.sqrt(jnp.float32(gamma) * (6.0 / net_width) ** 0.5)
    fc_w = std * jax.random.normal(k5, (num_classes, net_width), jnp.float32)
    fc_b = jax.random.uniform(k6, (num_classes,), jnp.float32, -1.0, 1.0) / jnp.sqrt(net_width)
    return dict(conv1_w=conv1_w, conv1_b=conv1_b,
                conv2_w=conv2_w, conv2_b=conv2_b,
                fc_w=fc_w, fc_b=fc_b)


@jax.jit
def net_forward(params, x):
    f32 = jnp.float32
    B, Cin, H, W = x.shape
    c1 = params["conv1_w"].shape[0]           # net_width // 2
    c2 = params["conv2_w"].shape[0]           # net_width
    num_classes = params["fc_b"].shape[0]

    # Static geometry (PyTorch Conv2d / MaxPool2d formulas).
    OH1 = (H + 2 - 5) // 2 + 1                # conv1: k=5, s=2, p=1
    OW1 = (W + 2 - 5) // 2 + 1
    PH1 = (OH1 - 3) // 2 + 1                  # pool1: k=3, s=2
    PW1 = (OW1 - 3) // 2 + 1
    OH2 = (PH1 + 2 - 5) // 2 + 1              # conv2: k=5, s=2, p=1
    OW2 = (PW1 + 2 - 5) // 2 + 1
    PH2 = (OH2 - 3) // 2 + 1                  # pool2: k=3, s=2
    PW2 = (OW2 - 3) // 2 + 1
    # Same assumption as the PyTorch module: flatten yields exactly net_width.
    assert PH2 == 1 and PW2 == 1, "flatten-to-net_width assumes 1x1 final spatial"

    # Padded row counts: dims used as the lane (last) dim of a big selection
    # matrix -> multiple of 128; small sublane-only dims -> 8/16.
    M1 = _ru(B * OH1 * OW1, 128)              # conv1 rows (lane dim of pool1 sel)
    K1 = _ru(Cin * 25, 128)                   # conv1 contraction
    R1 = _ru(B * PH1 * PW1, 128)              # pool1 rows (lane dim of conv2 sel)
    M2 = _ru(B * OH2 * OW2, 16)               # conv2 rows (lane dim of pool2 sel)
    M3 = _ru(B, 8)                            # pool2 / fc rows
    NF = _ru(num_classes, 128)                # fc output lanes

    # conv1 operands: im2col on the (tiny) network input, zero-padded.
    patches1 = _im2col(x, 5, 5, 2, 1).astype(f32)            # [B*OH1*OW1, Cin*25]
    patches1 = jnp.pad(patches1, ((0, M1 - patches1.shape[0]),
                                  (0, K1 - patches1.shape[1])))
    w1 = jnp.pad(params["conv1_w"].reshape(c1, Cin * 25).T.astype(f32),
                 ((0, K1 - Cin * 25), (0, 0)))               # [K1, c1]
    b1 = params["conv1_b"].reshape(1, c1).astype(f32)

    # One-hot selection matrices (exact gathers), bf16 to halve DMA.
    pool1_sel = jnp.asarray(_pool_select(B, OH1, OW1, 3, 2, M1, R1), jnp.bfloat16)
    conv2_sel = jnp.asarray(_conv_select(B, PH1, PW1, 5, 2, 1, R1, M2), jnp.bfloat16)
    pool2_sel = jnp.asarray(_pool_select(B, OH2, OW2, 3, 2, M2, M3), jnp.bfloat16)

    # conv2 per-tap weights [25, Cin, Cout] (tap t = di*5 + dj), and bias.
    w2 = jnp.transpose(params["conv2_w"], (2, 3, 1, 0)).reshape(25, c1, c2).astype(f32)
    b2 = params["conv2_b"].reshape(1, c2).astype(f32)

    # fc, zero-padded to 128 output lanes (sliced back after the kernel).
    fcw = jnp.pad(params["fc_w"].T.astype(f32), ((0, 0), (0, NF - num_classes)))
    fcb = jnp.pad(params["fc_b"].reshape(1, num_classes).astype(f32),
                  ((0, 0), (0, NF - num_classes)))

    out_full = pl.pallas_call(
        _net_fused_kernel,
        out_shape=jax.ShapeDtypeStruct((M3, NF), f32),
        in_specs=[pl.BlockSpec(memory_space=pltpu.MemorySpace.VMEM)] * 10,
        out_specs=pl.BlockSpec(memory_space=pltpu.MemorySpace.VMEM),
    )(patches1, w1, b1, pool1_sel, w2, b2, conv2_sel, pool2_sel, fcw, fcb)

    return out_full[:B, :num_classes]


if __name__ == "__main__":
    net_width = 32
    num_classes = 10
    gamma = 1.0
    batch = 2

    key = jax.random.PRNGKey(0)
    pkey, xkey = jax.random.split(key)
    params = init_params(pkey, net_width, num_classes, gamma)
    # 32x32 RGB input (CIFAR-sized): post-pool spatial is 1x1, so flatten gives
    # exactly net_width features for the fc layer (as the PyTorch module assumes).
    x = jax.random.normal(xkey, (batch, 3, 32, 32), jnp.float32)

    out = jax.block_until_ready(net_forward(params, x))
    assert out.shape == (batch, num_classes), out.shape
    print("KERNEL_OK")
</pallas_src>

<mosaic_0001>
module attributes {stable_mosaic.version = 11 : i64} {
  func.func @_net_fused_kernel(%arg0: memref<512x128xf32, #tpu.memory_space<vmem>>, %arg1: memref<128x16xf32, #tpu.memory_space<vmem>>, %arg2: memref<1x16xf32, #tpu.memory_space<vmem>>, %arg3: memref<9x128x512xbf16, #tpu.memory_space<vmem>>, %arg4: memref<25x16x32xf32, #tpu.memory_space<vmem>>, %arg5: memref<1x32xf32, #tpu.memory_space<vmem>>, %arg6: memref<25x32x128xbf16, #tpu.memory_space<vmem>>, %arg7: memref<9x8x32xbf16, #tpu.memory_space<vmem>>, %arg8: memref<32x128xf32, #tpu.memory_space<vmem>>, %arg9: memref<1x128xf32, #tpu.memory_space<vmem>>, %arg10: memref<8x128xf32, #tpu.memory_space<vmem>>) attributes {dimension_semantics = [], scalar_prefetch = 0 : i64, scratch_operands = 0 : i64, tpu.core_type = #tpu.core_type<tc>} {
    %c0 = arith.constant 0 : index
    %c0_0 = arith.constant 0 : index
    %0 = vector.load %arg0[%c0, %c0_0] : memref<512x128xf32, #tpu.memory_space<vmem>>, vector<512x128xf32>
    %c0_1 = arith.constant 0 : index
    %c0_2 = arith.constant 0 : index
    %1 = vector.load %arg1[%c0_1, %c0_2] : memref<128x16xf32, #tpu.memory_space<vmem>>, vector<128x16xf32>
    %cst = arith.constant dense<0.000000e+00> : vector<512x16xf32>
    %2 = tpu.matmul %0, %1, %cst {dimension_numbers = #tpu.dot_dimension_numbers<[1], [0], [0], [1], [0, 0, 1, 1], [], []>} : vector<512x128xf32>, vector<128x16xf32>, vector<512x16xf32> -> vector<512x16xf32>
    %c0_3 = arith.constant 0 : index
    %c0_4 = arith.constant 0 : index
    %3 = vector.load %arg2[%c0_3, %c0_4] : memref<1x16xf32, #tpu.memory_space<vmem>>, vector<1x16xf32>
    %4 = vector.broadcast %3 : vector<1x16xf32> to vector<512x16xf32>
    %5 = arith.addf %2, %4 : vector<512x16xf32>
    %cst_5 = arith.constant 0.000000e+00 : f32
    %6 = vector.broadcast %cst_5 : f32 to vector<512x16xf32>
    %7 = arith.maximumf %5, %6 : vector<512x16xf32>
    %c0_6 = arith.constant 0 : index
    %c0_7 = arith.constant 0 : index
    %c0_8 = arith.constant 0 : index
    %8 = vector.load %arg3[%c0_6, %c0_7, %c0_8] : memref<9x128x512xbf16, #tpu.memory_space<vmem>>, vector<1x128x512xbf16>
    %9 = vector.shape_cast %8 : vector<1x128x512xbf16> to vector<128x512xbf16>
    %10 = arith.extf %9 : vector<128x512xbf16> to vector<128x512xf32>
    %cst_9 = arith.constant dense<0.000000e+00> : vector<128x16xf32>
    %11 = tpu.matmul %10, %7, %cst_9 {dimension_numbers = #tpu.dot_dimension_numbers<[1], [0], [0], [1], [0, 0, 1, 1], [], []>} : vector<128x512xf32>, vector<512x16xf32>, vector<128x16xf32> -> vector<128x16xf32>
    %c1 = arith.constant 1 : index
    %c0_10 = arith.constant 0 : index
    %c0_11 = arith.constant 0 : index
    %12 = vector.load %arg3[%c1, %c0_10, %c0_11] : memref<9x128x512xbf16, #tpu.memory_space<vmem>>, vector<1x128x512xbf16>
    %13 = vector.shape_cast %12 : vector<1x128x512xbf16> to vector<128x512xbf16>
    %14 = arith.extf %13 : vector<128x512xbf16> to vector<128x512xf32>
    %cst_12 = arith.constant dense<0.000000e+00> : vector<128x16xf32>
    %15 = tpu.matmul %14, %7, %cst_12 {dimension_numbers = #tpu.dot_dimension_numbers<[1], [0], [0], [1], [0, 0, 1, 1], [], []>} : vector<128x512xf32>, vector<512x16xf32>, vector<128x16xf32> -> vector<128x16xf32>
    %16 = arith.maximumf %11, %15 : vector<128x16xf32>
    %c2 = arith.constant 2 : index
    %c0_13 = arith.constant 0 : index
    %c0_14 = arith.constant 0 : index
    %17 = vector.load %arg3[%c2, %c0_13, %c0_14] : memref<9x128x512xbf16, #tpu.memory_space<vmem>>, vector<1x128x512xbf16>
    %18 = vector.shape_cast %17 : vector<1x128x512xbf16> to vector<128x512xbf16>
    %19 = arith.extf %18 : vector<128x512xbf16> to vector<128x512xf32>
    %cst_15 = arith.constant dense<0.000000e+00> : vector<128x16xf32>
    %20 = tpu.matmul %19, %7, %cst_15 {dimension_numbers = #tpu.dot_dimension_numbers<[1], [0], [0], [1], [0, 0, 1, 1], [], []>} : vector<128x512xf32>, vector<512x16xf32>, vector<128x16xf32> -> vector<128x16xf32>
    %21 = arith.maximumf %16, %20 : vector<128x16xf32>
    %c3 = arith.constant 3 : index
    %c0_16 = arith.constant 0 : index
    %c0_17 = arith.constant 0 : index
    %22 = vector.load %arg3[%c3, %c0_16, %c0_17] : memref<9x128x512xbf16, #tpu.memory_space<vmem>>, vector<1x128x512xbf16>
    %23 = vector.shape_cast %22 : vector<1x128x512xbf16> to vector<128x512xbf16>
    %24 = arith.extf %23 : vector<128x512xbf16> to vector<128x512xf32>
    %cst_18 = arith.constant dense<0.000000e+00> : vector<128x16xf32>
    %25 = tpu.matmul %24, %7, %cst_18 {dimension_numbers = #tpu.dot_dimension_numbers<[1], [0], [0], [1], [0, 0, 1, 1], [], []>} : vector<128x512xf32>, vector<512x16xf32>, vector<128x16xf32> -> vector<128x16xf32>
    %26 = arith.maximumf %21, %25 : vector<128x16xf32>
    %c4 = arith.constant 4 : index
    %c0_19 = arith.constant 0 : index
    %c0_20 = arith.constant 0 : index
    %27 = vector.load %arg3[%c4, %c0_19, %c0_20] : memref<9x128x512xbf16, #tpu.memory_space<vmem>>, vector<1x128x512xbf16>
    %28 = vector.shape_cast %27 : vector<1x128x512xbf16> to vector<128x512xbf16>
    %29 = arith.extf %28 : vector<128x512xbf16> to vector<128x512xf32>
    %cst_21 = arith.constant dense<0.000000e+00> : vector<128x16xf32>
    %30 = tpu.matmul %29, %7, %cst_21 {dimension_numbers = #tpu.dot_dimension_numbers<[1], [0], [0], [1], [0, 0, 1, 1], [], []>} : vector<128x512xf32>, vector<512x16xf32>, vector<128x16xf32> -> vector<128x16xf32>
    %31 = arith.maximumf %26, %30 : vector<128x16xf32>
    %c5 = arith.constant 5 : index
    %c0_22 = arith.constant 0 : index
    %c0_23 = arith.constant 0 : index
    %32 = vector.load %arg3[%c5, %c0_22, %c0_23] : memref<9x128x512xbf16, #tpu.memory_space<vmem>>, vector<1x128x512xbf16>
    %33 = vector.shape_cast %32 : vector<1x128x512xbf16> to vector<128x512xbf16>
    %34 = arith.extf %33 : vector<128x512xbf16> to vector<128x512xf32>
    %cst_24 = arith.constant dense<0.000000e+00> : vector<128x16xf32>
    %35 = tpu.matmul %34, %7, %cst_24 {dimension_numbers = #tpu.dot_dimension_numbers<[1], [0], [0], [1], [0, 0, 1, 1], [], []>} : vector<128x512xf32>, vector<512x16xf32>, vector<128x16xf32> -> vector<128x16xf32>
    %36 = arith.maximumf %31, %35 : vector<128x16xf32>
    %c6 = arith.constant 6 : index
    %c0_25 = arith.constant 0 : index
    %c0_26 = arith.constant 0 : index
    %37 = vector.load %arg3[%c6, %c0_25, %c0_26] : memref<9x128x512xbf16, #tpu.memory_space<vmem>>, vector<1x128x512xbf16>
    %38 = vector.shape_cast %37 : vector<1x128x512xbf16> to vector<128x512xbf16>
    %39 = arith.extf %38 : vector<128x512xbf16> to vector<128x512xf32>
    %cst_27 = arith.constant dense<0.000000e+00> : vector<128x16xf32>
    %40 = tpu.matmul %39, %7, %cst_27 {dimension_numbers = #tpu.dot_dimension_numbers<[1], [0], [0], [1], [0, 0, 1, 1], [], []>} : vector<128x512xf32>, vector<512x16xf32>, vector<128x16xf32> -> vector<128x16xf32>
    %41 = arith.maximumf %36, %40 : vector<128x16xf32>
    %c7 = arith.constant 7 : index
    %c0_28 = arith.constant 0 : index
    %c0_29 = arith.constant 0 : index
    %42 = vector.load %arg3[%c7, %c0_28, %c0_29] : memref<9x128x512xbf16, #tpu.memory_space<vmem>>, vector<1x128x512xbf16>
    %43 = vector.shape_cast %42 : vector<1x128x512xbf16> to vector<128x512xbf16>
    %44 = arith.extf %43 : vector<128x512xbf16> to vector<128x512xf32>
    %cst_30 = arith.constant dense<0.000000e+00> : vector<128x16xf32>
    %45 = tpu.matmul %44, %7, %cst_30 {dimension_numbers = #tpu.dot_dimension_numbers<[1], [0], [0], [1], [0, 0, 1, 1], [], []>} : vector<128x512xf32>, vector<512x16xf32>, vector<128x16xf32> -> vector<128x16xf32>
    %46 = arith.maximumf %41, %45 : vector<128x16xf32>
    %c8 = arith.constant 8 : index
    %c0_31 = arith.constant 0 : index
    %c0_32 = arith.constant 0 : index
    %47 = vector.load %arg3[%c8, %c0_31, %c0_32] : memref<9x128x512xbf16, #tpu.memory_space<vmem>>, vector<1x128x512xbf16>
    %48 = vector.shape_cast %47 : vector<1x128x512xbf16> to vector<128x512xbf16>
    %49 = arith.extf %48 : vector<128x512xbf16> to vector<128x512xf32>
    %cst_33 = arith.constant dense<0.000000e+00> : vector<128x16xf32>
    %50 = tpu.matmul %49, %7, %cst_33 {dimension_numbers = #tpu.dot_dimension_numbers<[1], [0], [0], [1], [0, 0, 1, 1], [], []>} : vector<128x512xf32>, vector<512x16xf32>, vector<128x16xf32> -> vector<128x16xf32>
    %51 = arith.maximumf %46, %50 : vector<128x16xf32>
    %cst_34 = arith.constant 0.000000e+00 : f32
    %52 = vector.broadcast %cst_34 : f32 to vector<32x32xf32>
    %c0_35 = arith.constant 0 : index
    %c0_36 = arith.constant 0 : index
    %c0_37 = arith.constant 0 : index
    %53 = vector.load %arg6[%c0_35, %c0_36, %c0_37] : memref<25x32x128xbf16, #tpu.memory_space<vmem>>, vector<1x32x128xbf16>
    %54 = vector.shape_cast %53 : vector<1x32x128xbf16> to vector<32x128xbf16>
    %55 = arith.extf %54 : vector<32x128xbf16> to vector<32x128xf32>
    %cst_38 = arith.constant dense<0.000000e+00> : vector<32x16xf32>
    %56 = tpu.matmul %55, %51, %cst_38 {dimension_numbers = #tpu.dot_dimension_numbers<[1], [0], [0], [1], [0, 0, 1, 1], [], []>} : vector<32x128xf32>, vector<128x16xf32>, vector<32x16xf32> -> vector<32x16xf32>
    %c0_39 = arith.constant 0 : index
    %c0_40 = arith.constant 0 : index
    %c0_41 = arith.constant 0 : index
    %57 = vector.load %arg4[%c0_39, %c0_40, %c0_41] : memref<25x16x32xf32, #tpu.memory_space<vmem>>, vector<1x16x32xf32>
    %58 = vector.shape_cast %57 : vector<1x16x32xf32> to vector<16x32xf32>
    %cst_42 = arith.constant dense<0.000000e+00> : vector<32x32xf32>
    %59 = tpu.matmul %56, %58, %cst_42 {dimension_numbers = #tpu.dot_dimension_numbers<[1], [0], [0], [1], [0, 0, 1, 1], [], []>} : vector<32x16xf32>, vector<16x32xf32>, vector<32x32xf32> -> vector<32x32xf32>
    %60 = arith.addf %52, %59 : vector<32x32xf32>
    %c1_43 = arith.constant 1 : index
    %c0_44 = arith.constant 0 : index
    %c0_45 = arith.constant 0 : index
    %61 = vector.load %arg6[%c1_43, %c0_44, %c0_45] : memref<25x32x128xbf16, #tpu.memory_space<vmem>>, vector<1x32x128xbf16>
    %62 = vector.shape_cast %61 : vector<1x32x128xbf16> to vector<32x128xbf16>
    %63 = arith.extf %62 : vector<32x128xbf16> to vector<32x128xf32>
    %cst_46 = arith.constant dense<0.000000e+00> : vector<32x16xf32>
    %64 = tpu.matmul %63, %51, %cst_46 {dimension_numbers = #tpu.dot_dimension_numbers<[1], [0], [0], [1], [0, 0, 1, 1], [], []>} : vector<32x128xf32>, vector<128x16xf32>, vector<32x16xf32> -> vector<32x16xf32>
    %c1_47 = arith.constant 1 : index
    %c0_48 = arith.constant 0 : index
    %c0_49 = arith.constant 0 : index
    %65 = vector.load %arg4[%c1_47, %c0_48, %c0_49] : memref<25x16x32xf32, #tpu.memory_space<vmem>>, vector<1x16x32xf32>
    %66 = vector.shape_cast %65 : vector<1x16x32xf32> to vector<16x32xf32>
    %cst_50 = arith.constant dense<0.000000e+00> : vector<32x32xf32>
    %67 = tpu.matmul %64, %66, %cst_50 {dimension_numbers = #tpu.dot_dimension_numbers<[1], [0], [0], [1], [0, 0, 1, 1], [], []>} : vector<32x16xf32>, vector<16x32xf32>, vector<32x32xf32> -> vector<32x32xf32>
    %68 = arith.addf %60, %67 : vector<32x32xf32>
    %c2_51 = arith.constant 2 : index
    %c0_52 = arith.constant 0 : index
    %c0_53 = arith.constant 0 : index
    %69 = vector.load %arg6[%c2_51, %c0_52, %c0_53] : memref<25x32x128xbf16, #tpu.memory_space<vmem>>, vector<1x32x128xbf16>
    %70 = vector.shape_cast %69 : vector<1x32x128xbf16> to vector<32x128xbf16>
    %71 = arith.extf %70 : vector<32x128xbf16> to vector<32x128xf32>
    %cst_54 = arith.constant dense<0.000000e+00> : vector<32x16xf32>
    %72 = tpu.matmul %71, %51, %cst_54 {dimension_numbers = #tpu.dot_dimension_numbers<[1], [0], [0], [1], [0, 0, 1, 1], [], []>} : vector<32x128xf32>, vector<128x16xf32>, vector<32x16xf32> -> vector<32x16xf32>
    %c2_55 = arith.constant 2 : index
    %c0_56 = arith.constant 0 : index
    %c0_57 = arith.constant 0 : index
    %73 = vector.load %arg4[%c2_55, %c0_56, %c0_57] : memref<25x16x32xf32, #tpu.memory_space<vmem>>, vector<1x16x32xf32>
    %74 = vector.shape_cast %73 : vector<1x16x32xf32> to vector<16x32xf32>
    %cst_58 = arith.constant dense<0.000000e+00> : vector<32x32xf32>
    %75 = tpu.matmul %72, %74, %cst_58 {dimension_numbers = #tpu.dot_dimension_numbers<[1], [0], [0], [1], [0, 0, 1, 1], [], []>} : vector<32x16xf32>, vector<16x32xf32>, vector<32x32xf32> -> vector<32x32xf32>
    %76 = arith.addf %68, %75 : vector<32x32xf32>
    %c3_59 = arith.constant 3 : index
    %c0_60 = arith.constant 0 : index
    %c0_61 = arith.constant 0 : index
    %77 = vector.load %arg6[%c3_59, %c0_60, %c0_61] : memref<25x32x128xbf16, #tpu.memory_space<vmem>>, vector<1x32x128xbf16>
    %78 = vector.shape_cast %77 : vector<1x32x128xbf16> to vector<32x128xbf16>
    %79 = arith.extf %78 : vector<32x128xbf16> to vector<32x128xf32>
    %cst_62 = arith.constant dense<0.000000e+00> : vector<32x16xf32>
    %80 = tpu.matmul %79, %51, %cst_62 {dimension_numbers = #tpu.dot_dimension_numbers<[1], [0], [0], [1], [0, 0, 1, 1], [], []>} : vector<32x128xf32>, vector<128x16xf32>, vector<32x16xf32> -> vector<32x16xf32>
    %c3_63 = arith.constant 3 : index
    %c0_64 = arith.constant 0 : index
    %c0_65 = arith.constant 0 : index
    %81 = vector.load %arg4[%c3_63, %c0_64, %c0_65] : memref<25x16x32xf32, #tpu.memory_space<vmem>>, vector<1x16x32xf32>
    %82 = vector.shape_cast %81 : vector<1x16x32xf32> to vector<16x32xf32>
    %cst_66 = arith.constant dense<0.000000e+00> : vector<32x32xf32>
    %83 = tpu.matmul %80, %82, %cst_66 {dimension_numbers = #tpu.dot_dimension_numbers<[1], [0], [0], [1], [0, 0, 1, 1], [], []>} : vector<32x16xf32>, vector<16x32xf32>, vector<32x32xf32> -> vector<32x32xf32>
    %84 = arith.addf %76, %83 : vector<32x32xf32>
    %c4_67 = arith.constant 4 : index
    %c0_68 = arith.constant 0 : index
    %c0_69 = arith.constant 0 : index
    %85 = vector.load %arg6[%c4_67, %c0_68, %c0_69] : memref<25x32x128xbf16, #tpu.memory_space<vmem>>, vector<1x32x128xbf16>
    %86 = vector.shape_cast %85 : vector<1x32x128xbf16> to vector<32x128xbf16>
    %87 = arith.extf %86 : vector<32x128xbf16> to vector<32x128xf32>
    %cst_70 = arith.constant dense<0.000000e+00> : vector<32x16xf32>
    %88 = tpu.matmul %87, %51, %cst_70 {dimension_numbers = #tpu.dot_dimension_numbers<[1], [0], [0], [1], [0, 0, 1, 1], [], []>} : vector<32x128xf32>, vector<128x16xf32>, vector<32x16xf32> -> vector<32x16xf32>
    %c4_71 = arith.constant 4 : index
    %c0_72 = arith.constant 0 : index
    %c0_73 = arith.constant 0 : index
    %89 = vector.load %arg4[%c4_71, %c0_72, %c0_73] : memref<25x16x32xf32, #tpu.memory_space<vmem>>, vector<1x16x32xf32>
    %90 = vector.shape_cast %89 : vector<1x16x32xf32> to vector<16x32xf32>
    %cst_74 = arith.constant dense<0.000000e+00> : vector<32x32xf32>
    %91 = tpu.matmul %88, %90, %cst_74 {dimension_numbers = #tpu.dot_dimension_numbers<[1], [0], [0], [1], [0, 0, 1, 1], [], []>} : vector<32x16xf32>, vector<16x32xf32>, vector<32x32xf32> -> vector<32x32xf32>
    %92 = arith.addf %84, %91 : vector<32x32xf32>
    %c5_75 = arith.constant 5 : index
    %c0_76 = arith.constant 0 : index
    %c0_77 = arith.constant 0 : index
    %93 = vector.load %arg6[%c5_75, %c0_76, %c0_77] : memref<25x32x128xbf16, #tpu.memory_space<vmem>>, vector<1x32x128xbf16>
    %94 = vector.shape_cast %93 : vector<1x32x128xbf16> to vector<32x128xbf16>
    %95 = arith.extf %94 : vector<32x128xbf16> to vector<32x128xf32>
    %cst_78 = arith.constant dense<0.000000e+00> : vector<32x16xf32>
    %96 = tpu.matmul %95, %51, %cst_78 {dimension_numbers = #tpu.dot_dimension_numbers<[1], [0], [0], [1], [0, 0, 1, 1], [], []>} : vector<32x128xf32>, vector<128x16xf32>, vector<32x16xf32> -> vector<32x16xf32>
    %c5_79 = arith.constant 5 : index
    %c0_80 = arith.constant 0 : index
    %c0_81 = arith.constant 0 : index
    %97 = vector.load %arg4[%c5_79, %c0_80, %c0_81] : memref<25x16x32xf32, #tpu.memory_space<vmem>>, vector<1x16x32xf32>
    %98 = vector.shape_cast %97 : vector<1x16x32xf32> to vector<16x32xf32>
    %cst_82 = arith.constant dense<0.000000e+00> : vector<32x32xf32>
    %99 = tpu.matmul %96, %98, %cst_82 {dimension_numbers = #tpu.dot_dimension_numbers<[1], [0], [0], [1], [0, 0, 1, 1], [], []>} : vector<32x16xf32>, vector<16x32xf32>, vector<32x32xf32> -> vector<32x32xf32>
    %100 = arith.addf %92, %99 : vector<32x32xf32>
    %c6_83 = arith.constant 6 : index
    %c0_84 = arith.constant 0 : index
    %c0_85 = arith.constant 0 : index
    %101 = vector.load %arg6[%c6_83, %c0_84, %c0_85] : memref<25x32x128xbf16, #tpu.memory_space<vmem>>, vector<1x32x128xbf16>
    %102 = vector.shape_cast %101 : vector<1x32x128xbf16> to vector<32x128xbf16>
    %103 = arith.extf %102 : vector<32x128xbf16> to vector<32x128xf32>
    %cst_86 = arith.constant dense<0.000000e+00> : vector<32x16xf32>
    %104 = tpu.matmul %103, %51, %cst_86 {dimension_numbers = #tpu.dot_dimension_numbers<[1], [0], [0], [1], [0, 0, 1, 1], [], []>} : vector<32x128xf32>, vector<128x16xf32>, vector<32x16xf32> -> vector<32x16xf32>
    %c6_87 = arith.constant 6 : index
    %c0_88 = arith.constant 0 : index
    %c0_89 = arith.constant 0 : index
    %105 = vector.load %arg4[%c6_87, %c0_88, %c0_89] : memref<25x16x32xf32, #tpu.memory_space<vmem>>, vector<1x16x32xf32>
    %106 = vector.shape_cast %105 : vector<1x16x32xf32> to vector<16x32xf32>
    %cst_90 = arith.constant dense<0.000000e+00> : vector<32x32xf32>
    %107 = tpu.matmul %104, %106, %cst_90 {dimension_numbers = #tpu.dot_dimension_numbers<[1], [0], [0], [1], [0, 0, 1, 1], [], []>} : vector<32x16xf32>, vector<16x32xf32>, vector<32x32xf32> -> vector<32x32xf32>
    %108 = arith.addf %100, %107 : vector<32x32xf32>
    %c7_91 = arith.constant 7 : index
    %c0_92 = arith.constant 0 : index
    %c0_93 = arith.constant 0 : index
    %109 = vector.load %arg6[%c7_91, %c0_92, %c0_93] : memref<25x32x128xbf16, #tpu.memory_space<vmem>>, vector<1x32x128xbf16>
    %110 = vector.shape_cast %109 : vector<1x32x128xbf16> to vector<32x128xbf16>
    %111 = arith.extf %110 : vector<32x128xbf16> to vector<32x128xf32>
    %cst_94 = arith.constant dense<0.000000e+00> : vector<32x16xf32>
    %112 = tpu.matmul %111, %51, %cst_94 {dimension_numbers = #tpu.dot_dimension_numbers<[1], [0], [0], [1], [0, 0, 1, 1], [], []>} : vector<32x128xf32>, vector<128x16xf32>, vector<32x16xf32> -> vector<32x16xf32>
    %c7_95 = arith.constant 7 : index
    %c0_96 = arith.constant 0 : index
    %c0_97 = arith.constant 0 : index
    %113 = vector.load %arg4[%c7_95, %c0_96, %c0_97] : memref<25x16x32xf32, #tpu.memory_space<vmem>>, vector<1x16x32xf32>
    %114 = vector.shape_cast %113 : vector<1x16x32xf32> to vector<16x32xf32>
    %cst_98 = arith.constant dense<0.000000e+00> : vector<32x32xf32>
    %115 = tpu.matmul %112, %114, %cst_98 {dimension_numbers = #tpu.dot_dimension_numbers<[1], [0], [0], [1], [0, 0, 1, 1], [], []>} : vector<32x16xf32>, vector<16x32xf32>, vector<32x32xf32> -> vector<32x32xf32>
    %116 = arith.addf %108, %115 : vector<32x32xf32>
    %c8_99 = arith.constant 8 : index
    %c0_100 = arith.constant 0 : index
    %c0_101 = arith.constant 0 : index
    %117 = vector.load %arg6[%c8_99, %c0_100, %c0_101] : memref<25x32x128xbf16, #tpu.memory_space<vmem>>, vector<1x32x128xbf16>
    %118 = vector.shape_cast %117 : vector<1x32x128xbf16> to vector<32x128xbf16>
    %119 = arith.extf %118 : vector<32x128xbf16> to vector<32x128xf32>
    %cst_102 = arith.constant dense<0.000000e+00> : vector<32x16xf32>
    %120 = tpu.matmul %119, %51, %cst_102 {dimension_numbers = #tpu.dot_dimension_numbers<[1], [0], [0], [1], [0, 0, 1, 1], [], []>} : vector<32x128xf32>, vector<128x16xf32>, vector<32x16xf32> -> vector<32x16xf32>
    %c8_103 = arith.constant 8 : index
    %c0_104 = arith.constant 0 : index
    %c0_105 = arith.constant 0 : index
    %121 = vector.load %arg4[%c8_103, %c0_104, %c0_105] : memref<25x16x32xf32, #tpu.memory_space<vmem>>, vector<1x16x32xf32>
    %122 = vector.shape_cast %121 : vector<1x16x32xf32> to vector<16x32xf32>
    %cst_106 = arith.constant dense<0.000000e+00> : vector<32x32xf32>
    %123 = tpu.matmul %120, %122, %cst_106 {dimension_numbers = #tpu.dot_dimension_numbers<[1], [0], [0], [1], [0, 0, 1, 1], [], []>} : vector<32x16xf32>, vector<16x32xf32>, vector<32x32xf32> -> vector<32x32xf32>
    %124 = arith.addf %116, %123 : vector<32x32xf32>
    %c9 = arith.constant 9 : index
    %c0_107 = arith.constant 0 : index
    %c0_108 = arith.constant 0 : index
    %125 = vector.load %arg6[%c9, %c0_107, %c0_108] : memref<25x32x128xbf16, #tpu.memory_space<vmem>>, vector<1x32x128xbf16>
    %126 = vector.shape_cast %125 : vector<1x32x128xbf16> to vector<32x128xbf16>
    %127 = arith.extf %126 : vector<32x128xbf16> to vector<32x128xf32>
    %cst_109 = arith.constant dense<0.000000e+00> : vector<32x16xf32>
    %128 = tpu.matmul %127, %51, %cst_109 {dimension_numbers = #tpu.dot_dimension_numbers<[1], [0], [0], [1], [0, 0, 1, 1], [], []>} : vector<32x128xf32>, vector<128x16xf32>, vector<32x16xf32> -> vector<32x16xf32>
    %c9_110 = arith.constant 9 : index
    %c0_111 = arith.constant 0 : index
    %c0_112 = arith.constant 0 : index
    %129 = vector.load %arg4[%c9_110, %c0_111, %c0_112] : memref<25x16x32xf32, #tpu.memory_space<vmem>>, vector<1x16x32xf32>
    %130 = vector.shape_cast %129 : vector<1x16x32xf32> to vector<16x32xf32>
    %cst_113 = arith.constant dense<0.000000e+00> : vector<32x32xf32>
    %131 = tpu.matmul %128, %130, %cst_113 {dimension_numbers = #tpu.dot_dimension_numbers<[1], [0], [0], [1], [0, 0, 1, 1], [], []>} : vector<32x16xf32>, vector<16x32xf32>, vector<32x32xf32> -> vector<32x32xf32>
    %132 = arith.addf %124, %131 : vector<32x32xf32>
    %c10 = arith.constant 10 : index
    %c0_114 = arith.constant 0 : index
    %c0_115 = arith.constant 0 : index
    %133 = vector.load %arg6[%c10, %c0_114, %c0_115] : memref<25x32x128xbf16, #tpu.memory_space<vmem>>, vector<1x32x128xbf16>
    %134 = vector.shape_cast %133 : vector<1x32x128xbf16> to vector<32x128xbf16>
    %135 = arith.extf %134 : vector<32x128xbf16> to vector<32x128xf32>
    %cst_116 = arith.constant dense<0.000000e+00> : vector<32x16xf32>
    %136 = tpu.matmul %135, %51, %cst_116 {dimension_numbers = #tpu.dot_dimension_numbers<[1], [0], [0], [1], [0, 0, 1, 1], [], []>} : vector<32x128xf32>, vector<128x16xf32>, vector<32x16xf32> -> vector<32x16xf32>
    %c10_117 = arith.constant 10 : index
    %c0_118 = arith.constant 0 : index
    %c0_119 = arith.constant 0 : index
    %137 = vector.load %arg4[%c10_117, %c0_118, %c0_119] : memref<25x16x32xf32, #tpu.memory_space<vmem>>, vector<1x16x32xf32>
    %138 = vector.shape_cast %137 : vector<1x16x32xf32> to vector<16x32xf32>
    %cst_120 = arith.constant dense<0.000000e+00> : vector<32x32xf32>
    %139 = tpu.matmul %136, %138, %cst_120 {dimension_numbers = #tpu.dot_dimension_numbers<[1], [0], [0], [1], [0, 0, 1, 1], [], []>} : vector<32x16xf32>, vector<16x32xf32>, vector<32x32xf32> -> vector<32x32xf32>
    %140 = arith.addf %132, %139 : vector<32x32xf32>
    %c11 = arith.constant 11 : index
    %c0_121 = arith.constant 0 : index
    %c0_122 = arith.constant 0 : index
    %141 = vector.load %arg6[%c11, %c0_121, %c0_122] : memref<25x32x128xbf16, #tpu.memory_space<vmem>>, vector<1x32x128xbf16>
    %142 = vector.shape_cast %141 : vector<1x32x128xbf16> to vector<32x128xbf16>
    %143 = arith.extf %142 : vector<32x128xbf16> to vector<32x128xf32>
    %cst_123 = arith.constant dense<0.000000e+00> : vector<32x16xf32>
    %144 = tpu.matmul %143, %51, %cst_123 {dimension_numbers = #tpu.dot_dimension_numbers<[1], [0], [0], [1], [0, 0, 1, 1], [], []>} : vector<32x128xf32>, vector<128x16xf32>, vector<32x16xf32> -> vector<32x16xf32>
    %c11_124 = arith.constant 11 : index
    %c0_125 = arith.constant 0 : index
    %c0_126 = arith.constant 0 : index
    %145 = vector.load %arg4[%c11_124, %c0_125, %c0_126] : memref<25x16x32xf32, #tpu.memory_space<vmem>>, vector<1x16x32xf32>
    %146 = vector.shape_cast %145 : vector<1x16x32xf32> to vector<16x32xf32>
    %cst_127 = arith.constant dense<0.000000e+00> : vector<32x32xf32>
    %147 = tpu.matmul %144, %146, %cst_127 {dimension_numbers = #tpu.dot_dimension_numbers<[1], [0], [0], [1], [0, 0, 1, 1], [], []>} : vector<32x16xf32>, vector<16x32xf32>, vector<32x32xf32> -> vector<32x32xf32>
    %148 = arith.addf %140, %147 : vector<32x32xf32>
    %c12 = arith.constant 12 : index
    %c0_128 = arith.constant 0 : index
    %c0_129 = arith.constant 0 : index
    %149 = vector.load %arg6[%c12, %c0_128, %c0_129] : memref<25x32x128xbf16, #tpu.memory_space<vmem>>, vector<1x32x128xbf16>
    %150 = vector.shape_cast %149 : vector<1x32x128xbf16> to vector<32x128xbf16>
    %151 = arith.extf %150 : vector<32x128xbf16> to vector<32x128xf32>
    %cst_130 = arith.constant dense<0.000000e+00> : vector<32x16xf32>
    %152 = tpu.matmul %151, %51, %cst_130 {dimension_numbers = #tpu.dot_dimension_numbers<[1], [0], [0], [1], [0, 0, 1, 1], [], []>} : vector<32x128xf32>, vector<128x16xf32>, vector<32x16xf32> -> vector<32x16xf32>
    %c12_131 = arith.constant 12 : index
    %c0_132 = arith.constant 0 : index
    %c0_133 = arith.constant 0 : index
    %153 = vector.load %arg4[%c12_131, %c0_132, %c0_133] : memref<25x16x32xf32, #tpu.memory_space<vmem>>, vector<1x16x32xf32>
    %154 = vector.shape_cast %153 : vector<1x16x32xf32> to vector<16x32xf32>
    %cst_134 = arith.constant dense<0.000000e+00> : vector<32x32xf32>
    %155 = tpu.matmul %152, %154, %cst_134 {dimension_numbers = #tpu.dot_dimension_numbers<[1], [0], [0], [1], [0, 0, 1, 1], [], []>} : vector<32x16xf32>, vector<16x32xf32>, vector<32x32xf32> -> vector<32x32xf32>
    %156 = arith.addf %148, %155 : vector<32x32xf32>
    %c13 = arith.constant 13 : index
    %c0_135 = arith.constant 0 : index
    %c0_136 = arith.constant 0 : index
    %157 = vector.load %arg6[%c13, %c0_135, %c0_136] : memref<25x32x128xbf16, #tpu.memory_space<vmem>>, vector<1x32x128xbf16>
    %158 = vector.shape_cast %157 : vector<1x32x128xbf16> to vector<32x128xbf16>
    %159 = arith.extf %158 : vector<32x128xbf16> to vector<32x128xf32>
    %cst_137 = arith.constant dense<0.000000e+00> : vector<32x16xf32>
    %160 = tpu.matmul %159, %51, %cst_137 {dimension_numbers = #tpu.dot_dimension_numbers<[1], [0], [0], [1], [0, 0, 1, 1], [], []>} : vector<32x128xf32>, vector<128x16xf32>, vector<32x16xf32> -> vector<32x16xf32>
    %c13_138 = arith.constant 13 : index
    %c0_139 = arith.constant 0 : index
    %c0_140 = arith.constant 0 : index
    %161 = vector.load %arg4[%c13_138, %c0_139, %c0_140] : memref<25x16x32xf32, #tpu.memory_space<vmem>>, vector<1x16x32xf32>
    %162 = vector.shape_cast %161 : vector<1x16x32xf32> to vector<16x32xf32>
    %cst_141 = arith.constant dense<0.000000e+00> : vector<32x32xf32>
    %163 = tpu.matmul %160, %162, %cst_141 {dimension_numbers = #tpu.dot_dimension_numbers<[1], [0], [0], [1], [0, 0, 1, 1], [], []>} : vector<32x16xf32>, vector<16x32xf32>, vector<32x32xf32> -> vector<32x32xf32>
    %164 = arith.addf %156, %163 : vector<32x32xf32>
    %c14 = arith.constant 14 : index
    %c0_142 = arith.constant 0 : index
    %c0_143 = arith.constant 0 : index
    %165 = vector.load %arg6[%c14, %c0_142, %c0_143] : memref<25x32x128xbf16, #tpu.memory_space<vmem>>, vector<1x32x128xbf16>
    %166 = vector.shape_cast %165 : vector<1x32x128xbf16> to vector<32x128xbf16>
    %167 = arith.extf %166 : vector<32x128xbf16> to vector<32x128xf32>
    %cst_144 = arith.constant dense<0.000000e+00> : vector<32x16xf32>
    %168 = tpu.matmul %167, %51, %cst_144 {dimension_numbers = #tpu.dot_dimension_numbers<[1], [0], [0], [1], [0, 0, 1, 1], [], []>} : vector<32x128xf32>, vector<128x16xf32>, vector<32x16xf32> -> vector<32x16xf32>
    %c14_145 = arith.constant 14 : index
    %c0_146 = arith.constant 0 : index
    %c0_147 = arith.constant 0 : index
    %169 = vector.load %arg4[%c14_145, %c0_146, %c0_147] : memref<25x16x32xf32, #tpu.memory_space<vmem>>, vector<1x16x32xf32>
    %170 = vector.shape_cast %169 : vector<1x16x32xf32> to vector<16x32xf32>
    %cst_148 = arith.constant dense<0.000000e+00> : vector<32x32xf32>
    %171 = tpu.matmul %168, %170, %cst_148 {dimension_numbers = #tpu.dot_dimension_numbers<[1], [0], [0], [1], [0, 0, 1, 1], [], []>} : vector<32x16xf32>, vector<16x32xf32>, vector<32x32xf32> -> vector<32x32xf32>
    %172 = arith.addf %164, %171 : vector<32x32xf32>
    %c15 = arith.constant 15 : index
    %c0_149 = arith.constant 0 : index
    %c0_150 = arith.constant 0 : index
    %173 = vector.load %arg6[%c15, %c0_149, %c0_150] : memref<25x32x128xbf16, #tpu.memory_space<vmem>>, vector<1x32x128xbf16>
    %174 = vector.shape_cast %173 : vector<1x32x128xbf16> to vector<32x128xbf16>
    %175 = arith.extf %174 : vector<32x128xbf16> to vector<32x128xf32>
    %cst_151 = arith.constant dense<0.000000e+00> : vector<32x16xf32>
    %176 = tpu.matmul %175, %51, %cst_151 {dimension_numbers = #tpu.dot_dimension_numbers<[1], [0], [0], [1], [0, 0, 1, 1], [], []>} : vector<32x128xf32>, vector<128x16xf32>, vector<32x16xf32> -> vector<32x16xf32>
    %c15_152 = arith.constant 15 : index
    %c0_153 = arith.constant 0 : index
    %c0_154 = arith.constant 0 : index
    %177 = vector.load %arg4[%c15_152, %c0_153, %c0_154] : memref<25x16x32xf32, #tpu.memory_space<vmem>>, vector<1x16x32xf32>
    %178 = vector.shape_cast %177 : vector<1x16x32xf32> to vector<16x32xf32>
    %cst_155 = arith.constant dense<0.000000e+00> : vector<32x32xf32>
    %179 = tpu.matmul %176, %178, %cst_155 {dimension_numbers = #tpu.dot_dimension_numbers<[1], [0], [0], [1], [0, 0, 1, 1], [], []>} : vector<32x16xf32>, vector<16x32xf32>, vector<32x32xf32> -> vector<32x32xf32>
    %180 = arith.addf %172, %179 : vector<32x32xf32>
    %c16 = arith.constant 16 : index
    %c0_156 = arith.constant 0 : index
    %c0_157 = arith.constant 0 : index
    %181 = vector.load %arg6[%c16, %c0_156, %c0_157] : memref<25x32x128xbf16, #tpu.memory_space<vmem>>, vector<1x32x128xbf16>
    %182 = vector.shape_cast %181 : vector<1x32x128xbf16> to vector<32x128xbf16>
    %183 = arith.extf %182 : vector<32x128xbf16> to vector<32x128xf32>
    %cst_158 = arith.constant dense<0.000000e+00> : vector<32x16xf32>
    %184 = tpu.matmul %183, %51, %cst_158 {dimension_numbers = #tpu.dot_dimension_numbers<[1], [0], [0], [1], [0, 0, 1, 1], [], []>} : vector<32x128xf32>, vector<128x16xf32>, vector<32x16xf32> -> vector<32x16xf32>
    %c16_159 = arith.constant 16 : index
    %c0_160 = arith.constant 0 : index
    %c0_161 = arith.constant 0 : index
    %185 = vector.load %arg4[%c16_159, %c0_160, %c0_161] : memref<25x16x32xf32, #tpu.memory_space<vmem>>, vector<1x16x32xf32>
    %186 = vector.shape_cast %185 : vector<1x16x32xf32> to vector<16x32xf32>
    %cst_162 = arith.constant dense<0.000000e+00> : vector<32x32xf32>
    %187 = tpu.matmul %184, %186, %cst_162 {dimension_numbers = #tpu.dot_dimension_numbers<[1], [0], [0], [1], [0, 0, 1, 1], [], []>} : vector<32x16xf32>, vector<16x32xf32>, vector<32x32xf32> -> vector<32x32xf32>
    %188 = arith.addf %180, %187 : vector<32x32xf32>
    %c17 = arith.constant 17 : index
    %c0_163 = arith.constant 0 : index
    %c0_164 = arith.constant 0 : index
    %189 = vector.load %arg6[%c17, %c0_163, %c0_164] : memref<25x32x128xbf16, #tpu.memory_space<vmem>>, vector<1x32x128xbf16>
    %190 = vector.shape_cast %189 : vector<1x32x128xbf16> to vector<32x128xbf16>
    %191 = arith.extf %190 : vector<32x128xbf16> to vector<32x128xf32>
    %cst_165 = arith.constant dense<0.000000e+00> : vector<32x16xf32>
    %192 = tpu.matmul %191, %51, %cst_165 {dimension_numbers = #tpu.dot_dimension_numbers<[1], [0], [0], [1], [0, 0, 1, 1], [], []>} : vector<32x128xf32>, vector<128x16xf32>, vector<32x16xf32> -> vector<32x16xf32>
    %c17_166 = arith.constant 17 : index
    %c0_167 = arith.constant 0 : index
    %c0_168 = arith.constant 0 : index
    %193 = vector.load %arg4[%c17_166, %c0_167, %c0_168] : memref<25x16x32xf32, #tpu.memory_space<vmem>>, vector<1x16x32xf32>
    %194 = vector.shape_cast %193 : vector<1x16x32xf32> to vector<16x32xf32>
    %cst_169 = arith.constant dense<0.000000e+00> : vector<32x32xf32>
    %195 = tpu.matmul %192, %194, %cst_169 {dimension_numbers = #tpu.dot_dimension_numbers<[1], [0], [0], [1], [0, 0, 1, 1], [], []>} : vector<32x16xf32>, vector<16x32xf32>, vector<32x32xf32> -> vector<32x32xf32>
    %196 = arith.addf %188, %195 : vector<32x32xf32>
    %c18 = arith.constant 18 : index
    %c0_170 = arith.constant 0 : index
    %c0_171 = arith.constant 0 : index
    %197 = vector.load %arg6[%c18, %c0_170, %c0_171] : memref<25x32x128xbf16, #tpu.memory_space<vmem>>, vector<1x32x128xbf16>
    %198 = vector.shape_cast %197 : vector<1x32x128xbf16> to vector<32x128xbf16>
    %199 = arith.extf %198 : vector<32x128xbf16> to vector<32x128xf32>
    %cst_172 = arith.constant dense<0.000000e+00> : vector<32x16xf32>
    %200 = tpu.matmul %199, %51, %cst_172 {dimension_numbers = #tpu.dot_dimension_numbers<[1], [0], [0], [1], [0, 0, 1, 1], [], []>} : vector<32x128xf32>, vector<128x16xf32>, vector<32x16xf32> -> vector<32x16xf32>
    %c18_173 = arith.constant 18 : index
    %c0_174 = arith.constant 0 : index
    %c0_175 = arith.constant 0 : index
    %201 = vector.load %arg4[%c18_173, %c0_174, %c0_175] : memref<25x16x32xf32, #tpu.memory_space<vmem>>, vector<1x16x32xf32>
    %202 = vector.shape_cast %201 : vector<1x16x32xf32> to vector<16x32xf32>
    %cst_176 = arith.constant dense<0.000000e+00> : vector<32x32xf32>
    %203 = tpu.matmul %200, %202, %cst_176 {dimension_numbers = #tpu.dot_dimension_numbers<[1], [0], [0], [1], [0, 0, 1, 1], [], []>} : vector<32x16xf32>, vector<16x32xf32>, vector<32x32xf32> -> vector<32x32xf32>
    %204 = arith.addf %196, %203 : vector<32x32xf32>
    %c19 = arith.constant 19 : index
    %c0_177 = arith.constant 0 : index
    %c0_178 = arith.constant 0 : index
    %205 = vector.load %arg6[%c19, %c0_177, %c0_178] : memref<25x32x128xbf16, #tpu.memory_space<vmem>>, vector<1x32x128xbf16>
    %206 = vector.shape_cast %205 : vector<1x32x128xbf16> to vector<32x128xbf16>
    %207 = arith.extf %206 : vector<32x128xbf16> to vector<32x128xf32>
    %cst_179 = arith.constant dense<0.000000e+00> : vector<32x16xf32>
    %208 = tpu.matmul %207, %51, %cst_179 {dimension_numbers = #tpu.dot_dimension_numbers<[1], [0], [0], [1], [0, 0, 1, 1], [], []>} : vector<32x128xf32>, vector<128x16xf32>, vector<32x16xf32> -> vector<32x16xf32>
    %c19_180 = arith.constant 19 : index
    %c0_181 = arith.constant 0 : index
    %c0_182 = arith.constant 0 : index
    %209 = vector.load %arg4[%c19_180, %c0_181, %c0_182] : memref<25x16x32xf32, #tpu.memory_space<vmem>>, vector<1x16x32xf32>
    %210 = vector.shape_cast %209 : vector<1x16x32xf32> to vector<16x32xf32>
    %cst_183 = arith.constant dense<0.000000e+00> : vector<32x32xf32>
    %211 = tpu.matmul %208, %210, %cst_183 {dimension_numbers = #tpu.dot_dimension_numbers<[1], [0], [0], [1], [0, 0, 1, 1], [], []>} : vector<32x16xf32>, vector<16x32xf32>, vector<32x32xf32> -> vector<32x32xf32>
    %212 = arith.addf %204, %211 : vector<32x32xf32>
    %c20 = arith.constant 20 : index
    %c0_184 = arith.constant 0 : index
    %c0_185 = arith.constant 0 : index
    %213 = vector.load %arg6[%c20, %c0_184, %c0_185] : memref<25x32x128xbf16, #tpu.memory_space<vmem>>, vector<1x32x128xbf16>
    %214 = vector.shape_cast %213 : vector<1x32x128xbf16> to vector<32x128xbf16>
    %215 = arith.extf %214 : vector<32x128xbf16> to vector<32x128xf32>
    %cst_186 = arith.constant dense<0.000000e+00> : vector<32x16xf32>
    %216 = tpu.matmul %215, %51, %cst_186 {dimension_numbers = #tpu.dot_dimension_numbers<[1], [0], [0], [1], [0, 0, 1, 1], [], []>} : vector<32x128xf32>, vector<128x16xf32>, vector<32x16xf32> -> vector<32x16xf32>
    %c20_187 = arith.constant 20 : index
    %c0_188 = arith.constant 0 : index
    %c0_189 = arith.constant 0 : index
    %217 = vector.load %arg4[%c20_187, %c0_188, %c0_189] : memref<25x16x32xf32, #tpu.memory_space<vmem>>, vector<1x16x32xf32>
    %218 = vector.shape_cast %217 : vector<1x16x32xf32> to vector<16x32xf32>
    %cst_190 = arith.constant dense<0.000000e+00> : vector<32x32xf32>
    %219 = tpu.matmul %216, %218, %cst_190 {dimension_numbers = #tpu.dot_dimension_numbers<[1], [0], [0], [1], [0, 0, 1, 1], [], []>} : vector<32x16xf32>, vector<16x32xf32>, vector<32x32xf32> -> vector<32x32xf32>
    %220 = arith.addf %212, %219 : vector<32x32xf32>
    %c21 = arith.constant 21 : index
    %c0_191 = arith.constant 0 : index
    %c0_192 = arith.constant 0 : index
    %221 = vector.load %arg6[%c21, %c0_191, %c0_192] : memref<25x32x128xbf16, #tpu.memory_space<vmem>>, vector<1x32x128xbf16>
    %222 = vector.shape_cast %221 : vector<1x32x128xbf16> to vector<32x128xbf16>
    %223 = arith.extf %222 : vector<32x128xbf16> to vector<32x128xf32>
    %cst_193 = arith.constant dense<0.000000e+00> : vector<32x16xf32>
    %224 = tpu.matmul %223, %51, %cst_193 {dimension_numbers = #tpu.dot_dimension_numbers<[1], [0], [0], [1], [0, 0, 1, 1], [], []>} : vector<32x128xf32>, vector<128x16xf32>, vector<32x16xf32> -> vector<32x16xf32>
    %c21_194 = arith.constant 21 : index
    %c0_195 = arith.constant 0 : index
    %c0_196 = arith.constant 0 : index
    %225 = vector.load %arg4[%c21_194, %c0_195, %c0_196] : memref<25x16x32xf32, #tpu.memory_space<vmem>>, vector<1x16x32xf32>
    %226 = vector.shape_cast %225 : vector<1x16x32xf32> to vector<16x32xf32>
    %cst_197 = arith.constant dense<0.000000e+00> : vector<32x32xf32>
    %227 = tpu.matmul %224, %226, %cst_197 {dimension_numbers = #tpu.dot_dimension_numbers<[1], [0], [0], [1], [0, 0, 1, 1], [], []>} : vector<32x16xf32>, vector<16x32xf32>, vector<32x32xf32> -> vector<32x32xf32>
    %228 = arith.addf %220, %227 : vector<32x32xf32>
    %c22 = arith.constant 22 : index
    %c0_198 = arith.constant 0 : index
    %c0_199 = arith.constant 0 : index
    %229 = vector.load %arg6[%c22, %c0_198, %c0_199] : memref<25x32x128xbf16, #tpu.memory_space<vmem>>, vector<1x32x128xbf16>
    %230 = vector.shape_cast %229 : vector<1x32x128xbf16> to vector<32x128xbf16>
    %231 = arith.extf %230 : vector<32x128xbf16> to vector<32x128xf32>
    %cst_200 = arith.constant dense<0.000000e+00> : vector<32x16xf32>
    %232 = tpu.matmul %231, %51, %cst_200 {dimension_numbers = #tpu.dot_dimension_numbers<[1], [0], [0], [1], [0, 0, 1, 1], [], []>} : vector<32x128xf32>, vector<128x16xf32>, vector<32x16xf32> -> vector<32x16xf32>
    %c22_201 = arith.constant 22 : index
    %c0_202 = arith.constant 0 : index
    %c0_203 = arith.constant 0 : index
    %233 = vector.load %arg4[%c22_201, %c0_202, %c0_203] : memref<25x16x32xf32, #tpu.memory_space<vmem>>, vector<1x16x32xf32>
    %234 = vector.shape_cast %233 : vector<1x16x32xf32> to vector<16x32xf32>
    %cst_204 = arith.constant dense<0.000000e+00> : vector<32x32xf32>
    %235 = tpu.matmul %232, %234, %cst_204 {dimension_numbers = #tpu.dot_dimension_numbers<[1], [0], [0], [1], [0, 0, 1, 1], [], []>} : vector<32x16xf32>, vector<16x32xf32>, vector<32x32xf32> -> vector<32x32xf32>
    %236 = arith.addf %228, %235 : vector<32x32xf32>
    %c23 = arith.constant 23 : index
    %c0_205 = arith.constant 0 : index
    %c0_206 = arith.constant 0 : index
    %237 = vector.load %arg6[%c23, %c0_205, %c0_206] : memref<25x32x128xbf16, #tpu.memory_space<vmem>>, vector<1x32x128xbf16>
    %238 = vector.shape_cast %237 : vector<1x32x128xbf16> to vector<32x128xbf16>
    %239 = arith.extf %238 : vector<32x128xbf16> to vector<32x128xf32>
    %cst_207 = arith.constant dense<0.000000e+00> : vector<32x16xf32>
    %240 = tpu.matmul %239, %51, %cst_207 {dimension_numbers = #tpu.dot_dimension_numbers<[1], [0], [0], [1], [0, 0, 1, 1], [], []>} : vector<32x128xf32>, vector<128x16xf32>, vector<32x16xf32> -> vector<32x16xf32>
    %c23_208 = arith.constant 23 : index
    %c0_209 = arith.constant 0 : index
    %c0_210 = arith.constant 0 : index
    %241 = vector.load %arg4[%c23_208, %c0_209, %c0_210] : memref<25x16x32xf32, #tpu.memory_space<vmem>>, vector<1x16x32xf32>
    %242 = vector.shape_cast %241 : vector<1x16x32xf32> to vector<16x32xf32>
    %cst_211 = arith.constant dense<0.000000e+00> : vector<32x32xf32>
    %243 = tpu.matmul %240, %242, %cst_211 {dimension_numbers = #tpu.dot_dimension_numbers<[1], [0], [0], [1], [0, 0, 1, 1], [], []>} : vector<32x16xf32>, vector<16x32xf32>, vector<32x32xf32> -> vector<32x32xf32>
    %244 = arith.addf %236, %243 : vector<32x32xf32>
    %c24 = arith.constant 24 : index
    %c0_212 = arith.constant 0 : index
    %c0_213 = arith.constant 0 : index
    %245 = vector.load %arg6[%c24, %c0_212, %c0_213] : memref<25x32x128xbf16, #tpu.memory_space<vmem>>, vector<1x32x128xbf16>
    %246 = vector.shape_cast %245 : vector<1x32x128xbf16> to vector<32x128xbf16>
    %247 = arith.extf %246 : vector<32x128xbf16> to vector<32x128xf32>
    %cst_214 = arith.constant dense<0.000000e+00> : vector<32x16xf32>
    %248 = tpu.matmul %247, %51, %cst_214 {dimension_numbers = #tpu.dot_dimension_numbers<[1], [0], [0], [1], [0, 0, 1, 1], [], []>} : vector<32x128xf32>, vector<128x16xf32>, vector<32x16xf32> -> vector<32x16xf32>
    %c24_215 = arith.constant 24 : index
    %c0_216 = arith.constant 0 : index
    %c0_217 = arith.constant 0 : index
    %249 = vector.load %arg4[%c24_215, %c0_216, %c0_217] : memref<25x16x32xf32, #tpu.memory_space<vmem>>, vector<1x16x32xf32>
    %250 = vector.shape_cast %249 : vector<1x16x32xf32> to vector<16x32xf32>
    %cst_218 = arith.constant dense<0.000000e+00> : vector<32x32xf32>
    %251 = tpu.matmul %248, %250, %cst_218 {dimension_numbers = #tpu.dot_dimension_numbers<[1], [0], [0], [1], [0, 0, 1, 1], [], []>} : vector<32x16xf32>, vector<16x32xf32>, vector<32x32xf32> -> vector<32x32xf32>
    %252 = arith.addf %244, %251 : vector<32x32xf32>
    %c0_219 = arith.constant 0 : index
    %c0_220 = arith.constant 0 : index
    %253 = vector.load %arg5[%c0_219, %c0_220] : memref<1x32xf32, #tpu.memory_space<vmem>>, vector<1x32xf32>
    %254 = vector.broadcast %253 : vector<1x32xf32> to vector<32x32xf32>
    %255 = arith.addf %252, %254 : vector<32x32xf32>
    %cst_221 = arith.constant 0.000000e+00 : f32
    %256 = vector.broadcast %cst_221 : f32 to vector<32x32xf32>
    %257 = arith.maximumf %255, %256 : vector<32x32xf32>
    %c0_222 = arith.constant 0 : index
    %c0_223 = arith.constant 0 : index
    %c0_224 = arith.constant 0 : index
    %258 = vector.load %arg7[%c0_222, %c0_223, %c0_224] : memref<9x8x32xbf16, #tpu.memory_space<vmem>>, vector<1x8x32xbf16>
    %259 = vector.shape_cast %258 : vector<1x8x32xbf16> to vector<8x32xbf16>
    %260 = arith.extf %259 : vector<8x32xbf16> to vector<8x32xf32>
    %cst_225 = arith.constant dense<0.000000e+00> : vector<8x32xf32>
    %261 = tpu.matmul %260, %257, %cst_225 {dimension_numbers = #tpu.dot_dimension_numbers<[1], [0], [0], [1], [0, 0, 1, 1], [], []>} : vector<8x32xf32>, vector<32x32xf32>, vector<8x32xf32> -> vector<8x32xf32>
    %c1_226 = arith.constant 1 : index
    %c0_227 = arith.constant 0 : index
    %c0_228 = arith.constant 0 : index
    %262 = vector.load %arg7[%c1_226, %c0_227, %c0_228] : memref<9x8x32xbf16, #tpu.memory_space<vmem>>, vector<1x8x32xbf16>
    %263 = vector.shape_cast %262 : vector<1x8x32xbf16> to vector<8x32xbf16>
    %264 = arith.extf %263 : vector<8x32xbf16> to vector<8x32xf32>
    %cst_229 = arith.constant dense<0.000000e+00> : vector<8x32xf32>
    %265 = tpu.matmul %264, %257, %cst_229 {dimension_numbers = #tpu.dot_dimension_numbers<[1], [0], [0], [1], [0, 0, 1, 1], [], []>} : vector<8x32xf32>, vector<32x32xf32>, vector<8x32xf32> -> vector<8x32xf32>
    %266 = arith.maximumf %261, %265 : vector<8x32xf32>
    %c2_230 = arith.constant 2 : index
    %c0_231 = arith.constant 0 : index
    %c0_232 = arith.constant 0 : index
    %267 = vector.load %arg7[%c2_230, %c0_231, %c0_232] : memref<9x8x32xbf16, #tpu.memory_space<vmem>>, vector<1x8x32xbf16>
    %268 = vector.shape_cast %267 : vector<1x8x32xbf16> to vector<8x32xbf16>
    %269 = arith.extf %268 : vector<8x32xbf16> to vector<8x32xf32>
    %cst_233 = arith.constant dense<0.000000e+00> : vector<8x32xf32>
    %270 = tpu.matmul %269, %257, %cst_233 {dimension_numbers = #tpu.dot_dimension_numbers<[1], [0], [0], [1], [0, 0, 1, 1], [], []>} : vector<8x32xf32>, vector<32x32xf32>, vector<8x32xf32> -> vector<8x32xf32>
    %271 = arith.maximumf %266, %270 : vector<8x32xf32>
    %c3_234 = arith.constant 3 : index
    %c0_235 = arith.constant 0 : index
    %c0_236 = arith.constant 0 : index
    %272 = vector.load %arg7[%c3_234, %c0_235, %c0_236] : memref<9x8x32xbf16, #tpu.memory_space<vmem>>, vector<1x8x32xbf16>
    %273 = vector.shape_cast %272 : vector<1x8x32xbf16> to vector<8x32xbf16>
    %274 = arith.extf %273 : vector<8x32xbf16> to vector<8x32xf32>
    %cst_237 = arith.constant dense<0.000000e+00> : vector<8x32xf32>
    %275 = tpu.matmul %274, %257, %cst_237 {dimension_numbers = #tpu.dot_dimension_numbers<[1], [0], [0], [1], [0, 0, 1, 1], [], []>} : vector<8x32xf32>, vector<32x32xf32>, vector<8x32xf32> -> vector<8x32xf32>
    %276 = arith.maximumf %271, %275 : vector<8x32xf32>
    %c4_238 = arith.constant 4 : index
    %c0_239 = arith.constant 0 : index
    %c0_240 = arith.constant 0 : index
    %277 = vector.load %arg7[%c4_238, %c0_239, %c0_240] : memref<9x8x32xbf16, #tpu.memory_space<vmem>>, vector<1x8x32xbf16>
    %278 = vector.shape_cast %277 : vector<1x8x32xbf16> to vector<8x32xbf16>
    %279 = arith.extf %278 : vector<8x32xbf16> to vector<8x32xf32>
    %cst_241 = arith.constant dense<0.000000e+00> : vector<8x32xf32>
    %280 = tpu.matmul %279, %257, %cst_241 {dimension_numbers = #tpu.dot_dimension_numbers<[1], [0], [0], [1], [0, 0, 1, 1], [], []>} : vector<8x32xf32>, vector<32x32xf32>, vector<8x32xf32> -> vector<8x32xf32>
    %281 = arith.maximumf %276, %280 : vector<8x32xf32>
    %c5_242 = arith.constant 5 : index
    %c0_243 = arith.constant 0 : index
    %c0_244 = arith.constant 0 : index
    %282 = vector.load %arg7[%c5_242, %c0_243, %c0_244] : memref<9x8x32xbf16, #tpu.memory_space<vmem>>, vector<1x8x32xbf16>
    %283 = vector.shape_cast %282 : vector<1x8x32xbf16> to vector<8x32xbf16>
    %284 = arith.extf %283 : vector<8x32xbf16> to vector<8x32xf32>
    %cst_245 = arith.constant dense<0.000000e+00> : vector<8x32xf32>
    %285 = tpu.matmul %284, %257, %cst_245 {dimension_numbers = #tpu.dot_dimension_numbers<[1], [0], [0], [1], [0, 0, 1, 1], [], []>} : vector<8x32xf32>, vector<32x32xf32>, vector<8x32xf32> -> vector<8x32xf32>
    %286 = arith.maximumf %281, %285 : vector<8x32xf32>
    %c6_246 = arith.constant 6 : index
    %c0_247 = arith.constant 0 : index
    %c0_248 = arith.constant 0 : index
    %287 = vector.load %arg7[%c6_246, %c0_247, %c0_248] : memref<9x8x32xbf16, #tpu.memory_space<vmem>>, vector<1x8x32xbf16>
    %288 = vector.shape_cast %287 : vector<1x8x32xbf16> to vector<8x32xbf16>
    %289 = arith.extf %288 : vector<8x32xbf16> to vector<8x32xf32>
    %cst_249 = arith.constant dense<0.000000e+00> : vector<8x32xf32>
    %290 = tpu.matmul %289, %257, %cst_249 {dimension_numbers = #tpu.dot_dimension_numbers<[1], [0], [0], [1], [0, 0, 1, 1], [], []>} : vector<8x32xf32>, vector<32x32xf32>, vector<8x32xf32> -> vector<8x32xf32>
    %291 = arith.maximumf %286, %290 : vector<8x32xf32>
    %c7_250 = arith.constant 7 : index
    %c0_251 = arith.constant 0 : index
    %c0_252 = arith.constant 0 : index
    %292 = vector.load %arg7[%c7_250, %c0_251, %c0_252] : memref<9x8x32xbf16, #tpu.memory_space<vmem>>, vector<1x8x32xbf16>
    %293 = vector.shape_cast %292 : vector<1x8x32xbf16> to vector<8x32xbf16>
    %294 = arith.extf %293 : vector<8x32xbf16> to vector<8x32xf32>
    %cst_253 = arith.constant dense<0.000000e+00> : vector<8x32xf32>
    %295 = tpu.matmul %294, %257, %cst_253 {dimension_numbers = #tpu.dot_dimension_numbers<[1], [0], [0], [1], [0, 0, 1, 1], [], []>} : vector<8x32xf32>, vector<32x32xf32>, vector<8x32xf32> -> vector<8x32xf32>
    %296 = arith.maximumf %291, %295 : vector<8x32xf32>
    %c8_254 = arith.constant 8 : index
    %c0_255 = arith.constant 0 : index
    %c0_256 = arith.constant 0 : index
    %297 = vector.load %arg7[%c8_254, %c0_255, %c0_256] : memref<9x8x32xbf16, #tpu.memory_space<vmem>>, vector<1x8x32xbf16>
    %298 = vector.shape_cast %297 : vector<1x8x32xbf16> to vector<8x32xbf16>
    %299 = arith.extf %298 : vector<8x32xbf16> to vector<8x32xf32>
    %cst_257 = arith.constant dense<0.000000e+00> : vector<8x32xf32>
    %300 = tpu.matmul %299, %257, %cst_257 {dimension_numbers = #tpu.dot_dimension_numbers<[1], [0], [0], [1], [0, 0, 1, 1], [], []>} : vector<8x32xf32>, vector<32x32xf32>, vector<8x32xf32> -> vector<8x32xf32>
    %301 = arith.maximumf %296, %300 : vector<8x32xf32>
    %c0_258 = arith.constant 0 : index
    %c0_259 = arith.constant 0 : index
    %302 = vector.load %arg8[%c0_258, %c0_259] : memref<32x128xf32, #tpu.memory_space<vmem>>, vector<32x128xf32>
    %cst_260 = arith.constant dense<0.000000e+00> : vector<8x128xf32>
    %303 = tpu.matmul %301, %302, %cst_260 {dimension_numbers = #tpu.dot_dimension_numbers<[1], [0], [0], [1], [0, 0, 1, 1], [], []>} : vector<8x32xf32>, vector<32x128xf32>, vector<8x128xf32> -> vector<8x128xf32>
    %c0_261 = arith.constant 0 : index
    %c0_262 = arith.constant 0 : index
    %304 = vector.load %arg9[%c0_261, %c0_262] : memref<1x128xf32, #tpu.memory_space<vmem>>, vector<1x128xf32>
    %305 = vector.broadcast %304 : vector<1x128xf32> to vector<8x128xf32>
    %306 = arith.addf %303, %305 : vector<8x128xf32>
    %c0_263 = arith.constant 0 : index
    %c0_264 = arith.constant 0 : index
    %307 = vector.load %arg10[%c0_263, %c0_264] : memref<8x128xf32, #tpu.memory_space<vmem>>, vector<8x128xf32>
    tpu.vector_store %arg10[%c0_263, %c0_264], %306 {strides = array<i32>} : memref<8x128xf32, #tpu.memory_space<vmem>>, vector<8x128xf32>,
    return
  }
}

</mosaic_0001>

<bundles_post_ra>
// kernel: net_forward.1
= control target key start
LH: loop header
LB: loop body
LE: loop exit
PB: predicated region body
PF: predicated region fallthrough
CT: control target
= control target key end

     0   :  { %vm4373_vm0 = vcmask 130048   ;;  %vm16014_vm1 = vmmov 0   ;;  %vm9139_vm2 = vcmask 261120   ;;  %s19559_s1 = inlined_call_operand.vmem [shape: f32[128,16], index: 1, kind: input, shape index: {}]   ;;  %s19560_s0 = inlined_call_operand.vmem [shape: f32[512,128], index: 0, kind: input, shape index: {}]   ;;  %s19561_s3 = inlined_call_operand.vmem [shape: bf16[9,128,512], index: 3, kind: input, shape index: {}]   ;;  %s19562_s2 = inlined_call_operand.vmem [shape: f32[1,16], index: 2, kind: input, shape index: {}]   ;;  %s19563_s6 = inlined_call_operand.vmem [shape: bf16[25,32,128], index: 6, kind: input, shape index: {}]   ;;  %s19564_s4 = inlined_call_operand.vmem [shape: f32[25,16,32], index: 4, kind: input, shape index: {}]   ;;  %s19565_s5 = inlined_call_operand.vmem [shape: f32[1,32], index: 5, kind: input, shape index: {}]   ;;  %s19566_s7 = inlined_call_operand.vmem [shape: bf16[9,8,32], index: 7, kind: input, shape index: {}]   ;;  %s19567_s8 = inlined_call_operand.vmem [shape: f32[32,128], index: 8, kind: input, shape index: {}]   ;;  %s19568_s9 = inlined_call_operand.vmem [shape: f32[1,128], index: 9, kind: input, shape index: {}]   ;;  %s19569_s10 = inlined_call_operand.vmem [shape: f32[8,128], index: 10, kind: output, shape index: {}]  }
   0x1   :  { %v99_v0 = vld [vmem:[%s19559_s1] sm:$0xff]  ;;  %v100_v1 = vld [vmem:[%s19559_s1 + $0x8] sm:$0xff]  ;;  %v101_v2 = vld [vmem:[%s19559_s1 + $0x10] sm:$0xff] }
   0x2   :  { %v14346_v3 = vpack.c.bf16 %v100_v1, %v99_v0  ;;  %v102_v4 = vld [vmem:[%s19559_s1 + $0x18] sm:$0xff]  ;;  %v103_v6 = vld [vmem:[%s19559_s1 + $0x20] sm:$0xff]  ;;  %v104_v7 = vld [vmem:[%s19559_s1 + $0x28] sm:$0xff] }
   0x3   :  { %v14350_v5 = vpack.c.bf16 %v102_v4, %v101_v2  ;;  %v14354_v8 = vpack.c.bf16 %v104_v7, %v103_v6  ;;  %v35_v9 = vld [vmem:[%s19560_s0] sm:$0xff]  ;;  %v105_v10 = vld [vmem:[%s19559_s1 + $0x30] sm:$0xff]  ;;  %v106_v11 = vld [vmem:[%s19559_s1 + $0x38] sm:$0xff] }
   0x4   :  { %14347 = vmatprep.subr.bf16.mxu0 %v14346_v3  ;;  %12940 = vmatprep.mubr.f32.mxu0 %v35_v9  ;;  %v14358_v12 = vpack.c.bf16 %v106_v11, %v105_v10  ;;  %v107_v13 = vld [vmem:[%s19559_s1 + $0x40] sm:$0xff]  ;;  %v108_v14 = vld [vmem:[%s19559_s1 + $0x48] sm:$0xff]  ;;  %v109_v16 = vld [vmem:[%s19559_s1 + $0x50] sm:$0xff] }
   0x5   :  { %14349 = vmatpush3.bf16.msra.mxu0 %v14346_v3  ;;  %v14362_v15 = vpack.c.bf16 %v108_v14, %v107_v13  ;;  %v110_v17 = vld [vmem:[%s19559_s1 + $0x58] sm:$0xff]  ;;  %v111_v19 = vld [vmem:[%s19559_s1 + $0x60] sm:$0xff]  ;;  %v112_v20 = vld [vmem:[%s19559_s1 + $0x68] sm:$0xff] }
   0x6   :  { %14351 = vmatprep.subr.bf16.mxu0 %v14350_v5  ;;  %v14366_v18 = vpack.c.bf16 %v110_v17, %v109_v16  ;;  %v14370_v21 = vpack.c.bf16 %v112_v20, %v111_v19  ;;  %v113_v22 = vld [vmem:[%s19559_s1 + $0x70] sm:$0xff]  ;;  %v114_v23 = vld [vmem:[%s19559_s1 + $0x78] sm:$0xff]  ;;  %v36_v25 = vld [vmem:[%s19560_s0 + $0x8] sm:$0xff] }
   0x7   :  { %v14374_v24 = vpack.c.bf16 %v114_v23, %v113_v22  ;;  %v37_v26 = vld [vmem:[%s19560_s0 + $0x10] sm:$0xff]  ;;  %v38_v27 = vld [vmem:[%s19560_s0 + $0x18] sm:$0xff]  ;;  %v39_v28 = vld [vmem:[%s19560_s0 + $0x20] sm:$0xff] }
   0x8   :  { %v40_v29 = vld [vmem:[%s19560_s0 + $0x28] sm:$0xff]  ;;  %v41_v30 = vld [vmem:[%s19560_s0 + $0x30] sm:$0xff]  ;;  %v42_v31 = vld [vmem:[%s19560_s0 + $0x38] sm:$0xff] }
   0x9   :  { %14353 = vmatpush3.bf16.msra.mxu0 %v14350_v5  ;;  %v43_v32 = vld [vmem:[%s19560_s0 + $0x40] sm:$0xff]  ;;  %v44_v33 = vld [vmem:[%s19560_s0 + $0x48] sm:$0xff]  ;;  %v45_v34 = vld [vmem:[%s19560_s0 + $0x50] sm:$0xff] }
   0xa   :  { %14355 = vmatprep.subr.bf16.mxu0 %v14354_v8  ;;  %v46_v35 = vld [vmem:[%s19560_s0 + $0x58] sm:$0xff]  ;;  %v47_v36 = vld [vmem:[%s19560_s0 + $0x60] sm:$0xff]  ;;  %v48_v37 = vld [vmem:[%s19560_s0 + $0x68] sm:$0xff] }
   0xb   :  { %v49_v38 = vld [vmem:[%s19560_s0 + $0x70] sm:$0xff]  ;;  %v50_v39 = vld [vmem:[%s19560_s0 + $0x78] sm:$0xff]  ;;  %v51_v40 = vld [vmem:[%s19560_s0 + $0x80] sm:$0xff] }
   0xc   :  { %v52_v41 = vld [vmem:[%s19560_s0 + $0x88] sm:$0xff]  ;;  %v53_v42 = vld [vmem:[%s19560_s0 + $0x90] sm:$0xff]  ;;  %v54_v43 = vld [vmem:[%s19560_s0 + $0x98] sm:$0xff] }
   0xd   :  { %14357 = vmatpush3.bf16.msra.mxu0 %v14354_v8  ;;  %v55_v44 = vld [vmem:[%s19560_s0 + $0xa0] sm:$0xff]  ;;  %v56_v45 = vld [vmem:[%s19560_s0 + $0xa8] sm:$0xff]  ;;  %v57_v46 = vld [vmem:[%s19560_s0 + $0xb0] sm:$0xff] }
   0xe   :  { %14359 = vmatprep.subr.bf16.mxu0 %v14358_v12  ;;  %v58_v47 = vld [vmem:[%s19560_s0 + $0xb8] sm:$0xff]  ;;  %v59_v48 = vld [vmem:[%s19560_s0 + $0xc0] sm:$0xff]  ;;  %v60_v49 = vld [vmem:[%s19560_s0 + $0xc8] sm:$0xff] }
   0xf   :  { %v61_v50 = vld [vmem:[%s19560_s0 + $0xd0] sm:$0xff]  ;;  %v62_v51 = vld [vmem:[%s19560_s0 + $0xd8] sm:$0xff]  ;;  %v63_v52 = vld [vmem:[%s19560_s0 + $0xe0] sm:$0xff] }
  0x10   :  { %v64_v53 = vld [vmem:[%s19560_s0 + $0xe8] sm:$0xff]  ;;  %v65_v54 = vld [vmem:[%s19560_s0 + $0xf0] sm:$0xff]  ;;  %v66_v55 = vld [vmem:[%s19560_s0 + $0xf8] sm:$0xff] }
  0x11   :  { %14361 = vmatpush3.bf16.msra.mxu0 %v14358_v12  ;;  %v67_v56 = vld [vmem:[%s19560_s0 + $0x100] sm:$0xff]  ;;  %v68_v57 = vld [vmem:[%s19560_s0 + $0x108] sm:$0xff]  ;;  %v69_v58 = vld [vmem:[%s19560_s0 + $0x110] sm:$0xff] }
  0x12   :  { %14363 = vmatprep.subr.bf16.mxu0 %v14362_v15  ;;  %v70_v59 = vld [vmem:[%s19560_s0 + $0x118] sm:$0xff]  ;;  %v71_v60 = vld [vmem:[%s19560_s0 + $0x120] sm:$0xff]  ;;  %v72_v61 = vld [vmem:[%s19560_s0 + $0x128] sm:$0xff] }
  0x13   :  { %v73_v62 = vld [vmem:[%s19560_s0 + $0x130] sm:$0xff]  ;;  %v74_v63 = vld [vmem:[%s19560_s0 + $0x138] sm:$0xff]  ;;  %v75_v0 = vld [vmem:[%s19560_s0 + $0x140] sm:$0xff] }
  0x14   :  { %v76_v1 = vld [vmem:[%s19560_s0 + $0x148] sm:$0xff]  ;;  %v77_v2 = vld [vmem:[%s19560_s0 + $0x150] sm:$0xff]  ;;  %v78_v3 = vld [vmem:[%s19560_s0 + $0x158] sm:$0xff] }
  0x15   :  { %14365 = vmatpush3.bf16.msra.mxu0 %v14362_v15  ;;  %v79_v4 = vld [vmem:[%s19560_s0 + $0x160] sm:$0xff]  ;;  %v80_v5 = vld [vmem:[%s19560_s0 + $0x168] sm:$0xff]  ;;  %v81_v6 = vld [vmem:[%s19560_s0 + $0x170] sm:$0xff] }
  0x16   :  { %14367 = vmatprep.subr.bf16.mxu0 %v14366_v18  ;;  %v82_v7 = vld [vmem:[%s19560_s0 + $0x178] sm:$0xff]  ;;  %v83_v8 = vld [vmem:[%s19560_s0 + $0x180] sm:$0xff]  ;;  %v84_v9 = vld [vmem:[%s19560_s0 + $0x188] sm:$0xff] }
  0x17   :  { %v85_v10 = vld [vmem:[%s19560_s0 + $0x190] sm:$0xff]  ;;  %v86_v11 = vld [vmem:[%s19560_s0 + $0x198] sm:$0xff]  ;;  %v87_v12 = vld [vmem:[%s19560_s0 + $0x1a0] sm:$0xff] }
  0x18   :  { %v88_v13 = vld [vmem:[%s19560_s0 + $0x1a8] sm:$0xff]  ;;  %v89_v14 = vld [vmem:[%s19560_s0 + $0x1b0] sm:$0xff]  ;;  %v90_v15 = vld [vmem:[%s19560_s0 + $0x1b8] sm:$0xff] }
  0x19   :  { %14369 = vmatpush3.bf16.msra.mxu0 %v14366_v18  ;;  %v91_v16 = vld [vmem:[%s19560_s0 + $0x1c0] sm:$0xff]  ;;  %v92_v17 = vld [vmem:[%s19560_s0 + $0x1c8] sm:$0xff]  ;;  %v93_v18 = vld [vmem:[%s19560_s0 + $0x1d0] sm:$0xff] }
  0x1a   :  { %14371 = vmatprep.subr.bf16.mxu0 %v14370_v21  ;;  %v94_v19 = vld [vmem:[%s19560_s0 + $0x1d8] sm:$0xff]  ;;  %v95_v20 = vld [vmem:[%s19560_s0 + $0x1e0] sm:$0xff]  ;;  %v97_v22 = vld [vmem:[%s19560_s0 + $0x1f0] sm:$0xff] }
  0x1b   :  { %v98_v23 = vld [vmem:[%s19560_s0 + $0x1f8] sm:$0xff] }
  0x1d   :  { %14373 = vmatpush3.bf16.msra.mxu0 %v14370_v21  ;;  %v96_v21 = vld [vmem:[%s19560_s0 + $0x1e8] sm:$0xff] }
  0x1e   :  { %14375 = vmatprep.subr.bf16.mxu0 %v14374_v24 }
  0x21   :  { %14377 = vmatpush3.bf16.msra.mxu0 %v14374_v24  ;;  %v16314_v24 = vld [vmem:[%s19561_s3] sm:$0xff] }
  0x24   :  { %12941 = vmatmul.mubr.f32.vlgmr.msra.gmra.mrb[0].mxu0 %v36_v25  ;;  %v16319_v25 = vld [vmem:[%s19561_s3 + $0x100] sm:$0xff] }
  0x25   :  { %12943 = vmatprep.mubr.f32.mxu0 %v37_v26  ;;  %v604_v26 = vunpack.c.h.bf16 %v16314_v24 }
  0x27   :  { %731 = vmatprep.mubr.f32.mxu1 %v604_v26 }
  0x28   :  { %12944 = vmatmul.mubr.f32.gmra.mrb[2].mxu0 %v38_v27  ;;  %v991_v27 = vunpack.c.h.bf16 %v16319_v25 }
  0x29   :  { %12946 = vmatprep.mubr.f32.mxu0 %v39_v28  ;;  %v16326_v28 = vld [vmem:[%s19562_s2] ss:$0 sm:$0xff] }
  0x2c   :  { %12947 = vmatmul.mubr.f32.gmra.mrb[4].mxu0 %v40_v29 }
  0x2d   :  { %12949 = vmatprep.mubr.f32.mxu0 %v41_v30 }
  0x30   :  { %12950 = vmatmul.mubr.f32.gmra.mrb[6].mxu0 %v42_v31 }
  0x31   :  { %12952 = vmatprep.mubr.f32.mxu0 %v43_v32 }
  0x34   :  { %12953 = vmatmul.mubr.f32.gmra.mrb[8].mxu0 %v44_v33 }
  0x35   :  { %12955 = vmatprep.mubr.f32.mxu0 %v45_v34 }
  0x38   :  { %12956 = vmatmul.mubr.f32.gmra.mrb[10].mxu0 %v46_v35 }
  0x39   :  { %12958 = vmatprep.mubr.f32.mxu0 %v47_v36 }
  0x3c   :  { %12959 = vmatmul.mubr.f32.gmra.mrb[12].mxu0 %v48_v37 }
  0x3d   :  { %12961 = vmatprep.mubr.f32.mxu0 %v49_v38 }
  0x40   :  { %12962 = vmatmul.mubr.f32.gmra.mrb[14].mxu0 %v50_v39 }
  0x41   :  { %12964 = vmatprep.mubr.f32.mxu0 %v51_v40 }
  0x44   :  { %12965 = vmatmul.mubr.f32.gmra.mrb[16].mxu0 %v52_v41 }
  0x45   :  { %12967 = vmatprep.mubr.f32.mxu0 %v53_v42 }
  0x48   :  { %12968 = vmatmul.mubr.f32.gmra.mrb[18].mxu0 %v54_v43 }
  0x49   :  { %12970 = vmatprep.mubr.f32.mxu0 %v55_v44 }
  0x4c   :  { %12971 = vmatmul.mubr.f32.gmra.mrb[20].mxu0 %v56_v45 }
  0x4d   :  { %12973 = vmatprep.mubr.f32.mxu0 %v57_v46 }
  0x50   :  { %12974 = vmatmul.mubr.f32.gmra.mrb[22].mxu0 %v58_v47 }
  0x51   :  { %12976 = vmatprep.mubr.f32.mxu0 %v59_v48 }
  0x54   :  { %12977 = vmatmul.mubr.f32.gmra.mrb[24].mxu0 %v60_v49 }
  0x55   :  { %12979 = vmatprep.mubr.f32.mxu0 %v61_v50 }
  0x58   :  { %12980 = vmatmul.mubr.f32.gmra.mrb[26].mxu0 %v62_v51 }
  0x59   :  { %12982 = vmatprep.mubr.f32.mxu0 %v63_v52 }
  0x5c   :  { %12983 = vmatmul.mubr.f32.gmra.mrb[28].mxu0 %v64_v53 }
  0x5d   :  { %12985 = vmatprep.mubr.f32.mxu0 %v65_v54 }
  0x60   :  { %12986 = vmatmul.mubr.f32.gmra.mrb[30].mxu0 %v66_v55 }
  0x61   :  { %12988 = vmatprep.mubr.f32.mxu0 %v67_v56 }
  0x64   :  { %12989 = vmatmul.mubr.f32.gmra.mrb[32].mxu0 %v68_v57 }
  0x65   :  { %12991 = vmatprep.mubr.f32.mxu0 %v69_v58 }
  0x68   :  { %12992 = vmatmul.mubr.f32.gmra.mrb[34].mxu0 %v70_v59 }
  0x69   :  { %12994 = vmatprep.mubr.f32.mxu0 %v71_v60 }
  0x6c   :  { %12995 = vmatmul.mubr.f32.gmra.mrb[36].mxu0 %v72_v61 }
  0x6d   :  { %12997 = vmatprep.mubr.f32.mxu0 %v73_v62 }
  0x70   :  { %12998 = vmatmul.mubr.f32.gmra.mrb[38].mxu0 %v74_v63 }
  0x71   :  { %13000 = vmatprep.mubr.f32.mxu0 %v75_v0 }
  0x74   :  { %13001 = vmatmul.mubr.f32.gmra.mrb[40].mxu0 %v76_v1 }
  0x75   :  { %13003 = vmatprep.mubr.f32.mxu0 %v77_v2 }
  0x78   :  { %13004 = vmatmul.mubr.f32.gmra.mrb[42].mxu0 %v78_v3 }
  0x79   :  { %13006 = vmatprep.mubr.f32.mxu0 %v79_v4 }
  0x7c   :  { %13007 = vmatmul.mubr.f32.gmra.mrb[44].mxu0 %v80_v5 }
  0x7d   :  { %13009 = vmatprep.mubr.f32.mxu0 %v81_v6 }
  0x80   :  { %13010 = vmatmul.mubr.f32.gmra.mrb[46].mxu0 %v82_v7 }
  0x81   :  { %13012 = vmatprep.mubr.f32.mxu0 %v83_v8 }
  0x84   :  { %13013 = vmatmul.mubr.f32.gmra.mrb[48].mxu0 %v84_v9 }
  0x85   :  { %13015 = vmatprep.mubr.f32.mxu0 %v85_v10 }
  0x88   :  { %13016 = vmatmul.mubr.f32.gmra.mrb[50].mxu0 %v86_v11 }
  0x89   :  { %13018 = vmatprep.mubr.f32.mxu0 %v87_v12 }
  0x8c   :  { %13019 = vmatmul.mubr.f32.gmra.mrb[52].mxu0 %v88_v13 }
  0x8d   :  { %13021 = vmatprep.mubr.f32.mxu0 %v89_v14 }
  0x90   :  { %13022 = vmatmul.mubr.f32.gmra.mrb[54].mxu0 %v90_v15 }
  0x91   :  { %13024 = vmatprep.mubr.f32.mxu0 %v91_v16 }
  0x94   :  { %13025 = vmatmul.mubr.f32.gmra.mrb[56].mxu0 %v92_v17 }
  0x95   :  { %13027 = vmatprep.mubr.f32.mxu0 %v93_v18 }
  0x98   :  { %13028 = vmatmul.mubr.f32.gmra.mrb[58].mxu0 %v94_v19 }
  0x99   :  { %13030 = vmatprep.mubr.f32.mxu0 %v95_v20 }
  0x9c   :  { %13031 = vmatmul.mubr.f32.gmra.mrb[60].mxu0 %v96_v21 }
  0x9d   :  { %13033 = vmatprep.mubr.f32.mxu0 %v97_v22 }
  0xa0   :  { %13034 = vmatmul.mubr.f32.gmra.mrb[62].mxu0 %v98_v23 }
  0xa1   :  { %1118 = vmatprep.mubr.f32.mxu0 %v991_v27 }
  0xf7   :  { %v12942_v29 = vpop.f32.mrb[0].mxu0 }
  0xf8   :  { %v194_v30 = vadd.f32 %v12942_v29, %v16326_v28  ;;  %v188_v31 = vpop.f32.mrb[1].mxu0 }
  0xf9   :  { %v189_v32 = vadd.f32 %v16326_v28, %v188_v31 }
  0xfa   :  { %v508_v33 = vmax.f32 %v194_v30, 0.0 }
  0xfb   :  { %v507_v34 = vmax.f32 %v189_v32, 0.0  ;;  %v12945_v35 = vpop.f32.mrb[2].mxu0 }
  0xfc   :  { %v204_v36 = vadd.f32 %v12945_v35, %v16326_v28  ;;  %v198_v37 = vpop.f32.mrb[3].mxu0 }
  0xfd   :  { %v16331_v38 = vpack.c.bf16 %v508_v33, %v507_v34  ;;  %v199_v39 = vadd.f32 %v16326_v28, %v198_v37 }
  0xfe   :  { %v510_v40 = vmax.f32 %v204_v36, 0.0 }
  0xff   :  { %v509_v41 = vmax.f32 %v199_v39, 0.0  ;;  %v12948_v42 = vpop.f32.mrb[4].mxu0 }
 0x100   :  { %v214_v43 = vadd.f32 %v12948_v42, %v16326_v28  ;;  %v208_v44 = vpop.f32.mrb[5].mxu0 }
 0x101   :  { %v16335_v45 = vpack.c.bf16 %v510_v40, %v509_v41  ;;  %v209_v46 = vadd.f32 %v16326_v28, %v208_v44 }
 0x102   :  { %v512_v47 = vmax.f32 %v214_v43, 0.0 }
 0x103   :  { %v511_v48 = vmax.f32 %v209_v46, 0.0  ;;  %v12951_v49 = vpop.f32.mrb[6].mxu0 }
 0x104   :  { %v224_v50 = vadd.f32 %v12951_v49, %v16326_v28  ;;  %v218_v51 = vpop.f32.mrb[7].mxu0 }
 0x105   :  { %v16339_v52 = vpack.c.bf16 %v512_v47, %v511_v48  ;;  %v219_v53 = vadd.f32 %v16326_v28, %v218_v51 }
 0x106   :  { %v514_v54 = vmax.f32 %v224_v50, 0.0 }
 0x107   :  { %v513_v55 = vmax.f32 %v219_v53, 0.0  ;;  %v12954_v56 = vpop.f32.mrb[8].mxu0 }
 0x108   :  { %v234_v57 = vadd.f32 %v12954_v56, %v16326_v28  ;;  %v228_v58 = vpop.f32.mrb[9].mxu0 }
 0x109   :  { %v16343_v59 = vpack.c.bf16 %v514_v54, %v513_v55  ;;  %v229_v60 = vadd.f32 %v16326_v28, %v228_v58 }
 0x10a   :  { %v516_v61 = vmax.f32 %v234_v57, 0.0 }
 0x10b   :  { %v515_v62 = vmax.f32 %v229_v60, 0.0  ;;  %v12957_v63 = vpop.f32.mrb[10].mxu0 }
 0x10c   :  { %v244_v0 = vadd.f32 %v12957_v63, %v16326_v28  ;;  %v238_v1 = vpop.f32.mrb[11].mxu0 }
 0x10d   :  { %v16347_v2 = vpack.c.bf16 %v516_v61, %v515_v62  ;;  %v239_v3 = vadd.f32 %v16326_v28, %v238_v1 }
 0x10e   :  { %v518_v4 = vmax.f32 %v244_v0, 0.0 }
 0x10f   :  { %v517_v5 = vmax.f32 %v239_v3, 0.0  ;;  %v12960_v6 = vpop.f32.mrb[12].mxu0 }
 0x110   :  { %v254_v7 = vadd.f32 %v12960_v6, %v16326_v28  ;;  %v248_v8 = vpop.f32.mrb[13].mxu0 }
 0x111   :  { %v16351_v9 = vpack.c.bf16 %v518_v4, %v517_v5  ;;  %v249_v10 = vadd.f32 %v16326_v28, %v248_v8 }
 0x112   :  { %v520_v11 = vmax.f32 %v254_v7, 0.0 }
 0x113   :  { %v519_v12 = vmax.f32 %v249_v10, 0.0  ;;  %v12963_v13 = vpop.f32.mrb[14].mxu0 }
 0x114   :  { %v264_v14 = vadd.f32 %v12963_v13, %v16326_v28  ;;  %v258_v15 = vpop.f32.mrb[15].mxu0 }
 0x115   :  { %v16355_v16 = vpack.c.bf16 %v520_v11, %v519_v12  ;;  %v259_v17 = vadd.f32 %v16326_v28, %v258_v15 }
 0x116   :  { %v522_v18 = vmax.f32 %v264_v14, 0.0 }
 0x117   :  { %19593 = vst [vmem:[#allocation2_spill] sm:$0xff] %v16355_v16  ;;  %v521_v19 = vmax.f32 %v259_v17, 0.0  ;;  %v12966_v20 = vpop.f32.mrb[16].mxu0 }
 0x118   :  { %v274_v21 = vadd.f32 %v12966_v20, %v16326_v28  ;;  %v268_v22 = vpop.f32.mrb[17].mxu0 }
 0x119   :  { %v16359_v23 = vpack.c.bf16 %v522_v18, %v521_v19  ;;  %v269_v26 = vadd.f32 %v16326_v28, %v268_v22 }
 0x11a   :  { %v524_v27 = vmax.f32 %v274_v21, 0.0 }
 0x11b   :  { %19594 = vst [vmem:[#allocation3_spill] sm:$0xff] %v16359_v23  ;;  %v523_v29 = vmax.f32 %v269_v26, 0.0  ;;  %v12969_v30 = vpop.f32.mrb[18].mxu0 }
 0x11c   :  { %v284_v31 = vadd.f32 %v12969_v30, %v16326_v28  ;;  %v278_v32 = vpop.f32.mrb[19].mxu0 }
 0x11d   :  { %v16363_v33 = vpack.c.bf16 %v524_v27, %v523_v29  ;;  %v279_v34 = vadd.f32 %v16326_v28, %v278_v32 }
 0x11e   :  { %v526_v35 = vmax.f32 %v284_v31, 0.0  ;;  %v573_v31 = vld [vmem:[%s19561_s3 + $0x10] sm:$0xff] }
 0x11f   :  { %v525_v36 = vmax.f32 %v279_v34, 0.0  ;;  %v12972_v37 = vpop.f32.mrb[20].mxu0  ;;  %14379 = vmatprep.subr.bf16.mxu1 %v16363_v33  ;;  %14443 = vmatprep.subr.bf16.mxu0 %v16363_v33  ;;  %v9921_v34 = vld [vmem:[%s19561_s3 + $0x110] sm:$0xff] }
 0x120   :  { %v294_v39 = vadd.f32 %v12972_v37, %v16326_v28  ;;  %v288_v40 = vpop.f32.mrb[21].mxu0  ;;  %14381 = vmatpush3.bf16.msra.mxu1 %v16331_v38  ;;  %14445 = vmatpush3.bf16.msra.mxu0 %v16331_v38  ;;  %v603_v37 = vunpack.c.l.bf16 %v16314_v24  ;;  %v575_v24 = vld [vmem:[%s19561_s3 + $0x20] sm:$0xff] }
 0x121   :  { %v16371_v41 = vpack.c.bf16 %v526_v35, %v525_v36  ;;  %v289_v42 = vadd.f32 %v16326_v28, %v288_v40 }
 0x122   :  { %v528_v43 = vmax.f32 %v294_v39, 0.0  ;;  %v990_v39 = vunpack.c.l.bf16 %v16319_v25 }
 0x123   :  { %v527_v44 = vmax.f32 %v289_v42, 0.0  ;;  %v12975_v46 = vpop.f32.mrb[22].mxu0  ;;  %14383 = vmatprep.subr.bf16.mxu1 %v16371_v41  ;;  %14447 = vmatprep.subr.bf16.mxu0 %v16371_v41 }
 0x124   :  { %v304_v47 = vadd.f32 %v12975_v46, %v16326_v28  ;;  %v298_v48 = vpop.f32.mrb[23].mxu0  ;;  %14385 = vmatpush3.bf16.msra.mxu1 %v16335_v45  ;;  %14449 = vmatpush3.bf16.msra.mxu0 %v16335_v45 }
 0x125   :  { %v16379_v49 = vpack.c.bf16 %v528_v43, %v527_v44  ;;  %v299_v50 = vadd.f32 %v16326_v28, %v298_v48  ;;  %v608_v43 = vunpack.c.h.bf16 %v573_v31  ;;  %v9923_v48 = vld [vmem:[%s19561_s3 + $0x120] sm:$0xff] }
 0x126   :  { %v530_v51 = vmax.f32 %v304_v47, 0.0  ;;  %v995_v47 = vunpack.c.h.bf16 %v9921_v34 }
 0x127   :  { %v529_v53 = vmax.f32 %v299_v50, 0.0  ;;  %v12978_v54 = vpop.f32.mrb[24].mxu0  ;;  %14387 = vmatprep.subr.bf16.mxu1 %v16379_v49  ;;  %14451 = vmatprep.subr.bf16.mxu0 %v16379_v49 }
 0x128   :  { %v314_v55 = vadd.f32 %v12978_v54, %v16326_v28  ;;  %v308_v56 = vpop.f32.mrb[25].mxu0  ;;  %14389 = vmatpush3.bf16.msra.mxu1 %v16339_v52  ;;  %14453 = vmatpush3.bf16.msra.mxu0 %v16339_v52  ;;  %v994_v54 = vunpack.c.l.bf16 %v9921_v34 }
 0x129   :  { %v16387_v57 = vpack.c.bf16 %v530_v51, %v529_v53  ;;  %v309_v58 = vadd.f32 %v16326_v28, %v308_v56  ;;  %v607_v53 = vunpack.c.l.bf16 %v573_v31 }
 0x12a   :  { %v532_v60 = vmax.f32 %v314_v55, 0.0 }
 0x12b   :  { %v531_v61 = vmax.f32 %v309_v58, 0.0  ;;  %v12981_v62 = vpop.f32.mrb[26].mxu0  ;;  %14391 = vmatprep.subr.bf16.mxu1 %v16387_v57  ;;  %14455 = vmatprep.subr.bf16.mxu0 %v16387_v57  ;;  %v612_v58 = vunpack.c.h.bf16 %v575_v24 }
 0x12c   :  { %v324_v63 = vadd.f32 %v12981_v62, %v16326_v28  ;;  %v318_v0 = vpop.f32.mrb[27].mxu0  ;;  %14393 = vmatpush3.bf16.msra.mxu1 %v16343_v59  ;;  %14457 = vmatpush3.bf16.msra.mxu0 %v16343_v59  ;;  %v999_v62 = vunpack.c.h.bf16 %v9923_v48 }
 0x12d   :  { %v16395_v1 = vpack.c.bf16 %v532_v60, %v531_v61  ;;  %v319_v3 = vadd.f32 %v16326_v28, %v318_v0 }
 0x12e   :  { %v534_v4 = vmax.f32 %v324_v63, 0.0  ;;  %v577_v63 = vld [vmem:[%s19561_s3 + $0x30] sm:$0xff] }
 0x12f   :  { %v533_v5 = vmax.f32 %v319_v3, 0.0  ;;  %v12984_v6 = vpop.f32.mrb[28].mxu0  ;;  %14395 = vmatprep.subr.bf16.mxu1 %v16395_v1  ;;  %14459 = vmatprep.subr.bf16.mxu0 %v16395_v1  ;;  %v9925_v3 = vld [vmem:[%s19561_s3 + $0x130] sm:$0xff] }
 0x130   :  { %v334_v7 = vadd.f32 %v12984_v6, %v16326_v28  ;;  %v328_v8 = vpop.f32.mrb[29].mxu0  ;;  %14397 = vmatpush3.bf16.msra.mxu1 %v16347_v2  ;;  %14461 = vmatpush3.bf16.msra.mxu0 %v16347_v2  ;;  %v611_v6 = vunpack.c.l.bf16 %v575_v24 }
 0x131   :  { %v16403_v10 = vpack.c.bf16 %v534_v4, %v533_v5  ;;  %v329_v11 = vadd.f32 %v16326_v28, %v328_v8 }
 0x132   :  { %v536_v12 = vmax.f32 %v334_v7, 0.0  ;;  %v998_v7 = vunpack.c.l.bf16 %v9923_v48 }
 0x133   :  { %v535_v13 = vmax.f32 %v329_v11, 0.0  ;;  %v12987_v14 = vpop.f32.mrb[30].mxu0  ;;  %14399 = vmatprep.subr.bf16.mxu1 %v16403_v10  ;;  %14463 = vmatprep.subr.bf16.mxu0 %v16403_v10 }
 0x134   :  { %v344_v15 = vadd.f32 %v12987_v14, %v16326_v28  ;;  %v338_v17 = vpop.f32.mrb[31].mxu0  ;;  %14401 = vmatpush3.bf16.msra.mxu1 %v16351_v9  ;;  %14465 = vmatpush3.bf16.msra.mxu0 %v16351_v9 }
 0x135   :  { %v16411_v18 = vpack.c.bf16 %v536_v12, %v535_v13  ;;  %v339_v19 = vadd.f32 %v16326_v28, %v338_v17  ;;  %v616_v12 = vunpack.c.h.bf16 %v577_v63  ;;  %v579_v17 = vld [vmem:[%s19561_s3 + $0x40] sm:$0xff] }
 0x136   :  { %v538_v20 = vmax.f32 %v344_v15, 0.0  ;;  %v1003_v15 = vunpack.c.h.bf16 %v9925_v3 }
 0x137   :  { %v537_v21 = vmax.f32 %v339_v19, 0.0  ;;  %v12990_v22 = vpop.f32.mrb[32].mxu0  ;;  %14403 = vmatprep.subr.bf16.mxu1 %v16411_v18  ;;  %14467 = vmatprep.subr.bf16.mxu0 %v16411_v18 }
 0x138   :  { %v354_v26 = vadd.f32 %v12990_v22, %v16326_v28  ;;  %v348_v27 = vpop.f32.mrb[33].mxu0  ;;  %14405 = vmatpush3.bf16.msra.mxu1 %v16355_v16  ;;  %14469 = vmatpush3.bf16.msra.mxu0 %v16355_v16 }
 0x139   :  { %v16419_v29 = vpack.c.bf16 %v538_v20, %v537_v21  ;;  %v349_v30 = vadd.f32 %v16326_v28, %v348_v27  ;;  %v9927_v20 = vld [vmem:[%s19561_s3 + $0x140] sm:$0xff]  ;;  %v1002_v27 = vunpack.c.l.bf16 %v9925_v3 }
 0x13a   :  { %v540_v32 = vmax.f32 %v354_v26, 0.0  ;;  %v615_v26 = vunpack.c.l.bf16 %v577_v63 }
 0x13b   :  { %19595 = vst [vmem:[#allocation4_spill] sm:$0xff] %v16419_v29  ;;  %v539_v35 = vmax.f32 %v349_v30, 0.0  ;;  %v12993_v36 = vpop.f32.mrb[34].mxu0  ;;  %14407 = vmatprep.subr.bf16.mxu1 %v16419_v29  ;;  %14471 = vmatprep.subr.bf16.mxu0 %v16419_v29 }
 0x13c   :  { %v364_v40 = vadd.f32 %v12993_v36, %v16326_v28  ;;  %v358_v42 = vpop.f32.mrb[35].mxu0  ;;  %14409 = vmatpush3.bf16.msra.mxu1 %v16359_v23  ;;  %14473 = vmatpush3.bf16.msra.mxu0 %v16359_v23  ;;  %v1007_v36 = vunpack.c.h.bf16 %v9927_v20 }
 0x13d   :  { %v16435_v44 = vpack.c.bf16 %v540_v32, %v539_v35  ;;  %v359_v46 = vadd.f32 %v16326_v28, %v358_v42  ;;  %14507 = vmatprep.subr.bf16.mxu0 %v16363_v33  ;;  %v620_v32 = vunpack.c.h.bf16 %v579_v17 }
 0x13e   :  { %v542_v25 = vmax.f32 %v364_v40, 0.0  ;;  %v9929_v40 = vld [vmem:[%s19561_s3 + $0x150] sm:$0xff] }
 0x13f   :  { %v541_v50 = vmax.f32 %v359_v46, 0.0  ;;  %v12996_v51 = vpop.f32.mrb[36].mxu0  ;;  %732 = vmatmul.mubr.f32.vlgmr.msra.gmra.mrb[0].mxu1 %v603_v37  ;;  %1119 = vmatmul.mubr.f32.vlgmr.msra.gmra.mrb[64].mxu0 %v990_v39  ;;  %v581_v37 = vld [vmem:[%s19561_s3 + $0x50] sm:$0xff]  ;;  %v619_v46 = vunpack.c.l.bf16 %v579_v17  ;;  %v1010_v63 = vunpack.c.l.bf16 %v9929_v40 }
 0x140   :  { %v374_v55 = vadd.f32 %v12996_v51, %v16326_v28  ;;  %v368_v56 = vpop.f32.mrb[37].mxu0  ;;  %14509 = vmatpush3.bf16.msra.mxu0 %v16331_v38  ;;  %736 = vmatprep.mubr.f32.mxu1 %v608_v43  ;;  %v624_v48 = vunpack.c.h.bf16 %v581_v37 }
 0x141   :  { %v16447_v60 = vpack.c.bf16 %v542_v25, %v541_v50  ;;  %v369_v61 = vadd.f32 %v16326_v28, %v368_v56  ;;  %14511 = vmatprep.subr.bf16.mxu0 %v16371_v41  ;;  %1123 = vmatprep.mubr.f32.mxu0 %v995_v47  ;;  %v1006_v47 = vunpack.c.l.bf16 %v9927_v20  ;;  %v9931_v56 = vld [vmem:[%s19561_s3 + $0x160] sm:$0xff] }
 0x142   :  { %v544_v0 = vmax.f32 %v374_v55, 0.0 }
 0x143   :  { %v543_v4 = vmax.f32 %v369_v61, 0.0  ;;  %v12999_v5 = vpop.f32.mrb[38].mxu0  ;;  %737 = vmatmul.mubr.f32.gmra.mrb[2].mxu1 %v607_v53  ;;  %1124 = vmatmul.mubr.f32.gmra.mrb[66].mxu0 %v994_v54  ;;  %v1011_v53 = vunpack.c.h.bf16 %v9929_v40  ;;  %v583_v54 = vld [vmem:[%s19561_s3 + $0x60] sm:$0xff] }
 0x144   :  { %v384_v8 = vadd.f32 %v12999_v5, %v16326_v28  ;;  %v378_v11 = vpop.f32.mrb[39].mxu0  ;;  %14513 = vmatpush3.bf16.msra.mxu0 %v16335_v45  ;;  %741 = vmatprep.mubr.f32.mxu1 %v612_v58  ;;  %v627_v17 = vunpack.c.l.bf16 %v583_v54 }
 0x145   :  { %v16459_v13 = vpack.c.bf16 %v544_v0, %v543_v4  ;;  %v379_v14 = vadd.f32 %v16326_v28, %v378_v11  ;;  %14515 = vmatprep.subr.bf16.mxu0 %v16379_v49  ;;  %1128 = vmatprep.mubr.f32.mxu0 %v999_v62  ;;  %v623_v62 = vunpack.c.l.bf16 %v581_v37  ;;  %v628_v4 = vunpack.c.h.bf16 %v583_v54 }
 0x146   :  { %v546_v19 = vmax.f32 %v384_v8, 0.0  ;;  %v585_v8 = vld [vmem:[%s19561_s3 + $0x70] sm:$0xff] }
 0x147   :  { %v545_v21 = vmax.f32 %v379_v14, 0.0  ;;  %v13002_v22 = vpop.f32.mrb[40].mxu0  ;;  %742 = vmatmul.mubr.f32.gmra.mrb[4].mxu1 %v611_v6  ;;  %1129 = vmatmul.mubr.f32.gmra.mrb[68].mxu0 %v998_v7  ;;  %v1015_v7 = vunpack.c.h.bf16 %v9931_v56 }
 0x148   :  { %v394_v30 = vadd.f32 %v13002_v22, %v16326_v28  ;;  %v388_v31 = vpop.f32.mrb[41].mxu0  ;;  %14517 = vmatpush3.bf16.msra.mxu0 %v16339_v52  ;;  %746 = vmatprep.mubr.f32.mxu1 %v616_v12  ;;  %v9933_v12 = vld [vmem:[%s19561_s3 + $0x170] sm:$0xff]  ;;  %v632_v22 = vunpack.c.h.bf16 %v585_v8 }
 0x149   :  { %v16471_v34 = vpack.c.bf16 %v546_v19, %v545_v21  ;;  %v389_v35 = vadd.f32 %v16326_v28, %v388_v31  ;;  %14519 = vmatprep.subr.bf16.mxu0 %v16387_v57  ;;  %1133 = vmatprep.mubr.f32.mxu0 %v1003_v15  ;;  %v1014_v19 = vunpack.c.l.bf16 %v9931_v56  ;;  %v587_v31 = vld [vmem:[%s19561_s3 + $0x80] sm:$0xff]  ;;  %v1018_v40 = vunpack.c.l.bf16 %v9933_v12 }
 0x14a   :  { %v548_v39 = vmax.f32 %v394_v30, 0.0  ;;  %v1019_v30 = vunpack.c.h.bf16 %v9933_v12  ;;  %v635_v56 = vunpack.c.l.bf16 %v587_v31 }
 0x14b   :  { %v547_v42 = vmax.f32 %v389_v35, 0.0  ;;  %v13005_v43 = vpop.f32.mrb[42].mxu0  ;;  %747 = vmatmul.mubr.f32.gmra.mrb[6].mxu1 %v615_v26  ;;  %1134 = vmatmul.mubr.f32.gmra.mrb[70].mxu0 %v1002_v27  ;;  %v9935_v35 = vld [vmem:[%s19561_s3 + $0x180] sm:$0xff] }
 0x14c   :  { %v404_v24 = vadd.f32 %v13005_v43, %v16326_v28  ;;  %v398_v25 = vpop.f32.mrb[43].mxu0  ;;  %14521 = vmatpush3.bf16.msra.mxu0 %v16343_v59  ;;  %751 = vmatprep.mubr.f32.mxu1 %v620_v32 }
 0x14d   :  { %v16483_v50 = vpack.c.bf16 %v548_v39, %v547_v42  ;;  %v399_v51 = vadd.f32 %v16326_v28, %v398_v25  ;;  %14523 = vmatprep.subr.bf16.mxu0 %v16395_v1  ;;  %1138 = vmatprep.mubr.f32.mxu0 %v1007_v36  ;;  %v631_v39 = vunpack.c.l.bf16 %v585_v8  ;;  %v1023_v25 = vunpack.c.h.bf16 %v9935_v35  ;;  %v9939_v8 = vld [vmem:[%s19561_s3 + $0x1a0] sm:$0xff] }
 0x14e   :  { %v550_v55 = vmax.f32 %v404_v24, 0.0 }
 0x14f   :  { %v549_v58 = vmax.f32 %v399_v51, 0.0  ;;  %v13008_v61 = vpop.f32.mrb[44].mxu0  ;;  %752 = vmatmul.mubr.f32.gmra.mrb[8].mxu1 %v619_v46  ;;  %1139 = vmatmul.mubr.f32.gmra.mrb[72].mxu0 %v1006_v47  ;;  %v636_v46 = vunpack.c.h.bf16 %v587_v31  ;;  %v589_v51 = vld [vmem:[%s19561_s3 + $0x90] sm:$0xff] }
 0x150   :  { %v414_v0 = vadd.f32 %v13008_v61, %v16326_v28  ;;  %v408_v3 = vpop.f32.mrb[45].mxu0  ;;  %14525 = vmatpush3.bf16.msra.mxu0 %v16347_v2  ;;  %756 = vmatprep.mubr.f32.mxu1 %v624_v48  ;;  %v593_v31 = vld [vmem:[%s19561_s3 + $0xb0] sm:$0xff] }
 0x151   :  { %v16495_v5 = vpack.c.bf16 %v550_v55, %v549_v58  ;;  %v409_v6 = vadd.f32 %v16326_v28, %v408_v3  ;;  %14527 = vmatprep.subr.bf16.mxu0 %v16403_v10  ;;  %1143 = vmatprep.mubr.f32.mxu0 %v1011_v53  ;;  %v9937_v53 = vld [vmem:[%s19561_s3 + $0x190] sm:$0xff]  ;;  %v640_v3 = vunpack.c.h.bf16 %v589_v51 }
 0x152   :  { %v552_v11 = vmax.f32 %v414_v0, 0.0 }
 0x153   :  { %v551_v14 = vmax.f32 %v409_v6, 0.0  ;;  %v13011_v15 = vpop.f32.mrb[46].mxu0  ;;  %757 = vmatmul.mubr.f32.gmra.mrb[10].mxu1 %v623_v62  ;;  %1144 = vmatmul.mubr.f32.gmra.mrb[74].mxu0 %v1010_v63  ;;  %v1022_v62 = vunpack.c.l.bf16 %v9935_v35 }
 0x154   :  { %v424_v20 = vadd.f32 %v13011_v15, %v16326_v28  ;;  %v418_v21 = vpop.f32.mrb[47].mxu0  ;;  %14529 = vmatpush3.bf16.msra.mxu0 %v16351_v9  ;;  %761 = vmatprep.mubr.f32.mxu1 %v628_v4  ;;  %v1027_v4 = vunpack.c.h.bf16 %v9937_v53 }
 0x155   :  { %v16507_v26 = vpack.c.bf16 %v552_v11, %v551_v14  ;;  %v419_v27 = vadd.f32 %v16326_v28, %v418_v21  ;;  %14531 = vmatprep.subr.bf16.mxu0 %v16411_v18  ;;  %1148 = vmatprep.mubr.f32.mxu0 %v1015_v7  ;;  %v591_v7 = vld [vmem:[%s19561_s3 + $0xa0] sm:$0xff]  ;;  %v639_v14 = vunpack.c.l.bf16 %v589_v51 }
 0x156   :  { %v554_v32 = vmax.f32 %v424_v20, 0.0  ;;  %v595_v51 = vld [vmem:[%s19561_s3 + $0xc0] sm:$0xff] }
 0x157   :  { %v553_v36 = vmax.f32 %v419_v27, 0.0  ;;  %v13014_v37 = vpop.f32.mrb[48].mxu0  ;;  %762 = vmatmul.mubr.f32.gmra.mrb[12].mxu1 %v627_v17  ;;  %1149 = vmatmul.mubr.f32.gmra.mrb[76].mxu0 %v1014_v19  ;;  %v1026_v19 = vunpack.c.l.bf16 %v9937_v53  ;;  %v1031_v27 = vunpack.c.h.bf16 %v9939_v8  ;;  %v9943_v53 = vld [vmem:[%s19561_s3 + $0x1c0] sm:$0xff] }
 0x158   :  { %v434_v42 = vadd.f32 %v13014_v37, %v16326_v28  ;;  %v428_v43 = vpop.f32.mrb[49].mxu0  ;;  %14533 = vmatpush3.bf16.msra.mxu0 %v16355_v16  ;;  %766 = vmatprep.mubr.f32.mxu1 %v632_v22  ;;  %v644_v22 = vunpack.c.h.bf16 %v591_v7  ;;  %v643_v37 = vunpack.c.l.bf16 %v591_v7 }
 0x159   :  { %v16519_v47 = vpack.c.bf16 %v554_v32, %v553_v36  ;;  %v429_v24 = vadd.f32 %v16326_v28, %v428_v43  ;;  %14535 = vmatprep.subr.bf16.mxu0 %v16419_v29  ;;  %1153 = vmatprep.mubr.f32.mxu0 %v1019_v30  ;;  %v9941_v32 = vld [vmem:[%s19561_s3 + $0x1b0] sm:$0xff] }
 0x15a   :  { %v556_v48 = vmax.f32 %v434_v42, 0.0  ;;  %v1030_v42 = vunpack.c.l.bf16 %v9939_v8  ;;  %v597_v8 = vld [vmem:[%s19561_s3 + $0xd0] sm:$0xff] }
 0x15b   :  { %19596 = vst [vmem:[#allocation5_spill] sm:$0xff] %v16519_v47  ;;  %v555_v54 = vmax.f32 %v429_v24, 0.0  ;;  %v13017_v55 = vpop.f32.mrb[50].mxu0  ;;  %767 = vmatmul.mubr.f32.gmra.mrb[14].mxu1 %v631_v39  ;;  %1154 = vmatmul.mubr.f32.gmra.mrb[78].mxu0 %v1018_v40  ;;  %v648_v24 = vunpack.c.h.bf16 %v593_v31 }
 0x15c   :  { %v444_v58 = vadd.f32 %v13017_v55, %v16326_v28  ;;  %v438_v61 = vpop.f32.mrb[51].mxu0  ;;  %14537 = vmatpush3.bf16.msra.mxu0 %v16359_v23  ;;  %771 = vmatprep.mubr.f32.mxu1 %v636_v46 }
 0x15d   :  { %v16531_v63 = vpack.c.bf16 %v556_v48, %v555_v54  ;;  %v439_v0 = vadd.f32 %v16326_v28, %v438_v61  ;;  %14571 = vmatprep.subr.bf16.mxu0 %v16363_v33  ;;  %1158 = vmatprep.mubr.f32.mxu0 %v1023_v25  ;;  %v1035_v25 = vunpack.c.h.bf16 %v9941_v32 }
 0x15e   :  { %v558_v6 = vmax.f32 %v444_v58, 0.0 }
 0x15f   :  { %19597 = vst [vmem:[#allocation6_spill] sm:$0xff] %v16531_v63  ;;  %v557_v11 = vmax.f32 %v439_v0, 0.0  ;;  %v13020_v12 = vpop.f32.mrb[52].mxu0  ;;  %772 = vmatmul.mubr.f32.gmra.mrb[16].mxu1 %v635_v56  ;;  %14411 = vmatprep.subr.bf16.mxu1 %v16531_v63  ;;  %v647_v56 = vunpack.c.l.bf16 %v593_v31 }
 0x160   :  { %v454_v15 = vadd.f32 %v13020_v12, %v16326_v28  ;;  %1159 = vmatmul.mubr.f32.gmra.mrb[80].mxu0 %v1022_v62  ;;  %v448_v17 = vpop.f32.mrb[53].mxu0  ;;  %14413 = vmatpush3.bf16.msra.mxu1 %v16435_v44  ;;  %v1034_v62 = vunpack.c.l.bf16 %v9941_v32 }
 0x161   :  { %v16544_v20 = vpack.c.bf16 %v558_v6, %v557_v11  ;;  %v449_v21 = vadd.f32 %v16326_v28, %v448_v17  ;;  %776 = vmatprep.mubr.f32.mxu1 %v640_v3  ;;  %1163 = vmatprep.mubr.f32.mxu0 %v1027_v4  ;;  %v652_v4 = vunpack.c.h.bf16 %v595_v51  ;;  %v1039_v6 = vunpack.c.h.bf16 %v9943_v53  ;;  %v9945_v11 = vld [vmem:[%s19561_s3 + $0x1d0] sm:$0xff] }
 0x162   :  { %v560_v30 = vmax.f32 %v454_v15, 0.0  ;;  %v651_v15 = vunpack.c.l.bf16 %v595_v51  ;;  %v1043_v31 = vunpack.c.h.bf16 %v9945_v11 }
 0x163   :  { %v559_v35 = vmax.f32 %v449_v21, 0.0  ;;  %v13023_v36 = vpop.f32.mrb[54].mxu0  ;;  %777 = vmatmul.mubr.f32.gmra.mrb[18].mxu1 %v639_v14  ;;  %14415 = vmatprep.subr.bf16.mxu1 %v16544_v20  ;;  %v1038_v21 = vunpack.c.l.bf16 %v9943_v53 }
 0x164   :  { %v464_v39 = vadd.f32 %v13023_v36, %v16326_v28  ;;  %1164 = vmatmul.mubr.f32.gmra.mrb[82].mxu0 %v1026_v19  ;;  %v458_v40 = vpop.f32.mrb[55].mxu0  ;;  %14417 = vmatpush3.bf16.msra.mxu1 %v16447_v60  ;;  %v9947_v36 = vld [vmem:[%s19561_s3 + $0x1e0] sm:$0xff] }
 0x165   :  { %v16556_v43 = vpack.c.bf16 %v560_v30, %v559_v35  ;;  %v459_v46 = vadd.f32 %v16326_v28, %v458_v40  ;;  %781 = vmatprep.mubr.f32.mxu1 %v644_v22  ;;  %1168 = vmatprep.mubr.f32.mxu0 %v1031_v27  ;;  %v656_v30 = vunpack.c.h.bf16 %v597_v8  ;;  %v599_v35 = vld [vmem:[%s19561_s3 + $0xe0] sm:$0xff]  ;;  %v655_v40 = vunpack.c.l.bf16 %v597_v8 }
 0x166   :  { %v562_v48 = vmax.f32 %v464_v39, 0.0  ;;  %v660_v51 = vunpack.c.h.bf16 %v599_v35  ;;  %v1047_v53 = vunpack.c.h.bf16 %v9947_v36 }
 0x167   :  { %v561_v54 = vmax.f32 %v459_v46, 0.0  ;;  %v13026_v55 = vpop.f32.mrb[56].mxu0  ;;  %782 = vmatmul.mubr.f32.gmra.mrb[20].mxu1 %v643_v37  ;;  %14419 = vmatprep.subr.bf16.mxu1 %v16556_v43 }
 0x168   :  { %v474_v58 = vadd.f32 %v13026_v55, %v16326_v28  ;;  %1169 = vmatmul.mubr.f32.gmra.mrb[84].mxu0 %v1030_v42  ;;  %v468_v61 = vpop.f32.mrb[57].mxu0  ;;  %14421 = vmatpush3.bf16.msra.mxu1 %v16459_v13  ;;  %v601_v55 = vld [vmem:[%s19561_s3 + $0xf0] sm:$0xff] }
 0x169   :  { %v16568_v0 = vpack.c.bf16 %v562_v48, %v561_v54  ;;  %v469_v3 = vadd.f32 %v16326_v28, %v468_v61  ;;  %786 = vmatprep.mubr.f32.mxu1 %v648_v24  ;;  %1173 = vmatprep.mubr.f32.mxu0 %v1035_v25  ;;  %v1042_v24 = vunpack.c.l.bf16 %v9945_v11  ;;  %v664_v11 = vunpack.c.h.bf16 %v601_v55 }
 0x16a   :  { %v564_v7 = vmax.f32 %v474_v58, 0.0 }
 0x16b   :  { %v563_v12 = vmax.f32 %v469_v3, 0.0  ;;  %v13029_v14 = vpop.f32.mrb[58].mxu0  ;;  %787 = vmatmul.mubr.f32.gmra.mrb[22].mxu1 %v647_v56  ;;  %14423 = vmatprep.subr.bf16.mxu1 %v16568_v0  ;;  %v9949_v56 = vld [vmem:[%s19561_s3 + $0x1f0] sm:$0xff] }
 0x16c   :  { %v484_v17 = vadd.f32 %v13029_v14, %v16326_v28  ;;  %1174 = vmatmul.mubr.f32.gmra.mrb[86].mxu0 %v1034_v62  ;;  %v478_v19 = vpop.f32.mrb[59].mxu0  ;;  %14425 = vmatpush3.bf16.msra.mxu1 %v16471_v34  ;;  %v659_v62 = vunpack.c.l.bf16 %v599_v35  ;;  %v574_v35 = vld [vmem:[%s19561_s3 + $0x18] sm:$0xff] }
 0x16d   :  { %v16580_v22 = vpack.c.bf16 %v564_v7, %v563_v12  ;;  %v479_v27 = vadd.f32 %v16326_v28, %v478_v19  ;;  %791 = vmatprep.mubr.f32.mxu1 %v652_v4  ;;  %1178 = vmatprep.mubr.f32.mxu0 %v1039_v6  ;;  %v1046_v6 = vunpack.c.l.bf16 %v9947_v36  ;;  %v1051_v12 = vunpack.c.h.bf16 %v9949_v56 }
 0x16e   :  { %v566_v32 = vmax.f32 %v484_v17, 0.0  ;;  %v663_v19 = vunpack.c.l.bf16 %v601_v55  ;;  %v578_v55 = vld [vmem:[%s19561_s3 + $0x38] sm:$0xff] }
 0x16f   :  { %v565_v37 = vmax.f32 %v479_v27, 0.0  ;;  %v13032_v39 = vpop.f32.mrb[60].mxu0  ;;  %792 = vmatmul.mubr.f32.gmra.mrb[24].mxu1 %v651_v15  ;;  %14427 = vmatprep.subr.bf16.mxu1 %v16580_v22  ;;  %v572_v15 = vld [vmem:[%s19561_s3 + $0x8] sm:$0xff] }
 0x170   :  { %v494_v42 = vadd.f32 %v13032_v39, %v16326_v28  ;;  %1179 = vmatmul.mubr.f32.gmra.mrb[88].mxu0 %v1038_v21  ;;  %v488_v46 = vpop.f32.mrb[61].mxu0  ;;  %14429 = vmatpush3.bf16.msra.mxu1 %v16483_v50  ;;  %v9951_v21 = vld [vmem:[%s19561_s3 + $0x200] sm:$0xff]  ;;  %v610_v39 = vunpack.c.h.bf16 %v574_v35 }
 0x171   :  { %v16592_v25 = vpack.c.bf16 %v566_v32, %v565_v37  ;;  %v489_v48 = vadd.f32 %v16326_v28, %v488_v46  ;;  %796 = vmatprep.mubr.f32.mxu1 %v656_v30  ;;  %1183 = vmatprep.mubr.f32.mxu0 %v1043_v31  ;;  %v606_v30 = vunpack.c.h.bf16 %v572_v15  ;;  %v1394_v31 = vunpack.c.h.bf16 %v9951_v21  ;;  %v9953_v37 = vld [vmem:[%s19561_s3 + $0x210] sm:$0xff]  ;;  %v576_v46 = vld [vmem:[%s19561_s3 + $0x28] sm:$0xff] }
 0x172   :  { %v568_v54 = vmax.f32 %v494_v42, 0.0  ;;  %v605_v32 = vunpack.c.l.bf16 %v572_v15  ;;  %v1393_v36 = vunpack.c.l.bf16 %v9951_v21  ;;  %v609_v42 = vunpack.c.l.bf16 %v574_v35  ;;  %v582_v15 = vld [vmem:[%s19561_s3 + $0x58] sm:$0xff]  ;;  %v9963_v35 = vld [vmem:[%s19561_s3 + $0x260] sm:$0xff] }
 0x173   :  { %v567_v58 = vmax.f32 %v489_v48, 0.0  ;;  %v13035_v61 = vpop.f32.mrb[62].mxu0  ;;  %797 = vmatmul.mubr.f32.gmra.mrb[26].mxu1 %v655_v40  ;;  %14431 = vmatprep.subr.bf16.mxu1 %v16592_v25  ;;  %v1398_v40 = vunpack.c.h.bf16 %v9953_v37  ;;  %v9955_v48 = vld [vmem:[%s19561_s3 + $0x220] sm:$0xff]  ;;  %v626_v21 = vunpack.c.h.bf16 %v582_v15 }
 0x174   :  { %v504_v3 = vadd.f32 %v13035_v61, %v16326_v28  ;;  %1184 = vmatmul.mubr.f32.gmra.mrb[90].mxu0 %v1042_v24  ;;  %v498_v4 = vpop.f32.mrb[63].mxu0  ;;  %14433 = vmatpush3.bf16.msra.mxu1 %v16495_v5  ;;  %v1397_v24 = vunpack.c.l.bf16 %v9953_v37  ;;  %v618_v61 = vunpack.c.h.bf16 %v578_v55  ;;  %v1418_v37 = vunpack.c.h.bf16 %v9963_v35 }
 0x175   :  { %v16604_v7 = vpack.c.bf16 %v568_v54, %v567_v58  ;;  %v499_v8 = vadd.f32 %v16326_v28, %v498_v4  ;;  %801 = vmatprep.mubr.f32.mxu1 %v660_v51  ;;  %1188 = vmatprep.mubr.f32.mxu0 %v1047_v53  ;;  %v1050_v28 = vunpack.c.l.bf16 %v9949_v56  ;;  %v614_v51 = vunpack.c.h.bf16 %v576_v46  ;;  %v9957_v58 = vld [vmem:[%s19561_s3 + $0x230] sm:$0xff]  ;;  %v580_v4 = vld [vmem:[%s19561_s3 + $0x48] sm:$0xff] }
 0x176   :  { %v570_v14 = vmax.f32 %v504_v3, 0.0  ;;  %v1402_v53 = vunpack.c.h.bf16 %v9955_v48  ;;  %v613_v54 = vunpack.c.l.bf16 %v576_v46  ;;  %v1401_v56 = vunpack.c.l.bf16 %v9955_v48  ;;  %v9965_v46 = vld [vmem:[%s19561_s3 + $0x270] sm:$0xff] }
 0x177   :  { %19598 = vst [vmem:[#allocation7_spill] sm:$0xff] %v16604_v7  ;;  %v569_v17 = vmax.f32 %v499_v8, 0.0  ;;  %802 = vmatmul.mubr.f32.gmra.mrb[28].mxu1 %v659_v62  ;;  %14435 = vmatprep.subr.bf16.mxu1 %v16604_v7  ;;  %v1406_v62 = vunpack.c.h.bf16 %v9957_v58  ;;  %v617_v3 = vunpack.c.l.bf16 %v578_v55  ;;  %v9959_v8 = vld [vmem:[%s19561_s3 + $0x240] sm:$0xff]  ;;  %v1422_v48 = vunpack.c.h.bf16 %v9965_v46 }
 0x178   :  { %1189 = vmatmul.mubr.f32.gmra.mrb[92].mxu0 %v1046_v6  ;;  %14437 = vmatpush3.bf16.msra.mxu1 %v16507_v26  ;;  %v1405_v6 = vunpack.c.l.bf16 %v9957_v58  ;;  %v9967_v55 = vld [vmem:[%s19561_s3 + $0x280] sm:$0xff] }
 0x179   :  { %v16615_v27 = vpack.c.bf16 %v570_v14, %v569_v17  ;;  %806 = vmatprep.mubr.f32.mxu1 %v664_v11  ;;  %1193 = vmatprep.mubr.f32.mxu0 %v1051_v12  ;;  %v622_v11 = vunpack.c.h.bf16 %v580_v4  ;;  %v1410_v12 = vunpack.c.h.bf16 %v9959_v8  ;;  %v621_v14 = vunpack.c.l.bf16 %v580_v4 }
 0x17a   :  { %v1409_v17 = vunpack.c.l.bf16 %v9959_v8  ;;  %v1425_v4 = vunpack.c.l.bf16 %v9967_v55 }
 0x17b   :  { %19599 = vst [vmem:[#allocation8_spill] sm:$0xff] %v16615_v27  ;;  %807 = vmatmul.mubr.f32.gmra.mrb[30].mxu1 %v663_v19  ;;  %14439 = vmatprep.subr.bf16.mxu1 %v16615_v27  ;;  %v9961_v19 = vld [vmem:[%s19561_s3 + $0x250] sm:$0xff] }
 0x17c   :  { %1194 = vmatmul.mubr.f32.gmra.mrb[94].mxu0 %v1050_v28  ;;  %14441 = vmatpush3.bf16.msra.mxu1 %v16519_v47  ;;  %v1414_v28 = vunpack.c.h.bf16 %v9961_v19 }
 0x17d   :  { %14475 = vmatprep.subr.bf16.mxu1 %v16531_v63  ;;  %876 = vmatprep.mubr.f32.mxu1 %v606_v30  ;;  %v625_v30 = vunpack.c.l.bf16 %v582_v15 }
 0x17e   :  { %1521 = vmatprep.mubr.f32.mxu0 %v1394_v31  ;;  %v584_v31 = vld [vmem:[%s19561_s3 + $0x68] sm:$0xff] }
 0x17f   :  { %877 = vmatmul.mubr.f32.vlgmr.msra.gmra.mrb[32].mxu1 %v605_v32  ;;  %v1413_v32 = vunpack.c.l.bf16 %v9961_v19 }
 0x180   :  { %1522 = vmatmul.mubr.f32.vlgmr.msra.gmra.mrb[96].mxu0 %v1393_v36  ;;  %14477 = vmatpush3.bf16.msra.mxu1 %v16435_v44  ;;  %v630_v36 = vunpack.c.h.bf16 %v584_v31 }
 0x181   :  { %14573 = vmatpush3.bf16.msra.mxu0 %v16331_v38  ;;  %14479 = vmatprep.subr.bf16.mxu1 %v16544_v20 }
 0x182   :  { %14575 = vmatprep.subr.bf16.mxu0 %v16371_v41  ;;  %881 = vmatprep.mubr.f32.mxu1 %v610_v39  ;;  %v629_v39 = vunpack.c.l.bf16 %v584_v31 }
 0x183   :  { %1526 = vmatprep.mubr.f32.mxu0 %v1398_v40  ;;  %882 = vmatmul.mubr.f32.gmra.mrb[34].mxu1 %v609_v42  ;;  %v586_v40 = vld [vmem:[%s19561_s3 + $0x78] sm:$0xff]  ;;  %v1417_v42 = vunpack.c.l.bf16 %v9963_v35 }
 0x184   :  { %1527 = vmatmul.mubr.f32.gmra.mrb[98].mxu0 %v1397_v24  ;;  %14481 = vmatpush3.bf16.msra.mxu1 %v16447_v60  ;;  %v634_v24 = vunpack.c.h.bf16 %v586_v40 }
 0x185   :  { %14577 = vmatpush3.bf16.msra.mxu0 %v16335_v45  ;;  %14483 = vmatprep.subr.bf16.mxu1 %v16556_v43 }
 0x186   :  { %14579 = vmatprep.subr.bf16.mxu0 %v16379_v49  ;;  %886 = vmatprep.mubr.f32.mxu1 %v614_v51  ;;  %v633_v51 = vunpack.c.l.bf16 %v586_v40 }
 0x187   :  { %1531 = vmatprep.mubr.f32.mxu0 %v1402_v53  ;;  %887 = vmatmul.mubr.f32.gmra.mrb[36].mxu1 %v613_v54  ;;  %v588_v53 = vld [vmem:[%s19561_s3 + $0x88] sm:$0xff]  ;;  %v1421_v54 = vunpack.c.l.bf16 %v9965_v46 }
 0x188   :  { %1532 = vmatmul.mubr.f32.gmra.mrb[100].mxu0 %v1401_v56  ;;  %14485 = vmatpush3.bf16.msra.mxu1 %v16459_v13  ;;  %v590_v56 = vld [vmem:[%s19561_s3 + $0x98] sm:$0xff]  ;;  %v638_v58 = vunpack.c.h.bf16 %v588_v53 }
 0x189   :  { %14581 = vmatpush3.bf16.msra.mxu0 %v16339_v52  ;;  %14487 = vmatprep.subr.bf16.mxu1 %v16568_v0 }
 0x18a   :  { %14583 = vmatprep.subr.bf16.mxu0 %v16387_v57  ;;  %891 = vmatprep.mubr.f32.mxu1 %v618_v61  ;;  %v9969_v61 = vld [vmem:[%s19561_s3 + $0x290] sm:$0xff] }
 0x18b   :  { %1536 = vmatprep.mubr.f32.mxu0 %v1406_v62  ;;  %892 = vmatmul.mubr.f32.gmra.mrb[38].mxu1 %v617_v3  ;;  %v1426_v62 = vunpack.c.h.bf16 %v9967_v55  ;;  %v637_v3 = vunpack.c.l.bf16 %v588_v53  ;;  %v1430_v8 = vunpack.c.h.bf16 %v9969_v61  ;;  %v1429_v15 = vunpack.c.l.bf16 %v9969_v61 }
 0x18c   :  { %1537 = vmatmul.mubr.f32.gmra.mrb[102].mxu0 %v1405_v6  ;;  %14489 = vmatpush3.bf16.msra.mxu1 %v16471_v34  ;;  %v642_v6 = vunpack.c.h.bf16 %v590_v56 }
 0x18d   :  { %14585 = vmatpush3.bf16.msra.mxu0 %v16343_v59  ;;  %14491 = vmatprep.subr.bf16.mxu1 %v16580_v22 }
 0x18e   :  { %14587 = vmatprep.subr.bf16.mxu0 %v16395_v1  ;;  %896 = vmatprep.mubr.f32.mxu1 %v622_v11  ;;  %v592_v11 = vld [vmem:[%s19561_s3 + $0xa8] sm:$0xff] }
 0x18f   :  { %1541 = vmatprep.mubr.f32.mxu0 %v1410_v12  ;;  %897 = vmatmul.mubr.f32.gmra.mrb[40].mxu1 %v621_v14  ;;  %v9971_v12 = vld [vmem:[%s19561_s3 + $0x2a0] sm:$0xff]  ;;  %v641_v14 = vunpack.c.l.bf16 %v590_v56  ;;  %v600_v56 = vld [vmem:[%s19561_s3 + $0xe8] sm:$0xff] }
 0x190   :  { %1542 = vmatmul.mubr.f32.gmra.mrb[104].mxu0 %v1409_v17  ;;  %14493 = vmatpush3.bf16.msra.mxu1 %v16483_v50  ;;  %v646_v17 = vunpack.c.h.bf16 %v592_v11  ;;  %v1434_v19 = vunpack.c.h.bf16 %v9971_v12  ;;  %v1433_v31 = vunpack.c.l.bf16 %v9971_v12 }
 0x191   :  { %14589 = vmatpush3.bf16.msra.mxu0 %v16347_v2  ;;  %14495 = vmatprep.subr.bf16.mxu1 %v16592_v25 }
 0x192   :  { %14591 = vmatprep.subr.bf16.mxu0 %v16403_v10  ;;  %901 = vmatprep.mubr.f32.mxu1 %v626_v21  ;;  %v594_v21 = vld [vmem:[%s19561_s3 + $0xb8] sm:$0xff] }
 0x193   :  { %1546 = vmatprep.mubr.f32.mxu0 %v1414_v28  ;;  %902 = vmatmul.mubr.f32.gmra.mrb[42].mxu1 %v625_v30  ;;  %v9973_v28 = vld [vmem:[%s19561_s3 + $0x2b0] sm:$0xff]  ;;  %v645_v30 = vunpack.c.l.bf16 %v592_v11  ;;  %v661_v11 = vunpack.c.l.bf16 %v600_v56 }
 0x194   :  { %1547 = vmatmul.mubr.f32.gmra.mrb[106].mxu0 %v1413_v32  ;;  %14497 = vmatpush3.bf16.msra.mxu1 %v16495_v5  ;;  %v650_v32 = vunpack.c.h.bf16 %v594_v21  ;;  %v1438_v35 = vunpack.c.h.bf16 %v9973_v28  ;;  %v1437_v40 = vunpack.c.l.bf16 %v9973_v28 }
 0x195   :  { %14593 = vmatpush3.bf16.msra.mxu0 %v16351_v9  ;;  %14499 = vmatprep.subr.bf16.mxu1 %v16604_v7 }
 0x196   :  { %14595 = vmatprep.subr.bf16.mxu0 %v16411_v18  ;;  %906 = vmatprep.mubr.f32.mxu1 %v630_v36  ;;  %v596_v36 = vld [vmem:[%s19561_s3 + $0xc8] sm:$0xff] }
 0x197   :  { %1551 = vmatprep.mubr.f32.mxu0 %v1418_v37  ;;  %907 = vmatmul.mubr.f32.gmra.mrb[44].mxu1 %v629_v39  ;;  %v9975_v37 = vld [vmem:[%s19561_s3 + $0x2c0] sm:$0xff]  ;;  %v649_v39 = vunpack.c.l.bf16 %v594_v21 }
 0x198   :  { %1552 = vmatmul.mubr.f32.gmra.mrb[108].mxu0 %v1417_v42  ;;  %14501 = vmatpush3.bf16.msra.mxu1 %v16507_v26  ;;  %v654_v42 = vunpack.c.h.bf16 %v596_v36  ;;  %v1442_v46 = vunpack.c.h.bf16 %v9975_v37  ;;  %v1441_v53 = vunpack.c.l.bf16 %v9975_v37  ;;  %v9985_v37 = vld [vmem:[%s19561_s3 + $0x310] sm:$0xff] }
 0x199   :  { %14597 = vmatpush3.bf16.msra.mxu0 %v16355_v16  ;;  %14503 = vmatprep.subr.bf16.mxu1 %v16615_v27 }
 0x19a   :  { %14599 = vmatprep.subr.bf16.mxu0 %v16419_v29  ;;  %911 = vmatprep.mubr.f32.mxu1 %v634_v24  ;;  %v598_v24 = vld [vmem:[%s19561_s3 + $0xd8] sm:$0xff] }
 0x19b   :  { %1556 = vmatprep.mubr.f32.mxu0 %v1422_v48  ;;  %912 = vmatmul.mubr.f32.gmra.mrb[46].mxu1 %v633_v51  ;;  %v9977_v48 = vld [vmem:[%s19561_s3 + $0x2d0] sm:$0xff]  ;;  %v653_v51 = vunpack.c.l.bf16 %v596_v36  ;;  %v657_v61 = vunpack.c.l.bf16 %v598_v24 }
 0x19c   :  { %1557 = vmatmul.mubr.f32.gmra.mrb[110].mxu0 %v1421_v54  ;;  %14505 = vmatpush3.bf16.msra.mxu1 %v16519_v47  ;;  %v658_v54 = vunpack.c.h.bf16 %v598_v24  ;;  %v1446_v55 = vunpack.c.h.bf16 %v9977_v48  ;;  %v1800_v24 = vunpack.c.l.bf16 %v9985_v37 }
 0x19d   :  { %14601 = vmatpush3.bf16.msra.mxu0 %v16359_v23  ;;  %14539 = vmatprep.subr.bf16.mxu1 %v16531_v63 }
 0x19e   :  { %14635 = vmatprep.subr.bf16.mxu0 %v16363_v33  ;;  %916 = vmatprep.mubr.f32.mxu1 %v638_v58  ;;  %v9979_v58 = vld [vmem:[%s19561_s3 + $0x2e0] sm:$0xff] }
 0x19f   :  { %1561 = vmatprep.mubr.f32.mxu0 %v1426_v62  ;;  %917 = vmatmul.mubr.f32.gmra.mrb[48].mxu1 %v637_v3  ;;  %v1445_v62 = vunpack.c.l.bf16 %v9977_v48  ;;  %v662_v3 = vunpack.c.h.bf16 %v600_v56  ;;  %v1449_v12 = vunpack.c.l.bf16 %v9979_v58  ;;  %v9987_v48 = vld [vmem:[%s19561_s3 + $0x320] sm:$0xff] }
 0x1a0   :  { %1562 = vmatmul.mubr.f32.gmra.mrb[112].mxu0 %v1425_v4  ;;  %921 = vmatprep.mubr.f32.mxu1 %v642_v6  ;;  %v1450_v4 = vunpack.c.h.bf16 %v9979_v58  ;;  %v602_v6 = vld [vmem:[%s19561_s3 + $0xf8] sm:$0xff]  ;;  %v1804_v56 = vunpack.c.l.bf16 %v9987_v48  ;;  %v9989_v58 = vld [vmem:[%s19561_s3 + $0x330] sm:$0xff] }
 0x1a1   :  { %1566 = vmatprep.mubr.f32.mxu0 %v1430_v8  ;;  %v9981_v8 = vld [vmem:[%s19561_s3 + $0x2f0] sm:$0xff]  ;;  %v665_v21 = vunpack.c.l.bf16 %v602_v6 }
 0x1a2   :  { %v1453_v28 = vunpack.c.l.bf16 %v9981_v8 }
 0x1a3   :  { %922 = vmatmul.mubr.f32.gmra.mrb[50].mxu1 %v641_v14  ;;  %v666_v14 = vunpack.c.h.bf16 %v602_v6  ;;  %v1808_v6 = vunpack.c.l.bf16 %v9989_v58 }
 0x1a4   :  { %1567 = vmatmul.mubr.f32.gmra.mrb[114].mxu0 %v1429_v15  ;;  %926 = vmatprep.mubr.f32.mxu1 %v646_v17  ;;  %v1454_v15 = vunpack.c.h.bf16 %v9981_v8  ;;  %v9920_v17 = vld [vmem:[%s19561_s3 + $0x108] sm:$0xff]  ;;  %v9991_v8 = vld [vmem:[%s19561_s3 + $0x340] sm:$0xff] }
 0x1a5   :  { %1571 = vmatprep.mubr.f32.mxu0 %v1434_v19  ;;  %v9983_v19 = vld [vmem:[%s19561_s3 + $0x300] sm:$0xff] }
 0x1a6   :  { %v1796_v36 = vunpack.c.l.bf16 %v9983_v19 }
 0x1a7   :  { %927 = vmatmul.mubr.f32.gmra.mrb[52].mxu1 %v645_v30  ;;  %v993_v30 = vunpack.c.h.bf16 %v9920_v17 }
 0x1a8   :  { %1572 = vmatmul.mubr.f32.gmra.mrb[116].mxu0 %v1433_v31  ;;  %931 = vmatprep.mubr.f32.mxu1 %v650_v32  ;;  %v1797_v31 = vunpack.c.h.bf16 %v9983_v19  ;;  %v992_v32 = vunpack.c.l.bf16 %v9920_v17  ;;  %v1812_v17 = vunpack.c.l.bf16 %v9991_v8  ;;  %v9993_v19 = vld [vmem:[%s19561_s3 + $0x350] sm:$0xff] }
 0x1a9   :  { %1576 = vmatprep.mubr.f32.mxu0 %v1438_v35  ;;  %v9922_v35 = vld [vmem:[%s19561_s3 + $0x118] sm:$0xff] }
 0x1ab   :  { %932 = vmatmul.mubr.f32.gmra.mrb[54].mxu1 %v649_v39  ;;  %v997_v39 = vunpack.c.h.bf16 %v9922_v35 }
 0x1ac   :  { %1577 = vmatmul.mubr.f32.gmra.mrb[118].mxu0 %v1437_v40  ;;  %936 = vmatprep.mubr.f32.mxu1 %v654_v42  ;;  %v1801_v40 = vunpack.c.h.bf16 %v9985_v37  ;;  %v996_v42 = vunpack.c.l.bf16 %v9922_v35  ;;  %v9995_v35 = vld [vmem:[%s19561_s3 + $0x360] sm:$0xff] }
 0x1ad   :  { %1581 = vmatprep.mubr.f32.mxu0 %v1442_v46  ;;  %v9924_v46 = vld [vmem:[%s19561_s3 + $0x128] sm:$0xff]  ;;  %v1821_v37 = vunpack.c.h.bf16 %v9995_v35 }
 0x1af   :  { %937 = vmatmul.mubr.f32.gmra.mrb[56].mxu1 %v653_v51  ;;  %v1001_v51 = vunpack.c.h.bf16 %v9924_v46 }
 0x1b0   :  { %1582 = vmatmul.mubr.f32.gmra.mrb[120].mxu0 %v1441_v53  ;;  %941 = vmatprep.mubr.f32.mxu1 %v658_v54  ;;  %v1805_v53 = vunpack.c.h.bf16 %v9987_v48  ;;  %v1000_v54 = vunpack.c.l.bf16 %v9924_v46  ;;  %v9997_v46 = vld [vmem:[%s19561_s3 + $0x370] sm:$0xff] }
 0x1b1   :  { %1586 = vmatprep.mubr.f32.mxu0 %v1446_v55  ;;  %v9926_v55 = vld [vmem:[%s19561_s3 + $0x138] sm:$0xff]  ;;  %v1825_v48 = vunpack.c.h.bf16 %v9997_v46 }
 0x1b3   :  { %942 = vmatmul.mubr.f32.gmra.mrb[58].mxu1 %v657_v61  ;;  %v1005_v61 = vunpack.c.h.bf16 %v9926_v55 }
 0x1b4   :  { %1587 = vmatmul.mubr.f32.gmra.mrb[122].mxu0 %v1445_v62  ;;  %946 = vmatprep.mubr.f32.mxu1 %v662_v3  ;;  %v1809_v62 = vunpack.c.h.bf16 %v9989_v58  ;;  %v1004_v3 = vunpack.c.l.bf16 %v9926_v55  ;;  %v9999_v55 = vld [vmem:[%s19561_s3 + $0x380] sm:$0xff] }
 0x1b5   :  { %1591 = vmatprep.mubr.f32.mxu0 %v1450_v4  ;;  %v9928_v4 = vld [vmem:[%s19561_s3 + $0x148] sm:$0xff] }
 0x1b7   :  { %947 = vmatmul.mubr.f32.gmra.mrb[60].mxu1 %v661_v11  ;;  %v1009_v11 = vunpack.c.h.bf16 %v9928_v4 }
 0x1b8   :  { %1592 = vmatmul.mubr.f32.gmra.mrb[124].mxu0 %v1449_v12  ;;  %951 = vmatprep.mubr.f32.mxu1 %v666_v14  ;;  %v1813_v12 = vunpack.c.h.bf16 %v9991_v8  ;;  %v1008_v14 = vunpack.c.l.bf16 %v9928_v4  ;;  %v1828_v4 = vunpack.c.l.bf16 %v9999_v55 }
 0x1b9   :  { %1596 = vmatprep.mubr.f32.mxu0 %v1454_v15  ;;  %v9930_v15 = vld [vmem:[%s19561_s3 + $0x158] sm:$0xff] }
 0x1bb   :  { %952 = vmatmul.mubr.f32.gmra.mrb[62].mxu1 %v665_v21  ;;  %v1013_v21 = vunpack.c.h.bf16 %v9930_v15 }
 0x1bc   :  { %1597 = vmatmul.mubr.f32.gmra.mrb[126].mxu0 %v1453_v28  ;;  %1263 = vmatprep.mubr.f32.mxu1 %v993_v30  ;;  %v1817_v28 = vunpack.c.h.bf16 %v9993_v19  ;;  %v1012_v30 = vunpack.c.l.bf16 %v9930_v15 }
 0x1bd   :  { %1924 = vmatprep.mubr.f32.mxu0 %v1797_v31  ;;  %v9932_v31 = vld [vmem:[%s19561_s3 + $0x168] sm:$0xff] }
 0x1bf   :  { %1264 = vmatmul.mubr.f32.vlgmr.msra.gmra.mrb[64].mxu1 %v992_v32  ;;  %v1816_v32 = vunpack.c.l.bf16 %v9993_v19 }
 0x1c0   :  { %14541 = vmatpush3.bf16.msra.mxu1 %v16435_v44  ;;  %1925 = vmatmul.mubr.f32.vlgmr.msra.gmra.mrb[128].mxu0 %v1796_v36  ;;  %v1017_v36 = vunpack.c.h.bf16 %v9932_v31 }
 0x1c1   :  { %14637 = vmatpush3.bf16.msra.mxu0 %v16331_v38  ;;  %14543 = vmatprep.subr.bf16.mxu1 %v16544_v20 }
 0x1c2   :  { %14639 = vmatprep.subr.bf16.mxu0 %v16371_v41  ;;  %1268 = vmatprep.mubr.f32.mxu1 %v997_v39  ;;  %v1016_v39 = vunpack.c.l.bf16 %v9932_v31 }
 0x1c3   :  { %1929 = vmatprep.mubr.f32.mxu0 %v1801_v40  ;;  %1269 = vmatmul.mubr.f32.gmra.mrb[66].mxu1 %v996_v42  ;;  %v9934_v40 = vld [vmem:[%s19561_s3 + $0x178] sm:$0xff]  ;;  %v1820_v42 = vunpack.c.l.bf16 %v9995_v35 }
 0x1c4   :  { %14545 = vmatpush3.bf16.msra.mxu1 %v16447_v60  ;;  %1930 = vmatmul.mubr.f32.gmra.mrb[130].mxu0 %v1800_v24  ;;  %v1021_v24 = vunpack.c.h.bf16 %v9934_v40 }
 0x1c5   :  { %14641 = vmatpush3.bf16.msra.mxu0 %v16335_v45  ;;  %14547 = vmatprep.subr.bf16.mxu1 %v16556_v43 }
 0x1c6   :  { %14643 = vmatprep.subr.bf16.mxu0 %v16379_v49  ;;  %1273 = vmatprep.mubr.f32.mxu1 %v1001_v51  ;;  %v1020_v51 = vunpack.c.l.bf16 %v9934_v40 }
 0x1c7   :  { %1934 = vmatprep.mubr.f32.mxu0 %v1805_v53  ;;  %1274 = vmatmul.mubr.f32.gmra.mrb[68].mxu1 %v1000_v54  ;;  %v9936_v53 = vld [vmem:[%s19561_s3 + $0x188] sm:$0xff]  ;;  %v1824_v54 = vunpack.c.l.bf16 %v9997_v46 }
 0x1c8   :  { %14549 = vmatpush3.bf16.msra.mxu1 %v16459_v13  ;;  %1935 = vmatmul.mubr.f32.gmra.mrb[132].mxu0 %v1804_v56  ;;  %v9938_v56 = vld [vmem:[%s19561_s3 + $0x198] sm:$0xff]  ;;  %v1025_v58 = vunpack.c.h.bf16 %v9936_v53 }
 0x1c9   :  { %14645 = vmatpush3.bf16.msra.mxu0 %v16339_v52  ;;  %14551 = vmatprep.subr.bf16.mxu1 %v16568_v0 }
 0x1ca   :  { %14647 = vmatprep.subr.bf16.mxu0 %v16387_v57  ;;  %1278 = vmatprep.mubr.f32.mxu1 %v1005_v61  ;;  %v10001_v61 = vld [vmem:[%s19561_s3 + $0x390] sm:$0xff] }
 0x1cb   :  { %1939 = vmatprep.mubr.f32.mxu0 %v1809_v62  ;;  %1279 = vmatmul.mubr.f32.gmra.mrb[70].mxu1 %v1004_v3  ;;  %v1829_v62 = vunpack.c.h.bf16 %v9999_v55  ;;  %v1024_v3 = vunpack.c.l.bf16 %v9936_v53  ;;  %v1833_v8 = vunpack.c.h.bf16 %v10001_v61  ;;  %v1832_v15 = vunpack.c.l.bf16 %v10001_v61 }
 0x1cc   :  { %14553 = vmatpush3.bf16.msra.mxu1 %v16471_v34  ;;  %1940 = vmatmul.mubr.f32.gmra.mrb[134].mxu0 %v1808_v6  ;;  %v1029_v6 = vunpack.c.h.bf16 %v9938_v56 }
 0x1cd   :  { %14649 = vmatpush3.bf16.msra.mxu0 %v16343_v59  ;;  %14555 = vmatprep.subr.bf16.mxu1 %v16580_v22 }
 0x1ce   :  { %14651 = vmatprep.subr.bf16.mxu0 %v16395_v1  ;;  %1283 = vmatprep.mubr.f32.mxu1 %v1009_v11  ;;  %v9940_v11 = vld [vmem:[%s19561_s3 + $0x1a8] sm:$0xff] }
 0x1cf   :  { %1944 = vmatprep.mubr.f32.mxu0 %v1813_v12  ;;  %1284 = vmatmul.mubr.f32.gmra.mrb[72].mxu1 %v1008_v14  ;;  %v10003_v12 = vld [vmem:[%s19561_s3 + $0x3a0] sm:$0xff]  ;;  %v1028_v14 = vunpack.c.l.bf16 %v9938_v56  ;;  %v9948_v56 = vld [vmem:[%s19561_s3 + $0x1e8] sm:$0xff] }
 0x1d0   :  { %14557 = vmatpush3.bf16.msra.mxu1 %v16483_v50  ;;  %1945 = vmatmul.mubr.f32.gmra.mrb[136].mxu0 %v1812_v17  ;;  %v1033_v17 = vunpack.c.h.bf16 %v9940_v11  ;;  %v1837_v19 = vunpack.c.h.bf16 %v10003_v12  ;;  %v1836_v31 = vunpack.c.l.bf16 %v10003_v12 }
 0x1d1   :  { %14653 = vmatpush3.bf16.msra.mxu0 %v16347_v2  ;;  %14559 = vmatprep.subr.bf16.mxu1 %v16592_v25 }
 0x1d2   :  { %14655 = vmatprep.subr.bf16.mxu0 %v16403_v10  ;;  %1288 = vmatprep.mubr.f32.mxu1 %v1013_v21  ;;  %v9942_v21 = vld [vmem:[%s19561_s3 + $0x1b8] sm:$0xff] }
 0x1d3   :  { %1949 = vmatprep.mubr.f32.mxu0 %v1817_v28  ;;  %1289 = vmatmul.mubr.f32.gmra.mrb[74].mxu1 %v1012_v30  ;;  %v10005_v28 = vld [vmem:[%s19561_s3 + $0x3b0] sm:$0xff]  ;;  %v1032_v30 = vunpack.c.l.bf16 %v9940_v11  ;;  %v1048_v11 = vunpack.c.l.bf16 %v9948_v56 }
 0x1d4   :  { %14561 = vmatpush3.bf16.msra.mxu1 %v16495_v5  ;;  %1950 = vmatmul.mubr.f32.gmra.mrb[138].mxu0 %v1816_v32  ;;  %v1037_v32 = vunpack.c.h.bf16 %v9942_v21  ;;  %v1841_v35 = vunpack.c.h.bf16 %v10005_v28  ;;  %v1840_v40 = vunpack.c.l.bf16 %v10005_v28 }
 0x1d5   :  { %14657 = vmatpush3.bf16.msra.mxu0 %v16351_v9  ;;  %14563 = vmatprep.subr.bf16.mxu1 %v16604_v7 }
 0x1d6   :  { %14659 = vmatprep.subr.bf16.mxu0 %v16411_v18  ;;  %1293 = vmatprep.mubr.f32.mxu1 %v1017_v36  ;;  %v9944_v36 = vld [vmem:[%s19561_s3 + $0x1c8] sm:$0xff] }
 0x1d7   :  { %1954 = vmatprep.mubr.f32.mxu0 %v1821_v37  ;;  %1294 = vmatmul.mubr.f32.gmra.mrb[76].mxu1 %v1016_v39  ;;  %v10007_v37 = vld [vmem:[%s19561_s3 + $0x3c0] sm:$0xff]  ;;  %v1036_v39 = vunpack.c.l.bf16 %v9942_v21 }
 0x1d8   :  { %14565 = vmatpush3.bf16.msra.mxu1 %v16507_v26  ;;  %1955 = vmatmul.mubr.f32.gmra.mrb[140].mxu0 %v1820_v42  ;;  %v1041_v42 = vunpack.c.h.bf16 %v9944_v36  ;;  %v1845_v46 = vunpack.c.h.bf16 %v10007_v37  ;;  %v1844_v53 = vunpack.c.l.bf16 %v10007_v37  ;;  %v10017_v37 = vld [vmem:[%s19561_s3 + $0x410] sm:$0xff] }
 0x1d9   :  { %14661 = vmatpush3.bf16.msra.mxu0 %v16355_v16  ;;  %14567 = vmatprep.subr.bf16.mxu1 %v16615_v27 }
 0x1da   :  { %14663 = vmatprep.subr.bf16.mxu0 %v16419_v29  ;;  %1298 = vmatprep.mubr.f32.mxu1 %v1021_v24  ;;  %v9946_v24 = vld [vmem:[%s19561_s3 + $0x1d8] sm:$0xff] }
 0x1db   :  { %1959 = vmatprep.mubr.f32.mxu0 %v1825_v48  ;;  %1299 = vmatmul.mubr.f32.gmra.mrb[78].mxu1 %v1020_v51  ;;  %v10009_v48 = vld [vmem:[%s19561_s3 + $0x3d0] sm:$0xff]  ;;  %v1040_v51 = vunpack.c.l.bf16 %v9944_v36  ;;  %v1044_v61 = vunpack.c.l.bf16 %v9946_v24 }
 0x1dc   :  { %14569 = vmatpush3.bf16.msra.mxu1 %v16519_v47  ;;  %1960 = vmatmul.mubr.f32.gmra.mrb[142].mxu0 %v1824_v54  ;;  %v1045_v54 = vunpack.c.h.bf16 %v9946_v24  ;;  %v1849_v55 = vunpack.c.h.bf16 %v10009_v48  ;;  %v2203_v24 = vunpack.c.l.bf16 %v10017_v37 }
 0x1dd   :  { %14665 = vmatpush3.bf16.msra.mxu0 %v16359_v23  ;;  %14603 = vmatprep.subr.bf16.mxu1 %v16531_v63 }
 0x1de   :  { %14699 = vmatprep.subr.bf16.mxu0 %v16363_v33  ;;  %1303 = vmatprep.mubr.f32.mxu1 %v1025_v58  ;;  %v10011_v58 = vld [vmem:[%s19561_s3 + $0x3e0] sm:$0xff] }
 0x1df   :  { %1964 = vmatprep.mubr.f32.mxu0 %v1829_v62  ;;  %1304 = vmatmul.mubr.f32.gmra.mrb[80].mxu1 %v1024_v3  ;;  %v1848_v62 = vunpack.c.l.bf16 %v10009_v48  ;;  %v1049_v3 = vunpack.c.h.bf16 %v9948_v56  ;;  %v1852_v12 = vunpack.c.l.bf16 %v10011_v58  ;;  %v10019_v48 = vld [vmem:[%s19561_s3 + $0x420] sm:$0xff] }
 0x1e0   :  { %1965 = vmatmul.mubr.f32.gmra.mrb[144].mxu0 %v1828_v4  ;;  %1308 = vmatprep.mubr.f32.mxu1 %v1029_v6  ;;  %v1853_v4 = vunpack.c.h.bf16 %v10011_v58  ;;  %v9950_v6 = vld [vmem:[%s19561_s3 + $0x1f8] sm:$0xff]  ;;  %v2207_v56 = vunpack.c.l.bf16 %v10019_v48  ;;  %v10021_v58 = vld [vmem:[%s19561_s3 + $0x430] sm:$0xff] }
 0x1e1   :  { %1969 = vmatprep.mubr.f32.mxu0 %v1833_v8  ;;  %v10013_v8 = vld [vmem:[%s19561_s3 + $0x3f0] sm:$0xff]  ;;  %v1052_v21 = vunpack.c.l.bf16 %v9950_v6 }
 0x1e2   :  { %v1856_v28 = vunpack.c.l.bf16 %v10013_v8 }
 0x1e3   :  { %1309 = vmatmul.mubr.f32.gmra.mrb[82].mxu1 %v1028_v14  ;;  %v1053_v14 = vunpack.c.h.bf16 %v9950_v6  ;;  %v2211_v6 = vunpack.c.l.bf16 %v10021_v58 }
 0x1e4   :  { %1970 = vmatmul.mubr.f32.gmra.mrb[146].mxu0 %v1832_v15  ;;  %1313 = vmatprep.mubr.f32.mxu1 %v1033_v17  ;;  %v1857_v15 = vunpack.c.h.bf16 %v10013_v8  ;;  %v9952_v17 = vld [vmem:[%s19561_s3 + $0x208] sm:$0xff]  ;;  %v10023_v8 = vld [vmem:[%s19561_s3 + $0x440] sm:$0xff] }
 0x1e5   :  { %1974 = vmatprep.mubr.f32.mxu0 %v1837_v19  ;;  %v10015_v19 = vld [vmem:[%s19561_s3 + $0x400] sm:$0xff] }
 0x1e6   :  { %v2199_v36 = vunpack.c.l.bf16 %v10015_v19 }
 0x1e7   :  { %1314 = vmatmul.mubr.f32.gmra.mrb[84].mxu1 %v1032_v30  ;;  %v1396_v30 = vunpack.c.h.bf16 %v9952_v17 }
 0x1e8   :  { %1975 = vmatmul.mubr.f32.gmra.mrb[148].mxu0 %v1836_v31  ;;  %1318 = vmatprep.mubr.f32.mxu1 %v1037_v32  ;;  %v2200_v31 = vunpack.c.h.bf16 %v10015_v19  ;;  %v1395_v32 = vunpack.c.l.bf16 %v9952_v17  ;;  %v2215_v17 = vunpack.c.l.bf16 %v10023_v8  ;;  %v10025_v19 = vld [vmem:[%s19561_s3 + $0x450] sm:$0xff] }
 0x1e9   :  { %1979 = vmatprep.mubr.f32.mxu0 %v1841_v35  ;;  %v9954_v35 = vld [vmem:[%s19561_s3 + $0x218] sm:$0xff] }
 0x1eb   :  { %1319 = vmatmul.mubr.f32.gmra.mrb[86].mxu1 %v1036_v39  ;;  %v1400_v39 = vunpack.c.h.bf16 %v9954_v35 }
 0x1ec   :  { %1980 = vmatmul.mubr.f32.gmra.mrb[150].mxu0 %v1840_v40  ;;  %1323 = vmatprep.mubr.f32.mxu1 %v1041_v42  ;;  %v2204_v40 = vunpack.c.h.bf16 %v10017_v37  ;;  %v1399_v42 = vunpack.c.l.bf16 %v9954_v35  ;;  %v10027_v35 = vld [vmem:[%s19561_s3 + $0x460] sm:$0xff] }
 0x1ed   :  { %1984 = vmatprep.mubr.f32.mxu0 %v1845_v46  ;;  %v9956_v46 = vld [vmem:[%s19561_s3 + $0x228] sm:$0xff] }
 0x1ef   :  { %1324 = vmatmul.mubr.f32.gmra.mrb[88].mxu1 %v1040_v51  ;;  %v1404_v51 = vunpack.c.h.bf16 %v9956_v46 }
 0x1f0   :  { %1985 = vmatmul.mubr.f32.gmra.mrb[152].mxu0 %v1844_v53  ;;  %1328 = vmatprep.mubr.f32.mxu1 %v1045_v54  ;;  %v2208_v53 = vunpack.c.h.bf16 %v10019_v48  ;;  %v1403_v54 = vunpack.c.l.bf16 %v9956_v46  ;;  %v9966_v46 = vld [vmem:[%s19561_s3 + $0x278] sm:$0xff] }
 0x1f1   :  { %1989 = vmatprep.mubr.f32.mxu0 %v1849_v55  ;;  %v9958_v55 = vld [vmem:[%s19561_s3 + $0x238] sm:$0xff] }
 0x1f3   :  { %1329 = vmatmul.mubr.f32.gmra.mrb[90].mxu1 %v1044_v61  ;;  %v1408_v61 = vunpack.c.h.bf16 %v9958_v55 }
 0x1f4   :  { %1990 = vmatmul.mubr.f32.gmra.mrb[154].mxu0 %v1848_v62  ;;  %1333 = vmatprep.mubr.f32.mxu1 %v1049_v3  ;;  %v2212_v62 = vunpack.c.h.bf16 %v10021_v58  ;;  %v1407_v3 = vunpack.c.l.bf16 %v9958_v55 }
 0x1f5   :  { %1994 = vmatprep.mubr.f32.mxu0 %v1853_v4  ;;  %v9960_v4 = vld [vmem:[%s19561_s3 + $0x248] sm:$0xff] }
 0x1f7   :  { %1334 = vmatmul.mubr.f32.gmra.mrb[92].mxu1 %v1048_v11  ;;  %v1412_v11 = vunpack.c.h.bf16 %v9960_v4 }
 0x1f8   :  { %1995 = vmatmul.mubr.f32.gmra.mrb[156].mxu0 %v1852_v12  ;;  %1338 = vmatprep.mubr.f32.mxu1 %v1053_v14  ;;  %v2216_v12 = vunpack.c.h.bf16 %v10023_v8  ;;  %v1411_v14 = vunpack.c.l.bf16 %v9960_v4 }
 0x1f9   :  { %1999 = vmatprep.mubr.f32.mxu0 %v1857_v15  ;;  %v9962_v15 = vld [vmem:[%s19561_s3 + $0x258] sm:$0xff] }
 0x1fb   :  { %1339 = vmatmul.mubr.f32.gmra.mrb[94].mxu1 %v1052_v21  ;;  %v1416_v21 = vunpack.c.h.bf16 %v9962_v15 }
 0x1fc   :  { %2000 = vmatmul.mubr.f32.gmra.mrb[158].mxu0 %v1856_v28  ;;  %1666 = vmatprep.mubr.f32.mxu1 %v1396_v30  ;;  %v2220_v28 = vunpack.c.h.bf16 %v10025_v19  ;;  %v1415_v30 = vunpack.c.l.bf16 %v9962_v15  ;;  %v9970_v15 = vld [vmem:[%s19561_s3 + $0x298] sm:$0xff] }
 0x1fd   :  { %2327 = vmatprep.mubr.f32.mxu0 %v2200_v31  ;;  %v9964_v31 = vld [vmem:[%s19561_s3 + $0x268] sm:$0xff] }
 0x1ff   :  { %1667 = vmatmul.mubr.f32.vlgmr.msra.gmra.mrb[96].mxu1 %v1395_v32  ;;  %v2219_v32 = vunpack.c.l.bf16 %v10025_v19 }
 0x200   :  { %14605 = vmatpush3.bf16.msra.mxu1 %v16435_v44  ;;  %2328 = vmatmul.mubr.f32.vlgmr.msra.gmra.mrb[160].mxu0 %v2199_v36  ;;  %v1420_v36 = vunpack.c.h.bf16 %v9964_v31 }
 0x201   :  { %14701 = vmatpush3.bf16.msra.mxu0 %v16331_v38  ;;  %14607 = vmatprep.subr.bf16.mxu1 %v16544_v20 }
 0x202   :  { %14703 = vmatprep.subr.bf16.mxu0 %v16371_v41  ;;  %1671 = vmatprep.mubr.f32.mxu1 %v1400_v39 }
 0x203   :  { %2332 = vmatprep.mubr.f32.mxu0 %v2204_v40  ;;  %1672 = vmatmul.mubr.f32.gmra.mrb[98].mxu1 %v1399_v42  ;;  %v2224_v40 = vunpack.c.h.bf16 %v10027_v35  ;;  %v1419_v42 = vunpack.c.l.bf16 %v9964_v31 }
 0x204   :  { %14609 = vmatpush3.bf16.msra.mxu1 %v16447_v60  ;;  %2333 = vmatmul.mubr.f32.gmra.mrb[162].mxu0 %v2203_v24 }
 0x205   :  { %14705 = vmatpush3.bf16.msra.mxu0 %v16335_v45  ;;  %14611 = vmatprep.subr.bf16.mxu1 %v16556_v43 }
 0x206   :  { %14707 = vmatprep.subr.bf16.mxu0 %v16379_v49  ;;  %1676 = vmatprep.mubr.f32.mxu1 %v1404_v51  ;;  %v2223_v51 = vunpack.c.l.bf16 %v10027_v35 }
 0x207   :  { %2337 = vmatprep.mubr.f32.mxu0 %v2208_v53  ;;  %1677 = vmatmul.mubr.f32.gmra.mrb[100].mxu1 %v1403_v54  ;;  %v10029_v53 = vld [vmem:[%s19561_s3 + $0x470] sm:$0xff] }
 0x208   :  { %14613 = vmatpush3.bf16.msra.mxu1 %v16459_v13  ;;  %2338 = vmatmul.mubr.f32.gmra.mrb[164].mxu0 %v2207_v56  ;;  %v1424_v56 = vunpack.c.h.bf16 %v9966_v46  ;;  %v2227_v8 = vunpack.c.l.bf16 %v10029_v53 }
 0x209   :  { %14709 = vmatpush3.bf16.msra.mxu0 %v16339_v52  ;;  %14615 = vmatprep.subr.bf16.mxu1 %v16568_v0 }
 0x20a   :  { %14711 = vmatprep.subr.bf16.mxu0 %v16387_v57  ;;  %1681 = vmatprep.mubr.f32.mxu1 %v1408_v61  ;;  %v2228_v61 = vunpack.c.h.bf16 %v10029_v53  ;;  %v1431_v53 = vunpack.c.l.bf16 %v9970_v15 }
 0x20b   :  { %2342 = vmatprep.mubr.f32.mxu0 %v2212_v62  ;;  %1682 = vmatmul.mubr.f32.gmra.mrb[102].mxu1 %v1407_v3  ;;  %v1423_v62 = vunpack.c.l.bf16 %v9966_v46  ;;  %v9968_v3 = vld [vmem:[%s19561_s3 + $0x288] sm:$0xff] }
 0x20c   :  { %14617 = vmatpush3.bf16.msra.mxu1 %v16471_v34  ;;  %2343 = vmatmul.mubr.f32.gmra.mrb[166].mxu0 %v2211_v6  ;;  %v1428_v19 = vunpack.c.h.bf16 %v9968_v3  ;;  %v1427_v31 = vunpack.c.l.bf16 %v9968_v3  ;;  %v9972_v46 = vld [vmem:[%s19561_s3 + $0x2a8] sm:$0xff] }
 0x20d   :  { %14713 = vmatpush3.bf16.msra.mxu0 %v16343_v59  ;;  %14619 = vmatprep.subr.bf16.mxu1 %v16580_v22 }
 0x20e   :  { %14715 = vmatprep.subr.bf16.mxu0 %v16395_v1  ;;  %1686 = vmatprep.mubr.f32.mxu1 %v1412_v11  ;;  %v10031_v11 = vld [vmem:[%s19561_s3 + $0x480] sm:$0xff] }
 0x20f   :  { %2347 = vmatprep.mubr.f32.mxu0 %v2216_v12  ;;  %1687 = vmatmul.mubr.f32.gmra.mrb[104].mxu1 %v1411_v14 }
 0x210   :  { %14621 = vmatpush3.bf16.msra.mxu1 %v16483_v50  ;;  %2348 = vmatmul.mubr.f32.gmra.mrb[168].mxu0 %v2215_v17 }
 0x211   :  { %14717 = vmatpush3.bf16.msra.mxu0 %v16347_v2  ;;  %14623 = vmatprep.subr.bf16.mxu1 %v16592_v25 }
 0x212   :  { %14719 = vmatprep.subr.bf16.mxu0 %v16403_v10  ;;  %1691 = vmatprep.mubr.f32.mxu1 %v1416_v21  ;;  %v10800_v37 = vpop.f32.mrb[0].mxu1  ;;  %v10960_v39 = vpop.f32.mrb[64].mxu0  ;;  %v10033_v21 = vld [vmem:[%s19561_s3 + $0x490] sm:$0xff] }
 0x213   :  { %2352 = vmatprep.mubr.f32.mxu0 %v2220_v28  ;;  %1692 = vmatmul.mubr.f32.gmra.mrb[106].mxu1 %v1415_v30  ;;  %v10801_v24 = vpop.f32.mrb[1].mxu1  ;;  %v10961_v48 = vpop.f32.mrb[65].mxu0  ;;  %v2232_v30 = vunpack.c.h.bf16 %v10031_v11 }
 0x214   :  { %14625 = vmatpush3.bf16.msra.mxu1 %v16495_v5  ;;  %2353 = vmatmul.mubr.f32.gmra.mrb[170].mxu0 %v2219_v32  ;;  %v16939_v54 = vadd.f32 %v10801_v24, %v10800_v37  ;;  %v16941_v55 = vadd.f32 %v10961_v48, %v10960_v39  ;;  %v1432_v37 = vunpack.c.h.bf16 %v9970_v15  ;;  %v10035_v48 = vld [vmem:[%s19561_s3 + $0x4a0] sm:$0xff] }
 0x215   :  { %14721 = vmatpush3.bf16.msra.mxu0 %v16351_v9  ;;  %14627 = vmatprep.subr.bf16.mxu1 %v16604_v7 }
 0x216   :  { %19600 = vst [vmem:[#allocation9_spill] sm:$0xff] %v16941_v55  ;;  %14723 = vmatprep.subr.bf16.mxu0 %v16411_v18  ;;  %1696 = vmatprep.mubr.f32.mxu1 %v1420_v36  ;;  %v10803_v58 = vpop.f32.mrb[2].mxu1  ;;  %v10963_v6 = vpop.f32.mrb[66].mxu0  ;;  %v2231_v36 = vunpack.c.l.bf16 %v10031_v11 }
 0x217   :  { %2357 = vmatprep.mubr.f32.mxu0 %v2224_v40  ;;  %1697 = vmatmul.mubr.f32.gmra.mrb[108].mxu1 %v1419_v42  ;;  %v10804_v4 = vpop.f32.mrb[3].mxu1  ;;  %v10964_v14 = vpop.f32.mrb[67].mxu0  ;;  %v2236_v42 = vunpack.c.h.bf16 %v10033_v21 }
 0x218   :  { %14629 = vmatpush3.bf16.msra.mxu1 %v16507_v26  ;;  %2358 = vmatmul.mubr.f32.gmra.mrb[172].mxu0 %v2223_v51  ;;  %v16953_v12 = vadd.f32 %v10804_v4, %v10803_v58  ;;  %v16960_v17 = vadd.f32 %v10964_v14, %v10963_v6  ;;  %v2240_v6 = vunpack.c.h.bf16 %v10035_v48  ;;  %v10037_v14 = vld [vmem:[%s19561_s3 + $0x4b0] sm:$0xff] }
 0x219   :  { %14725 = vmatpush3.bf16.msra.mxu0 %v16355_v16  ;;  %14631 = vmatprep.subr.bf16.mxu1 %v16615_v27 }
 0x21a   :  { %19601 = vst [vmem:[#allocation10_spill] sm:$0xff] %v16960_v17  ;;  %14727 = vmatprep.subr.bf16.mxu0 %v16419_v29  ;;  %1701 = vmatprep.mubr.f32.mxu1 %v1424_v56  ;;  %v10806_v28 = vpop.f32.mrb[4].mxu1  ;;  %v10966_v35 = vpop.f32.mrb[68].mxu0 }
 0x21b   :  { %2362 = vmatprep.mubr.f32.mxu0 %v2228_v61  ;;  %1702 = vmatmul.mubr.f32.gmra.mrb[110].mxu1 %v1423_v62  ;;  %v10807_v32 = vpop.f32.mrb[5].mxu1  ;;  %v10967_v40 = vpop.f32.mrb[69].mxu0  ;;  %v2235_v61 = vunpack.c.l.bf16 %v10033_v21  ;;  %v1436_v62 = vunpack.c.h.bf16 %v9972_v46 }
 0x21c   :  { %14633 = vmatpush3.bf16.msra.mxu1 %v16519_v47  ;;  %2363 = vmatmul.mubr.f32.gmra.mrb[174].mxu0 %v2227_v8  ;;  %v16967_v39 = vadd.f32 %v10807_v32, %v10806_v28  ;;  %v16974_v24 = vadd.f32 %v10967_v40, %v10966_v35  ;;  %v9974_v8 = vld [vmem:[%s19561_s3 + $0x2b8] sm:$0xff] }
 0x21d   :  { %14729 = vmatpush3.bf16.msra.mxu0 %v16359_v23  ;;  %14667 = vmatprep.subr.bf16.mxu1 %v16531_v63 }
 0x21e   :  { %19602 = vst [vmem:[#allocation11_spill] sm:$0xff] %v16974_v24  ;;  %14763 = vmatprep.subr.bf16.mxu0 %v16363_v33  ;;  %1706 = vmatprep.mubr.f32.mxu1 %v1428_v19  ;;  %v10809_v51 = vpop.f32.mrb[6].mxu1  ;;  %v10969_v58 = vpop.f32.mrb[70].mxu0  ;;  %v1435_v19 = vunpack.c.l.bf16 %v9972_v46 }
 0x21f   :  { %2367 = vmatprep.mubr.f32.mxu0 %v2232_v30  ;;  %1707 = vmatmul.mubr.f32.gmra.mrb[112].mxu1 %v1427_v31  ;;  %v10810_v56 = vpop.f32.mrb[7].mxu1  ;;  %v10970_v4 = vpop.f32.mrb[71].mxu0  ;;  %v2239_v30 = vunpack.c.l.bf16 %v10035_v48  ;;  %v1440_v31 = vunpack.c.h.bf16 %v9974_v8 }
 0x220   :  { %2368 = vmatmul.mubr.f32.gmra.mrb[176].mxu0 %v2231_v36  ;;  %1711 = vmatprep.mubr.f32.mxu1 %v1432_v37  ;;  %v16980_v3 = vadd.f32 %v10810_v56, %v10809_v51  ;;  %v16985_v11 = vadd.f32 %v10970_v4, %v10969_v58  ;;  %v2244_v36 = vunpack.c.h.bf16 %v10037_v14  ;;  %v9976_v37 = vld [vmem:[%s19561_s3 + $0x2c8] sm:$0xff]  ;;  %v1439_v51 = vunpack.c.l.bf16 %v9974_v8  ;;  %v10041_v8 = vld [vmem:[%s19561_s3 + $0x4d0] sm:$0xff] }
 0x221   :  { %2372 = vmatprep.mubr.f32.mxu0 %v2236_v42  ;;  %v10039_v42 = vld [vmem:[%s19561_s3 + $0x4c0] sm:$0xff]  ;;  %v2243_v56 = vunpack.c.l.bf16 %v10037_v14  ;;  %v1444_v58 = vunpack.c.h.bf16 %v9976_v37 }
 0x222   :  { %19603 = vst [vmem:[#allocation12_spill] sm:$0xff] %v16985_v11  ;;  %v10812_v15 = vpop.f32.mrb[8].mxu1  ;;  %v10972_v28 = vpop.f32.mrb[72].mxu0  ;;  %v2248_v4 = vunpack.c.h.bf16 %v10039_v42 }
 0x223   :  { %1712 = vmatmul.mubr.f32.gmra.mrb[114].mxu1 %v1431_v53  ;;  %v10813_v21 = vpop.f32.mrb[9].mxu1  ;;  %v10973_v35 = vpop.f32.mrb[73].mxu0 }
 0x224   :  { %2373 = vmatmul.mubr.f32.gmra.mrb[178].mxu0 %v2235_v61  ;;  %1716 = vmatprep.mubr.f32.mxu1 %v1436_v62  ;;  %v16990_v32 = vadd.f32 %v10813_v21, %v10812_v15  ;;  %v16995_v40 = vadd.f32 %v10973_v35, %v10972_v28  ;;  %v1443_v21 = vunpack.c.l.bf16 %v9976_v37  ;;  %v10043_v37 = vld [vmem:[%s19561_s3 + $0x4e0] sm:$0xff] }
 0x225   :  { %2377 = vmatprep.mubr.f32.mxu0 %v2240_v6  ;;  %v9978_v6 = vld [vmem:[%s19561_s3 + $0x2d8] sm:$0xff] }
 0x226   :  { %19604 = vst [vmem:[#allocation13_spill] sm:$0xff] %v16995_v40  ;;  %v10815_v46 = vpop.f32.mrb[10].mxu1  ;;  %v10975_v53 = vpop.f32.mrb[74].mxu0 }
 0x227   :  { %1717 = vmatmul.mubr.f32.gmra.mrb[116].mxu1 %v1435_v19  ;;  %v10816_v48 = vpop.f32.mrb[11].mxu1  ;;  %v10976_v62 = vpop.f32.mrb[75].mxu0 }
 0x228   :  { %2378 = vmatmul.mubr.f32.gmra.mrb[180].mxu0 %v2239_v30  ;;  %1721 = vmatprep.mubr.f32.mxu1 %v1440_v31  ;;  %v17000_v61 = vadd.f32 %v10816_v48, %v10815_v46  ;;  %v17005_v15 = vadd.f32 %v10976_v62, %v10975_v53  ;;  %v2247_v30 = vunpack.c.l.bf16 %v10039_v42  ;;  %v1448_v31 = vunpack.c.h.bf16 %v9978_v6  ;;  %v9980_v48 = vld [vmem:[%s19561_s3 + $0x2e8] sm:$0xff] }
 0x229   :  { %2382 = vmatprep.mubr.f32.mxu0 %v2244_v36  ;;  %v2252_v46 = vunpack.c.h.bf16 %v10041_v8  ;;  %v2251_v62 = vunpack.c.l.bf16 %v10041_v8 }
 0x22a   :  { %19605 = vst [vmem:[#allocation14_spill] sm:$0xff] %v17005_v15  ;;  %v10818_v19 = vpop.f32.mrb[12].mxu1  ;;  %v10978_v28 = vpop.f32.mrb[76].mxu0  ;;  %v2256_v15 = vunpack.c.h.bf16 %v10043_v37 }
 0x22b   :  { %1722 = vmatmul.mubr.f32.gmra.mrb[118].mxu1 %v1439_v51  ;;  %v10819_v14 = vpop.f32.mrb[13].mxu1  ;;  %v10979_v36 = vpop.f32.mrb[77].mxu0 }
 0x22c   :  { %2383 = vmatmul.mubr.f32.gmra.mrb[182].mxu0 %v2243_v56  ;;  %1726 = vmatprep.mubr.f32.mxu1 %v1444_v58  ;;  %v17010_v35 = vadd.f32 %v10819_v14, %v10818_v19  ;;  %v17015_v53 = vadd.f32 %v10979_v36, %v10978_v28  ;;  %v1447_v56 = vunpack.c.l.bf16 %v9978_v6  ;;  %v9982_v28 = vld [vmem:[%s19561_s3 + $0x2f8] sm:$0xff]  ;;  %v10045_v6 = vld [vmem:[%s19561_s3 + $0x4f0] sm:$0xff] }
 0x22d   :  { %2387 = vmatprep.mubr.f32.mxu0 %v2248_v4  ;;  %v1452_v4 = vunpack.c.h.bf16 %v9980_v48  ;;  %v2260_v40 = vunpack.c.h.bf16 %v10045_v6 }
 0x22e   :  { %19606 = vst [vmem:[#allocation15_spill] sm:$0xff] %v17015_v53  ;;  %v10821_v51 = vpop.f32.mrb[14].mxu1  ;;  %v10981_v58 = vpop.f32.mrb[78].mxu0 }
 0x22f   :  { %1727 = vmatmul.mubr.f32.gmra.mrb[120].mxu1 %v1443_v21  ;;  %v10822_v42 = vpop.f32.mrb[15].mxu1  ;;  %v10982_v14 = vpop.f32.mrb[79].mxu0 }
 0x230   :  { %2388 = vmatmul.mubr.f32.gmra.mrb[184].mxu0 %v2247_v30  ;;  %1731 = vmatprep.mubr.f32.mxu1 %v1448_v31  ;;  %v17020_v19 = vadd.f32 %v10822_v42, %v10821_v51  ;;  %v17025_v36 = vadd.f32 %v10982_v14, %v10981_v58  ;;  %v1451_v30 = vunpack.c.l.bf16 %v9980_v48  ;;  %v2255_v51 = vunpack.c.l.bf16 %v10043_v37  ;;  %v9984_v58 = vld [vmem:[%s19561_s3 + $0x308] sm:$0xff]  ;;  %v10047_v48 = vld [vmem:[%s19561_s3 + $0x500] sm:$0xff] }
 0x231   :  { %2392 = vmatprep.mubr.f32.mxu0 %v2252_v46  ;;  %v1456_v46 = vunpack.c.h.bf16 %v9982_v28  ;;  %v2603_v11 = vunpack.c.h.bf16 %v10047_v48 }
 0x232   :  { %19607 = vst [vmem:[#allocation16_spill] sm:$0xff] %v17025_v36  ;;  %v10824_v21 = vpop.f32.mrb[16].mxu1 }
 0x233   :  { %1732 = vmatmul.mubr.f32.gmra.mrb[122].mxu1 %v1447_v56  ;;  %v10825_v8 = vpop.f32.mrb[17].mxu1  ;;  %v10984_v31 = vpop.f32.mrb[80].mxu0 }
 0x234   :  { %2393 = vmatmul.mubr.f32.gmra.mrb[186].mxu0 %v2251_v62  ;;  %1736 = vmatprep.mubr.f32.mxu1 %v1452_v4  ;;  %v17030_v42 = vadd.f32 %v10825_v8, %v10824_v21  ;;  %v10985_v53 = vpop.f32.mrb[81].mxu0  ;;  %v1455_v62 = vunpack.c.l.bf16 %v9982_v28  ;;  %v2259_v21 = vunpack.c.l.bf16 %v10045_v6  ;;  %v9986_v28 = vld [vmem:[%s19561_s3 + $0x318] sm:$0xff]  ;;  %v2602_v6 = vunpack.c.l.bf16 %v10047_v48 }
 0x235   :  { %2397 = vmatprep.mubr.f32.mxu0 %v2256_v15  ;;  %v17035_v14 = vadd.f32 %v10985_v53, %v10984_v31  ;;  %v1799_v15 = vunpack.c.h.bf16 %v9984_v58 }
 0x236   :  { %v10827_v56 = vpop.f32.mrb[18].mxu1 }
 0x237   :  { %19608 = vst [vmem:[#allocation17_spill] sm:$0xff] %v17035_v14  ;;  %1737 = vmatmul.mubr.f32.gmra.mrb[124].mxu1 %v1451_v30  ;;  %v10828_v37 = vpop.f32.mrb[19].mxu1  ;;  %v10987_v4 = vpop.f32.mrb[82].mxu0  ;;  %v1798_v14 = vunpack.c.l.bf16 %v9984_v58  ;;  %v1803_v58 = vunpack.c.h.bf16 %v9986_v28 }
 0x238   :  { %2398 = vmatmul.mubr.f32.gmra.mrb[188].mxu0 %v2255_v51  ;;  %1741 = vmatprep.mubr.f32.mxu1 %v1456_v46  ;;  %v17040_v8 = vadd.f32 %v10828_v37, %v10827_v56  ;;  %v10988_v36 = vpop.f32.mrb[83].mxu0  ;;  %v10049_v51 = vld [vmem:[%s19561_s3 + $0x510] sm:$0xff]  ;;  %v1802_v37 = vunpack.c.l.bf16 %v9986_v28 }
 0x239   :  { %2402 = vmatprep.mubr.f32.mxu0 %v2260_v40  ;;  %v17042_v53 = vadd.f32 %v10988_v36, %v10987_v4  ;;  %v9988_v4 = vld [vmem:[%s19561_s3 + $0x328] sm:$0xff] }
 0x23a   :  { %v10830_v31 = vpop.f32.mrb[20].mxu1  ;;  %v1807_v28 = vunpack.c.h.bf16 %v9988_v4 }
 0x23b   :  { %19609 = vst [vmem:[#allocation18_spill] sm:$0xff] %v17042_v53  ;;  %1742 = vmatmul.mubr.f32.gmra.mrb[126].mxu1 %v1455_v62  ;;  %v10831_v30 = vpop.f32.mrb[21].mxu1  ;;  %v10990_v24 = vpop.f32.mrb[84].mxu0  ;;  %v2607_v62 = vunpack.c.h.bf16 %v10049_v51 }
 0x23c   :  { %2403 = vmatmul.mubr.f32.gmra.mrb[190].mxu0 %v2259_v21  ;;  %2069 = vmatprep.mubr.f32.mxu1 %v1799_v15  ;;  %v17050_v40 = vadd.f32 %v10831_v30, %v10830_v31  ;;  %v10991_v36 = vpop.f32.mrb[85].mxu0  ;;  %v2606_v15 = vunpack.c.l.bf16 %v10049_v51  ;;  %v1806_v51 = vunpack.c.l.bf16 %v9988_v4 }
 0x23d   :  { %2730 = vmatprep.mubr.f32.mxu0 %v2603_v11  ;;  %v17052_v46 = vadd.f32 %v10991_v36, %v10990_v24  ;;  %v10051_v24 = vld [vmem:[%s19561_s3 + $0x520] sm:$0xff]  ;;  %v9990_v36 = vld [vmem:[%s19561_s3 + $0x338] sm:$0xff] }
 0x23e   :  { %v10833_v56 = vpop.f32.mrb[22].mxu1  ;;  %v1811_v4 = vunpack.c.h.bf16 %v9990_v36 }
 0x23f   :  { %19610 = vst [vmem:[#allocation19_spill] sm:$0xff] %v17052_v46  ;;  %2070 = vmatmul.mubr.f32.vlgmr.msra.gmra.mrb[128].mxu1 %v1798_v14  ;;  %v10834_v48 = vpop.f32.mrb[23].mxu1  ;;  %v10993_v21 = vpop.f32.mrb[86].mxu0 }
 0x240   :  { %14669 = vmatpush3.bf16.msra.mxu1 %v16435_v44  ;;  %2731 = vmatmul.mubr.f32.vlgmr.msra.gmra.mrb[192].mxu0 %v2602_v6  ;;  %v17061_v11 = vadd.f32 %v10834_v48, %v10833_v56  ;;  %v10994_v31 = vpop.f32.mrb[87].mxu0  ;;  %v2611_v6 = vunpack.c.h.bf16 %v10051_v24 }
 0x241   :  { %14765 = vmatpush3.bf16.msra.mxu0 %v16331_v38  ;;  %14671 = vmatprep.subr.bf16.mxu1 %v16544_v20  ;;  %v17065_v14 = vadd.f32 %v10994_v31, %v10993_v21  ;;  %v2610_v21 = vunpack.c.l.bf16 %v10051_v24  ;;  %v1810_v24 = vunpack.c.l.bf16 %v9990_v36 }
 0x242   :  { %14767 = vmatprep.subr.bf16.mxu0 %v16371_v41  ;;  %2074 = vmatprep.mubr.f32.mxu1 %v1803_v58  ;;  %v10836_v30 = vpop.f32.mrb[24].mxu1  ;;  %v10053_v58 = vld [vmem:[%s19561_s3 + $0x530] sm:$0xff] }
 0x243   :  { %19611 = vst [vmem:[#allocation20_spill] sm:$0xff] %v17065_v14  ;;  %2735 = vmatprep.mubr.f32.mxu0 %v2607_v62  ;;  %2075 = vmatmul.mubr.f32.gmra.mrb[130].mxu1 %v1802_v37  ;;  %v10837_v56 = vpop.f32.mrb[25].mxu1  ;;  %v10996_v48 = vpop.f32.mrb[88].mxu0 }
 0x244   :  { %14673 = vmatpush3.bf16.msra.mxu1 %v16447_v60  ;;  %2736 = vmatmul.mubr.f32.gmra.mrb[194].mxu0 %v2606_v15  ;;  %v17075_v31 = vadd.f32 %v10837_v56, %v10836_v30  ;;  %v10997_v62 = vpop.f32.mrb[89].mxu0  ;;  %v2615_v15 = vunpack.c.h.bf16 %v10053_v58  ;;  %v9992_v30 = vld [vmem:[%s19561_s3 + $0x348] sm:$0xff] }
 0x245   :  { %14769 = vmatpush3.bf16.msra.mxu0 %v16335_v45  ;;  %14675 = vmatprep.subr.bf16.mxu1 %v16556_v43  ;;  %v17079_v37 = vadd.f32 %v10997_v62, %v10996_v48  ;;  %v2614_v48 = vunpack.c.l.bf16 %v10053_v58  ;;  %v9994_v58 = vld [vmem:[%s19561_s3 + $0x358] sm:$0xff] }
 0x246   :  { %14771 = vmatprep.subr.bf16.mxu0 %v16379_v49  ;;  %2079 = vmatprep.mubr.f32.mxu1 %v1807_v28  ;;  %v10839_v14 = vpop.f32.mrb[26].mxu1  ;;  %v10055_v28 = vld [vmem:[%s19561_s3 + $0x540] sm:$0xff] }
 0x247   :  { %19612 = vst [vmem:[#allocation21_spill] sm:$0xff] %v17079_v37  ;;  %2740 = vmatprep.mubr.f32.mxu0 %v2611_v6  ;;  %2080 = vmatmul.mubr.f32.gmra.mrb[132].mxu1 %v1806_v51  ;;  %v10840_v46 = vpop.f32.mrb[27].mxu1  ;;  %v10999_v56 = vpop.f32.mrb[90].mxu0  ;;  %v1815_v37 = vunpack.c.h.bf16 %v9992_v30 }
 0x248   :  { %14677 = vmatpush3.bf16.msra.mxu1 %v16459_v13  ;;  %2741 = vmatmul.mubr.f32.gmra.mrb[196].mxu0 %v2610_v21  ;;  %v17086_v62 = vadd.f32 %v10840_v46, %v10839_v14  ;;  %v11000_v6 = vpop.f32.mrb[91].mxu0  ;;  %v2619_v46 = vunpack.c.h.bf16 %v10055_v28  ;;  %v1814_v21 = vunpack.c.l.bf16 %v9992_v30 }
 0x249   :  { %14773 = vmatpush3.bf16.msra.mxu0 %v16339_v52  ;;  %14679 = vmatprep.subr.bf16.mxu1 %v16568_v0  ;;  %v17093_v51 = vadd.f32 %v11000_v6, %v10999_v56  ;;  %v2618_v6 = vunpack.c.l.bf16 %v10055_v28 }
 0x24a   :  { %14775 = vmatprep.subr.bf16.mxu0 %v16387_v57  ;;  %2084 = vmatprep.mubr.f32.mxu1 %v1811_v4  ;;  %v10842_v36 = vpop.f32.mrb[28].mxu1  ;;  %v10057_v4 = vld [vmem:[%s19561_s3 + $0x550] sm:$0xff] }
 0x24b   :  { %19613 = vst [vmem:[#allocation22_spill] sm:$0xff] %v17093_v51  ;;  %2745 = vmatprep.mubr.f32.mxu0 %v2615_v15  ;;  %2085 = vmatmul.mubr.f32.gmra.mrb[134].mxu1 %v1810_v24  ;;  %v10843_v14 = vpop.f32.mrb[29].mxu1  ;;  %v11002_v53 = vpop.f32.mrb[92].mxu0  ;;  %v1819_v51 = vunpack.c.h.bf16 %v9994_v58  ;;  %v2623_v28 = vunpack.c.h.bf16 %v10057_v4 }
 0x24c   :  { %14681 = vmatpush3.bf16.msra.mxu1 %v16471_v34  ;;  %2746 = vmatmul.mubr.f32.gmra.mrb[198].mxu0 %v2614_v48  ;;  %v17100_v56 = vadd.f32 %v10843_v14, %v10842_v36  ;;  %v11003_v15 = vpop.f32.mrb[93].mxu0  ;;  %v1818_v36 = vunpack.c.l.bf16 %v9994_v58  ;;  %v9996_v14 = vld [vmem:[%s19561_s3 + $0x368] sm:$0xff] }
 0x24d   :  { %14777 = vmatpush3.bf16.msra.mxu0 %v16343_v59  ;;  %14683 = vmatprep.subr.bf16.mxu1 %v16580_v22  ;;  %v17107_v24 = vadd.f32 %v11003_v15, %v11002_v53  ;;  %v2622_v15 = vunpack.c.l.bf16 %v10057_v4 }
 0x24e   :  { %14779 = vmatprep.subr.bf16.mxu0 %v16395_v1  ;;  %2089 = vmatprep.mubr.f32.mxu1 %v1815_v37  ;;  %v10845_v30 = vpop.f32.mrb[30].mxu1  ;;  %v10059_v37 = vld [vmem:[%s19561_s3 + $0x560] sm:$0xff] }
 0x24f   :  { %19614 = vst [vmem:[#allocation23_spill] sm:$0xff] %v17107_v24  ;;  %2750 = vmatprep.mubr.f32.mxu0 %v2619_v46  ;;  %2090 = vmatmul.mubr.f32.gmra.mrb[136].mxu1 %v1814_v21  ;;  %v10846_v48 = vpop.f32.mrb[31].mxu1  ;;  %v11005_v17 = vpop.f32.mrb[94].mxu0  ;;  %v1823_v24 = vunpack.c.h.bf16 %v9996_v14  ;;  %v2627_v4 = vunpack.c.h.bf16 %v10059_v37 }
 0x250   :  { %14685 = vmatpush3.bf16.msra.mxu1 %v16483_v50  ;;  %2751 = vmatmul.mubr.f32.gmra.mrb[200].mxu0 %v2618_v6  ;;  %v17114_v53 = vadd.f32 %v10846_v48, %v10845_v30  ;;  %v11006_v46 = vpop.f32.mrb[95].mxu0  ;;  %v1822_v30 = vunpack.c.l.bf16 %v9996_v14  ;;  %v9998_v48 = vld [vmem:[%s19561_s3 + $0x378] sm:$0xff] }
 0x251   :  { %14781 = vmatpush3.bf16.msra.mxu0 %v16347_v2  ;;  %14687 = vmatprep.subr.bf16.mxu1 %v16592_v25  ;;  %v17121_v21 = vadd.f32 %v11006_v46, %v11005_v17  ;;  %v2626_v17 = vunpack.c.l.bf16 %v10059_v37 }
 0x252   :  { %19615 = vst [vmem:[#allocation24_spill] sm:$0xff] %v17114_v53  ;;  %14783 = vmatprep.subr.bf16.mxu0 %v16403_v10  ;;  %v10880_v58 = vpop.f32.mrb[32].mxu1  ;;  %2094 = vmatprep.mubr.f32.mxu1 %v1819_v51  ;;  %v10061_v51 = vld [vmem:[%s19561_s3 + $0x570] sm:$0xff] }
 0x253   :  { %19616 = vst [vmem:[#allocation25_spill] sm:$0xff] %v17121_v21  ;;  %2755 = vmatprep.mubr.f32.mxu0 %v2623_v28  ;;  %v10881_v6 = vpop.f32.mrb[33].mxu1  ;;  %2095 = vmatmul.mubr.f32.gmra.mrb[138].mxu1 %v1818_v36  ;;  %v11120_v55 = vpop.f32.mrb[96].mxu0  ;;  %v10000_v21 = vld [vmem:[%s19561_s3 + $0x388] sm:$0xff] }
 0x254   :  { %v10882_v53 = vadd.f32 %v10881_v6, %v10880_v58  ;;  %14689 = vmatpush3.bf16.msra.mxu1 %v16495_v5  ;;  %2756 = vmatmul.mubr.f32.gmra.mrb[202].mxu0 %v2622_v15  ;;  %v11121_v46 = vpop.f32.mrb[97].mxu0  ;;  %v1827_v15 = vunpack.c.h.bf16 %v9998_v48  ;;  %v2631_v58 = vunpack.c.h.bf16 %v10061_v51  ;;  %v1826_v6 = vunpack.c.l.bf16 %v9998_v48 }
 0x255   :  { %14785 = vmatpush3.bf16.msra.mxu0 %v16351_v9  ;;  %14691 = vmatprep.subr.bf16.mxu1 %v16604_v7  ;;  %v17133_v28 = vadd.f32 %v11121_v46, %v11120_v55  ;;  %v10065_v46 = vld [vmem:[%s19561_s3 + $0x590] sm:$0xff] }
 0x256   :  { %v17136_v36 = vadd.f32 %v10882_v53, %v16939_v54  ;;  %14787 = vmatprep.subr.bf16.mxu0 %v16411_v18  ;;  %v10883_v14 = vpop.f32.mrb[34].mxu1  ;;  %2099 = vmatprep.mubr.f32.mxu1 %v1823_v24  ;;  %v2630_v54 = vunpack.c.l.bf16 %v10061_v51  ;;  %v10063_v24 = vld [vmem:[%s19561_s3 + $0x580] sm:$0xff]  ;;  %v1831_v51 = vunpack.c.h.bf16 %v10000_v21 }
 0x257   :  { %19617 = vst [vmem:[#allocation26_spill] sm:$0xff] %v17133_v28  ;;  %2760 = vmatprep.mubr.f32.mxu0 %v2627_v4  ;;  %v10884_v37 = vpop.f32.mrb[35].mxu1  ;;  %2100 = vmatmul.mubr.f32.gmra.mrb[140].mxu1 %v1822_v30  ;;  %v11123_v7 = vpop.f32.mrb[98].mxu0  ;;  %v10002_v4 = vld [vmem:[%s19561_s3 + $0x398] sm:$0xff]  ;;  %v1830_v28 = vunpack.c.l.bf16 %v10000_v21 }
 0x258   :  { %v10885_v55 = vadd.f32 %v10884_v37, %v10883_v14  ;;  %14693 = vmatpush3.bf16.msra.mxu1 %v16507_v26  ;;  %2761 = vmatmul.mubr.f32.gmra.mrb[204].mxu0 %v2626_v17  ;;  %v11124_v53 = vpop.f32.mrb[99].mxu0  ;;  %v2635_v37 = vunpack.c.h.bf16 %v10063_v24 }
 0x259   :  { %14789 = vmatpush3.bf16.msra.mxu0 %v16355_v16  ;;  %14695 = vmatprep.subr.bf16.mxu1 %v16615_v27  ;;  %v17151_v30 = vadd.f32 %v11124_v53, %v11123_v7 }
 0x25a   :  { %v17154_v48 = vadd.f32 %v10885_v55, %v16953_v12  ;;  %14791 = vmatprep.subr.bf16.mxu0 %v16419_v29  ;;  %v10886_v17 = vpop.f32.mrb[36].mxu1  ;;  %2104 = vmatprep.mubr.f32.mxu1 %v1827_v15  ;;  %v2634_v12 = vunpack.c.l.bf16 %v10063_v24  ;;  %v1835_v55 = vunpack.c.h.bf16 %v10002_v4  ;;  %v2639_v15 = vunpack.c.h.bf16 %v10065_v46  ;;  %v10067_v24 = vld [vmem:[%s19561_s3 + $0x5a0] sm:$0xff] }
 0x25b   :  { %19618 = vst [vmem:[#allocation27_spill] sm:$0xff] %v17151_v30  ;;  %2765 = vmatprep.mubr.f32.mxu0 %v2631_v58  ;;  %v10887_v14 = vpop.f32.mrb[37].mxu1  ;;  %2105 = vmatmul.mubr.f32.gmra.mrb[142].mxu1 %v1826_v6  ;;  %v11126_v27 = vpop.f32.mrb[100].mxu0  ;;  %v10004_v58 = vld [vmem:[%s19561_s3 + $0x3a8] sm:$0xff] }
 0x25c   :  { %v10888_v7 = vadd.f32 %v10887_v14, %v10886_v17  ;;  %14697 = vmatpush3.bf16.msra.mxu1 %v16519_v47  ;;  %2766 = vmatmul.mubr.f32.gmra.mrb[206].mxu0 %v2630_v54  ;;  %v11127_v53 = vpop.f32.mrb[101].mxu0  ;;  %v1834_v14 = vunpack.c.l.bf16 %v10002_v4  ;;  %v10069_v4 = vld [vmem:[%s19561_s3 + $0x5b0] sm:$0xff] }
 0x25d   :  { %14793 = vmatpush3.bf16.msra.mxu0 %v16359_v23  ;;  %14731 = vmatprep.subr.bf16.mxu1 %v16531_v63  ;;  %v17166_v6 = vadd.f32 %v11127_v53, %v11126_v27  ;;  %v2638_v27 = vunpack.c.l.bf16 %v10065_v46  ;;  %v1839_v53 = vunpack.c.h.bf16 %v10004_v58  ;;  %v1838_v46 = vunpack.c.l.bf16 %v10004_v58  ;;  %v10071_v58 = vld [vmem:[%s19561_s3 + $0x5c0] sm:$0xff] }
 0x25e   :  { %v17169_v21 = vadd.f32 %v10888_v7, %v16967_v39  ;;  %14827 = vmatprep.subr.bf16.mxu0 %v16363_v33  ;;  %v10889_v54 = vpop.f32.mrb[38].mxu1  ;;  %2109 = vmatprep.mubr.f32.mxu1 %v1831_v51  ;;  %v2643_v7 = vunpack.c.h.bf16 %v10067_v24  ;;  %v10006_v51 = vld [vmem:[%s19561_s3 + $0x3b8] sm:$0xff] }
 0x25f   :  { %19619 = vst [vmem:[#allocation28_spill] sm:$0xff] %v17166_v6  ;;  %2770 = vmatprep.mubr.f32.mxu0 %v2635_v37  ;;  %v10890_v17 = vpop.f32.mrb[39].mxu1  ;;  %2110 = vmatmul.mubr.f32.gmra.mrb[144].mxu1 %v1830_v28  ;;  %v11129_v30 = vpop.f32.mrb[102].mxu0 }
 0x260   :  { %19620 = vst [vmem:[#allocation29_spill] sm:$0xff] %v17169_v21  ;;  %v10891_v63 = vadd.f32 %v10890_v17, %v10889_v54  ;;  %2771 = vmatmul.mubr.f32.gmra.mrb[208].mxu0 %v2634_v12  ;;  %2114 = vmatprep.mubr.f32.mxu1 %v1835_v55  ;;  %v11130_v39 = vpop.f32.mrb[103].mxu0  ;;  %v2642_v54 = vunpack.c.l.bf16 %v10067_v24  ;;  %v1843_v17 = vunpack.c.h.bf16 %v10006_v51  ;;  %v1842_v24 = vunpack.c.l.bf16 %v10006_v51  ;;  %v10073_v51 = vld [vmem:[%s19561_s3 + $0x5d0] sm:$0xff] }
 0x261   :  { %2775 = vmatprep.mubr.f32.mxu0 %v2639_v15  ;;  %v17178_v6 = vadd.f32 %v11130_v39, %v11129_v30  ;;  %v2647_v30 = vunpack.c.h.bf16 %v10069_v4 }
 0x262   :  { %v17181_v37 = vadd.f32 %v10891_v63, %v16980_v3  ;;  %v10892_v28 = vpop.f32.mrb[40].mxu1  ;;  %v10008_v63 = vld [vmem:[%s19561_s3 + $0x3c8] sm:$0xff] }
 0x263   :  { %19621 = vst [vmem:[#allocation30_spill] sm:$0xff] %v17178_v6  ;;  %v10893_v12 = vpop.f32.mrb[41].mxu1  ;;  %2115 = vmatmul.mubr.f32.gmra.mrb[146].mxu1 %v1834_v14  ;;  %v11132_v55 = vpop.f32.mrb[104].mxu0 }
 0x264   :  { %v10894_v15 = vadd.f32 %v10893_v12, %v10892_v28  ;;  %2776 = vmatmul.mubr.f32.gmra.mrb[210].mxu0 %v2638_v27  ;;  %2119 = vmatprep.mubr.f32.mxu1 %v1839_v53  ;;  %v11133_v21 = vpop.f32.mrb[105].mxu0  ;;  %v2646_v28 = vunpack.c.l.bf16 %v10069_v4  ;;  %v1847_v12 = vunpack.c.h.bf16 %v10008_v63  ;;  %v1846_v4 = vunpack.c.l.bf16 %v10008_v63  ;;  %v10075_v63 = vld [vmem:[%s19561_s3 + $0x5e0] sm:$0xff] }
 0x265   :  { %2780 = vmatprep.mubr.f32.mxu0 %v2643_v7  ;;  %v17189_v3 = vadd.f32 %v11133_v21, %v11132_v55  ;;  %v2651_v21 = vunpack.c.h.bf16 %v10071_v58 }
 0x266   :  { %v17192_v39 = vadd.f32 %v10894_v15, %v16990_v32  ;;  %v10895_v14 = vpop.f32.mrb[42].mxu1  ;;  %v10010_v32 = vld [vmem:[%s19561_s3 + $0x3d8] sm:$0xff] }
 0x267   :  { %19622 = vst [vmem:[#allocation31_spill] sm:$0xff] %v17189_v3  ;;  %v10896_v27 = vpop.f32.mrb[43].mxu1  ;;  %2120 = vmatmul.mubr.f32.gmra.mrb[148].mxu1 %v1838_v46  ;;  %v11135_v53 = vpop.f32.mrb[106].mxu0 }
 0x268   :  { %v10897_v7 = vadd.f32 %v10896_v27, %v10895_v14  ;;  %2781 = vmatmul.mubr.f32.gmra.mrb[212].mxu0 %v2642_v54  ;;  %2124 = vmatprep.mubr.f32.mxu1 %v1843_v17  ;;  %v11136_v6 = vpop.f32.mrb[107].mxu0  ;;  %v2650_v14 = vunpack.c.l.bf16 %v10071_v58  ;;  %v1851_v27 = vunpack.c.h.bf16 %v10010_v32  ;;  %v1850_v58 = vunpack.c.l.bf16 %v10010_v32  ;;  %v10077_v32 = vld [vmem:[%s19561_s3 + $0x5f0] sm:$0xff] }
 0x269   :  { %2785 = vmatprep.mubr.f32.mxu0 %v2647_v30  ;;  %v17200_v55 = vadd.f32 %v11136_v6, %v11135_v53  ;;  %v2655_v6 = vunpack.c.h.bf16 %v10073_v51 }
 0x26a   :  { %v17203_v15 = vadd.f32 %v10897_v7, %v17000_v61  ;;  %v10898_v46 = vpop.f32.mrb[44].mxu1  ;;  %v10012_v61 = vld [vmem:[%s19561_s3 + $0x3e8] sm:$0xff] }
 0x26b   :  { %19623 = vst [vmem:[#allocation32_spill] sm:$0xff] %v17200_v55  ;;  %v10899_v54 = vpop.f32.mrb[45].mxu1  ;;  %2125 = vmatmul.mubr.f32.gmra.mrb[150].mxu1 %v1842_v24  ;;  %v11138_v17 = vpop.f32.mrb[108].mxu0 }
 0x26c   :  { %v10900_v30 = vadd.f32 %v10899_v54, %v10898_v46  ;;  %2786 = vmatmul.mubr.f32.gmra.mrb[214].mxu0 %v2646_v28  ;;  %2129 = vmatprep.mubr.f32.mxu1 %v1847_v12  ;;  %v11139_v3 = vpop.f32.mrb[109].mxu0  ;;  %v2654_v46 = vunpack.c.l.bf16 %v10073_v51  ;;  %v1855_v54 = vunpack.c.h.bf16 %v10012_v61  ;;  %v1854_v51 = vunpack.c.l.bf16 %v10012_v61  ;;  %v10079_v61 = vld [vmem:[%s19561_s3 + $0x600] sm:$0xff] }
 0x26d   :  { %2790 = vmatprep.mubr.f32.mxu0 %v2651_v21  ;;  %v17211_v53 = vadd.f32 %v11139_v3, %v11138_v17  ;;  %v2659_v3 = vunpack.c.h.bf16 %v10075_v63 }
 0x26e   :  { %v17214_v7 = vadd.f32 %v10900_v30, %v17010_v35  ;;  %v10901_v24 = vpop.f32.mrb[46].mxu1  ;;  %v10014_v35 = vld [vmem:[%s19561_s3 + $0x3f8] sm:$0xff] }
 0x26f   :  { %19624 = vst [vmem:[#allocation33_spill] sm:$0xff] %v17211_v53  ;;  %v10902_v28 = vpop.f32.mrb[47].mxu1  ;;  %2130 = vmatmul.mubr.f32.gmra.mrb[152].mxu1 %v1846_v4  ;;  %v11141_v12 = vpop.f32.mrb[110].mxu0 }
 0x270   :  { %19625 = vst [vmem:[#allocation34_spill] sm:$0xff] %v17214_v7  ;;  %v10903_v21 = vadd.f32 %v10902_v28, %v10901_v24  ;;  %2791 = vmatmul.mubr.f32.gmra.mrb[216].mxu0 %v2650_v14  ;;  %2134 = vmatprep.mubr.f32.mxu1 %v1851_v27  ;;  %v11142_v55 = vpop.f32.mrb[111].mxu0  ;;  %v2658_v24 = vunpack.c.l.bf16 %v10075_v63  ;;  %v1859_v28 = vunpack.c.h.bf16 %v10014_v35  ;;  %v1858_v63 = vunpack.c.l.bf16 %v10014_v35  ;;  %v10018_v35 = vld [vmem:[%s19561_s3 + $0x418] sm:$0xff] }
 0x271   :  { %2795 = vmatprep.mubr.f32.mxu0 %v2655_v6  ;;  %v17222_v17 = vadd.f32 %v11142_v55, %v11141_v12  ;;  %v2663_v55 = vunpack.c.h.bf16 %v10077_v32 }
 0x272   :  { %v17225_v30 = vadd.f32 %v10903_v21, %v17020_v19  ;;  %v10904_v4 = vpop.f32.mrb[48].mxu1  ;;  %v10016_v19 = vld [vmem:[%s19561_s3 + $0x408] sm:$0xff] }
 0x273   :  { %19626 = vst [vmem:[#allocation35_spill] sm:$0xff] %v17222_v17  ;;  %v10905_v14 = vpop.f32.mrb[49].mxu1  ;;  %2135 = vmatmul.mubr.f32.gmra.mrb[154].mxu1 %v1850_v58  ;;  %v11144_v27 = vpop.f32.mrb[112].mxu0 }
 0x274   :  { %19627 = vst [vmem:[#allocation36_spill] sm:$0xff] %v17225_v30  ;;  %v10906_v6 = vadd.f32 %v10905_v14, %v10904_v4  ;;  %2796 = vmatmul.mubr.f32.gmra.mrb[218].mxu0 %v2654_v46  ;;  %2139 = vmatprep.mubr.f32.mxu1 %v1855_v54  ;;  %v11145_v53 = vpop.f32.mrb[113].mxu0  ;;  %v2662_v4 = vunpack.c.l.bf16 %v10077_v32  ;;  %v2202_v14 = vunpack.c.h.bf16 %v10016_v19  ;;  %v3005_v32 = vunpack.c.l.bf16 %v10079_v61 }
 0x275   :  { %2800 = vmatprep.mubr.f32.mxu0 %v2659_v3  ;;  %v17233_v12 = vadd.f32 %v11145_v53, %v11144_v27  ;;  %v3006_v53 = vunpack.c.h.bf16 %v10079_v61  ;;  %v10020_v61 = vld [vmem:[%s19561_s3 + $0x428] sm:$0xff] }
 0x276   :  { %v17236_v21 = vadd.f32 %v10906_v6, %v17030_v42  ;;  %v10907_v58 = vpop.f32.mrb[50].mxu1 }
 0x277   :  { %19628 = vst [vmem:[#allocation37_spill] sm:$0xff] %v17233_v12  ;;  %v10908_v46 = vpop.f32.mrb[51].mxu1  ;;  %2140 = vmatmul.mubr.f32.gmra.mrb[156].mxu1 %v1854_v51  ;;  %v11147_v54 = vpop.f32.mrb[114].mxu0 }
 0x278   :  { %19629 = vst [vmem:[#allocation38_spill] sm:$0xff] %v17236_v21  ;;  %v10909_v3 = vadd.f32 %v10908_v46, %v10907_v58  ;;  %2801 = vmatmul.mubr.f32.gmra.mrb[220].mxu0 %v2658_v24  ;;  %2144 = vmatprep.mubr.f32.mxu1 %v1859_v28  ;;  %v11148_v17 = vpop.f32.mrb[115].mxu0  ;;  %v2201_v21 = vunpack.c.l.bf16 %v10016_v19  ;;  %v2206_v58 = vunpack.c.h.bf16 %v10018_v35 }
 0x279   :  { %2805 = vmatprep.mubr.f32.mxu0 %v2663_v55  ;;  %v17241_v27 = vadd.f32 %v11148_v17, %v11147_v54  ;;  %v10081_v17 = vld [vmem:[%s19561_s3 + $0x610] sm:$0xff] }
 0x27a   :  { %v17244_v42 = vadd.f32 %v10909_v3, %v17040_v8  ;;  %v10910_v6 = vpop.f32.mrb[52].mxu1 }
 0x27b   :  { %19630 = vst [vmem:[#allocation39_spill] sm:$0xff] %v17241_v27  ;;  %v10911_v12 = vpop.f32.mrb[53].mxu1  ;;  %2145 = vmatmul.mubr.f32.gmra.mrb[158].mxu1 %v1858_v63  ;;  %v11150_v51 = vpop.f32.mrb[116].mxu0  ;;  %v3010_v63 = vunpack.c.h.bf16 %v10081_v17 }
 0x27c   :  { %v10912_v24 = vadd.f32 %v10911_v12, %v10910_v6  ;;  %2806 = vmatmul.mubr.f32.gmra.mrb[222].mxu0 %v2662_v4  ;;  %2472 = vmatprep.mubr.f32.mxu1 %v2202_v14  ;;  %v11151_v28 = vpop.f32.mrb[117].mxu0  ;;  %v2205_v12 = vunpack.c.l.bf16 %v10018_v35  ;;  %v3009_v4 = vunpack.c.l.bf16 %v10081_v17  ;;  %v2210_v35 = vunpack.c.h.bf16 %v10020_v61  ;;  %v10022_v17 = vld [vmem:[%s19561_s3 + $0x438] sm:$0xff] }
 0x27d   :  { %3133 = vmatprep.mubr.f32.mxu0 %v3006_v53  ;;  %v17252_v8 = vadd.f32 %v11151_v28, %v11150_v51 }
 0x27e   :  { %v17255_v55 = vadd.f32 %v10912_v24, %v17050_v40  ;;  %v10913_v19 = vpop.f32.mrb[54].mxu1  ;;  %v10083_v40 = vld [vmem:[%s19561_s3 + $0x620] sm:$0xff] }
 0x27f   :  { %19631 = vst [vmem:[#allocation40_spill] sm:$0xff] %v17252_v8  ;;  %v10914_v46 = vpop.f32.mrb[55].mxu1  ;;  %2473 = vmatmul.mubr.f32.vlgmr.msra.gmra.mrb[160].mxu1 %v2201_v21  ;;  %v11153_v54 = vpop.f32.mrb[118].mxu0  ;;  %v3014_v24 = vunpack.c.h.bf16 %v10083_v40 }
 0x280   :  { %v10915_v3 = vadd.f32 %v10914_v46, %v10913_v19  ;;  %14733 = vmatpush3.bf16.msra.mxu1 %v16435_v44  ;;  %3134 = vmatmul.mubr.f32.vlgmr.msra.gmra.mrb[224].mxu0 %v3005_v32  ;;  %v11154_v14 = vpop.f32.mrb[119].mxu0  ;;  %v2209_v32 = vunpack.c.l.bf16 %v10020_v61 }
 0x281   :  { %14829 = vmatpush3.bf16.msra.mxu0 %v16331_v38  ;;  %14735 = vmatprep.subr.bf16.mxu1 %v16544_v20  ;;  %v17266_v21 = vadd.f32 %v11154_v14, %v11153_v54  ;;  %v2214_v54 = vunpack.c.h.bf16 %v10022_v17  ;;  %v10024_v14 = vld [vmem:[%s19561_s3 + $0x448] sm:$0xff] }
 0x282   :  { %v17269_v53 = vadd.f32 %v10915_v3, %v17061_v11  ;;  %14831 = vmatprep.subr.bf16.mxu0 %v16371_v41  ;;  %v10916_v6 = vpop.f32.mrb[56].mxu1  ;;  %2477 = vmatprep.mubr.f32.mxu1 %v2206_v58  ;;  %v3013_v11 = vunpack.c.l.bf16 %v10083_v40  ;;  %v10085_v58 = vld [vmem:[%s19561_s3 + $0x630] sm:$0xff]  ;;  %v2213_v40 = vunpack.c.l.bf16 %v10022_v17 }
 0x283   :  { %19632 = vst [vmem:[#allocation41_spill] sm:$0xff] %v17266_v21  ;;  %3138 = vmatprep.mubr.f32.mxu0 %v3010_v63  ;;  %v10917_v51 = vpop.f32.mrb[57].mxu1  ;;  %2478 = vmatmul.mubr.f32.gmra.mrb[162].mxu1 %v2205_v12  ;;  %v11156_v28 = vpop.f32.mrb[120].mxu0  ;;  %v10032_v21 = vld [vmem:[%s19561_s3 + $0x488] sm:$0xff] }
 0x284   :  { %v10918_v19 = vadd.f32 %v10917_v51, %v10916_v6  ;;  %14737 = vmatpush3.bf16.msra.mxu1 %v16447_v60  ;;  %3139 = vmatmul.mubr.f32.gmra.mrb[226].mxu0 %v3009_v4  ;;  %v11157_v46 = vpop.f32.mrb[121].mxu0  ;;  %v3018_v4 = vunpack.c.h.bf16 %v10085_v58 }
 0x285   :  { %14833 = vmatpush3.bf16.msra.mxu0 %v16335_v45  ;;  %14739 = vmatprep.subr.bf16.mxu1 %v16556_v43  ;;  %v17281_v63 = vadd.f32 %v11157_v46, %v11156_v28  ;;  %v2217_v46 = vunpack.c.l.bf16 %v10024_v14 }
 0x286   :  { %v17284_v12 = vadd.f32 %v10918_v19, %v17075_v31  ;;  %14835 = vmatprep.subr.bf16.mxu0 %v16379_v49  ;;  %v10919_v61 = vpop.f32.mrb[58].mxu1  ;;  %2482 = vmatprep.mubr.f32.mxu1 %v2210_v35  ;;  %v3017_v31 = vunpack.c.l.bf16 %v10085_v58  ;;  %v10087_v35 = vld [vmem:[%s19561_s3 + $0x640] sm:$0xff]  ;;  %v2218_v19 = vunpack.c.h.bf16 %v10024_v14 }
 0x287   :  { %19633 = vst [vmem:[#allocation42_spill] sm:$0xff] %v17281_v63  ;;  %3143 = vmatprep.mubr.f32.mxu0 %v3014_v24  ;;  %v10920_v3 = vpop.f32.mrb[59].mxu1  ;;  %2483 = vmatmul.mubr.f32.gmra.mrb[164].mxu1 %v2209_v32  ;;  %v11159_v6 = vpop.f32.mrb[122].mxu0  ;;  %v3022_v58 = vunpack.c.h.bf16 %v10087_v35 }
 0x288   :  { %v10921_v51 = vadd.f32 %v10920_v3, %v10919_v61  ;;  %14741 = vmatpush3.bf16.msra.mxu1 %v16459_v13  ;;  %3144 = vmatmul.mubr.f32.gmra.mrb[228].mxu0 %v3013_v11  ;;  %v11160_v28 = vpop.f32.mrb[123].mxu0  ;;  %v10026_v61 = vld [vmem:[%s19561_s3 + $0x458] sm:$0xff] }
 0x289   :  { %14837 = vmatpush3.bf16.msra.mxu0 %v16339_v52  ;;  %14743 = vmatprep.subr.bf16.mxu1 %v16568_v0  ;;  %v17296_v24 = vadd.f32 %v11160_v28, %v11159_v6 }
 0x28a   :  { %v17299_v32 = vadd.f32 %v10921_v51, %v17086_v62  ;;  %14839 = vmatprep.subr.bf16.mxu0 %v16387_v57  ;;  %v10922_v17 = vpop.f32.mrb[60].mxu1  ;;  %2487 = vmatprep.mubr.f32.mxu1 %v2214_v54  ;;  %v3021_v62 = vunpack.c.l.bf16 %v10087_v35  ;;  %v10089_v54 = vld [vmem:[%s19561_s3 + $0x650] sm:$0xff] }
 0x28b   :  { %19634 = vst [vmem:[#allocation43_spill] sm:$0xff] %v17296_v24  ;;  %3148 = vmatprep.mubr.f32.mxu0 %v3018_v4  ;;  %v10923_v11 = vpop.f32.mrb[61].mxu1  ;;  %2488 = vmatmul.mubr.f32.gmra.mrb[166].mxu1 %v2213_v40  ;;  %v11162_v3 = vpop.f32.mrb[124].mxu0  ;;  %v3026_v28 = vunpack.c.h.bf16 %v10089_v54 }
 0x28c   :  { %v10924_v6 = vadd.f32 %v10923_v11, %v10922_v17  ;;  %14745 = vmatpush3.bf16.msra.mxu1 %v16471_v34  ;;  %3149 = vmatmul.mubr.f32.gmra.mrb[230].mxu0 %v3017_v31  ;;  %v11163_v51 = vpop.f32.mrb[125].mxu0  ;;  %v2222_v31 = vunpack.c.h.bf16 %v10026_v61  ;;  %v2221_v17 = vunpack.c.l.bf16 %v10026_v61  ;;  %v10028_v11 = vld [vmem:[%s19561_s3 + $0x468] sm:$0xff] }
 0x28d   :  { %14841 = vmatpush3.bf16.msra.mxu0 %v16343_v59  ;;  %14747 = vmatprep.subr.bf16.mxu1 %v16580_v22  ;;  %v17311_v4 = vadd.f32 %v11163_v51, %v11162_v3 }
 0x28e   :  { %v17314_v40 = vadd.f32 %v10924_v6, %v17100_v56  ;;  %14843 = vmatprep.subr.bf16.mxu0 %v16395_v1  ;;  %v10925_v14 = vpop.f32.mrb[62].mxu1  ;;  %2492 = vmatprep.mubr.f32.mxu1 %v2218_v19  ;;  %v3025_v56 = vunpack.c.l.bf16 %v10089_v54  ;;  %v10091_v19 = vld [vmem:[%s19561_s3 + $0x660] sm:$0xff] }
 0x28f   :  { %19635 = vst [vmem:[#allocation44_spill] sm:$0xff] %v17311_v4  ;;  %3153 = vmatprep.mubr.f32.mxu0 %v3022_v58  ;;  %v10926_v35 = vpop.f32.mrb[63].mxu1  ;;  %2493 = vmatmul.mubr.f32.gmra.mrb[168].mxu1 %v2217_v46  ;;  %v11165_v24 = vpop.f32.mrb[126].mxu0  ;;  %v19637_v46 = vld [vmem:[#allocation24_spill] sm:$0xff]  ;;  %v10030_v4 = vld [vmem:[%s19561_s3 + $0x478] sm:$0xff] }
 0x290   :  { %v10927_v3 = vadd.f32 %v10926_v35, %v10925_v14  ;;  %14749 = vmatpush3.bf16.msra.mxu1 %v16483_v50  ;;  %3154 = vmatmul.mubr.f32.gmra.mrb[232].mxu0 %v3021_v62  ;;  %v11166_v6 = vpop.f32.mrb[127].mxu0  ;;  %v2226_v62 = vunpack.c.h.bf16 %v10028_v11  ;;  %v3030_v14 = vunpack.c.h.bf16 %v10091_v19  ;;  %v2225_v35 = vunpack.c.l.bf16 %v10028_v11  ;;  %v19640_v11 = vld [vmem:[#allocation9_spill] sm:$0xff] }
 0x291   :  { %14845 = vmatpush3.bf16.msra.mxu0 %v16347_v2  ;;  %14751 = vmatprep.subr.bf16.mxu1 %v16592_v25  ;;  %v17326_v58 = vadd.f32 %v11166_v6, %v11165_v24 }
 0x292   :  { %v17329_v61 = vadd.f32 %v10927_v3, %v19637_v46  ;;  %14847 = vmatprep.subr.bf16.mxu0 %v16403_v10  ;;  %v11040_v51 = vpop.f32.mrb[64].mxu1  ;;  %2497 = vmatprep.mubr.f32.mxu1 %v2222_v31  ;;  %v3029_v3 = vunpack.c.l.bf16 %v10091_v19  ;;  %v10093_v31 = vld [vmem:[%s19561_s3 + $0x670] sm:$0xff] }
 0x293   :  { %19636 = vst [vmem:[#allocation45_spill] sm:$0xff] %v17326_v58  ;;  %3158 = vmatprep.mubr.f32.mxu0 %v3026_v28  ;;  %v11041_v54 = vpop.f32.mrb[65].mxu1  ;;  %2498 = vmatmul.mubr.f32.gmra.mrb[170].mxu1 %v2221_v17  ;;  %v11280_v63 = vpop.f32.mrb[128].mxu0  ;;  %v19638_v28 = vld [vmem:[#allocation7_spill] sm:$0xff]  ;;  %v2229_v58 = vunpack.c.l.bf16 %v10030_v4 }
 0x294   :  { %v11042_v24 = vadd.f32 %v11041_v54, %v11040_v51  ;;  %14753 = vmatpush3.bf16.msra.mxu1 %v16495_v5  ;;  %3159 = vmatmul.mubr.f32.gmra.mrb[234].mxu0 %v3025_v56  ;;  %v11281_v6 = vpop.f32.mrb[129].mxu0  ;;  %v2230_v56 = vunpack.c.h.bf16 %v10030_v4  ;;  %v3034_v54 = vunpack.c.h.bf16 %v10093_v31  ;;  %v19641_v4 = vld [vmem:[#allocation8_spill] sm:$0xff] }
 0x295   :  { %14849 = vmatpush3.bf16.msra.mxu0 %v16351_v9  ;;  %14755 = vmatprep.subr.bf16.mxu1 %v19638_v28  ;;  %v17341_v17 = vadd.f32 %v11281_v6, %v11280_v63  ;;  %v3033_v6 = vunpack.c.l.bf16 %v10093_v31  ;;  %v2234_v31 = vunpack.c.h.bf16 %v10032_v21  ;;  %v10097_v63 = vld [vmem:[%s19561_s3 + $0x690] sm:$0xff] }
 0x296   :  { %v17344_v46 = vadd.f32 %v11042_v24, %v19640_v11  ;;  %14851 = vmatprep.subr.bf16.mxu0 %v16411_v18  ;;  %v11043_v51 = vpop.f32.mrb[66].mxu1  ;;  %2502 = vmatprep.mubr.f32.mxu1 %v2226_v62  ;;  %v10095_v62 = vld [vmem:[%s19561_s3 + $0x680] sm:$0xff] }
 0x297   :  { %19639 = vst [vmem:[#allocation24_spill] sm:$0xff] %v17341_v17  ;;  %3163 = vmatprep.mubr.f32.mxu0 %v3030_v14  ;;  %v11044_v19 = vpop.f32.mrb[67].mxu1  ;;  %2503 = vmatmul.mubr.f32.gmra.mrb[172].mxu1 %v2225_v35  ;;  %v11283_v8 = vpop.f32.mrb[130].mxu0  ;;  %v10034_v35 = vld [vmem:[%s19561_s3 + $0x498] sm:$0xff]  ;;  %v3038_v27 = vunpack.c.h.bf16 %v10095_v62 }
 0x298   :  { %v11045_v24 = vadd.f32 %v11044_v19, %v11043_v51  ;;  %14757 = vmatpush3.bf16.msra.mxu1 %v16507_v26  ;;  %3164 = vmatmul.mubr.f32.gmra.mrb[236].mxu0 %v3029_v3  ;;  %v11284_v14 = vpop.f32.mrb[131].mxu0  ;;  %v19643_v51 = vld [vmem:[#allocation10_spill] sm:$0xff] }
 0x299   :  { %14853 = vmatpush3.bf16.msra.mxu0 %v16355_v16  ;;  %14759 = vmatprep.subr.bf16.mxu1 %v19641_v4  ;;  %v17361_v11 = vadd.f32 %v11284_v14, %v11283_v8  ;;  %v2233_v4 = vunpack.c.l.bf16 %v10032_v21  ;;  %v3037_v14 = vunpack.c.l.bf16 %v10095_v62  ;;  %v10036_v21 = vld [vmem:[%s19561_s3 + $0x4a8] sm:$0xff] }
 0x29a   :  { %v17364_v19 = vadd.f32 %v11045_v24, %v19643_v51  ;;  %14855 = vmatprep.subr.bf16.mxu0 %v16419_v29  ;;  %v11046_v3 = vpop.f32.mrb[68].mxu1  ;;  %2507 = vmatprep.mubr.f32.mxu1 %v2230_v56  ;;  %v2238_v56 = vunpack.c.h.bf16 %v10034_v35  ;;  %v19646_v29 = vld [vmem:[#allocation11_spill] sm:$0xff] }
 0x29b   :  { %19642 = vst [vmem:[#allocation7_spill] sm:$0xff] %v17361_v11  ;;  %3168 = vmatprep.mubr.f32.mxu0 %v3034_v54  ;;  %v11047_v17 = vpop.f32.mrb[69].mxu1  ;;  %2508 = vmatmul.mubr.f32.gmra.mrb[174].mxu1 %v2229_v58  ;;  %v11286_v16 = vpop.f32.mrb[132].mxu0  ;;  %v19644_v11 = vld [vmem:[#allocation6_spill] sm:$0xff]  ;;  %v3042_v54 = vunpack.c.h.bf16 %v10097_v63 }
 0x29c   :  { %v11048_v24 = vadd.f32 %v11047_v17, %v11046_v3  ;;  %14761 = vmatpush3.bf16.msra.mxu1 %v16519_v47  ;;  %3169 = vmatmul.mubr.f32.gmra.mrb[238].mxu0 %v3033_v6  ;;  %v11287_v51 = vpop.f32.mrb[133].mxu0  ;;  %v10099_v6 = vld [vmem:[%s19561_s3 + $0x6a0] sm:$0xff]  ;;  %v2237_v3 = vunpack.c.l.bf16 %v10034_v35 }
 0x29d   :  { %14857 = vmatpush3.bf16.msra.mxu0 %v16359_v23  ;;  %14795 = vmatprep.subr.bf16.mxu1 %v19644_v11  ;;  %v17378_v58 = vadd.f32 %v11287_v51, %v11286_v16  ;;  %v19648_v23 = vld [vmem:[#allocation29_spill] sm:$0xff] }
 0x29e   :  { %v17381_v8 = vadd.f32 %v11048_v24, %v19646_v29  ;;  %14891 = vmatprep.subr.bf16.mxu0 %v16363_v33  ;;  %v11049_v17 = vpop.f32.mrb[70].mxu1  ;;  %2512 = vmatprep.mubr.f32.mxu1 %v2234_v31  ;;  %v3041_v29 = vunpack.c.l.bf16 %v10097_v63  ;;  %v2242_v24 = vunpack.c.h.bf16 %v10036_v21  ;;  %v3046_v31 = vunpack.c.h.bf16 %v10099_v6 }
 0x29f   :  { %19645 = vst [vmem:[#allocation9_spill] sm:$0xff] %v17378_v58  ;;  %3173 = vmatprep.mubr.f32.mxu0 %v3038_v27  ;;  %v11050_v62 = vpop.f32.mrb[71].mxu1  ;;  %2513 = vmatmul.mubr.f32.gmra.mrb[176].mxu1 %v2233_v4  ;;  %v11289_v11 = vpop.f32.mrb[134].mxu0  ;;  %v10038_v58 = vld [vmem:[%s19561_s3 + $0x4b8] sm:$0xff]  ;;  %v19650_v4 = vld [vmem:[#allocation12_spill] sm:$0xff]  ;;  %v2241_v63 = vunpack.c.l.bf16 %v10036_v21 }
 0x2a0   :  { %19647 = vst [vmem:[#allocation10_spill] sm:$0xff] %v17381_v8  ;;  %v11051_v51 = vadd.f32 %v11050_v62, %v11049_v17  ;;  %3174 = vmatmul.mubr.f32.gmra.mrb[240].mxu0 %v3037_v14  ;;  %2517 = vmatprep.mubr.f32.mxu1 %v2238_v56  ;;  %v11290_v33 = vpop.f32.mrb[135].mxu0  ;;  %v10101_v14 = vld [vmem:[%s19561_s3 + $0x6b0] sm:$0xff] }
 0x2a1   :  { %3178 = vmatprep.mubr.f32.mxu0 %v3042_v54  ;;  %v17392_v27 = vadd.f32 %v11290_v33, %v11289_v11  ;;  %v3045_v11 = vunpack.c.l.bf16 %v10099_v6  ;;  %v2246_v33 = vunpack.c.h.bf16 %v10038_v58  ;;  %v2245_v6 = vunpack.c.l.bf16 %v10038_v58 }
 0x2a2   :  { %v17395_v35 = vadd.f32 %v11051_v51, %v19650_v4  ;;  %v11052_v47 = vpop.f32.mrb[72].mxu1  ;;  %v3050_v51 = vunpack.c.h.bf16 %v10101_v14  ;;  %v10040_v4 = vld [vmem:[%s19561_s3 + $0x4c8] sm:$0xff] }
 0x2a3   :  { %19649 = vst [vmem:[#allocation11_spill] sm:$0xff] %v17392_v27  ;;  %v11053_v56 = vpop.f32.mrb[73].mxu1  ;;  %2518 = vmatmul.mubr.f32.gmra.mrb[178].mxu1 %v2237_v3  ;;  %v11292_v17 = vpop.f32.mrb[136].mxu0  ;;  %v19653_v3 = vld [vmem:[#allocation13_spill] sm:$0xff] }
 0x2a4   :  { %19651 = vst [vmem:[#allocation29_spill] sm:$0xff] %v17395_v35  ;;  %v11054_v62 = vadd.f32 %v11053_v56, %v11052_v47  ;;  %3179 = vmatmul.mubr.f32.gmra.mrb[242].mxu0 %v3041_v29  ;;  %2522 = vmatprep.mubr.f32.mxu1 %v2242_v24  ;;  %v11293_v16 = vpop.f32.mrb[137].mxu0  ;;  %v10103_v47 = vld [vmem:[%s19561_s3 + $0x6c0] sm:$0xff] }
 0x2a5   :  { %3183 = vmatprep.mubr.f32.mxu0 %v3046_v31  ;;  %v17405_v27 = vadd.f32 %v11293_v16, %v11292_v17  ;;  %v3049_v16 = vunpack.c.l.bf16 %v10101_v14  ;;  %v2250_v17 = vunpack.c.h.bf16 %v10040_v4  ;;  %v2249_v14 = vunpack.c.l.bf16 %v10040_v4 }
 0x2a6   :  { %v17408_v21 = vadd.f32 %v11054_v62, %v19653_v3  ;;  %v11055_v8 = vpop.f32.mrb[74].mxu1  ;;  %v3054_v62 = vunpack.c.h.bf16 %v10103_v47  ;;  %v10042_v3 = vld [vmem:[%s19561_s3 + $0x4d8] sm:$0xff] }
 0x2a7   :  { %19652 = vst [vmem:[#allocation12_spill] sm:$0xff] %v17405_v27  ;;  %v11056_v29 = vpop.f32.mrb[75].mxu1  ;;  %2523 = vmatmul.mubr.f32.gmra.mrb[180].mxu1 %v2241_v63  ;;  %v11295_v24 = vpop.f32.mrb[138].mxu0  ;;  %v19656_v63 = vld [vmem:[#allocation14_spill] sm:$0xff] }
 0x2a8   :  { %19654 = vst [vmem:[#allocation13_spill] sm:$0xff] %v17408_v21  ;;  %v11057_v56 = vadd.f32 %v11056_v29, %v11055_v8  ;;  %3184 = vmatmul.mubr.f32.gmra.mrb[244].mxu0 %v3045_v11  ;;  %2527 = vmatprep.mubr.f32.mxu1 %v2246_v33  ;;  %v11296_v54 = vpop.f32.mrb[139].mxu0  ;;  %v10105_v8 = vld [vmem:[%s19561_s3 + $0x6d0] sm:$0xff] }
 0x2a9   :  { %3188 = vmatprep.mubr.f32.mxu0 %v3050_v51  ;;  %v17418_v27 = vadd.f32 %v11296_v54, %v11295_v24  ;;  %v3053_v54 = vunpack.c.l.bf16 %v10103_v47  ;;  %v2254_v24 = vunpack.c.h.bf16 %v10042_v3  ;;  %v2253_v47 = vunpack.c.l.bf16 %v10042_v3 }
 0x2aa   :  { %v17421_v58 = vadd.f32 %v11057_v56, %v19656_v63  ;;  %v11058_v35 = vpop.f32.mrb[76].mxu1  ;;  %v3058_v56 = vunpack.c.h.bf16 %v10105_v8  ;;  %v10044_v63 = vld [vmem:[%s19561_s3 + $0x4e8] sm:$0xff] }
 0x2ab   :  { %19655 = vst [vmem:[#allocation46_spill] sm:$0xff] %v17418_v27  ;;  %v11059_v11 = vpop.f32.mrb[77].mxu1  ;;  %2528 = vmatmul.mubr.f32.gmra.mrb[182].mxu1 %v2245_v6  ;;  %v11298_v33 = vpop.f32.mrb[140].mxu0  ;;  %v19659_v6 = vld [vmem:[#allocation15_spill] sm:$0xff] }
 0x2ac   :  { %19657 = vst [vmem:[#allocation14_spill] sm:$0xff] %v17421_v58  ;;  %v11060_v29 = vadd.f32 %v11059_v11, %v11058_v35  ;;  %3189 = vmatmul.mubr.f32.gmra.mrb[246].mxu0 %v3049_v16  ;;  %2532 = vmatprep.mubr.f32.mxu1 %v2250_v17  ;;  %v11299_v31 = vpop.f32.mrb[141].mxu0  ;;  %v10107_v35 = vld [vmem:[%s19561_s3 + $0x6e0] sm:$0xff] }
 0x2ad   :  { %3193 = vmatprep.mubr.f32.mxu0 %v3054_v62  ;;  %v17431_v27 = vadd.f32 %v11299_v31, %v11298_v33  ;;  %v3057_v31 = vunpack.c.l.bf16 %v10105_v8  ;;  %v2258_v33 = vunpack.c.h.bf16 %v10044_v63  ;;  %v2257_v8 = vunpack.c.l.bf16 %v10044_v63 }
 0x2ae   :  { %v17434_v4 = vadd.f32 %v11060_v29, %v19659_v6  ;;  %v11061_v21 = vpop.f32.mrb[78].mxu1  ;;  %v3062_v29 = vunpack.c.h.bf16 %v10107_v35  ;;  %v10046_v6 = vld [vmem:[%s19561_s3 + $0x4f8] sm:$0xff] }
 0x2af   :  { %19658 = vst [vmem:[#allocation47_spill] sm:$0xff] %v17431_v27  ;;  %v11062_v16 = vpop.f32.mrb[79].mxu1  ;;  %2533 = vmatmul.mubr.f32.gmra.mrb[184].mxu1 %v2249_v14  ;;  %v11301_v17 = vpop.f32.mrb[142].mxu0  ;;  %v19662_v14 = vld [vmem:[#allocation16_spill] sm:$0xff] }
 0x2b0   :  { %19660 = vst [vmem:[#allocation15_spill] sm:$0xff] %v17434_v4  ;;  %v11063_v11 = vadd.f32 %v11062_v16, %v11061_v21  ;;  %3194 = vmatmul.mubr.f32.gmra.mrb[248].mxu0 %v3053_v54  ;;  %2537 = vmatprep.mubr.f32.mxu1 %v2254_v24  ;;  %v11302_v51 = vpop.f32.mrb[143].mxu0  ;;  %v10109_v21 = vld [vmem:[%s19561_s3 + $0x6f0] sm:$0xff] }
 0x2b1   :  { %3198 = vmatprep.mubr.f32.mxu0 %v3058_v56  ;;  %v17444_v27 = vadd.f32 %v11302_v51, %v11301_v17  ;;  %v3061_v51 = vunpack.c.l.bf16 %v10107_v35  ;;  %v2262_v17 = vunpack.c.h.bf16 %v10046_v6  ;;  %v2261_v35 = vunpack.c.l.bf16 %v10046_v6 }
 0x2b2   :  { %v17447_v3 = vadd.f32 %v11063_v11, %v19662_v14  ;;  %v11064_v58 = vpop.f32.mrb[80].mxu1  ;;  %v3066_v11 = vunpack.c.h.bf16 %v10109_v21  ;;  %v10048_v14 = vld [vmem:[%s19561_s3 + $0x508] sm:$0xff] }
 0x2b3   :  { %19661 = vst [vmem:[#allocation48_spill] sm:$0xff] %v17444_v27  ;;  %v11065_v54 = vpop.f32.mrb[81].mxu1  ;;  %2538 = vmatmul.mubr.f32.gmra.mrb[186].mxu1 %v2253_v47  ;;  %v11304_v24 = vpop.f32.mrb[144].mxu0  ;;  %v19665_v47 = vld [vmem:[#allocation17_spill] sm:$0xff]  ;;  %v2604_v6 = vunpack.c.l.bf16 %v10048_v14 }
 0x2b4   :  { %19663 = vst [vmem:[#allocation16_spill] sm:$0xff] %v17447_v3  ;;  %v11066_v16 = vadd.f32 %v11065_v54, %v11064_v58  ;;  %3199 = vmatmul.mubr.f32.gmra.mrb[250].mxu0 %v3057_v31  ;;  %2542 = vmatprep.mubr.f32.mxu1 %v2258_v33  ;;  %v11305_v62 = vpop.f32.mrb[145].mxu0  ;;  %v10111_v58 = vld [vmem:[%s19561_s3 + $0x700] sm:$0xff] }
 0x2b5   :  { %3203 = vmatprep.mubr.f32.mxu0 %v3062_v29  ;;  %v17457_v27 = vadd.f32 %v11305_v62, %v11304_v24  ;;  %v19666_v29 = vld [vmem:[#allocation38_spill] sm:$0xff]  ;;  %v3065_v62 = vunpack.c.l.bf16 %v10109_v21  ;;  %v2605_v24 = vunpack.c.h.bf16 %v10048_v14  ;;  %v19669_v14 = vld [vmem:[#allocation19_spill] sm:$0xff] }
 0x2b6   :  { %v17460_v63 = vadd.f32 %v11066_v16, %v19665_v47  ;;  %v11067_v4 = vpop.f32.mrb[82].mxu1  ;;  %v3409_v16 = vunpack.c.h.bf16 %v10111_v58  ;;  %v19667_v3 = vld [vmem:[#allocation18_spill] sm:$0xff] }
 0x2b7   :  { %19664 = vst [vmem:[#allocation49_spill] sm:$0xff] %v17457_v27  ;;  %v11068_v31 = vpop.f32.mrb[83].mxu1  ;;  %2543 = vmatmul.mubr.f32.gmra.mrb[188].mxu1 %v2257_v8  ;;  %v11307_v33 = vpop.f32.mrb[146].mxu0 }
 0x2b8   :  { %v11069_v56 = vadd.f32 %v11068_v31, %v11067_v4  ;;  %3204 = vmatmul.mubr.f32.gmra.mrb[252].mxu0 %v3061_v51  ;;  %2547 = vmatprep.mubr.f32.mxu1 %v2262_v17  ;;  %v11308_v27 = vpop.f32.mrb[147].mxu0  ;;  %v10050_v4 = vld [vmem:[%s19561_s3 + $0x518] sm:$0xff] }
 0x2b9   :  { %3208 = vmatprep.mubr.f32.mxu0 %v3066_v11  ;;  %v17467_v47 = vadd.f32 %v11308_v27, %v11307_v33  ;;  %v3408_v27 = vunpack.c.l.bf16 %v10111_v58  ;;  %v2609_v33 = vunpack.c.h.bf16 %v10050_v4  ;;  %v2608_v21 = vunpack.c.l.bf16 %v10050_v4 }
 0x2ba   :  { %v17470_v30 = vadd.f32 %v11069_v56, %v19667_v3  ;;  %v11070_v7 = vpop.f32.mrb[84].mxu1  ;;  %v10052_v3 = vld [vmem:[%s19561_s3 + $0x528] sm:$0xff] }
 0x2bb   :  { %v11071_v8 = vpop.f32.mrb[85].mxu1  ;;  %2548 = vmatmul.mubr.f32.gmra.mrb[190].mxu1 %v2261_v35  ;;  %v11310_v51 = vpop.f32.mrb[148].mxu0 }
 0x2bc   :  { %v11072_v17 = vadd.f32 %v11071_v8, %v11070_v7  ;;  %3209 = vmatmul.mubr.f32.gmra.mrb[254].mxu0 %v3065_v62  ;;  %2875 = vmatprep.mubr.f32.mxu1 %v2605_v24  ;;  %v11311_v11 = vpop.f32.mrb[149].mxu0  ;;  %v2613_v24 = vunpack.c.h.bf16 %v10052_v3  ;;  %v10113_v8 = vld [vmem:[%s19561_s3 + $0x710] sm:$0xff] }
 0x2bd   :  { %3536 = vmatprep.mubr.f32.mxu0 %v3409_v16  ;;  %v17480_v56 = vadd.f32 %v11311_v11, %v11310_v51  ;;  %v19671_v51 = vld [vmem:[#allocation20_spill] sm:$0xff]  ;;  %v3412_v11 = vunpack.c.l.bf16 %v10113_v8 }
 0x2be   :  { %v17483_v31 = vadd.f32 %v11072_v17, %v19669_v14  ;;  %v11073_v35 = vpop.f32.mrb[86].mxu1 }
 0x2bf   :  { %19668 = vst [vmem:[#allocation17_spill] sm:$0xff] %v17480_v56  ;;  %v11074_v54 = vpop.f32.mrb[87].mxu1  ;;  %2876 = vmatmul.mubr.f32.vlgmr.msra.gmra.mrb[192].mxu1 %v2604_v6  ;;  %v11313_v7 = vpop.f32.mrb[150].mxu0  ;;  %v10054_v6 = vld [vmem:[%s19561_s3 + $0x538] sm:$0xff] }
 0x2c0   :  { %v11075_v62 = vadd.f32 %v11074_v54, %v11073_v35  ;;  %14797 = vmatpush3.bf16.msra.mxu1 %v16435_v44  ;;  %3537 = vmatmul.mubr.f32.vlgmr.msra.gmra.mrb[0].mxu0 %v3408_v27  ;;  %v11314_v16 = vpop.f32.mrb[151].mxu0  ;;  %v3413_v54 = vunpack.c.h.bf16 %v10113_v8 }
 0x2c1   :  { %14893 = vmatpush3.bf16.msra.mxu0 %v16331_v38  ;;  %14799 = vmatprep.subr.bf16.mxu1 %v16544_v20  ;;  %v17496_v4 = vadd.f32 %v11314_v16, %v11313_v7  ;;  %v2612_v38 = vunpack.c.l.bf16 %v10052_v3  ;;  %v2617_v7 = vunpack.c.h.bf16 %v10054_v6  ;;  %v19673_v16 = vld [vmem:[#allocation21_spill] sm:$0xff] }
 0x2c2   :  { %v17499_v17 = vadd.f32 %v11075_v62, %v19671_v51  ;;  %14895 = vmatprep.subr.bf16.mxu0 %v16371_v41  ;;  %v11076_v27 = vpop.f32.mrb[88].mxu1  ;;  %2880 = vmatprep.mubr.f32.mxu1 %v2609_v33  ;;  %v10115_v41 = vld [vmem:[%s19561_s3 + $0x720] sm:$0xff] }
 0x2c3   :  { %19670 = vst [vmem:[#allocation38_spill] sm:$0xff] %v17496_v4  ;;  %v11077_v14 = vpop.f32.mrb[89].mxu1  ;;  %2881 = vmatmul.mubr.f32.gmra.mrb[194].mxu1 %v2608_v21  ;;  %v11316_v35 = vpop.f32.mrb[152].mxu0  ;;  %3541 = vmatprep.mubr.f32.mxu0 %v3413_v54  ;;  %v10056_v21 = vld [vmem:[%s19561_s3 + $0x548] sm:$0xff]  ;;  %v3417_v33 = vunpack.c.h.bf16 %v10115_v41  ;;  %v3416_v54 = vunpack.c.l.bf16 %v10115_v41 }
 0x2c4   :  { %v11078_v56 = vadd.f32 %v11077_v14, %v11076_v27  ;;  %14801 = vmatpush3.bf16.msra.mxu1 %v16447_v60  ;;  %2885 = vmatprep.mubr.f32.mxu1 %v2613_v24  ;;  %v11317_v62 = vpop.f32.mrb[153].mxu0 }
 0x2c5   :  { %14897 = vmatpush3.bf16.msra.mxu0 %v16335_v45  ;;  %14803 = vmatprep.subr.bf16.mxu1 %v16556_v43  ;;  %v17513_v3 = vadd.f32 %v11317_v62, %v11316_v35  ;;  %v2616_v45 = vunpack.c.l.bf16 %v10054_v6  ;;  %v2621_v35 = vunpack.c.h.bf16 %v10056_v21  ;;  %v10058_v6 = vld [vmem:[%s19561_s3 + $0x558] sm:$0xff]  ;;  %v19675_v62 = vld [vmem:[#allocation22_spill] sm:$0xff] }
 0x2c6   :  { %v17516_v8 = vadd.f32 %v11078_v56, %v19673_v16  ;;  %14899 = vmatprep.subr.bf16.mxu0 %v16379_v49  ;;  %v11079_v24 = vpop.f32.mrb[90].mxu1  ;;  %3542 = vmatmul.mubr.f32.gmra.mrb[2].mxu0 %v3412_v11  ;;  %v10117_v49 = vld [vmem:[%s19561_s3 + $0x730] sm:$0xff] }
 0x2c7   :  { %19672 = vst [vmem:[#allocation18_spill] sm:$0xff] %v17513_v3  ;;  %v11080_v51 = vpop.f32.mrb[91].mxu1  ;;  %2886 = vmatmul.mubr.f32.gmra.mrb[196].mxu1 %v2612_v38  ;;  %v11319_v27 = vpop.f32.mrb[154].mxu0  ;;  %3546 = vmatprep.mubr.f32.mxu0 %v3417_v33  ;;  %v3421_v38 = vunpack.c.h.bf16 %v10117_v49  ;;  %v3420_v33 = vunpack.c.l.bf16 %v10117_v49 }
 0x2c8   :  { %v11081_v58 = vadd.f32 %v11080_v51, %v11079_v24  ;;  %14805 = vmatpush3.bf16.msra.mxu1 %v16459_v13  ;;  %2890 = vmatprep.mubr.f32.mxu1 %v2617_v7  ;;  %v11320_v56 = vpop.f32.mrb[155].mxu0 }
 0x2c9   :  { %14901 = vmatpush3.bf16.msra.mxu0 %v16339_v52  ;;  %14807 = vmatprep.subr.bf16.mxu1 %v16568_v0  ;;  %v17530_v11 = vadd.f32 %v11320_v56, %v11319_v27  ;;  %v2620_v52 = vunpack.c.l.bf16 %v10056_v21  ;;  %v2625_v27 = vunpack.c.h.bf16 %v10058_v6  ;;  %v10060_v21 = vld [vmem:[%s19561_s3 + $0x568] sm:$0xff] }
 0x2ca   :  { %v17533_v41 = vadd.f32 %v11081_v58, %v19675_v62  ;;  %14903 = vmatprep.subr.bf16.mxu0 %v16387_v57  ;;  %v11082_v7 = vpop.f32.mrb[92].mxu1  ;;  %3547 = vmatmul.mubr.f32.gmra.mrb[4].mxu0 %v3416_v54  ;;  %v10119_v57 = vld [vmem:[%s19561_s3 + $0x740] sm:$0xff]  ;;  %v19677_v56 = vld [vmem:[#allocation23_spill] sm:$0xff] }
 0x2cb   :  { %19674 = vst [vmem:[#allocation19_spill] sm:$0xff] %v17530_v11  ;;  %v11083_v16 = vpop.f32.mrb[93].mxu1  ;;  %2891 = vmatmul.mubr.f32.gmra.mrb[198].mxu1 %v2616_v45  ;;  %v11322_v24 = vpop.f32.mrb[156].mxu0  ;;  %3551 = vmatprep.mubr.f32.mxu0 %v3421_v38  ;;  %v3425_v45 = vunpack.c.h.bf16 %v10119_v57  ;;  %v3424_v38 = vunpack.c.l.bf16 %v10119_v57 }
 0x2cc   :  { %v11084_v14 = vadd.f32 %v11083_v16, %v11082_v7  ;;  %14809 = vmatpush3.bf16.msra.mxu1 %v16471_v34  ;;  %2895 = vmatprep.mubr.f32.mxu1 %v2621_v35  ;;  %v11323_v58 = vpop.f32.mrb[157].mxu0 }
 0x2cd   :  { %14905 = vmatpush3.bf16.msra.mxu0 %v16343_v59  ;;  %14811 = vmatprep.subr.bf16.mxu1 %v16580_v22  ;;  %v17547_v54 = vadd.f32 %v11323_v58, %v11322_v24  ;;  %v2624_v59 = vunpack.c.l.bf16 %v10058_v6  ;;  %v2629_v24 = vunpack.c.h.bf16 %v10060_v21  ;;  %v10062_v6 = vld [vmem:[%s19561_s3 + $0x578] sm:$0xff] }
 0x2ce   :  { %v17550_v49 = vadd.f32 %v11084_v14, %v19677_v56  ;;  %14907 = vmatprep.subr.bf16.mxu0 %v16395_v1  ;;  %v11085_v35 = vpop.f32.mrb[94].mxu1  ;;  %3552 = vmatmul.mubr.f32.gmra.mrb[6].mxu0 %v3420_v33  ;;  %v10121_v1 = vld [vmem:[%s19561_s3 + $0x750] sm:$0xff]  ;;  %v19679_v58 = vld [vmem:[#allocation25_spill] sm:$0xff] }
 0x2cf   :  { %19676 = vst [vmem:[#allocation20_spill] sm:$0xff] %v17547_v54  ;;  %v11086_v62 = vpop.f32.mrb[95].mxu1  ;;  %2896 = vmatmul.mubr.f32.gmra.mrb[200].mxu1 %v2620_v52  ;;  %v11325_v7 = vpop.f32.mrb[158].mxu0  ;;  %3556 = vmatprep.mubr.f32.mxu0 %v3425_v45  ;;  %v3429_v52 = vunpack.c.h.bf16 %v10121_v1  ;;  %v3428_v45 = vunpack.c.l.bf16 %v10121_v1 }
 0x2d0   :  { %v11087_v51 = vadd.f32 %v11086_v62, %v11085_v35  ;;  %14813 = vmatpush3.bf16.msra.mxu1 %v16483_v50  ;;  %2900 = vmatprep.mubr.f32.mxu1 %v2625_v27  ;;  %v11326_v14 = vpop.f32.mrb[159].mxu0 }
 0x2d1   :  { %14909 = vmatpush3.bf16.msra.mxu0 %v16347_v2  ;;  %14815 = vmatprep.subr.bf16.mxu1 %v16592_v25  ;;  %v17564_v33 = vadd.f32 %v11326_v14, %v11325_v7  ;;  %v2628_v2 = vunpack.c.l.bf16 %v10060_v21  ;;  %v2633_v7 = vunpack.c.h.bf16 %v10062_v6  ;;  %v10064_v21 = vld [vmem:[%s19561_s3 + $0x588] sm:$0xff]  ;;  %v19681_v14 = vld [vmem:[#allocation26_spill] sm:$0xff] }
 0x2d2   :  { %v17567_v57 = vadd.f32 %v11087_v51, %v19679_v58  ;;  %14911 = vmatprep.subr.bf16.mxu0 %v16403_v10  ;;  %v11200_v27 = vpop.f32.mrb[96].mxu1  ;;  %3557 = vmatmul.mubr.f32.gmra.mrb[8].mxu0 %v3424_v38  ;;  %v10123_v10 = vld [vmem:[%s19561_s3 + $0x760] sm:$0xff] }
 0x2d3   :  { %19678 = vst [vmem:[#allocation21_spill] sm:$0xff] %v17564_v33  ;;  %v11201_v56 = vpop.f32.mrb[97].mxu1  ;;  %2901 = vmatmul.mubr.f32.gmra.mrb[202].mxu1 %v2624_v59  ;;  %v11440_v35 = vpop.f32.mrb[160].mxu0  ;;  %3561 = vmatprep.mubr.f32.mxu0 %v3429_v52  ;;  %v3433_v59 = vunpack.c.h.bf16 %v10123_v10  ;;  %v3432_v52 = vunpack.c.l.bf16 %v10123_v10  ;;  %v19686_v10 = vld [vmem:[#allocation27_spill] sm:$0xff] }
 0x2d4   :  { %v11202_v16 = vadd.f32 %v11201_v56, %v11200_v27  ;;  %14817 = vmatpush3.bf16.msra.mxu1 %v16495_v5  ;;  %2905 = vmatprep.mubr.f32.mxu1 %v2629_v24  ;;  %v11441_v51 = vpop.f32.mrb[161].mxu0  ;;  %v2632_v27 = vunpack.c.l.bf16 %v10062_v6  ;;  %v19682_v56 = vmax.f32 %v17136_v36, %v17344_v46  ;;  %v19684_v6 = vld [vmem:[#allocation8_spill] sm:$0xff]  ;;  %v10066_v36 = vld [vmem:[%s19561_s3 + $0x598] sm:$0xff] }
 0x2d5   :  { %14913 = vmatpush3.bf16.msra.mxu0 %v16351_v9  ;;  %14819 = vmatprep.subr.bf16.mxu1 %v19638_v28  ;;  %v17581_v38 = vadd.f32 %v11441_v51, %v11440_v35 }
 0x2d6   :  { %v1669_v1 = vadd.f32 %v11202_v16, %v19681_v14  ;;  %14915 = vmatprep.subr.bf16.mxu0 %v16411_v18  ;;  %v11203_v24 = vpop.f32.mrb[98].mxu1  ;;  %3562 = vmatmul.mubr.f32.gmra.mrb[10].mxu0 %v3428_v45  ;;  %v2637_v16 = vunpack.c.h.bf16 %v10064_v21  ;;  %v10125_v18 = vld [vmem:[%s19561_s3 + $0x770] sm:$0xff]  ;;  %v19683_v45 = vld [vmem:[#allocation2_spill] sm:$0xff] }
 0x2d7   :  { %19680 = vst [vmem:[#allocation22_spill] sm:$0xff] %v17581_v38  ;;  %v11204_v58 = vpop.f32.mrb[99].mxu1  ;;  %2906 = vmatmul.mubr.f32.gmra.mrb[204].mxu1 %v2628_v2  ;;  %v11443_v9 = vpop.f32.mrb[162].mxu0  ;;  %3566 = vmatprep.mubr.f32.mxu0 %v3433_v59  ;;  %v3437_v2 = vunpack.c.h.bf16 %v10125_v18 }
 0x2d8   :  { %v17588_v62 = vmax.f32 %v19682_v56, %v1669_v1  ;;  %v11205_v35 = vadd.f32 %v11204_v58, %v11203_v24  ;;  %14821 = vmatpush3.bf16.msra.mxu1 %v16507_v26  ;;  %2910 = vmatprep.mubr.f32.mxu1 %v2633_v7  ;;  %v11444_v51 = vpop.f32.mrb[163].mxu0  ;;  %v19687_v7 = vld [vmem:[#allocation4_spill] sm:$0xff]  ;;  %v3436_v1 = vunpack.c.l.bf16 %v10125_v18  ;;  %v2636_v58 = vunpack.c.l.bf16 %v10064_v21  ;;  %v19690_v18 = vld [vmem:[#allocation3_spill] sm:$0xff]  ;;  %v19691_v21 = vld [vmem:[#allocation6_spill] sm:$0xff] }
 0x2d9   :  { %14917 = vmatpush3.bf16.msra.mxu0 %v19683_v45  ;;  %14823 = vmatprep.subr.bf16.mxu1 %v19684_v6  ;;  %v17599_v46 = vadd.f32 %v11444_v51, %v11443_v9  ;;  %v19688_v45 = vmax.f32 %v17154_v48, %v17364_v19  ;;  %v19689_v51 = vld [vmem:[#allocation5_spill] sm:$0xff]  ;;  %v10068_v48 = vld [vmem:[%s19561_s3 + $0x5a8] sm:$0xff] }
 0x2da   :  { %v1674_v59 = vadd.f32 %v11205_v35, %v19686_v10  ;;  %14919 = vmatprep.subr.bf16.mxu0 %v19687_v7  ;;  %v11206_v14 = vpop.f32.mrb[100].mxu1  ;;  %3567 = vmatmul.mubr.f32.gmra.mrb[12].mxu0 %v3432_v52  ;;  %v2641_v35 = vunpack.c.h.bf16 %v10066_v36  ;;  %v10127_v52 = vld [vmem:[%s19561_s3 + $0x780] sm:$0xff] }
 0x2db   :  { %19685 = vst [vmem:[#allocation23_spill] sm:$0xff] %v17599_v46  ;;  %v11207_v24 = vpop.f32.mrb[101].mxu1  ;;  %2911 = vmatmul.mubr.f32.gmra.mrb[206].mxu1 %v2632_v27  ;;  %v11446_v56 = vpop.f32.mrb[164].mxu0  ;;  %3571 = vmatprep.mubr.f32.mxu0 %v3437_v2  ;;  %v3441_v27 = vunpack.c.h.bf16 %v10127_v52  ;;  %v19693_v2 = vld [vmem:[#allocation28_spill] sm:$0xff]  ;;  %v3440_v7 = vunpack.c.l.bf16 %v10127_v52  ;;  %v19697_v52 = vld [vmem:[#allocation30_spill] sm:$0xff] }
 0x2dc   :  { %v17606_v38 = vmax.f32 %v19688_v45, %v1674_v59  ;;  %v11208_v9 = vadd.f32 %v11207_v24, %v11206_v14  ;;  %14825 = vmatpush3.bf16.msra.mxu1 %v19689_v51  ;;  %2915 = vmatprep.mubr.f32.mxu1 %v2637_v16  ;;  %v11447_v10 = vpop.f32.mrb[165].mxu0  ;;  %v2640_v24 = vunpack.c.l.bf16 %v10066_v36 }
 0x2dd   :  { %14921 = vmatpush3.bf16.msra.mxu0 %v19690_v18  ;;  %14859 = vmatprep.subr.bf16.mxu1 %v19691_v21  ;;  %v17617_v19 = vadd.f32 %v11447_v10, %v11446_v56  ;;  %v19694_v18 = vld [vmem:[#allocation10_spill] sm:$0xff]  ;;  %v2645_v56 = vunpack.c.h.bf16 %v10068_v48 }
 0x2de   :  { %v1679_v59 = vadd.f32 %v11208_v9, %v19693_v2  ;;  %v11209_v16 = vpop.f32.mrb[102].mxu1  ;;  %3572 = vmatmul.mubr.f32.gmra.mrb[14].mxu0 %v3436_v1  ;;  %v19695_v46 = vmax.f32 %v19648_v23, %v19694_v18  ;;  %v10129_v9 = vld [vmem:[%s19561_s3 + $0x790] sm:$0xff]  ;;  %v10070_v1 = vld [vmem:[%s19561_s3 + $0x5b8] sm:$0xff] }
 0x2df   :  { %19692 = vst [vmem:[#allocation25_spill] sm:$0xff] %v17617_v19  ;;  %v11210_v14 = vpop.f32.mrb[103].mxu1  ;;  %2916 = vmatmul.mubr.f32.gmra.mrb[208].mxu1 %v2636_v58  ;;  %v11449_v45 = vpop.f32.mrb[166].mxu0  ;;  %3576 = vmatprep.mubr.f32.mxu0 %v3441_v27  ;;  %v3445_v58 = vunpack.c.h.bf16 %v10129_v9 }
 0x2e0   :  { %v17623_v33 = vmax.f32 %v19695_v46, %v1679_v59  ;;  %v11211_v54 = vadd.f32 %v11210_v14, %v11209_v16  ;;  %2920 = vmatprep.mubr.f32.mxu1 %v2641_v35  ;;  %v11450_v10 = vpop.f32.mrb[167].mxu0  ;;  %v3444_v46 = vunpack.c.l.bf16 %v10129_v9  ;;  %v2644_v35 = vunpack.c.l.bf16 %v10068_v48  ;;  %v19698_v16 = vld [vmem:[#allocation29_spill] sm:$0xff]  ;;  %v19701_v9 = vld [vmem:[#allocation31_spill] sm:$0xff] }
 0x2e1   :  { %v17631_v36 = vadd.f32 %v11450_v10, %v11449_v45  ;;  %v19699_v14 = vmax.f32 %v17181_v37, %v19698_v16  ;;  %v2649_v45 = vunpack.c.h.bf16 %v10070_v1 }
 0x2e2   :  { %v1684_v27 = vadd.f32 %v11211_v54, %v19697_v52  ;;  %v11212_v23 = vpop.f32.mrb[104].mxu1  ;;  %3577 = vmatmul.mubr.f32.gmra.mrb[16].mxu0 %v3440_v7  ;;  %v10131_v54 = vld [vmem:[%s19561_s3 + $0x7a0] sm:$0xff]  ;;  %v10072_v7 = vld [vmem:[%s19561_s3 + $0x5c8] sm:$0xff] }
 0x2e3   :  { %19696 = vst [vmem:[#allocation26_spill] sm:$0xff] %v17631_v36  ;;  %v11213_v2 = vpop.f32.mrb[105].mxu1  ;;  %2921 = vmatmul.mubr.f32.gmra.mrb[210].mxu1 %v2640_v24  ;;  %v11452_v59 = vpop.f32.mrb[168].mxu0  ;;  %3581 = vmatprep.mubr.f32.mxu0 %v3445_v58  ;;  %v3449_v24 = vunpack.c.h.bf16 %v10131_v54  ;;  %v3448_v52 = vunpack.c.l.bf16 %v10131_v54  ;;  %v19705_v54 = vld [vmem:[#allocation32_spill] sm:$0xff] }
 0x2e4   :  { %v17637_v18 = vmax.f32 %v19699_v14, %v1684_v27  ;;  %v11214_v19 = vadd.f32 %v11213_v2, %v11212_v23  ;;  %2925 = vmatprep.mubr.f32.mxu1 %v2645_v56  ;;  %v11453_v10 = vpop.f32.mrb[169].mxu0  ;;  %v2648_v56 = vunpack.c.l.bf16 %v10070_v1  ;;  %v19702_v2 = vld [vmem:[#allocation13_spill] sm:$0xff] }
 0x2e5   :  { %v17645_v48 = vadd.f32 %v11453_v10, %v11452_v59  ;;  %v19703_v16 = vmax.f32 %v17192_v39, %v19702_v2  ;;  %v2653_v59 = vunpack.c.h.bf16 %v10072_v7 }
 0x2e6   :  { %v1689_v58 = vadd.f32 %v11214_v19, %v19701_v9  ;;  %v11215_v37 = vpop.f32.mrb[106].mxu1  ;;  %3582 = vmatmul.mubr.f32.gmra.mrb[18].mxu0 %v3444_v46  ;;  %v10133_v19 = vld [vmem:[%s19561_s3 + $0x7b0] sm:$0xff]  ;;  %v10074_v46 = vld [vmem:[%s19561_s3 + $0x5d8] sm:$0xff] }
 0x2e7   :  { %19700 = vst [vmem:[#allocation2_spill] sm:$0xff] %v17645_v48  ;;  %v11216_v27 = vpop.f32.mrb[107].mxu1  ;;  %2926 = vmatmul.mubr.f32.gmra.mrb[212].mxu1 %v2644_v35  ;;  %v11455_v23 = vpop.f32.mrb[170].mxu0  ;;  %3586 = vmatprep.mubr.f32.mxu0 %v3449_v24  ;;  %v3453_v35 = vunpack.c.h.bf16 %v10133_v19  ;;  %v3452_v9 = vunpack.c.l.bf16 %v10133_v19  ;;  %v2657_v2 = vunpack.c.h.bf16 %v10074_v46 }
 0x2e8   :  { %v17651_v14 = vmax.f32 %v19703_v16, %v1689_v58  ;;  %v11217_v36 = vadd.f32 %v11216_v27, %v11215_v37  ;;  %2930 = vmatprep.mubr.f32.mxu1 %v2649_v45  ;;  %v11456_v10 = vpop.f32.mrb[171].mxu0  ;;  %v2652_v45 = vunpack.c.l.bf16 %v10072_v7  ;;  %v19706_v16 = vld [vmem:[#allocation14_spill] sm:$0xff] }
 0x2e9   :  { %v17659_v1 = vadd.f32 %v11456_v10, %v11455_v23  ;;  %v19707_v48 = vmax.f32 %v17203_v15, %v19706_v16  ;;  %v19709_v10 = vld [vmem:[#allocation33_spill] sm:$0xff]  ;;  %v19711_v16 = vld [vmem:[#allocation15_spill] sm:$0xff] }
 0x2ea   :  { %v1694_v24 = vadd.f32 %v11217_v36, %v19705_v54  ;;  %v11218_v39 = vpop.f32.mrb[108].mxu1  ;;  %3587 = vmatmul.mubr.f32.gmra.mrb[20].mxu0 %v3448_v52  ;;  %v10135_v36 = vld [vmem:[%s19561_s3 + $0x7c0] sm:$0xff]  ;;  %v10076_v52 = vld [vmem:[%s19561_s3 + $0x5e8] sm:$0xff] }
 0x2eb   :  { %19704 = vst [vmem:[#allocation8_spill] sm:$0xff] %v17659_v1  ;;  %v11219_v58 = vpop.f32.mrb[109].mxu1  ;;  %2931 = vmatmul.mubr.f32.gmra.mrb[214].mxu1 %v2648_v56  ;;  %v11458_v37 = vpop.f32.mrb[172].mxu0  ;;  %3591 = vmatprep.mubr.f32.mxu0 %v3453_v35  ;;  %v3457_v56 = vunpack.c.h.bf16 %v10135_v36  ;;  %v3456_v35 = vunpack.c.l.bf16 %v10135_v36 }
 0x2ec   :  { %v11220_v27 = vadd.f32 %v11219_v58, %v11218_v39  ;;  %2935 = vmatprep.mubr.f32.mxu1 %v2653_v59  ;;  %v17665_v11 = vmax.f32 %v19707_v48, %v1694_v24  ;;  %v11459_v23 = vpop.f32.mrb[173].mxu0  ;;  %v2656_v48 = vunpack.c.l.bf16 %v10074_v46  ;;  %v2661_v39 = vunpack.c.h.bf16 %v10076_v52  ;;  %v19710_v58 = vld [vmem:[#allocation34_spill] sm:$0xff] }
 0x2ed   :  { %v17673_v7 = vadd.f32 %v11459_v23, %v11458_v37  ;;  %v19712_v1 = vmax.f32 %v19710_v58, %v19711_v16  ;;  %v19713_v23 = vld [vmem:[#allocation35_spill] sm:$0xff]  ;;  %v19714_v58 = vld [vmem:[#allocation36_spill] sm:$0xff] }
 0x2ee   :  { %v1699_v59 = vadd.f32 %v11220_v27, %v19709_v10  ;;  %v11221_v19 = vpop.f32.mrb[110].mxu1  ;;  %3592 = vmatmul.mubr.f32.gmra.mrb[22].mxu0 %v3452_v9  ;;  %v10137_v27 = vld [vmem:[%s19561_s3 + $0x7d0] sm:$0xff]  ;;  %v10078_v9 = vld [vmem:[%s19561_s3 + $0x5f8] sm:$0xff] }
 0x2ef   :  { %19708 = vst [vmem:[#allocation27_spill] sm:$0xff] %v17673_v7  ;;  %v11222_v15 = vpop.f32.mrb[111].mxu1  ;;  %2936 = vmatmul.mubr.f32.gmra.mrb[216].mxu1 %v2652_v45  ;;  %v11461_v54 = vpop.f32.mrb[174].mxu0  ;;  %3596 = vmatprep.mubr.f32.mxu0 %v3457_v56  ;;  %v3461_v45 = vunpack.c.h.bf16 %v10137_v27  ;;  %v3460_v56 = vunpack.c.l.bf16 %v10137_v27  ;;  %v19715_v16 = vld [vmem:[#allocation16_spill] sm:$0xff] }
 0x2f0   :  { %v11223_v24 = vadd.f32 %v11222_v15, %v11221_v19  ;;  %2940 = vmatprep.mubr.f32.mxu1 %v2657_v2  ;;  %v17679_v3 = vmax.f32 %v19712_v1, %v1699_v59  ;;  %v11462_v37 = vpop.f32.mrb[175].mxu0  ;;  %v2660_v1 = vunpack.c.l.bf16 %v10076_v52  ;;  %v2665_v15 = vunpack.c.h.bf16 %v10078_v9 }
 0x2f1   :  { %v17687_v46 = vadd.f32 %v11462_v37, %v11461_v54  ;;  %v19716_v7 = vmax.f32 %v19714_v58, %v19715_v16  ;;  %v19717_v37 = vld [vmem:[#allocation37_spill] sm:$0xff]  ;;  %v19718_v58 = vmax.f32 %v19666_v29, %v17460_v63 }
 0x2f2   :  { %v1704_v2 = vadd.f32 %v11223_v24, %v19713_v23  ;;  %v11224_v36 = vpop.f32.mrb[112].mxu1  ;;  %3597 = vmatmul.mubr.f32.gmra.mrb[24].mxu0 %v3456_v35  ;;  %v10139_v24 = vld [vmem:[%s19561_s3 + $0x7e0] sm:$0xff]  ;;  %v10080_v35 = vld [vmem:[%s19561_s3 + $0x608] sm:$0xff] }
 0x2f3   :  { %v11225_v10 = vpop.f32.mrb[113].mxu1  ;;  %2941 = vmatmul.mubr.f32.gmra.mrb[218].mxu1 %v2656_v48  ;;  %v11464_v59 = vpop.f32.mrb[176].mxu0  ;;  %3601 = vmatprep.mubr.f32.mxu0 %v3461_v45  ;;  %v3465_v48 = vunpack.c.h.bf16 %v10139_v24  ;;  %v3464_v45 = vunpack.c.l.bf16 %v10139_v24  ;;  %v3007_v29 = vunpack.c.l.bf16 %v10080_v35 }
 0x2f4   :  { %v11226_v19 = vadd.f32 %v11225_v10, %v11224_v36  ;;  %2945 = vmatprep.mubr.f32.mxu1 %v2661_v39  ;;  %v17693_v4 = vmax.f32 %v19716_v7, %v1704_v2  ;;  %v11465_v54 = vpop.f32.mrb[177].mxu0  ;;  %v2664_v7 = vunpack.c.l.bf16 %v10078_v9  ;;  %v3008_v10 = vunpack.c.h.bf16 %v10080_v35 }
 0x2f5   :  { %v17701_v52 = vadd.f32 %v11465_v54, %v11464_v59  ;;  %v19719_v54 = vld [vmem:[#allocation39_spill] sm:$0xff] }
 0x2f6   :  { %v1709_v39 = vadd.f32 %v11226_v19, %v19717_v37  ;;  %v11227_v27 = vpop.f32.mrb[114].mxu1  ;;  %3602 = vmatmul.mubr.f32.gmra.mrb[26].mxu0 %v3460_v56  ;;  %v10141_v19 = vld [vmem:[%s19561_s3 + $0x7f0] sm:$0xff]  ;;  %v10082_v56 = vld [vmem:[%s19561_s3 + $0x618] sm:$0xff] }
 0x2f7   :  { %v11228_v23 = vpop.f32.mrb[115].mxu1  ;;  %2946 = vmatmul.mubr.f32.gmra.mrb[220].mxu1 %v2660_v1  ;;  %v11467_v2 = vpop.f32.mrb[178].mxu0  ;;  %3606 = vmatprep.mubr.f32.mxu0 %v3465_v48  ;;  %v3469_v1 = vunpack.c.h.bf16 %v10141_v19  ;;  %v3468_v48 = vunpack.c.l.bf16 %v10141_v19 }
 0x2f8   :  { %v11229_v36 = vadd.f32 %v11228_v23, %v11227_v27  ;;  %2950 = vmatprep.mubr.f32.mxu1 %v2665_v15  ;;  %v17707_v16 = vmax.f32 %v19718_v58, %v1709_v39  ;;  %v11468_v59 = vpop.f32.mrb[179].mxu0  ;;  %v3012_v27 = vunpack.c.h.bf16 %v10082_v56  ;;  %v19720_v23 = vmax.f32 %v17244_v42, %v17470_v30 }
 0x2f9   :  { %v17715_v9 = vadd.f32 %v11468_v59, %v11467_v2  ;;  %v19722_v59 = vld [vmem:[#allocation40_spill] sm:$0xff]  ;;  %v3011_v42 = vunpack.c.l.bf16 %v10082_v56  ;;  %v10086_v56 = vld [vmem:[%s19561_s3 + $0x638] sm:$0xff] }
 0x2fa   :  { %v1714_v15 = vadd.f32 %v11229_v36, %v19719_v54  ;;  %v11230_v24 = vpop.f32.mrb[116].mxu1  ;;  %3607 = vmatmul.mubr.f32.gmra.mrb[28].mxu0 %v3464_v45  ;;  %v10143_v36 = vld [vmem:[%s19561_s3 + $0x800] sm:$0xff]  ;;  %v10084_v45 = vld [vmem:[%s19561_s3 + $0x628] sm:$0xff] }
 0x2fb   :  { %v11231_v63 = vpop.f32.mrb[117].mxu1  ;;  %2951 = vmatmul.mubr.f32.gmra.mrb[222].mxu1 %v2664_v7  ;;  %v11470_v37 = vpop.f32.mrb[180].mxu0  ;;  %3611 = vmatprep.mubr.f32.mxu0 %v3469_v1  ;;  %v3812_v7 = vunpack.c.h.bf16 %v10143_v36  ;;  %v3811_v1 = vunpack.c.l.bf16 %v10143_v36 }
 0x2fc   :  { %v11232_v39 = vadd.f32 %v11231_v63, %v11230_v24  ;;  %3278 = vmatprep.mubr.f32.mxu1 %v3008_v10  ;;  %v17721_v58 = vmax.f32 %v19720_v23, %v1714_v15  ;;  %v11471_v2 = vpop.f32.mrb[181].mxu0  ;;  %v3016_v24 = vunpack.c.h.bf16 %v10084_v45  ;;  %v19723_v63 = vmax.f32 %v17255_v55, %v17483_v31 }
 0x2fd   :  { %v17729_v35 = vadd.f32 %v11471_v2, %v11470_v37 }
 0x2fe   :  { %v1719_v10 = vadd.f32 %v11232_v39, %v19722_v59  ;;  %v11233_v19 = vpop.f32.mrb[118].mxu1  ;;  %3612 = vmatmul.mubr.f32.gmra.mrb[30].mxu0 %v3468_v48  ;;  %v10145_v48 = vld [vmem:[%s19561_s3 + $0x810] sm:$0xff] }
 0x2ff   :  { %19721 = vst [vmem:[#allocation4_spill] sm:$0xff] %v17729_v35  ;;  %v11234_v30 = vpop.f32.mrb[119].mxu1  ;;  %3279 = vmatmul.mubr.f32.vlgmr.msra.gmra.mrb[224].mxu1 %v3007_v29  ;;  %v11473_v54 = vpop.f32.mrb[182].mxu0  ;;  %3939 = vmatprep.mubr.f32.mxu0 %v3812_v7  ;;  %v3816_v39 = vunpack.c.h.bf16 %v10145_v48  ;;  %v3815_v55 = vunpack.c.l.bf16 %v10145_v48  ;;  %v3015_v7 = vunpack.c.l.bf16 %v10084_v45  ;;  %v10088_v45 = vld [vmem:[%s19561_s3 + $0x648] sm:$0xff] }
 0x300   :  { %v11235_v15 = vadd.f32 %v11234_v30, %v11233_v19  ;;  %14861 = vmatpush3.bf16.msra.mxu1 %v16435_v44  ;;  %3283 = vmatprep.mubr.f32.mxu1 %v3012_v27  ;;  %v17736_v37 = vmax.f32 %v19723_v63, %v1719_v10  ;;  %v11474_v23 = vpop.f32.mrb[183].mxu0  ;;  %v19725_v27 = vld [vmem:[#allocation41_spill] sm:$0xff]  ;;  %v3020_v19 = vunpack.c.h.bf16 %v10086_v56  ;;  %v19726_v30 = vmax.f32 %v17269_v53, %v17499_v17 }
 0x301   :  { %14863 = vmatprep.subr.bf16.mxu1 %v16544_v20  ;;  %v17745_v29 = vadd.f32 %v11474_v23, %v11473_v54 }
 0x302   :  { %v1724_v2 = vadd.f32 %v11235_v15, %v19725_v27  ;;  %v11236_v36 = vpop.f32.mrb[120].mxu1  ;;  %3940 = vmatmul.mubr.f32.vlgmr.msra.gmra.mrb[32].mxu0 %v3811_v1  ;;  %v10147_v1 = vld [vmem:[%s19561_s3 + $0x820] sm:$0xff] }
 0x303   :  { %19724 = vst [vmem:[#allocation5_spill] sm:$0xff] %v17745_v29  ;;  %v11237_v31 = vpop.f32.mrb[121].mxu1  ;;  %3284 = vmatmul.mubr.f32.gmra.mrb[226].mxu1 %v3011_v42  ;;  %v11476_v59 = vpop.f32.mrb[184].mxu0  ;;  %3944 = vmatprep.mubr.f32.mxu0 %v3816_v39  ;;  %v3820_v15 = vunpack.c.h.bf16 %v10147_v1  ;;  %v3819_v53 = vunpack.c.l.bf16 %v10147_v1  ;;  %v3019_v39 = vunpack.c.l.bf16 %v10086_v56  ;;  %v10090_v56 = vld [vmem:[%s19561_s3 + $0x658] sm:$0xff] }
 0x304   :  { %v11238_v10 = vadd.f32 %v11237_v31, %v11236_v36  ;;  %14865 = vmatpush3.bf16.msra.mxu1 %v16447_v60  ;;  %3288 = vmatprep.mubr.f32.mxu1 %v3016_v24  ;;  %v17752_v54 = vmax.f32 %v19726_v30, %v1724_v2  ;;  %v11477_v63 = vpop.f32.mrb[185].mxu0  ;;  %v19728_v24 = vld [vmem:[#allocation42_spill] sm:$0xff]  ;;  %v3024_v36 = vunpack.c.h.bf16 %v10088_v45  ;;  %v19729_v31 = vmax.f32 %v17284_v12, %v17516_v8 }
 0x305   :  { %14867 = vmatprep.subr.bf16.mxu1 %v16556_v43  ;;  %v17761_v42 = vadd.f32 %v11477_v63, %v11476_v59 }
 0x306   :  { %v1729_v23 = vadd.f32 %v11238_v10, %v19728_v24  ;;  %v11239_v48 = vpop.f32.mrb[122].mxu1  ;;  %3945 = vmatmul.mubr.f32.gmra.mrb[34].mxu0 %v3815_v55  ;;  %v10149_v55 = vld [vmem:[%s19561_s3 + $0x830] sm:$0xff] }
 0x307   :  { %19727 = vst [vmem:[#allocation3_spill] sm:$0xff] %v17761_v42  ;;  %v11240_v17 = vpop.f32.mrb[123].mxu1  ;;  %3289 = vmatmul.mubr.f32.gmra.mrb[228].mxu1 %v3015_v7  ;;  %v11479_v27 = vpop.f32.mrb[186].mxu0  ;;  %3949 = vmatprep.mubr.f32.mxu0 %v3820_v15  ;;  %v3824_v10 = vunpack.c.h.bf16 %v10149_v55  ;;  %v3823_v12 = vunpack.c.l.bf16 %v10149_v55  ;;  %v3023_v15 = vunpack.c.l.bf16 %v10088_v45  ;;  %v10092_v45 = vld [vmem:[%s19561_s3 + $0x668] sm:$0xff] }
 0x308   :  { %v11241_v2 = vadd.f32 %v11240_v17, %v11239_v48  ;;  %14869 = vmatpush3.bf16.msra.mxu1 %v16459_v13  ;;  %3293 = vmatprep.mubr.f32.mxu1 %v3020_v19  ;;  %v17768_v59 = vmax.f32 %v19729_v31, %v1729_v23  ;;  %v11480_v30 = vpop.f32.mrb[187].mxu0  ;;  %v19731_v19 = vld [vmem:[#allocation43_spill] sm:$0xff]  ;;  %v3028_v48 = vunpack.c.h.bf16 %v10090_v56  ;;  %v19732_v17 = vmax.f32 %v17299_v32, %v17533_v41 }
 0x309   :  { %14871 = vmatprep.subr.bf16.mxu1 %v16568_v0  ;;  %v17777_v7 = vadd.f32 %v11480_v30, %v11479_v27 }
 0x30a   :  { %v1734_v63 = vadd.f32 %v11241_v2, %v19731_v19  ;;  %v11242_v1 = vpop.f32.mrb[124].mxu1  ;;  %3950 = vmatmul.mubr.f32.gmra.mrb[36].mxu0 %v3819_v53  ;;  %v10151_v53 = vld [vmem:[%s19561_s3 + $0x840] sm:$0xff] }
 0x30b   :  { %19730 = vst [vmem:[#allocation6_spill] sm:$0xff] %v17777_v7  ;;  %v11243_v8 = vpop.f32.mrb[125].mxu1  ;;  %3294 = vmatmul.mubr.f32.gmra.mrb[230].mxu1 %v3019_v39  ;;  %v11482_v24 = vpop.f32.mrb[188].mxu0  ;;  %3954 = vmatprep.mubr.f32.mxu0 %v3824_v10  ;;  %v3828_v2 = vunpack.c.h.bf16 %v10151_v53  ;;  %v3827_v32 = vunpack.c.l.bf16 %v10151_v53  ;;  %v3027_v10 = vunpack.c.l.bf16 %v10090_v56  ;;  %v10094_v56 = vld [vmem:[%s19561_s3 + $0x678] sm:$0xff] }
 0x30c   :  { %v11244_v23 = vadd.f32 %v11243_v8, %v11242_v1  ;;  %14873 = vmatpush3.bf16.msra.mxu1 %v16471_v34  ;;  %3298 = vmatprep.mubr.f32.mxu1 %v3024_v36  ;;  %v17784_v27 = vmax.f32 %v19732_v17, %v1734_v63  ;;  %v11483_v31 = vpop.f32.mrb[189].mxu0  ;;  %v19734_v36 = vld [vmem:[#allocation44_spill] sm:$0xff]  ;;  %v3032_v1 = vunpack.c.h.bf16 %v10092_v45  ;;  %v19735_v8 = vmax.f32 %v17314_v40, %v17550_v49 }
 0x30d   :  { %14875 = vmatprep.subr.bf16.mxu1 %v16580_v22  ;;  %v17793_v39 = vadd.f32 %v11483_v31, %v11482_v24 }
 0x30e   :  { %v1739_v30 = vadd.f32 %v11244_v23, %v19734_v36  ;;  %v11245_v55 = vpop.f32.mrb[126].mxu1  ;;  %3955 = vmatmul.mubr.f32.gmra.mrb[38].mxu0 %v3823_v12  ;;  %v10153_v12 = vld [vmem:[%s19561_s3 + $0x850] sm:$0xff] }
 0x30f   :  { %19733 = vst [vmem:[#allocation28_spill] sm:$0xff] %v17793_v39  ;;  %v11246_v41 = vpop.f32.mrb[127].mxu1  ;;  %3299 = vmatmul.mubr.f32.gmra.mrb[232].mxu1 %v3023_v15  ;;  %v11485_v19 = vpop.f32.mrb[190].mxu0  ;;  %3959 = vmatprep.mubr.f32.mxu0 %v3828_v2  ;;  %v3832_v23 = vunpack.c.h.bf16 %v10153_v12  ;;  %v3831_v40 = vunpack.c.l.bf16 %v10153_v12  ;;  %v3031_v2 = vunpack.c.l.bf16 %v10092_v45  ;;  %v10096_v45 = vld [vmem:[%s19561_s3 + $0x688] sm:$0xff] }
 0x310   :  { %v11247_v63 = vadd.f32 %v11246_v41, %v11245_v55  ;;  %14877 = vmatpush3.bf16.msra.mxu1 %v16483_v50  ;;  %3303 = vmatprep.mubr.f32.mxu1 %v3028_v48  ;;  %v17800_v24 = vmax.f32 %v19735_v8, %v1739_v30  ;;  %v11486_v17 = vpop.f32.mrb[191].mxu0  ;;  %v19737_v48 = vld [vmem:[#allocation45_spill] sm:$0xff]  ;;  %v3036_v55 = vunpack.c.h.bf16 %v10094_v56  ;;  %v19738_v41 = vmax.f32 %v17329_v61, %v17567_v57 }
 0x311   :  { %14879 = vmatprep.subr.bf16.mxu1 %v16592_v25  ;;  %v17809_v15 = vadd.f32 %v11486_v17, %v11485_v19 }
 0x312   :  { %v1744_v31 = vadd.f32 %v11247_v63, %v19737_v48  ;;  %v11360_v53 = vpop.f32.mrb[128].mxu1  ;;  %3960 = vmatmul.mubr.f32.gmra.mrb[40].mxu0 %v3827_v32  ;;  %v10155_v32 = vld [vmem:[%s19561_s3 + $0x860] sm:$0xff] }
 0x313   :  { %19736 = vst [vmem:[#allocation10_spill] sm:$0xff] %v17809_v15  ;;  %v11361_v49 = vpop.f32.mrb[129].mxu1  ;;  %3304 = vmatmul.mubr.f32.gmra.mrb[234].mxu1 %v3027_v10  ;;  %v11600_v36 = vpop.f32.mrb[192].mxu0  ;;  %3964 = vmatprep.mubr.f32.mxu0 %v3832_v23  ;;  %v3836_v63 = vunpack.c.h.bf16 %v10155_v32  ;;  %v3835_v57 = vunpack.c.l.bf16 %v10155_v32  ;;  %v3035_v23 = vunpack.c.l.bf16 %v10094_v56  ;;  %v10098_v56 = vld [vmem:[%s19561_s3 + $0x698] sm:$0xff] }
 0x314   :  { %v11362_v30 = vadd.f32 %v11361_v49, %v11360_v53  ;;  %14881 = vmatpush3.bf16.msra.mxu1 %v16495_v5  ;;  %3308 = vmatprep.mubr.f32.mxu1 %v3032_v1  ;;  %v17816_v19 = vmax.f32 %v19738_v41, %v1744_v31  ;;  %v11601_v8 = vpop.f32.mrb[193].mxu0  ;;  %v19740_v1 = vld [vmem:[#allocation24_spill] sm:$0xff]  ;;  %v3040_v53 = vunpack.c.h.bf16 %v10096_v45  ;;  %v19742_v41 = vld [vmem:[#allocation7_spill] sm:$0xff]  ;;  %v3044_v49 = vunpack.c.h.bf16 %v10098_v56 }
 0x315   :  { %14883 = vmatprep.subr.bf16.mxu1 %v19638_v28  ;;  %v17825_v10 = vadd.f32 %v11601_v8, %v11600_v36 }
 0x316   :  { %v17828_v17 = vadd.f32 %v11362_v30, %v19740_v1  ;;  %v11363_v61 = vpop.f32.mrb[130].mxu1  ;;  %3965 = vmatmul.mubr.f32.gmra.mrb[42].mxu0 %v3831_v40  ;;  %v10157_v30 = vld [vmem:[%s19561_s3 + $0x870] sm:$0xff]  ;;  %v3039_v1 = vunpack.c.l.bf16 %v10096_v45  ;;  %v10100_v45 = vld [vmem:[%s19561_s3 + $0x6a8] sm:$0xff] }
 0x317   :  { %19739 = vst [vmem:[#allocation30_spill] sm:$0xff] %v17825_v10  ;;  %v11364_v12 = vpop.f32.mrb[131].mxu1  ;;  %3309 = vmatmul.mubr.f32.gmra.mrb[236].mxu1 %v3031_v2  ;;  %v11603_v48 = vpop.f32.mrb[194].mxu0  ;;  %3969 = vmatprep.mubr.f32.mxu0 %v3836_v63  ;;  %v3840_v2 = vunpack.c.h.bf16 %v10157_v30  ;;  %v3839_v32 = vunpack.c.l.bf16 %v10157_v30  ;;  %v19744_v30 = vld [vmem:[#allocation9_spill] sm:$0xff] }
 0x318   :  { %v11365_v31 = vadd.f32 %v11364_v12, %v11363_v61  ;;  %14885 = vmatpush3.bf16.msra.mxu1 %v16507_v26  ;;  %3313 = vmatprep.mubr.f32.mxu1 %v3036_v55  ;;  %v11604_v36 = vpop.f32.mrb[195].mxu0 }
 0x319   :  { %14887 = vmatprep.subr.bf16.mxu1 %v19684_v6  ;;  %v17840_v40 = vadd.f32 %v11604_v36, %v11603_v48 }
 0x31a   :  { %v17843_v55 = vadd.f32 %v11365_v31, %v19742_v41  ;;  %v11366_v8 = vpop.f32.mrb[132].mxu1  ;;  %3970 = vmatmul.mubr.f32.gmra.mrb[44].mxu0 %v3835_v57  ;;  %v10159_v31 = vld [vmem:[%s19561_s3 + $0x880] sm:$0xff] }
 0x31b   :  { %19741 = vst [vmem:[#allocation29_spill] sm:$0xff] %v17840_v40  ;;  %v11367_v63 = vpop.f32.mrb[133].mxu1  ;;  %3314 = vmatmul.mubr.f32.gmra.mrb[238].mxu1 %v3035_v23  ;;  %v11606_v61 = vpop.f32.mrb[196].mxu0  ;;  %3974 = vmatprep.mubr.f32.mxu0 %v3840_v2  ;;  %v3844_v23 = vunpack.c.h.bf16 %v10159_v31  ;;  %v3843_v41 = vunpack.c.l.bf16 %v10159_v31 }
 0x31c   :  { %v11368_v12 = vadd.f32 %v11367_v63, %v11366_v8  ;;  %14889 = vmatpush3.bf16.msra.mxu1 %v19689_v51  ;;  %3318 = vmatprep.mubr.f32.mxu1 %v3040_v53  ;;  %v11607_v36 = vpop.f32.mrb[197].mxu0  ;;  %v3043_v63 = vunpack.c.l.bf16 %v10098_v56 }
 0x31d   :  { %14923 = vmatprep.subr.bf16.mxu1 %v19691_v21  ;;  %v17855_v57 = vadd.f32 %v11607_v36, %v11606_v61  ;;  %v3048_v21 = vunpack.c.h.bf16 %v10100_v45 }
 0x31e   :  { %v17858_v53 = vadd.f32 %v11368_v12, %v19744_v30  ;;  %v11369_v2 = vpop.f32.mrb[134].mxu1  ;;  %3975 = vmatmul.mubr.f32.gmra.mrb[46].mxu0 %v3839_v32  ;;  %v10161_v12 = vld [vmem:[%s19561_s3 + $0x890] sm:$0xff]  ;;  %v10102_v32 = vld [vmem:[%s19561_s3 + $0x6b8] sm:$0xff] }
 0x31f   :  { %19743 = vst [vmem:[#allocation31_spill] sm:$0xff] %v17855_v57  ;;  %v11370_v8 = vpop.f32.mrb[135].mxu1  ;;  %3319 = vmatmul.mubr.f32.gmra.mrb[240].mxu1 %v3039_v1  ;;  %v11609_v48 = vpop.f32.mrb[198].mxu0  ;;  %3979 = vmatprep.mubr.f32.mxu0 %v3844_v23  ;;  %v3848_v56 = vunpack.c.h.bf16 %v10161_v12  ;;  %v19746_v1 = vld [vmem:[#allocation11_spill] sm:$0xff]  ;;  %v3847_v23 = vunpack.c.l.bf16 %v10161_v12  ;;  %v3052_v57 = vunpack.c.h.bf16 %v10102_v32 }
 0x320   :  { %v11371_v40 = vadd.f32 %v11370_v8, %v11369_v2  ;;  %3323 = vmatprep.mubr.f32.mxu1 %v3044_v49  ;;  %v11610_v61 = vpop.f32.mrb[199].mxu0  ;;  %v3047_v2 = vunpack.c.l.bf16 %v10100_v45 }
 0x321   :  { %v17868_v36 = vadd.f32 %v11610_v61, %v11609_v48 }
 0x322   :  { %v17871_v31 = vadd.f32 %v11371_v40, %v19746_v1  ;;  %v11372_v49 = vpop.f32.mrb[136].mxu1  ;;  %3980 = vmatmul.mubr.f32.gmra.mrb[48].mxu0 %v3843_v41  ;;  %v10163_v40 = vld [vmem:[%s19561_s3 + $0x8a0] sm:$0xff]  ;;  %v10104_v41 = vld [vmem:[%s19561_s3 + $0x6c8] sm:$0xff] }
 0x323   :  { %19745 = vst [vmem:[#allocation13_spill] sm:$0xff] %v17868_v36  ;;  %v11373_v30 = vpop.f32.mrb[137].mxu1  ;;  %3324 = vmatmul.mubr.f32.gmra.mrb[242].mxu1 %v3043_v63  ;;  %v11612_v8 = vpop.f32.mrb[200].mxu0  ;;  %3984 = vmatprep.mubr.f32.mxu0 %v3848_v56  ;;  %v3852_v45 = vunpack.c.h.bf16 %v10163_v40  ;;  %v19748_v63 = vld [vmem:[#allocation12_spill] sm:$0xff]  ;;  %v3851_v56 = vunpack.c.l.bf16 %v10163_v40  ;;  %v3056_v36 = vunpack.c.h.bf16 %v10104_v41 }
 0x324   :  { %v11374_v10 = vadd.f32 %v11373_v30, %v11372_v49  ;;  %3328 = vmatprep.mubr.f32.mxu1 %v3048_v21  ;;  %v11613_v48 = vpop.f32.mrb[201].mxu0  ;;  %v3051_v49 = vunpack.c.l.bf16 %v10102_v32 }
 0x325   :  { %v17881_v61 = vadd.f32 %v11613_v48, %v11612_v8 }
 0x326   :  { %v17884_v12 = vadd.f32 %v11374_v10, %v19748_v63  ;;  %v11375_v21 = vpop.f32.mrb[138].mxu1  ;;  %3985 = vmatmul.mubr.f32.gmra.mrb[50].mxu0 %v3847_v23  ;;  %v10165_v10 = vld [vmem:[%s19561_s3 + $0x8b0] sm:$0xff]  ;;  %v10106_v23 = vld [vmem:[%s19561_s3 + $0x6d8] sm:$0xff] }
 0x327   :  { %19747 = vst [vmem:[#allocation32_spill] sm:$0xff] %v17881_v61  ;;  %v11376_v1 = vpop.f32.mrb[139].mxu1  ;;  %3329 = vmatmul.mubr.f32.gmra.mrb[244].mxu1 %v3047_v2  ;;  %v11615_v30 = vpop.f32.mrb[202].mxu0  ;;  %3989 = vmatprep.mubr.f32.mxu0 %v3852_v45  ;;  %v3856_v32 = vunpack.c.h.bf16 %v10165_v10  ;;  %v19750_v2 = vld [vmem:[#allocation46_spill] sm:$0xff]  ;;  %v3855_v45 = vunpack.c.l.bf16 %v10165_v10  ;;  %v3060_v7 = vunpack.c.h.bf16 %v10106_v23 }
 0x328   :  { %v11377_v15 = vadd.f32 %v11376_v1, %v11375_v21  ;;  %3333 = vmatprep.mubr.f32.mxu1 %v3052_v57  ;;  %v11616_v8 = vpop.f32.mrb[203].mxu0  ;;  %v3055_v21 = vunpack.c.l.bf16 %v10104_v41 }
 0x329   :  { %v17894_v48 = vadd.f32 %v11616_v8, %v11615_v30 }
 0x32a   :  { %v17897_v40 = vadd.f32 %v11377_v15, %v19750_v2  ;;  %v11378_v57 = vpop.f32.mrb[140].mxu1  ;;  %3990 = vmatmul.mubr.f32.gmra.mrb[52].mxu0 %v3851_v56  ;;  %v10167_v15 = vld [vmem:[%s19561_s3 + $0x8c0] sm:$0xff]  ;;  %v10108_v56 = vld [vmem:[%s19561_s3 + $0x6e8] sm:$0xff] }
 0x32b   :  { %19749 = vst [vmem:[#allocation14_spill] sm:$0xff] %v17894_v48  ;;  %v11379_v63 = vpop.f32.mrb[141].mxu1  ;;  %3334 = vmatmul.mubr.f32.gmra.mrb[246].mxu1 %v3051_v49  ;;  %v11618_v1 = vpop.f32.mrb[204].mxu0  ;;  %3994 = vmatprep.mubr.f32.mxu0 %v3856_v32  ;;  %v3860_v41 = vunpack.c.h.bf16 %v10167_v15  ;;  %v19752_v49 = vld [vmem:[#allocation47_spill] sm:$0xff]  ;;  %v3859_v2 = vunpack.c.l.bf16 %v10167_v15  ;;  %v3064_v42 = vunpack.c.h.bf16 %v10108_v56 }
 0x32c   :  { %v11380_v61 = vadd.f32 %v11379_v63, %v11378_v57  ;;  %3338 = vmatprep.mubr.f32.mxu1 %v3056_v36  ;;  %v11619_v30 = vpop.f32.mrb[205].mxu0  ;;  %v3059_v57 = vunpack.c.l.bf16 %v10106_v23 }
 0x32d   :  { %v17907_v8 = vadd.f32 %v11619_v30, %v11618_v1 }
 0x32e   :  { %v17910_v10 = vadd.f32 %v11380_v61, %v19752_v49  ;;  %v11381_v32 = vpop.f32.mrb[142].mxu1  ;;  %3995 = vmatmul.mubr.f32.gmra.mrb[54].mxu0 %v3855_v45  ;;  %v10169_v61 = vld [vmem:[%s19561_s3 + $0x8d0] sm:$0xff]  ;;  %v10110_v45 = vld [vmem:[%s19561_s3 + $0x6f8] sm:$0xff] }
 0x32f   :  { %19751 = vst [vmem:[#allocation33_spill] sm:$0xff] %v17907_v8  ;;  %v11382_v36 = vpop.f32.mrb[143].mxu1  ;;  %3339 = vmatmul.mubr.f32.gmra.mrb[248].mxu1 %v3055_v21  ;;  %v11621_v63 = vpop.f32.mrb[206].mxu0  ;;  %3999 = vmatprep.mubr.f32.mxu0 %v3860_v41  ;;  %v3864_v23 = vunpack.c.h.bf16 %v10169_v61  ;;  %v19754_v21 = vld [vmem:[#allocation48_spill] sm:$0xff]  ;;  %v3863_v49 = vunpack.c.l.bf16 %v10169_v61  ;;  %v3068_v29 = vunpack.c.h.bf16 %v10110_v45 }
 0x330   :  { %v11383_v48 = vadd.f32 %v11382_v36, %v11381_v32  ;;  %3343 = vmatprep.mubr.f32.mxu1 %v3060_v7  ;;  %v11622_v1 = vpop.f32.mrb[207].mxu0  ;;  %v3063_v32 = vunpack.c.l.bf16 %v10108_v56 }
 0x331   :  { %v17920_v30 = vadd.f32 %v11622_v1, %v11621_v63 }
 0x332   :  { %v17923_v15 = vadd.f32 %v11383_v48, %v19754_v21  ;;  %v11384_v41 = vpop.f32.mrb[144].mxu1  ;;  %4000 = vmatmul.mubr.f32.gmra.mrb[56].mxu0 %v3859_v2  ;;  %v10171_v48 = vld [vmem:[%s19561_s3 + $0x8e0] sm:$0xff]  ;;  %v10112_v2 = vld [vmem:[%s19561_s3 + $0x708] sm:$0xff] }
 0x333   :  { %19753 = vst [vmem:[#allocation34_spill] sm:$0xff] %v17920_v30  ;;  %v11385_v7 = vpop.f32.mrb[145].mxu1  ;;  %3344 = vmatmul.mubr.f32.gmra.mrb[250].mxu1 %v3059_v57  ;;  %v11624_v36 = vpop.f32.mrb[208].mxu0  ;;  %4004 = vmatprep.mubr.f32.mxu0 %v3864_v23  ;;  %v3868_v56 = vunpack.c.h.bf16 %v10171_v48  ;;  %v19756_v57 = vld [vmem:[#allocation49_spill] sm:$0xff]  ;;  %v3867_v21 = vunpack.c.l.bf16 %v10171_v48  ;;  %v3411_v35 = vunpack.c.h.bf16 %v10112_v2 }
 0x334   :  { %v11386_v8 = vadd.f32 %v11385_v7, %v11384_v41  ;;  %3348 = vmatprep.mubr.f32.mxu1 %v3064_v42  ;;  %v11625_v63 = vpop.f32.mrb[209].mxu0  ;;  %v3067_v41 = vunpack.c.l.bf16 %v10110_v45 }
 0x335   :  { %v17933_v1 = vadd.f32 %v11625_v63, %v11624_v36 }
 0x336   :  { %v17936_v61 = vadd.f32 %v11386_v8, %v19756_v57  ;;  %v11387_v23 = vpop.f32.mrb[146].mxu1  ;;  %4005 = vmatmul.mubr.f32.gmra.mrb[58].mxu0 %v3863_v49  ;;  %v10173_v8 = vld [vmem:[%s19561_s3 + $0x8f0] sm:$0xff]  ;;  %v10114_v49 = vld [vmem:[%s19561_s3 + $0x718] sm:$0xff]  ;;  %v3410_v57 = vunpack.c.l.bf16 %v10112_v2 }
 0x337   :  { %19755 = vst [vmem:[#allocation15_spill] sm:$0xff] %v17933_v1  ;;  %v11388_v42 = vpop.f32.mrb[147].mxu1  ;;  %3349 = vmatmul.mubr.f32.gmra.mrb[252].mxu1 %v3063_v32  ;;  %v11627_v7 = vpop.f32.mrb[210].mxu0  ;;  %4009 = vmatprep.mubr.f32.mxu0 %v3868_v56  ;;  %v3872_v45 = vunpack.c.h.bf16 %v10173_v8  ;;  %v3871_v56 = vunpack.c.l.bf16 %v10173_v8  ;;  %v3415_v1 = vunpack.c.h.bf16 %v10114_v49  ;;  %v3414_v8 = vunpack.c.l.bf16 %v10114_v49 }
 0x338   :  { %v11389_v30 = vadd.f32 %v11388_v42, %v11387_v23  ;;  %3353 = vmatprep.mubr.f32.mxu1 %v3068_v29  ;;  %v11628_v36 = vpop.f32.mrb[211].mxu0 }
 0x339   :  { %v17946_v63 = vadd.f32 %v11628_v36, %v11627_v7 }
 0x33a   :  { %v17949_v32 = vadd.f32 %v11389_v30, %v17467_v47  ;;  %v11390_v48 = vpop.f32.mrb[148].mxu1  ;;  %4010 = vmatmul.mubr.f32.gmra.mrb[60].mxu0 %v3867_v21  ;;  %v10116_v47 = vld [vmem:[%s19561_s3 + $0x728] sm:$0xff]  ;;  %v19757_v21 = vld [vmem:[#allocation17_spill] sm:$0xff] }
 0x33b   :  { %v11391_v29 = vpop.f32.mrb[149].mxu1  ;;  %3354 = vmatmul.mubr.f32.gmra.mrb[254].mxu1 %v3067_v41  ;;  %v11630_v23 = vpop.f32.mrb[212].mxu0  ;;  %4014 = vmatprep.mubr.f32.mxu0 %v3872_v45 }
 0x33c   :  { %v11392_v39 = vadd.f32 %v11391_v29, %v11390_v48  ;;  %3681 = vmatprep.mubr.f32.mxu1 %v3411_v35  ;;  %v11631_v7 = vpop.f32.mrb[213].mxu0  ;;  %v3419_v29 = vunpack.c.h.bf16 %v10116_v47 }
 0x33d   :  { %v17956_v30 = vadd.f32 %v11631_v7, %v11630_v23 }
 0x33e   :  { %v17959_v36 = vadd.f32 %v11392_v39, %v19757_v21  ;;  %v11393_v41 = vpop.f32.mrb[150].mxu1  ;;  %4015 = vmatmul.mubr.f32.gmra.mrb[62].mxu0 %v3871_v56  ;;  %v10118_v39 = vld [vmem:[%s19561_s3 + $0x738] sm:$0xff]  ;;  %v3418_v21 = vunpack.c.l.bf16 %v10116_v47 }
 0x33f   :  { %v11394_v2 = vpop.f32.mrb[151].mxu1  ;;  %3682 = vmatmul.mubr.f32.vlgmr.msra.gmra.mrb[0].mxu1 %v3410_v57  ;;  %v11633_v45 = vpop.f32.mrb[214].mxu0  ;;  %v19758_v57 = vld [vmem:[#allocation38_spill] sm:$0xff] }
 0x340   :  { %v11395_v48 = vadd.f32 %v11394_v2, %v11393_v41  ;;  %14925 = vmatpush3.bf16.msra.mxu1 %v16435_v44  ;;  %3686 = vmatprep.mubr.f32.mxu1 %v3415_v1  ;;  %v11634_v42 = vpop.f32.mrb[215].mxu0 }
 0x341   :  { %14927 = vmatprep.subr.bf16.mxu1 %v16544_v20  ;;  %v17968_v56 = vadd.f32 %v11634_v42, %v11633_v45  ;;  %v3423_v20 = vunpack.c.h.bf16 %v10118_v39  ;;  %v10120_v42 = vld [vmem:[%s19561_s3 + $0x748] sm:$0xff] }
 0x342   :  { %v17971_v49 = vadd.f32 %v11395_v48, %v19758_v57  ;;  %v11396_v23 = vpop.f32.mrb[152].mxu1 }
 0x343   :  { %v11397_v7 = vpop.f32.mrb[153].mxu1  ;;  %3687 = vmatmul.mubr.f32.gmra.mrb[2].mxu1 %v3414_v8  ;;  %v11636_v41 = vpop.f32.mrb[216].mxu0  ;;  %v19759_v8 = vld [vmem:[#allocation18_spill] sm:$0xff] }
 0x344   :  { %v11398_v1 = vadd.f32 %v11397_v7, %v11396_v23  ;;  %14929 = vmatpush3.bf16.msra.mxu1 %v16447_v60  ;;  %3691 = vmatprep.mubr.f32.mxu1 %v3419_v29  ;;  %v11637_v2 = vpop.f32.mrb[217].mxu0  ;;  %v3422_v23 = vunpack.c.l.bf16 %v10118_v39 }
 0x345   :  { %14931 = vmatprep.subr.bf16.mxu1 %v16556_v43  ;;  %v17980_v45 = vadd.f32 %v11637_v2, %v11636_v41  ;;  %v3427_v43 = vunpack.c.h.bf16 %v10120_v42  ;;  %v10122_v41 = vld [vmem:[%s19561_s3 + $0x758] sm:$0xff] }
 0x346   :  { %v17983_v47 = vadd.f32 %v11398_v1, %v19759_v8  ;;  %v11399_v48 = vpop.f32.mrb[154].mxu1 }
 0x347   :  { %v11400_v57 = vpop.f32.mrb[155].mxu1  ;;  %3692 = vmatmul.mubr.f32.gmra.mrb[4].mxu1 %v3418_v21  ;;  %v11639_v7 = vpop.f32.mrb[218].mxu0  ;;  %v19760_v21 = vld [vmem:[#allocation19_spill] sm:$0xff] }
 0x348   :  { %v11401_v29 = vadd.f32 %v11400_v57, %v11399_v48  ;;  %14933 = vmatpush3.bf16.msra.mxu1 %v16459_v13  ;;  %3696 = vmatprep.mubr.f32.mxu1 %v3423_v20  ;;  %v11640_v44 = vpop.f32.mrb[219].mxu0  ;;  %v3426_v48 = vunpack.c.l.bf16 %v10120_v42 }
 0x349   :  { %14935 = vmatprep.subr.bf16.mxu1 %v16568_v0  ;;  %v17992_v1 = vadd.f32 %v11640_v44, %v11639_v7  ;;  %v3431_v0 = vunpack.c.h.bf16 %v10122_v41  ;;  %v10124_v44 = vld [vmem:[%s19561_s3 + $0x768] sm:$0xff] }
 0x34a   :  { %v17995_v39 = vadd.f32 %v11401_v29, %v19760_v21  ;;  %v11402_v2 = vpop.f32.mrb[156].mxu1 }
 0x34b   :  { %v11403_v8 = vpop.f32.mrb[157].mxu1  ;;  %3697 = vmatmul.mubr.f32.gmra.mrb[6].mxu1 %v3422_v23  ;;  %v11642_v57 = vpop.f32.mrb[220].mxu0  ;;  %v19761_v23 = vld [vmem:[#allocation20_spill] sm:$0xff] }
 0x34c   :  { %v11404_v20 = vadd.f32 %v11403_v8, %v11402_v2  ;;  %14937 = vmatpush3.bf16.msra.mxu1 %v16471_v34  ;;  %3701 = vmatprep.mubr.f32.mxu1 %v3427_v43  ;;  %v11643_v60 = vpop.f32.mrb[221].mxu0  ;;  %v3430_v2 = vunpack.c.l.bf16 %v10122_v41 }
 0x34d   :  { %14939 = vmatprep.subr.bf16.mxu1 %v16580_v22  ;;  %v18004_v7 = vadd.f32 %v11643_v60, %v11642_v57  ;;  %v3435_v22 = vunpack.c.h.bf16 %v10124_v44  ;;  %v10126_v60 = vld [vmem:[%s19561_s3 + $0x778] sm:$0xff] }
 0x34e   :  { %v18007_v42 = vadd.f32 %v11404_v20, %v19761_v23  ;;  %v11405_v29 = vpop.f32.mrb[158].mxu1 }
 0x34f   :  { %v11406_v21 = vpop.f32.mrb[159].mxu1  ;;  %3702 = vmatmul.mubr.f32.gmra.mrb[8].mxu1 %v3426_v48  ;;  %v11645_v8 = vpop.f32.mrb[222].mxu0  ;;  %v19762_v48 = vld [vmem:[#allocation21_spill] sm:$0xff] }
 0x350   :  { %v11407_v43 = vadd.f32 %v11406_v21, %v11405_v29  ;;  %14941 = vmatpush3.bf16.msra.mxu1 %v16483_v50  ;;  %3706 = vmatprep.mubr.f32.mxu1 %v3431_v0  ;;  %v11646_v13 = vpop.f32.mrb[223].mxu0  ;;  %v3434_v29 = vunpack.c.l.bf16 %v10124_v44  ;;  %v3438_v50 = vunpack.c.l.bf16 %v10126_v60 }
 0x351   :  { %14943 = vmatprep.subr.bf16.mxu1 %v16592_v25  ;;  %v18016_v57 = vadd.f32 %v11646_v13, %v11645_v8  ;;  %v3439_v25 = vunpack.c.h.bf16 %v10126_v60  ;;  %v10128_v13 = vld [vmem:[%s19561_s3 + $0x788] sm:$0xff] }
 0x352   :  { %v18019_v41 = vadd.f32 %v11407_v43, %v19762_v48  ;;  %v11520_v20 = vpop.f32.mrb[160].mxu1  ;;  %v19765_v60 = vld [vmem:[#allocation23_spill] sm:$0xff] }
 0x353   :  { %v11521_v23 = vpop.f32.mrb[161].mxu1  ;;  %3707 = vmatmul.mubr.f32.gmra.mrb[10].mxu1 %v3430_v2  ;;  %v11760_v21 = vpop.f32.mrb[224].mxu0  ;;  %v19763_v2 = vld [vmem:[#allocation22_spill] sm:$0xff] }
 0x354   :  { %v11522_v0 = vadd.f32 %v11521_v23, %v11520_v20  ;;  %14945 = vmatpush3.bf16.msra.mxu1 %v16495_v5  ;;  %3711 = vmatprep.mubr.f32.mxu1 %v3435_v22  ;;  %v11761_v34 = vpop.f32.mrb[225].mxu0  ;;  %v19764_v5 = vmax.f32 %v17588_v62, %v17828_v17  ;;  %v3442_v17 = vunpack.c.l.bf16 %v10128_v13 }
 0x355   :  { %14947 = vmatprep.subr.bf16.mxu1 %v19638_v28  ;;  %v18028_v8 = vadd.f32 %v11761_v34, %v11760_v21  ;;  %v3443_v28 = vunpack.c.h.bf16 %v10128_v13  ;;  %v10130_v34 = vld [vmem:[%s19561_s3 + $0x798] sm:$0xff] }
 0x356   :  { %v2475_v44 = vadd.f32 %v11522_v0, %v19763_v2  ;;  %v11523_v43 = vpop.f32.mrb[162].mxu1 }
 0x357   :  { %v11524_v48 = vpop.f32.mrb[163].mxu1  ;;  %3712 = vmatmul.mubr.f32.gmra.mrb[12].mxu1 %v3434_v29  ;;  %v11763_v20 = vpop.f32.mrb[226].mxu0 }
 0x358   :  { %v18034_v22 = vmax.f32 %v19764_v5, %v2475_v44  ;;  %v11525_v23 = vadd.f32 %v11524_v48, %v11523_v43  ;;  %14949 = vmatpush3.bf16.msra.mxu1 %v16507_v26  ;;  %3716 = vmatprep.mubr.f32.mxu1 %v3439_v25  ;;  %v11764_v35 = vpop.f32.mrb[227].mxu0  ;;  %v19766_v26 = vmax.f32 %v17606_v38, %v17843_v55  ;;  %v3446_v38 = vunpack.c.l.bf16 %v10130_v34 }
 0x359   :  { %14951 = vmatprep.subr.bf16.mxu1 %v19684_v6  ;;  %v18041_v29 = vadd.f32 %v11764_v35, %v11763_v20  ;;  %v3447_v6 = vunpack.c.h.bf16 %v10130_v34  ;;  %v10132_v35 = vld [vmem:[%s19561_s3 + $0x7a8] sm:$0xff] }
 0x35a   :  { %v2480_v21 = vadd.f32 %v11525_v23, %v19765_v60  ;;  %v11526_v0 = vpop.f32.mrb[164].mxu1  ;;  %v19768_v23 = vmax.f32 %v17623_v33, %v17858_v53  ;;  %v3451_v60 = vunpack.c.h.bf16 %v10132_v35  ;;  %v19770_v33 = vmax.f32 %v17637_v18, %v17871_v31 }
 0x35b   :  { %v11527_v62 = vpop.f32.mrb[165].mxu1  ;;  %3717 = vmatmul.mubr.f32.gmra.mrb[14].mxu1 %v3438_v50  ;;  %v11766_v2 = vpop.f32.mrb[228].mxu0  ;;  %v19767_v50 = vld [vmem:[#allocation25_spill] sm:$0xff]  ;;  %v19772_v18 = vmax.f32 %v17651_v14, %v17884_v12  ;;  %v19774_v14 = vmax.f32 %v17665_v11, %v17897_v40  ;;  %v19776_v11 = vmax.f32 %v17679_v3, %v17910_v10  ;;  %v19777_v3 = vmax.f32 %v17693_v4, %v17923_v15 }
 0x35c   :  { %v18047_v25 = vmax.f32 %v19766_v26, %v2480_v21  ;;  %v11528_v44 = vadd.f32 %v11527_v62, %v11526_v0  ;;  %14953 = vmatpush3.bf16.msra.mxu1 %v19689_v51  ;;  %3721 = vmatprep.mubr.f32.mxu1 %v3443_v28  ;;  %v11767_v43 = vpop.f32.mrb[229].mxu0  ;;  %v10134_v0 = vld [vmem:[%s19561_s3 + $0x7b8] sm:$0xff]  ;;  %v19778_v4 = vmax.f32 %v17707_v16, %v17936_v61 }
 0x35d   :  { %v18053_v48 = vadd.f32 %v11767_v43, %v11766_v2  ;;  %v19769_v2 = vld [vmem:[#allocation26_spill] sm:$0xff]  ;;  %v19779_v16 = vmax.f32 %v17721_v58, %v17949_v32  ;;  %v19781_v58 = vmax.f32 %v17736_v37, %v17959_v36  ;;  %v19783_v37 = vmax.f32 %v17752_v54, %v17971_v49 }
 0x35e   :  { %v2485_v13 = vadd.f32 %v11528_v44, %v19767_v50  ;;  %v11529_v20 = vpop.f32.mrb[166].mxu1  ;;  %v3450_v44 = vunpack.c.l.bf16 %v10132_v35  ;;  %v3455_v50 = vunpack.c.h.bf16 %v10134_v0  ;;  %v19786_v54 = vmax.f32 %v17768_v59, %v17983_v47 }
 0x35f   :  { %v11530_v5 = vpop.f32.mrb[167].mxu1  ;;  %3722 = vmatmul.mubr.f32.gmra.mrb[16].mxu1 %v3442_v17  ;;  %v11769_v55 = vpop.f32.mrb[230].mxu0  ;;  %v19789_v59 = vmax.f32 %v17784_v27, %v17995_v39  ;;  %v19792_v27 = vmax.f32 %v17800_v24, %v18007_v42  ;;  %v19795_v24 = vmax.f32 %v17816_v19, %v18019_v41 }
 0x360   :  { %v18059_v51 = vmax.f32 %v19768_v23, %v2485_v13  ;;  %v11531_v28 = vadd.f32 %v11530_v5, %v11529_v20  ;;  %3726 = vmatprep.mubr.f32.mxu1 %v3447_v6  ;;  %v11770_v21 = vpop.f32.mrb[231].mxu0  ;;  %v10136_v20 = vld [vmem:[%s19561_s3 + $0x7c8] sm:$0xff] }
 0x361   :  { %v18064_v62 = vadd.f32 %v11770_v21, %v11769_v55  ;;  %v19771_v55 = vld [vmem:[#allocation2_spill] sm:$0xff] }
 0x362   :  { %v2490_v26 = vadd.f32 %v11531_v28, %v19769_v2  ;;  %v11532_v17 = vpop.f32.mrb[168].mxu1  ;;  %v3454_v28 = vunpack.c.l.bf16 %v10134_v0  ;;  %v3459_v2 = vunpack.c.h.bf16 %v10136_v20 }
 0x363   :  { %v11533_v34 = vpop.f32.mrb[169].mxu1  ;;  %3727 = vmatmul.mubr.f32.gmra.mrb[18].mxu1 %v3446_v38  ;;  %v11772_v43 = vpop.f32.mrb[232].mxu0 }
 0x364   :  { %v18070_v53 = vmax.f32 %v19770_v33, %v2490_v26  ;;  %v11534_v6 = vadd.f32 %v11533_v34, %v11532_v17  ;;  %3731 = vmatprep.mubr.f32.mxu1 %v3451_v60  ;;  %v11773_v13 = vpop.f32.mrb[233].mxu0  ;;  %v10138_v17 = vld [vmem:[%s19561_s3 + $0x7d8] sm:$0xff] }
 0x365   :  { %v18075_v5 = vadd.f32 %v11773_v13, %v11772_v43  ;;  %v19773_v43 = vld [vmem:[#allocation8_spill] sm:$0xff] }
 0x366   :  { %v2495_v23 = vadd.f32 %v11534_v6, %v19771_v55  ;;  %v11535_v38 = vpop.f32.mrb[170].mxu1  ;;  %v3458_v6 = vunpack.c.l.bf16 %v10136_v20  ;;  %v3463_v55 = vunpack.c.h.bf16 %v10138_v17 }
 0x367   :  { %v11536_v35 = vpop.f32.mrb[171].mxu1  ;;  %3732 = vmatmul.mubr.f32.gmra.mrb[20].mxu1 %v3450_v44  ;;  %v11775_v21 = vpop.f32.mrb[234].mxu0 }
 0x368   :  { %v18081_v31 = vmax.f32 %v19772_v18, %v2495_v23  ;;  %v11537_v60 = vadd.f32 %v11536_v35, %v11535_v38  ;;  %3736 = vmatprep.mubr.f32.mxu1 %v3455_v50  ;;  %v11776_v26 = vpop.f32.mrb[235].mxu0  ;;  %v10140_v38 = vld [vmem:[%s19561_s3 + $0x7e8] sm:$0xff] }
 0x369   :  { %v18086_v34 = vadd.f32 %v11776_v26, %v11775_v21  ;;  %v19775_v21 = vld [vmem:[#allocation27_spill] sm:$0xff] }
 0x36a   :  { %v2500_v33 = vadd.f32 %v11537_v60, %v19773_v43  ;;  %v11538_v44 = vpop.f32.mrb[172].mxu1  ;;  %v3462_v60 = vunpack.c.l.bf16 %v10138_v17  ;;  %v3467_v43 = vunpack.c.h.bf16 %v10140_v38 }
 0x36b   :  { %v11539_v0 = vpop.f32.mrb[173].mxu1  ;;  %3737 = vmatmul.mubr.f32.gmra.mrb[22].mxu1 %v3454_v28  ;;  %v11778_v13 = vpop.f32.mrb[236].mxu0 }
 0x36c   :  { %v18092_v12 = vmax.f32 %v19774_v14, %v2500_v33  ;;  %v11540_v50 = vadd.f32 %v11539_v0, %v11538_v44  ;;  %3741 = vmatprep.mubr.f32.mxu1 %v3459_v2  ;;  %v11779_v23 = vpop.f32.mrb[237].mxu0  ;;  %v10142_v44 = vld [vmem:[%s19561_s3 + $0x7f8] sm:$0xff]  ;;  %v3466_v14 = vunpack.c.l.bf16 %v10140_v38 }
 0x36d   :  { %v18097_v35 = vadd.f32 %v11779_v23, %v11778_v13  ;;  %v3471_v23 = vunpack.c.h.bf16 %v10142_v44 }
 0x36e   :  { %v2505_v18 = vadd.f32 %v11540_v50, %v19775_v21  ;;  %v11541_v28 = vpop.f32.mrb[174].mxu1 }
 0x36f   :  { %v11542_v20 = vpop.f32.mrb[175].mxu1  ;;  %3742 = vmatmul.mubr.f32.gmra.mrb[24].mxu1 %v3458_v6  ;;  %v11781_v26 = vpop.f32.mrb[238].mxu0 }
 0x370   :  { %v18103_v40 = vmax.f32 %v19776_v11, %v2505_v18  ;;  %v11543_v2 = vadd.f32 %v11542_v20, %v11541_v28  ;;  %3746 = vmatprep.mubr.f32.mxu1 %v3463_v55  ;;  %v11782_v33 = vpop.f32.mrb[239].mxu0  ;;  %v10144_v18 = vld [vmem:[%s19561_s3 + $0x808] sm:$0xff] }
 0x371   :  { %v18108_v0 = vadd.f32 %v11782_v33, %v11781_v26  ;;  %v10146_v33 = vld [vmem:[%s19561_s3 + $0x818] sm:$0xff] }
 0x372   :  { %v2510_v13 = vadd.f32 %v11543_v2, %v17687_v46  ;;  %v11544_v6 = vpop.f32.mrb[176].mxu1  ;;  %v3814_v2 = vunpack.c.h.bf16 %v10144_v18 }
 0x373   :  { %v11545_v17 = vpop.f32.mrb[177].mxu1  ;;  %3747 = vmatmul.mubr.f32.gmra.mrb[26].mxu1 %v3462_v60  ;;  %v11784_v50 = vpop.f32.mrb[240].mxu0  ;;  %v3470_v60 = vunpack.c.l.bf16 %v10142_v44 }
 0x374   :  { %v18114_v10 = vmax.f32 %v19777_v3, %v2510_v13  ;;  %v11546_v55 = vadd.f32 %v11545_v17, %v11544_v6  ;;  %3751 = vmatprep.mubr.f32.mxu1 %v3467_v43  ;;  %v11785_v21 = vpop.f32.mrb[241].mxu0  ;;  %v3813_v17 = vunpack.c.l.bf16 %v10144_v18  ;;  %v3818_v3 = vunpack.c.h.bf16 %v10146_v33 }
 0x375   :  { %v18119_v28 = vadd.f32 %v11785_v21, %v11784_v50 }
 0x376   :  { %v2515_v46 = vadd.f32 %v11546_v55, %v17701_v52  ;;  %v11547_v20 = vpop.f32.mrb[178].mxu1 }
 0x377   :  { %v11548_v38 = vpop.f32.mrb[179].mxu1  ;;  %3752 = vmatmul.mubr.f32.gmra.mrb[28].mxu1 %v3466_v14  ;;  %v11787_v26 = vpop.f32.mrb[242].mxu0 }
 0x378   :  { %v18125_v15 = vmax.f32 %v19778_v4, %v2515_v46  ;;  %v11549_v11 = vadd.f32 %v11548_v38, %v11547_v20  ;;  %3756 = vmatprep.mubr.f32.mxu1 %v3471_v23  ;;  %v11788_v43 = vpop.f32.mrb[243].mxu0  ;;  %v10148_v23 = vld [vmem:[%s19561_s3 + $0x828] sm:$0xff]  ;;  %v3817_v38 = vunpack.c.l.bf16 %v10146_v33 }
 0x379   :  { %v18130_v13 = vadd.f32 %v11788_v43, %v11787_v26  ;;  %v3822_v4 = vunpack.c.h.bf16 %v10148_v23 }
 0x37a   :  { %v2520_v52 = vadd.f32 %v11549_v11, %v17715_v9  ;;  %v11550_v6 = vpop.f32.mrb[180].mxu1  ;;  %v19780_v9 = vld [vmem:[#allocation4_spill] sm:$0xff] }
 0x37b   :  { %v11551_v44 = vpop.f32.mrb[181].mxu1  ;;  %3757 = vmatmul.mubr.f32.gmra.mrb[30].mxu1 %v3470_v60  ;;  %v11790_v14 = vpop.f32.mrb[244].mxu0 }
 0x37c   :  { %v18136_v61 = vmax.f32 %v19779_v16, %v2520_v52  ;;  %v11552_v50 = vadd.f32 %v11551_v44, %v11550_v6  ;;  %4084 = vmatprep.mubr.f32.mxu1 %v3814_v2  ;;  %v11791_v55 = vpop.f32.mrb[245].mxu0  ;;  %v10150_v2 = vld [vmem:[%s19561_s3 + $0x838] sm:$0xff] }
 0x37d   :  { %v18141_v21 = vadd.f32 %v11791_v55, %v11790_v14  ;;  %v19782_v52 = vld [vmem:[#allocation5_spill] sm:$0xff]  ;;  %v10152_v55 = vld [vmem:[%s19561_s3 + $0x848] sm:$0xff] }
 0x37e   :  { %v2525_v46 = vadd.f32 %v11552_v50, %v19780_v9  ;;  %v11553_v20 = vpop.f32.mrb[182].mxu1  ;;  %v3826_v50 = vunpack.c.h.bf16 %v10150_v2 }
 0x37f   :  { %v11554_v18 = vpop.f32.mrb[183].mxu1  ;;  %4085 = vmatmul.mubr.f32.vlgmr.msra.gmra.mrb[32].mxu1 %v3813_v17  ;;  %v11793_v60 = vpop.f32.mrb[246].mxu0  ;;  %v3821_v17 = vunpack.c.l.bf16 %v10148_v23 }
 0x380   :  { %v18147_v32 = vmax.f32 %v19781_v58, %v2525_v46  ;;  %v11555_v26 = vadd.f32 %v11554_v18, %v11553_v20  ;;  %4089 = vmatprep.mubr.f32.mxu1 %v3818_v3  ;;  %v11794_v11 = vpop.f32.mrb[247].mxu0  ;;  %v19785_v46 = vld [vmem:[#allocation3_spill] sm:$0xff] }
 0x381   :  { %v18152_v43 = vadd.f32 %v11794_v11, %v11793_v60  ;;  %v10154_v11 = vld [vmem:[%s19561_s3 + $0x858] sm:$0xff] }
 0x382   :  { %v2530_v6 = vadd.f32 %v11555_v26, %v19782_v52  ;;  %v11556_v44 = vpop.f32.mrb[184].mxu1  ;;  %v3830_v26 = vunpack.c.h.bf16 %v10152_v55 }
 0x383   :  { %v11557_v33 = vpop.f32.mrb[185].mxu1  ;;  %4090 = vmatmul.mubr.f32.gmra.mrb[34].mxu1 %v3817_v38  ;;  %v11796_v14 = vpop.f32.mrb[248].mxu0  ;;  %v3825_v38 = vunpack.c.l.bf16 %v10150_v2 }
 0x384   :  { %v18158_v36 = vmax.f32 %v19783_v37, %v2530_v6  ;;  %v11558_v16 = vadd.f32 %v11557_v33, %v11556_v44  ;;  %4094 = vmatprep.mubr.f32.mxu1 %v3822_v4  ;;  %v11797_v3 = vpop.f32.mrb[249].mxu0  ;;  %v19788_v6 = vld [vmem:[#allocation6_spill] sm:$0xff] }
 0x385   :  { %v18163_v9 = vadd.f32 %v11797_v3, %v11796_v14  ;;  %v10156_v3 = vld [vmem:[%s19561_s3 + $0x868] sm:$0xff] }
 0x386   :  { %v2535_v20 = vadd.f32 %v11558_v16, %v19785_v46  ;;  %v11559_v18 = vpop.f32.mrb[186].mxu1  ;;  %v3834_v16 = vunpack.c.h.bf16 %v10154_v11 }
 0x387   :  { %19784 = vst [vmem:[#allocation35_spill] sm:$0xff] %v18163_v9  ;;  %v11560_v23 = vpop.f32.mrb[187].mxu1  ;;  %4095 = vmatmul.mubr.f32.gmra.mrb[36].mxu1 %v3821_v17  ;;  %v11799_v60 = vpop.f32.mrb[250].mxu0  ;;  %v3829_v17 = vunpack.c.l.bf16 %v10152_v55 }
 0x388   :  { %v18169_v49 = vmax.f32 %v19786_v54, %v2535_v20  ;;  %v11561_v58 = vadd.f32 %v11560_v23, %v11559_v18  ;;  %4099 = vmatprep.mubr.f32.mxu1 %v3826_v50  ;;  %v11800_v4 = vpop.f32.mrb[251].mxu0  ;;  %v19791_v20 = vld [vmem:[#allocation28_spill] sm:$0xff] }
 0x389   :  { %v18174_v52 = vadd.f32 %v11800_v4, %v11799_v60  ;;  %v10158_v4 = vld [vmem:[%s19561_s3 + $0x878] sm:$0xff] }
 0x38a   :  { %v2540_v44 = vadd.f32 %v11561_v58, %v19788_v6  ;;  %v11562_v33 = vpop.f32.mrb[188].mxu1  ;;  %v3838_v58 = vunpack.c.h.bf16 %v10156_v3 }
 0x38b   :  { %19787 = vst [vmem:[#allocation36_spill] sm:$0xff] %v18174_v52  ;;  %v11563_v2 = vpop.f32.mrb[189].mxu1  ;;  %4100 = vmatmul.mubr.f32.gmra.mrb[38].mxu1 %v3825_v38  ;;  %v11802_v14 = vpop.f32.mrb[252].mxu0  ;;  %v3833_v38 = vunpack.c.l.bf16 %v10154_v11 }
 0x38c   :  { %v18180_v47 = vmax.f32 %v19789_v59, %v2540_v44  ;;  %v11564_v37 = vadd.f32 %v11563_v2, %v11562_v33  ;;  %4104 = vmatprep.mubr.f32.mxu1 %v3830_v26  ;;  %v11803_v50 = vpop.f32.mrb[253].mxu0  ;;  %v19794_v44 = vld [vmem:[#allocation10_spill] sm:$0xff] }
 0x38d   :  { %v18185_v46 = vadd.f32 %v11803_v50, %v11802_v14  ;;  %v10160_v50 = vld [vmem:[%s19561_s3 + $0x888] sm:$0xff] }
 0x38e   :  { %v2545_v18 = vadd.f32 %v11564_v37, %v19791_v20  ;;  %v11565_v23 = vpop.f32.mrb[190].mxu1  ;;  %v3842_v37 = vunpack.c.h.bf16 %v10158_v4 }
 0x38f   :  { %19790 = vst [vmem:[#allocation16_spill] sm:$0xff] %v18185_v46  ;;  %v11566_v55 = vpop.f32.mrb[191].mxu1  ;;  %4105 = vmatmul.mubr.f32.gmra.mrb[40].mxu1 %v3829_v17  ;;  %v11805_v60 = vpop.f32.mrb[254].mxu0  ;;  %v3837_v17 = vunpack.c.l.bf16 %v10156_v3 }
 0x390   :  { %v18191_v39 = vmax.f32 %v19792_v27, %v2545_v18  ;;  %v11567_v54 = vadd.f32 %v11566_v55, %v11565_v23  ;;  %4109 = vmatprep.mubr.f32.mxu1 %v3834_v16  ;;  %v11806_v26 = vpop.f32.mrb[255].mxu0  ;;  %v19797_v18 = vld [vmem:[#allocation30_spill] sm:$0xff]  ;;  %v10162_v27 = vld [vmem:[%s19561_s3 + $0x898] sm:$0xff] }
 0x391   :  { %v18196_v6 = vadd.f32 %v11806_v26, %v11805_v60  ;;  %v3846_v60 = vunpack.c.h.bf16 %v10160_v50 }
 0x392   :  { %v2550_v33 = vadd.f32 %v11567_v54, %v19794_v44  ;;  %v11680_v2 = vpop.f32.mrb[192].mxu1 }
 0x393   :  { %19793 = vst [vmem:[#allocation37_spill] sm:$0xff] %v18196_v6  ;;  %v11681_v11 = vpop.f32.mrb[193].mxu1  ;;  %4110 = vmatmul.mubr.f32.gmra.mrb[42].mxu1 %v3833_v38  ;;  %v11920_v14 = vpop.f32.mrb[0].mxu0  ;;  %v3841_v38 = vunpack.c.l.bf16 %v10158_v4 }
 0x394   :  { %v18202_v42 = vmax.f32 %v19795_v24, %v2550_v33  ;;  %v11682_v59 = vadd.f32 %v11681_v11, %v11680_v2  ;;  %4114 = vmatprep.mubr.f32.mxu1 %v3838_v58  ;;  %v11921_v16 = vpop.f32.mrb[1].mxu0  ;;  %v19798_v58 = vld [vmem:[#allocation29_spill] sm:$0xff]  ;;  %v3845_v11 = vunpack.c.l.bf16 %v10160_v50  ;;  %v3850_v24 = vunpack.c.h.bf16 %v10162_v27 }
 0x395   :  { %v18207_v20 = vadd.f32 %v11921_v16, %v11920_v14  ;;  %v19800_v16 = vld [vmem:[#allocation31_spill] sm:$0xff]  ;;  %v3849_v50 = vunpack.c.l.bf16 %v10162_v27 }
 0x396   :  { %v18210_v23 = vadd.f32 %v11682_v59, %v19797_v18  ;;  %v11683_v3 = vpop.f32.mrb[194].mxu1  ;;  %v10164_v59 = vld [vmem:[%s19561_s3 + $0x8a8] sm:$0xff] }
 0x397   :  { %19796 = vst [vmem:[#allocation39_spill] sm:$0xff] %v18207_v20  ;;  %v11684_v55 = vpop.f32.mrb[195].mxu1  ;;  %4115 = vmatmul.mubr.f32.gmra.mrb[44].mxu1 %v3837_v17  ;;  %v3853_v27 = vunpack.c.l.bf16 %v10164_v59 }
 0x398   :  { %v11685_v41 = vadd.f32 %v11684_v55, %v11683_v3  ;;  %4119 = vmatprep.mubr.f32.mxu1 %v3842_v37 }
 0x399   :  { %v11923_v54 = vpop.f32.mrb[2].mxu0 }
 0x39a   :  { %v18218_v26 = vadd.f32 %v11685_v41, %v19798_v58  ;;  %v11686_v44 = vpop.f32.mrb[196].mxu1  ;;  %v11924_v33 = vpop.f32.mrb[3].mxu0  ;;  %v3854_v58 = vunpack.c.h.bf16 %v10164_v59 }
 0x39b   :  { %v11687_v2 = vpop.f32.mrb[197].mxu1  ;;  %4120 = vmatmul.mubr.f32.gmra.mrb[46].mxu1 %v3841_v38  ;;  %v18220_v4 = vadd.f32 %v11924_v33, %v11923_v54 }
 0x39c   :  { %v11688_v14 = vadd.f32 %v11687_v2, %v11686_v44  ;;  %4124 = vmatprep.mubr.f32.mxu1 %v3846_v60  ;;  %v10166_v44 = vld [vmem:[%s19561_s3 + $0x8b8] sm:$0xff] }
 0x39d   :  { %19799 = vst [vmem:[#allocation40_spill] sm:$0xff] %v18220_v4  ;;  %v11926_v37 = vpop.f32.mrb[4].mxu0  ;;  %v19802_v2 = vld [vmem:[#allocation13_spill] sm:$0xff] }
 0x39e   :  { %v18228_v18 = vadd.f32 %v11688_v14, %v19800_v16  ;;  %v11689_v3 = vpop.f32.mrb[198].mxu1  ;;  %v11927_v55 = vpop.f32.mrb[5].mxu0 }
 0x39f   :  { %v11690_v38 = vpop.f32.mrb[199].mxu1  ;;  %4125 = vmatmul.mubr.f32.gmra.mrb[48].mxu1 %v3845_v11  ;;  %v18230_v41 = vadd.f32 %v11927_v55, %v11926_v37  ;;  %v3858_v55 = vunpack.c.h.bf16 %v10166_v44 }
 0x3a0   :  { %v11691_v60 = vadd.f32 %v11690_v38, %v11689_v3  ;;  %4129 = vmatprep.mubr.f32.mxu1 %v3850_v24  ;;  %v10168_v38 = vld [vmem:[%s19561_s3 + $0x8c8] sm:$0xff] }
 0x3a1   :  { %19801 = vst [vmem:[#allocation41_spill] sm:$0xff] %v18230_v41  ;;  %v11929_v33 = vpop.f32.mrb[6].mxu0 }
 0x3a2   :  { %v18238_v14 = vadd.f32 %v11691_v60, %v19802_v2  ;;  %v11692_v16 = vpop.f32.mrb[200].mxu1  ;;  %v11930_v17 = vpop.f32.mrb[7].mxu0  ;;  %v19804_v60 = vld [vmem:[#allocation32_spill] sm:$0xff] }
 0x3a3   :  { %v11693_v11 = vpop.f32.mrb[201].mxu1  ;;  %4130 = vmatmul.mubr.f32.gmra.mrb[50].mxu1 %v3849_v50  ;;  %v18240_v37 = vadd.f32 %v11930_v17, %v11929_v33  ;;  %v3857_v17 = vunpack.c.l.bf16 %v10166_v44 }
 0x3a4   :  { %v11694_v24 = vadd.f32 %v11693_v11, %v11692_v16  ;;  %4134 = vmatprep.mubr.f32.mxu1 %v3854_v58  ;;  %v3862_v16 = vunpack.c.h.bf16 %v10168_v38  ;;  %v10170_v11 = vld [vmem:[%s19561_s3 + $0x8d8] sm:$0xff] }
 0x3a5   :  { %19803 = vst [vmem:[#allocation42_spill] sm:$0xff] %v18240_v37  ;;  %v11932_v54 = vpop.f32.mrb[8].mxu0 }
 0x3a6   :  { %v18248_v2 = vadd.f32 %v11694_v24, %v19804_v60  ;;  %v11695_v19 = vpop.f32.mrb[202].mxu1  ;;  %v11933_v41 = vpop.f32.mrb[9].mxu0  ;;  %v19806_v24 = vld [vmem:[#allocation14_spill] sm:$0xff] }
 0x3a7   :  { %v11696_v50 = vpop.f32.mrb[203].mxu1  ;;  %4135 = vmatmul.mubr.f32.gmra.mrb[52].mxu1 %v3853_v27  ;;  %v18250_v59 = vadd.f32 %v11933_v41, %v11932_v54  ;;  %v3861_v41 = vunpack.c.l.bf16 %v10168_v38 }
 0x3a8   :  { %v11697_v58 = vadd.f32 %v11696_v50, %v11695_v19  ;;  %4139 = vmatprep.mubr.f32.mxu1 %v3858_v55  ;;  %v3866_v55 = vunpack.c.h.bf16 %v10170_v11  ;;  %v10172_v50 = vld [vmem:[%s19561_s3 + $0x8e8] sm:$0xff] }
 0x3a9   :  { %19805 = vst [vmem:[#allocation43_spill] sm:$0xff] %v18250_v59  ;;  %v11935_v3 = vpop.f32.mrb[10].mxu0 }
 0x3aa   :  { %v18258_v60 = vadd.f32 %v11697_v58, %v19806_v24  ;;  %v11698_v37 = vpop.f32.mrb[204].mxu1  ;;  %v11936_v4 = vpop.f32.mrb[11].mxu0  ;;  %v19808_v58 = vld [vmem:[#allocation33_spill] sm:$0xff] }
 0x3ab   :  { %v11699_v27 = vpop.f32.mrb[205].mxu1  ;;  %4140 = vmatmul.mubr.f32.gmra.mrb[54].mxu1 %v3857_v17  ;;  %v18260_v54 = vadd.f32 %v11936_v4, %v11935_v3  ;;  %v3865_v4 = vunpack.c.l.bf16 %v10170_v11 }
 0x3ac   :  { %v11700_v44 = vadd.f32 %v11699_v27, %v11698_v37  ;;  %4144 = vmatprep.mubr.f32.mxu1 %v3862_v16  ;;  %v3870_v16 = vunpack.c.h.bf16 %v10172_v50  ;;  %v10174_v27 = vld [vmem:[%s19561_s3 + $0x8f8] sm:$0xff]  ;;  %v19811_v37 = vld [vmem:[#allocation15_spill] sm:$0xff] }
 0x3ad   :  { %19807 = vst [vmem:[#allocation44_spill] sm:$0xff] %v18260_v54  ;;  %v11938_v33 = vpop.f32.mrb[12].mxu0  ;;  %v3873_v52 = vunpack.c.l.bf16 %v10174_v27 }
 0x3ae   :  { %v18268_v24 = vadd.f32 %v11700_v44, %v19808_v58  ;;  %v11701_v59 = vpop.f32.mrb[206].mxu1  ;;  %v11939_v20 = vpop.f32.mrb[13].mxu0  ;;  %v19810_v44 = vld [vmem:[#allocation34_spill] sm:$0xff] }
 0x3af   :  { %v11702_v17 = vpop.f32.mrb[207].mxu1  ;;  %4145 = vmatmul.mubr.f32.gmra.mrb[56].mxu1 %v3861_v41  ;;  %v18270_v3 = vadd.f32 %v11939_v20, %v11938_v33  ;;  %v3869_v20 = vunpack.c.l.bf16 %v10172_v50 }
 0x3b0   :  { %v11703_v38 = vadd.f32 %v11702_v17, %v11701_v59  ;;  %4149 = vmatprep.mubr.f32.mxu1 %v3866_v55  ;;  %v3874_v55 = vunpack.c.h.bf16 %v10174_v27 }
 0x3b1   :  { %19809 = vst [vmem:[#allocation45_spill] sm:$0xff] %v18270_v3  ;;  %v11941_v19 = vpop.f32.mrb[14].mxu0 }
 0x3b2   :  { %v18278_v58 = vadd.f32 %v11703_v38, %v19810_v44  ;;  %v11704_v54 = vpop.f32.mrb[208].mxu1  ;;  %v11942_v6 = vpop.f32.mrb[15].mxu0 }
 0x3b3   :  { %v11705_v41 = vpop.f32.mrb[209].mxu1  ;;  %4150 = vmatmul.mubr.f32.gmra.mrb[58].mxu1 %v3865_v4  ;;  %v18280_v33 = vadd.f32 %v11942_v6, %v11941_v19 }
 0x3b4   :  { %v11706_v11 = vadd.f32 %v11705_v41, %v11704_v54  ;;  %4154 = vmatprep.mubr.f32.mxu1 %v3870_v16 }
 0x3b5   :  { %v11944_v17 = vpop.f32.mrb[16].mxu0 }
 0x3b6   :  { %v18285_v3 = vadd.f32 %v11706_v11, %v19811_v37  ;;  %v11707_v46 = vpop.f32.mrb[210].mxu1  ;;  %v11945_v38 = vpop.f32.mrb[17].mxu0 }
 0x3b7   :  { %v11708_v44 = vpop.f32.mrb[211].mxu1  ;;  %4155 = vmatmul.mubr.f32.gmra.mrb[60].mxu1 %v3869_v20  ;;  %v18287_v9 = vadd.f32 %v11945_v38, %v11944_v17 }
 0x3b8   :  { %v11709_v19 = vadd.f32 %v11708_v44, %v11707_v46  ;;  %4159 = vmatprep.mubr.f32.mxu1 %v3874_v55 }
 0x3b9   :  { %v11947_v50 = vpop.f32.mrb[18].mxu0 }
 0x3ba   :  { %v18292_v54 = vadd.f32 %v11709_v19, %v17946_v63  ;;  %v11710_v4 = vpop.f32.mrb[212].mxu1  ;;  %v11948_v16 = vpop.f32.mrb[19].mxu0 }
 0x3bb   :  { %v11711_v37 = vpop.f32.mrb[213].mxu1  ;;  %4160 = vmatmul.mubr.f32.gmra.mrb[62].mxu1 %v3873_v52  ;;  %v18294_v41 = vadd.f32 %v11948_v16, %v11947_v50 }
 0x3bc   :  { %v11712_v20 = vadd.f32 %v11711_v37, %v11710_v4 }
 0x3bd   :  { %v11950_v11 = vpop.f32.mrb[20].mxu0 }
 0x3be   :  { %v18299_v17 = vadd.f32 %v11712_v20, %v17956_v30  ;;  %v11713_v46 = vpop.f32.mrb[214].mxu1  ;;  %v11951_v55 = vpop.f32.mrb[21].mxu0 }
 0x3bf   :  { %v11714_v38 = vpop.f32.mrb[215].mxu1  ;;  %v18301_v44 = vadd.f32 %v11951_v55, %v11950_v11 }
 0x3c0   :  { %v11715_v19 = vadd.f32 %v11714_v38, %v11713_v46 }
 0x3c1   :  { %v11953_v52 = vpop.f32.mrb[22].mxu0 }
 0x3c2   :  { %v18306_v50 = vadd.f32 %v11715_v19, %v17968_v56  ;;  %v11716_v16 = vpop.f32.mrb[216].mxu1  ;;  %v11954_v27 = vpop.f32.mrb[23].mxu0 }
 0x3c3   :  { %v11717_v4 = vpop.f32.mrb[217].mxu1  ;;  %v18308_v37 = vadd.f32 %v11954_v27, %v11953_v52 }
 0x3c4   :  { %v11718_v20 = vadd.f32 %v11717_v4, %v11716_v16 }
 0x3c5   :  { %19812 = vst [vmem:[#allocation24_spill] sm:$0xff] %v18308_v37  ;;  %v11956_v6 = vpop.f32.mrb[24].mxu0 }
 0x3c6   :  { %v18313_v11 = vadd.f32 %v11718_v20, %v17980_v45  ;;  %v11719_v55 = vpop.f32.mrb[218].mxu1  ;;  %v11957_v63 = vpop.f32.mrb[25].mxu0 }
 0x3c7   :  { %v11720_v46 = vpop.f32.mrb[219].mxu1  ;;  %v18315_v38 = vadd.f32 %v11957_v63, %v11956_v6 }
 0x3c8   :  { %v11721_v19 = vadd.f32 %v11720_v46, %v11719_v55 }
 0x3c9   :  { %19813 = vst [vmem:[#allocation7_spill] sm:$0xff] %v18315_v38  ;;  %v11959_v59 = vpop.f32.mrb[26].mxu0 }
 0x3ca   :  { %v18320_v27 = vadd.f32 %v11721_v19, %v17992_v1  ;;  %v11722_v52 = vpop.f32.mrb[220].mxu1  ;;  %v11960_v30 = vpop.f32.mrb[27].mxu0 }
 0x3cb   :  { %v11723_v16 = vpop.f32.mrb[221].mxu1  ;;  %v18322_v4 = vadd.f32 %v11960_v30, %v11959_v59 }
 0x3cc   :  { %v11724_v20 = vadd.f32 %v11723_v16, %v11722_v52 }
 0x3cd   :  { %19814 = vst [vmem:[#allocation9_spill] sm:$0xff] %v18322_v4  ;;  %v11962_v37 = vpop.f32.mrb[28].mxu0 }
 0x3ce   :  { %v18327_v6 = vadd.f32 %v11724_v20, %v18004_v7  ;;  %v11725_v63 = vpop.f32.mrb[222].mxu1  ;;  %v11963_v56 = vpop.f32.mrb[29].mxu0 }
 0x3cf   :  { %v11726_v55 = vpop.f32.mrb[223].mxu1  ;;  %v18329_v46 = vadd.f32 %v11963_v56, %v11962_v37 }
 0x3d0   :  { %v11727_v19 = vadd.f32 %v11726_v55, %v11725_v63 }
 0x3d1   :  { %19815 = vst [vmem:[#allocation11_spill] sm:$0xff] %v18329_v46  ;;  %v11965_v38 = vpop.f32.mrb[30].mxu0 }
 0x3d2   :  { %v18334_v59 = vadd.f32 %v11727_v19, %v18016_v57  ;;  %v11840_v30 = vpop.f32.mrb[224].mxu1  ;;  %v11966_v45 = vpop.f32.mrb[31].mxu0  ;;  %v19817_v57 = vmax.f32 %v18034_v22, %v18210_v23 }
 0x3d3   :  { %v11841_v52 = vpop.f32.mrb[225].mxu1  ;;  %v18336_v16 = vadd.f32 %v11966_v45, %v11965_v38 }
 0x3d4   :  { %v11842_v20 = vadd.f32 %v11841_v52, %v11840_v30 }
 0x3d5   :  { %19816 = vst [vmem:[#allocation12_spill] sm:$0xff] %v18336_v16  ;;  %v12080_v4 = vpop.f32.mrb[32].mxu0 }
 0x3d6   :  { %v3281_v37 = vadd.f32 %v11842_v20, %v18028_v8  ;;  %v11843_v56 = vpop.f32.mrb[226].mxu1  ;;  %v12081_v46 = vpop.f32.mrb[33].mxu0  ;;  %v19818_v8 = vmax.f32 %v18047_v25, %v18218_v26 }
 0x3d7   :  { %v11844_v1 = vpop.f32.mrb[227].mxu1  ;;  %v18341_v63 = vadd.f32 %v12081_v46, %v12080_v4 }
 0x3d8   :  { %v18346_v55 = vmax.f32 %v19817_v57, %v3281_v37  ;;  %v11845_v19 = vadd.f32 %v11844_v1, %v11843_v56 }
 0x3d9   :  { %v12083_v38 = vpop.f32.mrb[34].mxu0 }
 0x3da   :  { %v3286_v45 = vadd.f32 %v11845_v19, %v18041_v29  ;;  %v11846_v16 = vpop.f32.mrb[228].mxu1  ;;  %v12084_v7 = vpop.f32.mrb[35].mxu0  ;;  %v19819_v29 = vmax.f32 %v18059_v51, %v18228_v18 }
 0x3db   :  { %v11847_v30 = vpop.f32.mrb[229].mxu1  ;;  %v18349_v52 = vadd.f32 %v12084_v7, %v12083_v38 }
 0x3dc   :  { %v18354_v20 = vmax.f32 %v19818_v8, %v3286_v45  ;;  %v11848_v4 = vadd.f32 %v11847_v30, %v11846_v16 }
 0x3dd   :  { %v12086_v46 = vpop.f32.mrb[36].mxu0 }
 0x3de   :  { %v3291_v22 = vadd.f32 %v11848_v4, %v18053_v48  ;;  %v11849_v23 = vpop.f32.mrb[230].mxu1  ;;  %v12087_v37 = vpop.f32.mrb[37].mxu0  ;;  %v19820_v48 = vmax.f32 %v18070_v53, %v18238_v14 }
 0x3df   :  { %v11850_v1 = vpop.f32.mrb[231].mxu1  ;;  %v18357_v56 = vadd.f32 %v12087_v37, %v12086_v46 }
 0x3e0   :  { %v18362_v57 = vmax.f32 %v19819_v29, %v3291_v22  ;;  %v11851_v7 = vadd.f32 %v11850_v1, %v11849_v23 }
 0x3e1   :  { %v12089_v19 = vpop.f32.mrb[38].mxu0 }
 0x3e2   :  { %v3296_v25 = vadd.f32 %v11851_v7, %v18064_v62  ;;  %v11852_v26 = vpop.f32.mrb[232].mxu1  ;;  %v12090_v38 = vpop.f32.mrb[39].mxu0  ;;  %v19821_v62 = vmax.f32 %v18081_v31, %v18248_v2 }
 0x3e3   :  { %v11853_v16 = vpop.f32.mrb[233].mxu1  ;;  %v18365_v45 = vadd.f32 %v12090_v38, %v12089_v19 }
 0x3e4   :  { %v18370_v30 = vmax.f32 %v19820_v48, %v3296_v25  ;;  %v11854_v8 = vadd.f32 %v11853_v16, %v11852_v26 }
 0x3e5   :  { %v12092_v4 = vpop.f32.mrb[40].mxu0 }
 0x3e6   :  { %v3301_v51 = vadd.f32 %v11854_v8, %v18075_v5  ;;  %v11855_v18 = vpop.f32.mrb[234].mxu1  ;;  %v12093_v46 = vpop.f32.mrb[41].mxu0  ;;  %v19822_v5 = vmax.f32 %v18092_v12, %v18258_v60 }
 0x3e7   :  { %v11856_v22 = vpop.f32.mrb[235].mxu1  ;;  %v18373_v23 = vadd.f32 %v12093_v46, %v12092_v4 }
 0x3e8   :  { %v18378_v37 = vmax.f32 %v19821_v62, %v3301_v51  ;;  %v11857_v1 = vadd.f32 %v11856_v22, %v11855_v18 }
 0x3e9   :  { %v12095_v29 = vpop.f32.mrb[42].mxu0 }
 0x3ea   :  { %v3306_v53 = vadd.f32 %v11857_v1, %v18086_v34  ;;  %v11858_v14 = vpop.f32.mrb[236].mxu1  ;;  %v12096_v7 = vpop.f32.mrb[43].mxu0  ;;  %v19823_v34 = vmax.f32 %v18103_v40, %v18268_v24 }
 0x3eb   :  { %v11859_v19 = vpop.f32.mrb[237].mxu1  ;;  %v18381_v25 = vadd.f32 %v12096_v7, %v12095_v29 }
 0x3ec   :  { %v18386_v26 = vmax.f32 %v19822_v5, %v3306_v53  ;;  %v11860_v38 = vadd.f32 %v11859_v19, %v11858_v14 }
 0x3ed   :  { %v12098_v16 = vpop.f32.mrb[44].mxu0 }
 0x3ee   :  { %v3311_v31 = vadd.f32 %v11860_v38, %v18097_v35  ;;  %v11861_v2 = vpop.f32.mrb[238].mxu1  ;;  %v12099_v48 = vpop.f32.mrb[45].mxu0  ;;  %v19824_v35 = vmax.f32 %v18114_v10, %v18278_v58 }
 0x3ef   :  { %v11862_v8 = vpop.f32.mrb[239].mxu1  ;;  %v18389_v4 = vadd.f32 %v12099_v48, %v12098_v16 }
 0x3f0   :  { %v18394_v51 = vmax.f32 %v19823_v34, %v3311_v31  ;;  %v11863_v18 = vadd.f32 %v11862_v8, %v11861_v2 }
 0x3f1   :  { %v12101_v46 = vpop.f32.mrb[46].mxu0 }
 0x3f2   :  { %v3316_v12 = vadd.f32 %v11863_v18, %v18108_v0  ;;  %v11864_v60 = vpop.f32.mrb[240].mxu1  ;;  %v12102_v22 = vpop.f32.mrb[47].mxu0  ;;  %v19825_v0 = vmax.f32 %v18125_v15, %v18285_v3 }
 0x3f3   :  { %v11865_v62 = vpop.f32.mrb[241].mxu1  ;;  %v18397_v1 = vadd.f32 %v12102_v22, %v12101_v46 }
 0x3f4   :  { %v18402_v29 = vmax.f32 %v19824_v35, %v3316_v12  ;;  %v11866_v53 = vadd.f32 %v11865_v62, %v11864_v60 }
 0x3f5   :  { %v12104_v14 = vpop.f32.mrb[48].mxu0 }
 0x3f6   :  { %v3321_v40 = vadd.f32 %v11866_v53, %v18119_v28  ;;  %v11867_v24 = vpop.f32.mrb[242].mxu1  ;;  %v12105_v7 = vpop.f32.mrb[49].mxu0  ;;  %v19826_v28 = vmax.f32 %v18136_v61, %v18292_v54 }
 0x3f7   :  { %v11868_v19 = vpop.f32.mrb[243].mxu1  ;;  %v18405_v5 = vadd.f32 %v12105_v7, %v12104_v14 }
 0x3f8   :  { %v18410_v38 = vmax.f32 %v19825_v0, %v3321_v40  ;;  %v11869_v16 = vadd.f32 %v11868_v19, %v11867_v24 }
 0x3f9   :  { %v12107_v31 = vpop.f32.mrb[50].mxu0 }
 0x3fa   :  { %v3326_v10 = vadd.f32 %v11869_v16, %v18130_v13  ;;  %v11870_v58 = vpop.f32.mrb[244].mxu1  ;;  %v12108_v2 = vpop.f32.mrb[51].mxu0  ;;  %v19827_v13 = vmax.f32 %v18147_v32, %v18299_v17  ;;  %v19829_v16 = vld [vmem:[#allocation35_spill] sm:$0xff] }
 0x3fb   :  { %v11871_v48 = vpop.f32.mrb[245].mxu1  ;;  %v18413_v8 = vadd.f32 %v12108_v2, %v12107_v31 }
 0x3fc   :  { %v18418_v34 = vmax.f32 %v19826_v28, %v3326_v10  ;;  %v11872_v18 = vadd.f32 %v11871_v48, %v11870_v58 }
 0x3fd   :  { %v12110_v46 = vpop.f32.mrb[52].mxu0 }
 0x3fe   :  { %v3331_v15 = vadd.f32 %v11872_v18, %v18141_v21  ;;  %v11873_v3 = vpop.f32.mrb[246].mxu1  ;;  %v12111_v12 = vpop.f32.mrb[53].mxu0  ;;  %v19828_v21 = vmax.f32 %v18158_v36, %v18306_v50  ;;  %v19831_v18 = vld [vmem:[#allocation36_spill] sm:$0xff] }
 0x3ff   :  { %v11874_v60 = vpop.f32.mrb[247].mxu1  ;;  %v18421_v22 = vadd.f32 %v12111_v12, %v12110_v46  ;;  %v19832_v12 = vmax.f32 %v18180_v47, %v18320_v27 }
 0x400   :  { %v18426_v62 = vmax.f32 %v19827_v13, %v3331_v15  ;;  %v11875_v35 = vadd.f32 %v11874_v60, %v11873_v3 }
 0x401   :  { %v12113_v53 = vpop.f32.mrb[54].mxu0 }
 0x402   :  { %v3336_v61 = vadd.f32 %v11875_v35, %v18152_v43  ;;  %v11876_v54 = vpop.f32.mrb[248].mxu1  ;;  %v12114_v14 = vpop.f32.mrb[55].mxu0  ;;  %v19830_v43 = vmax.f32 %v18169_v49, %v18313_v11 }
 0x403   :  { %v11877_v40 = vpop.f32.mrb[249].mxu1  ;;  %v18429_v24 = vadd.f32 %v12114_v14, %v12113_v53  ;;  %v19833_v53 = vld [vmem:[#allocation16_spill] sm:$0xff] }
 0x404   :  { %v18434_v7 = vmax.f32 %v19828_v21, %v3336_v61  ;;  %v11878_v19 = vadd.f32 %v11877_v40, %v11876_v54  ;;  %v19834_v40 = vmax.f32 %v18191_v39, %v18327_v6 }
 0x405   :  { %v12116_v0 = vpop.f32.mrb[56].mxu0 }
 0x406   :  { %v3341_v32 = vadd.f32 %v11878_v19, %v19829_v16  ;;  %v11879_v17 = vpop.f32.mrb[250].mxu1  ;;  %v12117_v31 = vpop.f32.mrb[57].mxu0  ;;  %v19835_v16 = vld [vmem:[#allocation37_spill] sm:$0xff] }
 0x407   :  { %v11880_v10 = vpop.f32.mrb[251].mxu1  ;;  %v18437_v58 = vadd.f32 %v12117_v31, %v12116_v0 }
 0x408   :  { %v18442_v2 = vmax.f32 %v19830_v43, %v3341_v32  ;;  %v11881_v48 = vadd.f32 %v11880_v10, %v11879_v17  ;;  %v19836_v10 = vmax.f32 %v18202_v42, %v18334_v59  ;;  %v18479_v42 = vld [vmem:[%s19563_s6 + $0x10] sm:$0xff]  }
 0x409   :  { %v12119_v28 = vpop.f32.mrb[58].mxu0  ;;  %19839 = vst [vmem:[#allocation46_spill] sm:$0xff] %v18479_v42 }
 0x40a   :  { %v3346_v36 = vadd.f32 %v11881_v48, %v19831_v18  ;;  %v11882_v50 = vpop.f32.mrb[252].mxu1  ;;  %v12120_v46 = vpop.f32.mrb[59].mxu0 }
 0x40b   :  { %v11883_v15 = vpop.f32.mrb[253].mxu1  ;;  %v18445_v3 = vadd.f32 %v12120_v46, %v12119_v28  ;;  %v19837_v28 = vld [vmem:[#allocation39_spill] sm:$0xff]  ;;  %v19838_v46 = vld [vmem:[#allocation40_spill] sm:$0xff] }
 0x40c   :  { %v18450_v60 = vmax.f32 %v19832_v12, %v3346_v36  ;;  %v11884_v13 = vadd.f32 %v11883_v15, %v11882_v50 }
 0x40d   :  { %v12122_v35 = vpop.f32.mrb[60].mxu0 }
 0x40e   :  { %v3351_v49 = vadd.f32 %v11884_v13, %v19833_v53  ;;  %v11885_v11 = vpop.f32.mrb[254].mxu1  ;;  %v12123_v61 = vpop.f32.mrb[61].mxu0  ;;  %v10449_v13 = vunpack.c.l.bf16 %v18479_v42 }
 0x40f   :  { %v11886_v54 = vpop.f32.mrb[255].mxu1  ;;  %v18453_v14 = vadd.f32 %v12123_v61, %v12122_v35 }
 0x410   :  { %v18458_v21 = vmax.f32 %v19834_v40, %v3351_v49  ;;  %v11887_v19 = vadd.f32 %v11886_v54, %v11885_v11  ;;  %13106 = vmatprep.mubr.f32.mxu1 %v10449_v13  ;;  %v19840_v49 = vld [vmem:[#allocation41_spill] sm:$0xff] }
 0x411   :  { %v12125_v0 = vpop.f32.mrb[62].mxu0 }
 0x412   :  { %v3356_v47 = vadd.f32 %v11887_v19, %v19835_v16  ;;  %v12000_v27 = vpop.f32.mrb[0].mxu1  ;;  %v12126_v32 = vpop.f32.mrb[63].mxu0 }
 0x413   :  { %v12001_v17 = vpop.f32.mrb[1].mxu1  ;;  %v18461_v31 = vadd.f32 %v12126_v32, %v12125_v0  ;;  %v19841_v0 = vld [vmem:[#allocation42_spill] sm:$0xff] }
 0x414   :  { %v18466_v43 = vmax.f32 %v19836_v10, %v3356_v47  ;;  %v12002_v48 = vadd.f32 %v12001_v17, %v12000_v27  ;;  %v18495_v27 = vld [vmem:[%s19563_s6] sm:$0xff]  }
 0x415   :  { %19842 = vst [vmem:[#allocation47_spill] sm:$0xff] %v18495_v27  ;;  %v10441_v17 = vunpack.c.l.bf16 %v18495_v27 }
 0x416   :  { %v18469_v18 = vadd.f32 %v12002_v48, %v19837_v28  ;;  %v12003_v39 = vpop.f32.mrb[2].mxu1  ;;  %v19843_v28 = vld [vmem:[#allocation43_spill] sm:$0xff] }
 0x417   :  { %v12004_v6 = vpop.f32.mrb[3].mxu1  ;;  %13068 = vmatprep.mubr.f32.mxu0 %v10441_v17 }
 0x418   :  { %v12005_v50 = vadd.f32 %v12004_v6, %v12003_v39 }
 0x41a   :  { %v18474_v15 = vadd.f32 %v12005_v50, %v19838_v46  ;;  %v12006_v12 = vpop.f32.mrb[4].mxu1 }
 0x41b   :  { %v12007_v59 = vpop.f32.mrb[5].mxu1 }
 0x41c   :  { %v12008_v53 = vadd.f32 %v12007_v59, %v12006_v12  ;;  %v19844_v59 = vld [vmem:[#allocation44_spill] sm:$0xff] }
 0x41e   :  { %v18485_v11 = vadd.f32 %v12008_v53, %v19840_v49  ;;  %v12009_v61 = vpop.f32.mrb[6].mxu1 }
 0x41f   :  { %v12010_v54 = vpop.f32.mrb[7].mxu1 }
 0x420   :  { %v12011_v19 = vadd.f32 %v12010_v54, %v12009_v61 }
 0x422   :  { %v18490_v16 = vadd.f32 %v12011_v19, %v19841_v0  ;;  %v12012_v47 = vpop.f32.mrb[8].mxu1  ;;  %v19845_v19 = vld [vmem:[#allocation45_spill] sm:$0xff] }
 0x423   :  { %v12013_v32 = vpop.f32.mrb[9].mxu1 }
 0x424   :  { %v12014_v48 = vadd.f32 %v12013_v32, %v12012_v47 }
 0x426   :  { %v18501_v39 = vadd.f32 %v12014_v48, %v19843_v28  ;;  %v12015_v6 = vpop.f32.mrb[10].mxu1 }
 0x427   :  { %v12016_v50 = vpop.f32.mrb[11].mxu1 }
 0x428   :  { %v12017_v12 = vadd.f32 %v12016_v50, %v12015_v6 }
 0x42a   :  { %v18506_v13 = vadd.f32 %v12017_v12, %v19844_v59  ;;  %v12018_v53 = vpop.f32.mrb[12].mxu1 }
 0x42b   :  { %v12019_v49 = vpop.f32.mrb[13].mxu1 }
 0x42c   :  { %v12020_v54 = vadd.f32 %v12019_v49, %v12018_v53 }
 0x42e   :  { %v18511_v0 = vadd.f32 %v12020_v54, %v19845_v19  ;;  %v12021_v47 = vpop.f32.mrb[14].mxu1  ;;  %v19846_v19 = vld [vmem:[#allocation24_spill] sm:$0xff] }
 0x42f   :  { %v12022_v32 = vpop.f32.mrb[15].mxu1 }
 0x430   :  { %v12023_v48 = vadd.f32 %v12022_v32, %v12021_v47 }
 0x432   :  { %v18516_v28 = vadd.f32 %v12023_v48, %v18280_v33  ;;  %v12024_v6 = vpop.f32.mrb[16].mxu1  ;;  %v19847_v48 = vld [vmem:[#allocation7_spill] sm:$0xff] }
 0x433   :  { %v12025_v50 = vpop.f32.mrb[17].mxu1 }
 0x434   :  { %v12026_v59 = vadd.f32 %v12025_v50, %v12024_v6 }
 0x436   :  { %v18521_v53 = vadd.f32 %v12026_v59, %v18287_v9  ;;  %v12027_v49 = vpop.f32.mrb[18].mxu1  ;;  %v19848_v59 = vld [vmem:[#allocation9_spill] sm:$0xff] }
 0x437   :  { %v12028_v54 = vpop.f32.mrb[19].mxu1 }
 0x438   :  { %v12029_v61 = vadd.f32 %v12028_v54, %v12027_v49  ;;  %v19849_v54 = vld [vmem:[#allocation11_spill] sm:$0xff] }
 0x43a   :  { %v18526_v47 = vadd.f32 %v12029_v61, %v18294_v41  ;;  %v12030_v33 = vpop.f32.mrb[20].mxu1 }
 0x43b   :  { %v12031_v32 = vpop.f32.mrb[21].mxu1 }
 0x43c   :  { %v12032_v17 = vadd.f32 %v12031_v32, %v12030_v33  ;;  %v19850_v32 = vld [vmem:[#allocation12_spill] sm:$0xff] }
 0x43e   :  { %v18531_v6 = vadd.f32 %v12032_v17, %v18301_v44  ;;  %v12033_v9 = vpop.f32.mrb[22].mxu1 }
 0x43f   :  { %v12034_v50 = vpop.f32.mrb[23].mxu1 }
 0x440   :  { %v12035_v12 = vadd.f32 %v12034_v50, %v12033_v9 }
 0x442   :  { %v18536_v49 = vadd.f32 %v12035_v12, %v19846_v19  ;;  %v12036_v41 = vpop.f32.mrb[24].mxu1 }
 0x443   :  { %v12037_v61 = vpop.f32.mrb[25].mxu1 }
 0x444   :  { %v12038_v46 = vadd.f32 %v12037_v61, %v12036_v41 }
 0x446   :  { %v18541_v33 = vadd.f32 %v12038_v46, %v19847_v48  ;;  %v12039_v44 = vpop.f32.mrb[26].mxu1 }
 0x447   :  { %v12040_v17 = vpop.f32.mrb[27].mxu1 }
 0x448   :  { %v12041_v10 = vadd.f32 %v12040_v17, %v12039_v44 }
 0x44a   :  { %v18546_v9 = vadd.f32 %v12041_v10, %v19848_v59  ;;  %v12042_v12 = vpop.f32.mrb[28].mxu1 }
 0x44b   :  { %v12043_v19 = vpop.f32.mrb[29].mxu1 }
 0x44c   :  { %v12044_v40 = vadd.f32 %v12043_v19, %v12042_v12 }
 0x44e   :  { %v18551_v41 = vadd.f32 %v12044_v40, %v19849_v54  ;;  %v12045_v46 = vpop.f32.mrb[30].mxu1  ;;  %v19851_v54 = vmax.f32 %v18346_v55, %v18469_v18  ;;  %v19853_v55 = vmax.f32 %v18362_v57, %v18485_v11 }
 0x44f   :  { %v12046_v48 = vpop.f32.mrb[31].mxu1 }
 0x450   :  { %v12047_v35 = vadd.f32 %v12046_v48, %v12045_v46 }
 0x452   :  { %v18556_v44 = vadd.f32 %v12047_v35, %v19850_v32  ;;  %v12160_v10 = vpop.f32.mrb[32].mxu1  ;;  %v19852_v32 = vmax.f32 %v18354_v20, %v18474_v15 }
 0x453   :  { %v12161_v59 = vpop.f32.mrb[33].mxu1 }
 0x454   :  { %v12162_v36 = vadd.f32 %v12161_v59, %v12160_v10 }
 0x456   :  { %v4087_v12 = vadd.f32 %v12162_v36, %v18341_v63  ;;  %v12163_v19 = vpop.f32.mrb[34].mxu1 }
 0x457   :  { %v12164_v40 = vpop.f32.mrb[35].mxu1 }
 0x458   :  { %v4165_v50 = vmax.f32 %v19851_v54, %v4087_v12  ;;  %v12165_v27 = vadd.f32 %v12164_v40, %v12163_v19  ;;  %v19855_v12 = vmax.f32 %v18378_v37, %v18501_v39 }
 0x45a   :  { %v4092_v46 = vadd.f32 %v12165_v27, %v18349_v52  ;;  %v12166_v48 = vpop.f32.mrb[36].mxu1 }
 0x45b   :  { %v12167_v35 = vpop.f32.mrb[37].mxu1 }
 0x45c   :  { %v4166_v61 = vmax.f32 %v19852_v32, %v4092_v46  ;;  %v12168_v42 = vadd.f32 %v12167_v35, %v12166_v48  ;;  %v19857_v32 = vmax.f32 %v18394_v51, %v18511_v0 }
 0x45e   :  { %v18568_v17 = vpack.c.bf16 %v4166_v61, %v4165_v50  ;;  %v4097_v63 = vadd.f32 %v12168_v42, %v18357_v56  ;;  %v12169_v36 = vpop.f32.mrb[38].mxu1  ;;  %v19854_v56 = vmax.f32 %v18370_v30, %v18490_v16 }
 0x45f   :  { %v12170_v10 = vpop.f32.mrb[39].mxu1 }
 0x460   :  { %v4167_v18 = vmax.f32 %v19853_v55, %v4097_v63  ;;  %v12171_v59 = vadd.f32 %v12170_v10, %v12169_v36  ;;  %14955 = vmatprep.subr.bf16.mxu0 %v18568_v17  ;;  %14987 = vmatprep.subr.bf16.mxu1 %v18568_v17 }
 0x461   :  { %14957 = vmatpush3.bf16.msra.mxu0 %v18568_v17  ;;  %14989 = vmatpush3.bf16.msra.mxu1 %v18568_v17 }
 0x462   :  { %v4102_v52 = vadd.f32 %v12171_v59, %v18365_v45  ;;  %v12172_v20 = vpop.f32.mrb[40].mxu1 }
 0x463   :  { %v12173_v15 = vpop.f32.mrb[41].mxu1 }
 0x464   :  { %v4168_v42 = vmax.f32 %v19854_v56, %v4102_v52  ;;  %v12174_v27 = vadd.f32 %v12173_v15, %v12172_v20  ;;  %v19859_v52 = vmax.f32 %v18410_v38, %v18521_v53 }
 0x466   :  { %v18582_v57 = vpack.c.bf16 %v4168_v42, %v4167_v18  ;;  %v4107_v11 = vadd.f32 %v12174_v27, %v18373_v23  ;;  %v12175_v50 = vpop.f32.mrb[42].mxu1  ;;  %v19856_v23 = vmax.f32 %v18386_v26, %v18506_v13 }
 0x467   :  { %v12176_v61 = vpop.f32.mrb[43].mxu1 }
 0x468   :  { %v4169_v19 = vmax.f32 %v19855_v12, %v4107_v11  ;;  %v12177_v40 = vadd.f32 %v12176_v61, %v12175_v50  ;;  %14959 = vmatprep.subr.bf16.mxu0 %v18582_v57  ;;  %14991 = vmatprep.subr.bf16.mxu1 %v18582_v57  ;;  %v19861_v50 = vmax.f32 %v18426_v62, %v18531_v6 }
 0x469   :  { %14961 = vmatpush3.bf16.msra.mxu0 %v18582_v57  ;;  %14993 = vmatpush3.bf16.msra.mxu1 %v18582_v57 }
 0x46a   :  { %v4112_v45 = vadd.f32 %v12177_v40, %v18381_v25  ;;  %v12178_v30 = vpop.f32.mrb[44].mxu1 }
 0x46b   :  { %v12179_v16 = vpop.f32.mrb[45].mxu1 }
 0x46c   :  { %v4170_v54 = vmax.f32 %v19856_v23, %v4112_v45  ;;  %v12180_v46 = vadd.f32 %v12179_v16, %v12178_v30  ;;  %v19863_v16 = vmax.f32 %v18442_v2, %v18541_v33 }
 0x46e   :  { %v18596_v37 = vpack.c.bf16 %v4170_v54, %v4169_v19  ;;  %v4117_v39 = vadd.f32 %v12180_v46, %v18389_v4  ;;  %v12181_v48 = vpop.f32.mrb[46].mxu1  ;;  %v19858_v4 = vmax.f32 %v18402_v29, %v18516_v28 }
 0x46f   :  { %v12182_v35 = vpop.f32.mrb[47].mxu1 }
 0x470   :  { %v4171_v63 = vmax.f32 %v19857_v32, %v4117_v39  ;;  %v12183_v36 = vadd.f32 %v12182_v35, %v12181_v48  ;;  %14963 = vmatprep.subr.bf16.mxu0 %v18596_v37  ;;  %14995 = vmatprep.subr.bf16.mxu1 %v18596_v37  ;;  %v19865_v32 = vmax.f32 %v18458_v21, %v18551_v41  ;;  %v10641_v21 = vld [vmem:[%s19563_s6 + $0x18] sm:$0xff]   ;;  %v10639_v41 = vld [vmem:[%s19563_s6 + $0x8] sm:$0xff]  }
 0x471   :  { %14965 = vmatpush3.bf16.msra.mxu0 %v18596_v37  ;;  %14997 = vmatpush3.bf16.msra.mxu1 %v18596_v37 }
 0x472   :  { %v4122_v25 = vadd.f32 %v12183_v36, %v18397_v1  ;;  %v12184_v26 = vpop.f32.mrb[48].mxu1 }
 0x473   :  { %v12185_v13 = vpop.f32.mrb[49].mxu1 }
 0x474   :  { %v4172_v10 = vmax.f32 %v19858_v4, %v4122_v25  ;;  %v12186_v55 = vadd.f32 %v12185_v13, %v12184_v26  ;;  %v19867_v25 = vld [vmem:[#allocation46_spill] sm:$0xff]  ;;  %v19868_v26 = vld [vmem:[#allocation47_spill] sm:$0xff] }
 0x475   :  { %v10442_v13 = vunpack.c.h.bf16 %v19868_v26  ;;  %v10642_v4 = vld [vmem:[%s19563_s6 + $0x20] sm:$0xff]  }
 0x476   :  { %v18610_v51 = vpack.c.bf16 %v4172_v10, %v4171_v63  ;;  %v4127_v0 = vadd.f32 %v12186_v55, %v18405_v5  ;;  %v12187_v18 = vpop.f32.mrb[50].mxu1  ;;  %v19860_v5 = vmax.f32 %v18418_v34, %v18526_v47  ;;  %v10454_v10 = vunpack.c.h.bf16 %v10641_v21 }
 0x477   :  { %v12188_v59 = vpop.f32.mrb[51].mxu1  ;;  %v10446_v55 = vunpack.c.h.bf16 %v10639_v41 }
 0x478   :  { %v4173_v20 = vmax.f32 %v19859_v52, %v4127_v0  ;;  %v12189_v15 = vadd.f32 %v12188_v59, %v12187_v18  ;;  %14967 = vmatprep.subr.bf16.mxu0 %v18610_v51  ;;  %14999 = vmatprep.subr.bf16.mxu1 %v18610_v51  ;;  %v10457_v0 = vunpack.c.l.bf16 %v10642_v4  ;;  %v10643_v18 = vld [vmem:[%s19563_s6 + $0x28] sm:$0xff]   ;;  %v10458_v59 = vunpack.c.h.bf16 %v10642_v4 }
 0x479   :  { %14969 = vmatpush3.bf16.msra.mxu0 %v18610_v51  ;;  %15001 = vmatpush3.bf16.msra.mxu1 %v18610_v51  ;;  %v10461_v52 = vunpack.c.l.bf16 %v10643_v18 }
 0x47a   :  { %v4132_v1 = vadd.f32 %v12189_v15, %v18413_v8  ;;  %v12190_v29 = vpop.f32.mrb[52].mxu1  ;;  %v10462_v15 = vunpack.c.h.bf16 %v10643_v18  ;;  %v10664_v18 = vld [vmem:[%s19563_s6 + $0xd0] sm:$0xff]  }
 0x47b   :  { %v12191_v28 = vpop.f32.mrb[53].mxu1 }
 0x47c   :  { %v4174_v56 = vmax.f32 %v19860_v5, %v4132_v1  ;;  %v12192_v42 = vadd.f32 %v12191_v28, %v12190_v29  ;;  %v10647_v29 = vld [vmem:[%s19563_s6 + $0x48] sm:$0xff]  }
 0x47d   :  { %v10477_v5 = vunpack.c.l.bf16 %v10647_v29 }
 0x47e   :  { %v18624_v38 = vpack.c.bf16 %v4174_v56, %v4173_v20  ;;  %v4137_v53 = vadd.f32 %v12192_v42, %v18421_v22  ;;  %v12193_v27 = vpop.f32.mrb[54].mxu1  ;;  %v19862_v22 = vmax.f32 %v18434_v7, %v18536_v49  ;;  %v10646_v20 = vld [vmem:[%s19563_s6 + $0x40] sm:$0xff]   ;;  %v10648_v56 = vld [vmem:[%s19563_s6 + $0x50] sm:$0xff]   ;;  %v10478_v42 = vunpack.c.h.bf16 %v10647_v29 }
 0x47f   :  { %v12194_v11 = vpop.f32.mrb[55].mxu1  ;;  %v10473_v1 = vunpack.c.l.bf16 %v10646_v20  ;;  %v10474_v28 = vunpack.c.h.bf16 %v10646_v20 }
 0x480   :  { %v4175_v61 = vmax.f32 %v19861_v50, %v4137_v53  ;;  %v12195_v12 = vadd.f32 %v12194_v11, %v12193_v27  ;;  %14971 = vmatprep.subr.bf16.mxu0 %v18624_v38  ;;  %15003 = vmatprep.subr.bf16.mxu1 %v18624_v38  ;;  %v10481_v53 = vunpack.c.l.bf16 %v10648_v56  ;;  %v10179_v27 = vld [vmem:[%s19564_s4 + $0x10] sm:$0xff]  ;;  %v10180_v11 = vld [vmem:[%s19564_s4 + $0x18] sm:$0xff] }
 0x481   :  { %14973 = vmatpush3.bf16.msra.mxu0 %v18624_v38  ;;  %15005 = vmatpush3.bf16.msra.mxu1 %v18624_v38  ;;  %v15018_v50 = vpack.c.bf16 %v10180_v11, %v10179_v27  ;;  %v10668_v27 = vld [vmem:[%s19563_s6 + $0xf0] sm:$0xff]  }
 0x482   :  { %v4142_v8 = vadd.f32 %v12195_v12, %v18429_v24  ;;  %v12196_v34 = vpop.f32.mrb[56].mxu1  ;;  %v4275_v12 = vld [vmem:[%s19564_s4 + $0x8] sm:$0xff] }
 0x483   :  { %v12197_v47 = vpop.f32.mrb[57].mxu1 }
 0x484   :  { %v4176_v19 = vmax.f32 %v19862_v22, %v4142_v8  ;;  %v12198_v40 = vadd.f32 %v12197_v47, %v12196_v34  ;;  %v10649_v34 = vld [vmem:[%s19563_s6 + $0x58] sm:$0xff]   ;;  %v10482_v47 = vunpack.c.h.bf16 %v10648_v56 }
 0x485   :  { %v10485_v22 = vunpack.c.l.bf16 %v10649_v34  ;;  %v10665_v56 = vld [vmem:[%s19563_s6 + $0xd8] sm:$0xff]  }
 0x486   :  { %v18638_v62 = vpack.c.bf16 %v4176_v19, %v4175_v61  ;;  %v4147_v6 = vadd.f32 %v12198_v40, %v18437_v58  ;;  %v12199_v45 = vpop.f32.mrb[58].mxu1  ;;  %v19864_v58 = vmax.f32 %v18450_v60, %v18546_v9  ;;  %v19866_v60 = vmax.f32 %v18466_v43, %v18556_v44  ;;  %v4274_v61 = vld [vmem:[%s19564_s4] sm:$0xff]  ;;  %v10652_v19 = vld [vmem:[%s19563_s6 + $0x70] sm:$0xff]  }
 0x487   :  { %v12200_v30 = vpop.f32.mrb[59].mxu1  ;;  %v10453_v43 = vunpack.c.l.bf16 %v10641_v21  ;;  %v10445_v44 = vunpack.c.l.bf16 %v10639_v41  ;;  %v18753_v8 = vpack.c.bf16 %v4275_v12, %v4274_v61  ;;  %v10486_v40 = vunpack.c.h.bf16 %v10649_v34  ;;  %v10645_v61 = vld [vmem:[%s19563_s6 + $0x38] sm:$0xff]  }
 0x488   :  { %v4177_v23 = vmax.f32 %v19863_v16, %v4147_v6  ;;  %v12201_v54 = vadd.f32 %v12200_v30, %v12199_v45  ;;  %14975 = vmatprep.subr.bf16.mxu0 %v18638_v62  ;;  %15007 = vmatprep.subr.bf16.mxu1 %v18638_v62  ;;  %v10497_v6 = vunpack.c.l.bf16 %v10652_v19  ;;  %v10653_v45 = vld [vmem:[%s19563_s6 + $0x78] sm:$0xff]   ;;  %v10498_v30 = vunpack.c.h.bf16 %v10652_v19 }
 0x489   :  { %14977 = vmatpush3.bf16.msra.mxu0 %v18638_v62  ;;  %15009 = vmatpush3.bf16.msra.mxu1 %v18638_v62  ;;  %v10501_v16 = vunpack.c.l.bf16 %v10653_v45  ;;  %v10550_v11 = vunpack.c.h.bf16 %v10665_v56  ;;  %v10470_v34 = vunpack.c.h.bf16 %v10645_v61 }
 0x48a   :  { %v4152_v24 = vadd.f32 %v12201_v54, %v18445_v3  ;;  %v12202_v7 = vpop.f32.mrb[60].mxu1  ;;  %v10502_v54 = vunpack.c.h.bf16 %v10653_v45 }
 0x48b   :  { %v12203_v49 = vpop.f32.mrb[61].mxu1 }
 0x48c   :  { %v4178_v46 = vmax.f32 %v19864_v58, %v4152_v24  ;;  %v12204_v39 = vadd.f32 %v12203_v49, %v12202_v7  ;;  %v10657_v7 = vld [vmem:[%s19563_s6 + $0x98] sm:$0xff]  }
 0x48d   :  { %v10517_v58 = vunpack.c.l.bf16 %v10657_v7 }
 0x48e   :  { %v18652_v2 = vpack.c.bf16 %v4178_v46, %v4177_v23  ;;  %v4157_v33 = vadd.f32 %v12204_v39, %v18453_v14  ;;  %v12205_v48 = vpop.f32.mrb[62].mxu1  ;;  %v10656_v23 = vld [vmem:[%s19563_s6 + $0x90] sm:$0xff]   ;;  %v10658_v46 = vld [vmem:[%s19563_s6 + $0xa0] sm:$0xff]   ;;  %v10518_v39 = vunpack.c.h.bf16 %v10657_v7 }
 0x48f   :  { %v12206_v35 = vpop.f32.mrb[63].mxu1  ;;  %v10513_v24 = vunpack.c.l.bf16 %v10656_v23  ;;  %v10514_v49 = vunpack.c.h.bf16 %v10656_v23  ;;  %v10674_v7 = vld [vmem:[%s19563_s6 + $0x120] sm:$0xff]  }
 0x490   :  { %v4179_v63 = vmax.f32 %v19865_v32, %v4157_v33  ;;  %v12207_v36 = vadd.f32 %v12206_v35, %v12205_v48  ;;  %14979 = vmatprep.subr.bf16.mxu0 %v18652_v2  ;;  %15011 = vmatprep.subr.bf16.mxu1 %v18652_v2  ;;  %v10521_v33 = vunpack.c.l.bf16 %v10658_v46  ;;  %v10659_v48 = vld [vmem:[%s19563_s6 + $0xa8] sm:$0xff]   ;;  %v10522_v35 = vunpack.c.h.bf16 %v10658_v46 }
 0x491   :  { %14981 = vmatpush3.bf16.msra.mxu0 %v18652_v2  ;;  %15013 = vmatpush3.bf16.msra.mxu1 %v18652_v2  ;;  %v10525_v32 = vunpack.c.l.bf16 %v10659_v48  ;;  %v10585_v46 = vunpack.c.l.bf16 %v10674_v7 }
 0x492   :  { %v4162_v3 = vadd.f32 %v12207_v36, %v18461_v31  ;;  %v10450_v31 = vunpack.c.h.bf16 %v19867_v25  ;;  %v10526_v36 = vunpack.c.h.bf16 %v10659_v48 }
 0x494   :  { %v4180_v14 = vmax.f32 %v19866_v60, %v4162_v3  ;;  %v10193_v60 = vld [vmem:[%s19564_s4 + $0x20] sm:$0xff] }
 0x496   :  { %v18666_v9 = vpack.c.bf16 %v4180_v14, %v4179_v63  ;;  %v10662_v63 = vld [vmem:[%s19563_s6 + $0xc0] sm:$0xff]   ;;  %v10194_v14 = vld [vmem:[%s19564_s4 + $0x28] sm:$0xff] }
 0x497   :  { %v10537_v3 = vunpack.c.l.bf16 %v10662_v63  ;;  %v15058_v26 = vpack.c.bf16 %v10194_v14, %v10193_v60  ;;  %v10213_v60 = vld [vmem:[%s19564_s4 + $0x40] sm:$0xff]  ;;  %v10214_v14 = vld [vmem:[%s19564_s4 + $0x48] sm:$0xff] }
 0x498   :  { %14983 = vmatprep.subr.bf16.mxu0 %v18666_v9  ;;  %15015 = vmatprep.subr.bf16.mxu1 %v18666_v9 }
 0x499   :  { %14985 = vmatpush3.bf16.msra.mxu0 %v18666_v9  ;;  %15017 = vmatpush3.bf16.msra.mxu1 %v18666_v9 }
 0x49a   :  { %15027 = vmatprep.subr.bf16.mxu1 %v18568_v17  ;;  %15019 = vmatprep.subr.bf16.mxu0 %v15018_v50 }
 0x49c   :  { %13107 = vmatmul.mubr.f32.vlgmr.msra.gmra.mrb[64].mxu1 %v10450_v31  ;;  %13069 = vmatmul.mubr.f32.vlgmr.msra.gmra.mrb[64].mxu0 %v10442_v13 }
 0x49d   :  { %15029 = vmatpush3.bf16.msra.mxu1 %v18568_v17  ;;  %13109 = vmatprep.mubr.f32.mxu1 %v10453_v43 }
 0x49e   :  { %15031 = vmatprep.subr.bf16.mxu1 %v18582_v57  ;;  %13071 = vmatprep.mubr.f32.mxu0 %v10445_v44 }
 0x49f   :  { %15021 = vmatpush3.bf16.msra.mxu0 %v15018_v50  ;;  %v10561_v50 = vunpack.c.l.bf16 %v10668_v27 }
 0x4a0   :  { %13110 = vmatmul.mubr.f32.gmra.mrb[66].mxu1 %v10454_v10  ;;  %13072 = vmatmul.mubr.f32.gmra.mrb[66].mxu0 %v10446_v55  ;;  %v10663_v10 = vld [vmem:[%s19563_s6 + $0xc8] sm:$0xff]   ;;  %v10538_v55 = vunpack.c.h.bf16 %v10662_v63  ;;  %v10678_v63 = vld [vmem:[%s19563_s6 + $0x140] sm:$0xff]  }
 0x4a1   :  { %15033 = vmatpush3.bf16.msra.mxu1 %v18582_v57  ;;  %13164 = vmatprep.mubr.f32.mxu1 %v10457_v0  ;;  %v10541_v0 = vunpack.c.l.bf16 %v10663_v10 }
 0x4a2   :  { %15035 = vmatprep.subr.bf16.mxu1 %v18596_v37  ;;  %15023 = vmatprep.subr.bf16.mxu0 %v18753_v8 }
 0x4a5   :  { %15037 = vmatpush3.bf16.msra.mxu1 %v18596_v37 }
 0x4a6   :  { %15039 = vmatprep.subr.bf16.mxu1 %v18610_v51 }
 0x4a9   :  { %15041 = vmatpush3.bf16.msra.mxu1 %v18610_v51 }
 0x4aa   :  { %15043 = vmatprep.subr.bf16.mxu1 %v18624_v38 }
 0x4ad   :  { %15045 = vmatpush3.bf16.msra.mxu1 %v18624_v38 }
 0x4ae   :  { %15047 = vmatprep.subr.bf16.mxu1 %v18638_v62 }
 0x4b1   :  { %15049 = vmatpush3.bf16.msra.mxu1 %v18638_v62 }
 0x4b2   :  { %15051 = vmatprep.subr.bf16.mxu1 %v18652_v2 }
 0x4b5   :  { %15053 = vmatpush3.bf16.msra.mxu1 %v18652_v2 }
 0x4b6   :  { %15055 = vmatprep.subr.bf16.mxu1 %v18666_v9 }
 0x4b9   :  { %15057 = vmatpush3.bf16.msra.mxu1 %v18666_v9 }
 0x4ba   :  { %15099 = vmatprep.subr.bf16.mxu1 %v18568_v17 }
 0x4bc   :  { %13165 = vmatmul.mubr.f32.vlgmr.msra.gmra.mrb[68].mxu1 %v10458_v59  ;;  %v10542_v59 = vunpack.c.h.bf16 %v10663_v10 }
 0x4bd   :  { %15101 = vmatpush3.bf16.msra.mxu1 %v18568_v17  ;;  %13167 = vmatprep.mubr.f32.mxu1 %v10461_v52  ;;  %v10545_v52 = vunpack.c.l.bf16 %v10664_v18 }
 0x4be   :  { %15103 = vmatprep.subr.bf16.mxu1 %v18582_v57 }
 0x4c0   :  { %13168 = vmatmul.mubr.f32.gmra.mrb[70].mxu1 %v10462_v15 }
 0x4c1   :  { %15105 = vmatpush3.bf16.msra.mxu1 %v18582_v57  ;;  %13260 = vmatprep.mubr.f32.mxu1 %v10473_v1  ;;  %v10644_v1 = vld [vmem:[%s19563_s6 + $0x30] sm:$0xff]  }
 0x4c2   :  { %15107 = vmatprep.subr.bf16.mxu1 %v18596_v37  ;;  %v10466_v12 = vunpack.c.h.bf16 %v10644_v1 }
 0x4c5   :  { %15109 = vmatpush3.bf16.msra.mxu1 %v18596_v37 }
 0x4c6   :  { %15111 = vmatprep.subr.bf16.mxu1 %v18610_v51 }
 0x4c9   :  { %15113 = vmatpush3.bf16.msra.mxu1 %v18610_v51 }
 0x4ca   :  { %15115 = vmatprep.subr.bf16.mxu1 %v18624_v38 }
 0x4cd   :  { %15117 = vmatpush3.bf16.msra.mxu1 %v18624_v38 }
 0x4ce   :  { %15119 = vmatprep.subr.bf16.mxu1 %v18638_v62 }
 0x4d1   :  { %15121 = vmatpush3.bf16.msra.mxu1 %v18638_v62 }
 0x4d2   :  { %15123 = vmatprep.subr.bf16.mxu1 %v18652_v2 }
 0x4d5   :  { %15125 = vmatpush3.bf16.msra.mxu1 %v18652_v2 }
 0x4d6   :  { %15127 = vmatprep.subr.bf16.mxu1 %v18666_v9 }
 0x4d9   :  { %15129 = vmatpush3.bf16.msra.mxu1 %v18666_v9 }
 0x4da   :  { %15135 = vmatprep.subr.bf16.mxu1 %v18568_v17 }
 0x4dc   :  { %13261 = vmatmul.mubr.f32.vlgmr.msra.gmra.mrb[72].mxu1 %v10474_v28  ;;  %v10465_v28 = vunpack.c.l.bf16 %v10644_v1 }
 0x4dd   :  { %15137 = vmatpush3.bf16.msra.mxu1 %v18568_v17  ;;  %13263 = vmatprep.mubr.f32.mxu1 %v10477_v5 }
 0x4de   :  { %15139 = vmatprep.subr.bf16.mxu1 %v18582_v57 }
 0x4e0   :  { %13264 = vmatmul.mubr.f32.gmra.mrb[74].mxu1 %v10478_v42  ;;  %v10546_v42 = vunpack.c.h.bf16 %v10664_v18 }
 0x4e1   :  { %15141 = vmatpush3.bf16.msra.mxu1 %v18582_v57  ;;  %13308 = vmatprep.mubr.f32.mxu1 %v10481_v53  ;;  %v10549_v53 = vunpack.c.l.bf16 %v10665_v56  ;;  %v10650_v56 = vld [vmem:[%s19563_s6 + $0x60] sm:$0xff]  }
 0x4e2   :  { %15143 = vmatprep.subr.bf16.mxu1 %v18596_v37 }
 0x4e5   :  { %15145 = vmatpush3.bf16.msra.mxu1 %v18596_v37 }
 0x4e6   :  { %15147 = vmatprep.subr.bf16.mxu1 %v18610_v51 }
 0x4e9   :  { %15149 = vmatpush3.bf16.msra.mxu1 %v18610_v51 }
 0x4ea   :  { %15151 = vmatprep.subr.bf16.mxu1 %v18624_v38 }
 0x4ed   :  { %15153 = vmatpush3.bf16.msra.mxu1 %v18624_v38 }
 0x4ee   :  { %15155 = vmatprep.subr.bf16.mxu1 %v18638_v62 }
 0x4f1   :  { %15157 = vmatpush3.bf16.msra.mxu1 %v18638_v62 }
 0x4f2   :  { %15159 = vmatprep.subr.bf16.mxu1 %v18652_v2 }
 0x4f5   :  { %15161 = vmatpush3.bf16.msra.mxu1 %v18652_v2 }
 0x4f6   :  { %15163 = vmatprep.subr.bf16.mxu1 %v18666_v9 }
 0x4f9   :  { %15165 = vmatpush3.bf16.msra.mxu1 %v18666_v9 }
 0x4fa   :  { %15207 = vmatprep.subr.bf16.mxu1 %v18568_v17 }
 0x4fc   :  { %13309 = vmatmul.mubr.f32.vlgmr.msra.gmra.mrb[76].mxu1 %v10482_v47  ;;  %v10669_v47 = vld [vmem:[%s19563_s6 + $0xf8] sm:$0xff]  }
 0x4fd   :  { %15209 = vmatpush3.bf16.msra.mxu1 %v18568_v17  ;;  %13311 = vmatprep.mubr.f32.mxu1 %v10485_v22  ;;  %v10562_v22 = vunpack.c.h.bf16 %v10668_v27  ;;  %v10565_v19 = vunpack.c.l.bf16 %v10669_v47  ;;  %v10234_v27 = vld [vmem:[%s19564_s4 + $0x68] sm:$0xff] }
 0x4fe   :  { %15211 = vmatprep.subr.bf16.mxu1 %v18582_v57 }
 0x500   :  { %13312 = vmatmul.mubr.f32.gmra.mrb[78].mxu1 %v10486_v40  ;;  %v10672_v40 = vld [vmem:[%s19563_s6 + $0x110] sm:$0xff]  }
 0x501   :  { %15213 = vmatpush3.bf16.msra.mxu1 %v18582_v57  ;;  %13404 = vmatprep.mubr.f32.mxu1 %v10497_v6  ;;  %v10566_v6 = vunpack.c.h.bf16 %v10669_v47  ;;  %v10577_v45 = vunpack.c.l.bf16 %v10672_v40  ;;  %v10244_v47 = vld [vmem:[%s19564_s4 + $0x78] sm:$0xff] }
 0x502   :  { %15215 = vmatprep.subr.bf16.mxu1 %v18596_v37 }
 0x505   :  { %15217 = vmatpush3.bf16.msra.mxu1 %v18596_v37 }
 0x506   :  { %15219 = vmatprep.subr.bf16.mxu1 %v18610_v51 }
 0x509   :  { %15221 = vmatpush3.bf16.msra.mxu1 %v18610_v51 }
 0x50a   :  { %15223 = vmatprep.subr.bf16.mxu1 %v18624_v38 }
 0x50d   :  { %15225 = vmatpush3.bf16.msra.mxu1 %v18624_v38 }
 0x50e   :  { %15227 = vmatprep.subr.bf16.mxu1 %v18638_v62 }
 0x511   :  { %15229 = vmatpush3.bf16.msra.mxu1 %v18638_v62 }
 0x512   :  { %15231 = vmatprep.subr.bf16.mxu1 %v18652_v2 }
 0x515   :  { %15233 = vmatpush3.bf16.msra.mxu1 %v18652_v2 }
 0x516   :  { %15235 = vmatprep.subr.bf16.mxu1 %v18666_v9 }
 0x519   :  { %15237 = vmatpush3.bf16.msra.mxu1 %v18666_v9 }
 0x51a   :  { %15279 = vmatprep.subr.bf16.mxu1 %v18568_v17 }
 0x51c   :  { %13405 = vmatmul.mubr.f32.vlgmr.msra.gmra.mrb[80].mxu1 %v10498_v30  ;;  %v10673_v30 = vld [vmem:[%s19563_s6 + $0x118] sm:$0xff]  }
 0x51d   :  { %15281 = vmatpush3.bf16.msra.mxu1 %v18568_v17  ;;  %13407 = vmatprep.mubr.f32.mxu1 %v10501_v16  ;;  %v10578_v16 = vunpack.c.h.bf16 %v10672_v40  ;;  %v10581_v23 = vunpack.c.l.bf16 %v10673_v30 }
 0x51e   :  { %15283 = vmatprep.subr.bf16.mxu1 %v18582_v57 }
 0x520   :  { %13408 = vmatmul.mubr.f32.gmra.mrb[82].mxu1 %v10502_v54  ;;  %v10203_v54 = vld [vmem:[%s19564_s4 + $0x30] sm:$0xff] }
 0x521   :  { %15285 = vmatpush3.bf16.msra.mxu1 %v18582_v57  ;;  %13500 = vmatprep.mubr.f32.mxu1 %v10513_v24  ;;  %v10204_v24 = vld [vmem:[%s19564_s4 + $0x38] sm:$0xff] }
 0x522   :  { %15287 = vmatprep.subr.bf16.mxu1 %v18596_v37 }
 0x525   :  { %15289 = vmatpush3.bf16.msra.mxu1 %v18596_v37 }
 0x526   :  { %15291 = vmatprep.subr.bf16.mxu1 %v18610_v51 }
 0x529   :  { %15293 = vmatpush3.bf16.msra.mxu1 %v18610_v51 }
 0x52a   :  { %15295 = vmatprep.subr.bf16.mxu1 %v18624_v38 }
 0x52d   :  { %15297 = vmatpush3.bf16.msra.mxu1 %v18624_v38 }
 0x52e   :  { %15299 = vmatprep.subr.bf16.mxu1 %v18638_v62 }
 0x531   :  { %15301 = vmatpush3.bf16.msra.mxu1 %v18638_v62 }
 0x532   :  { %15303 = vmatprep.subr.bf16.mxu1 %v18652_v2 }
 0x535   :  { %15305 = vmatpush3.bf16.msra.mxu1 %v18652_v2 }
 0x536   :  { %15307 = vmatprep.subr.bf16.mxu1 %v18666_v9 }
 0x539   :  { %15309 = vmatpush3.bf16.msra.mxu1 %v18666_v9 }
 0x53a   :  { %15315 = vmatprep.subr.bf16.mxu1 %v18568_v17 }
 0x53c   :  { %13501 = vmatmul.mubr.f32.vlgmr.msra.gmra.mrb[84].mxu1 %v10514_v49  ;;  %v15094_v49 = vpack.c.bf16 %v10204_v24, %v10203_v54  ;;  %v10654_v24 = vld [vmem:[%s19563_s6 + $0x80] sm:$0xff]  }
 0x53d   :  { %15317 = vmatpush3.bf16.msra.mxu1 %v18568_v17  ;;  %13503 = vmatprep.mubr.f32.mxu1 %v10517_v58  ;;  %v10582_v58 = vunpack.c.h.bf16 %v10673_v30 }
 0x53e   :  { %15319 = vmatprep.subr.bf16.mxu1 %v18582_v57 }
 0x540   :  { %13504 = vmatmul.mubr.f32.gmra.mrb[86].mxu1 %v10518_v39  ;;  %v10675_v39 = vld [vmem:[%s19563_s6 + $0x128] sm:$0xff]  }
 0x541   :  { %15321 = vmatpush3.bf16.msra.mxu1 %v18582_v57  ;;  %13548 = vmatprep.mubr.f32.mxu1 %v10521_v33 }
 0x542   :  { %15323 = vmatprep.subr.bf16.mxu1 %v18596_v37 }
 0x545   :  { %15325 = vmatpush3.bf16.msra.mxu1 %v18596_v37 }
 0x546   :  { %15327 = vmatprep.subr.bf16.mxu1 %v18610_v51 }
 0x549   :  { %15329 = vmatpush3.bf16.msra.mxu1 %v18610_v51 }
 0x54a   :  { %15331 = vmatprep.subr.bf16.mxu1 %v18624_v38 }
 0x54d   :  { %15333 = vmatpush3.bf16.msra.mxu1 %v18624_v38 }
 0x54e   :  { %15335 = vmatprep.subr.bf16.mxu1 %v18638_v62 }
 0x551   :  { %15337 = vmatpush3.bf16.msra.mxu1 %v18638_v62 }
 0x552   :  { %15339 = vmatprep.subr.bf16.mxu1 %v18652_v2 }
 0x555   :  { %15341 = vmatpush3.bf16.msra.mxu1 %v18652_v2 }
 0x556   :  { %15343 = vmatprep.subr.bf16.mxu1 %v18666_v9 }
 0x559   :  { %15345 = vmatpush3.bf16.msra.mxu1 %v18666_v9 }
 0x55a   :  { %15387 = vmatprep.subr.bf16.mxu1 %v18568_v17 }
 0x55c   :  { %13549 = vmatmul.mubr.f32.vlgmr.msra.gmra.mrb[88].mxu1 %v10522_v35  ;;  %v10586_v35 = vunpack.c.h.bf16 %v10674_v7  ;;  %v10505_v7 = vunpack.c.l.bf16 %v10654_v24 }
 0x55d   :  { %15389 = vmatpush3.bf16.msra.mxu1 %v18568_v17  ;;  %13551 = vmatprep.mubr.f32.mxu1 %v10525_v32  ;;  %v10589_v32 = vunpack.c.l.bf16 %v10675_v39 }
 0x55e   :  { %15391 = vmatprep.subr.bf16.mxu1 %v18582_v57 }
 0x560   :  { %13552 = vmatmul.mubr.f32.gmra.mrb[90].mxu1 %v10526_v36  ;;  %v10590_v36 = vunpack.c.h.bf16 %v10675_v39 }
 0x561   :  { %15393 = vmatpush3.bf16.msra.mxu1 %v18582_v57  ;;  %13644 = vmatprep.mubr.f32.mxu1 %v10537_v3  ;;  %v10601_v3 = vunpack.c.l.bf16 %v10678_v63 }
 0x562   :  { %15395 = vmatprep.subr.bf16.mxu1 %v18596_v37 }
 0x565   :  { %15397 = vmatpush3.bf16.msra.mxu1 %v18596_v37 }
 0x566   :  { %15399 = vmatprep.subr.bf16.mxu1 %v18610_v51 }
 0x569   :  { %15401 = vmatpush3.bf16.msra.mxu1 %v18610_v51 }
 0x56a   :  { %15403 = vmatprep.subr.bf16.mxu1 %v18624_v38 }
 0x56d   :  { %15405 = vmatpush3.bf16.msra.mxu1 %v18624_v38 }
 0x56e   :  { %15407 = vmatprep.subr.bf16.mxu1 %v18638_v62 }
 0x56f   :  { %v13108_v21 = vpop.f32.mrb[64].mxu1  ;;  %v13070_v41 = vpop.f32.mrb[64].mxu0 }
 0x570   :  { %v4351_v25 = vpop.f32.mrb[65].mxu1  ;;  %v4255_v31 = vpop.f32.mrb[65].mxu0 }
 0x571   :  { %13116 = vmatprep.mubr.msk.f32.mxu0 %vm4373_vm0, %v4351_v25  ;;  %15409 = vmatpush3.bf16.msra.mxu1 %v18638_v62 }
 0x572   :  { %13117 = vmatmul.mubr.msk.f32.vlgmr.msra.gmra.mrb[68].mxu0 %vm4373_vm0, %v13108_v21  ;;  %15411 = vmatprep.subr.bf16.mxu1 %v18652_v2  ;;  %v19006_v21 = vpack.c.bf16 %v10214_v14, %v10213_v60 }
 0x573   :  { %v13111_v13 = vpop.f32.mrb[66].mxu1  ;;  %15025 = vmatpush3.bf16.msra.mxu0 %v18753_v8  ;;  %v13073_v43 = vpop.f32.mrb[66].mxu0  ;;  %v10469_v8 = vunpack.c.l.bf16 %v10645_v61  ;;  %v10490_v61 = vunpack.c.h.bf16 %v10650_v56 }
 0x574   :  { %v4361_v44 = vpop.f32.mrb[67].mxu1  ;;  %15059 = vmatprep.subr.bf16.mxu0 %v15058_v26  ;;  %v4265_v4 = vpop.f32.mrb[67].mxu0 }
 0x575   :  { %13119 = vmatprep.mubr.msk.f32.mxu0 %vm4373_vm0, %v4361_v44  ;;  %15413 = vmatpush3.bf16.msra.mxu1 %v18652_v2 }
 0x576   :  { %13120 = vmatmul.mubr.msk.f32.gmra.mrb[70].mxu0 %vm4373_vm0, %v13111_v13  ;;  %15415 = vmatprep.subr.bf16.mxu1 %v18666_v9  ;;  %v10679_v13 = vld [vmem:[%s19563_s6 + $0x148] sm:$0xff]  }
 0x577   :  { %13126 = vmatprep.mubr.msk.f32.mxu0 %vm4373_vm0, %v4255_v31  ;;  %v10605_v44 = vunpack.c.l.bf16 %v10679_v13  ;;  %v10606_v10 = vunpack.c.h.bf16 %v10679_v13  ;;  %v10273_v13 = vld [vmem:[%s19564_s4 + $0xa0] sm:$0xff] }
 0x579   :  { %15417 = vmatpush3.bf16.msra.mxu1 %v18666_v9 }
 0x57a   :  { %13127 = vmatmul.mubr.msk.f32.vlgmr.msra.gmra.mrb[68].mxu0 %vm4373_vm0, %v13070_v41  ;;  %15423 = vmatprep.subr.bf16.mxu1 %v18568_v17 }
 0x57b   :  { %15061 = vmatpush3.bf16.msra.mxu0 %v15058_v26  ;;  %13129 = vmatprep.mubr.msk.f32.mxu0 %vm4373_vm0, %v4265_v4  ;;  %v10680_v4 = vld [vmem:[%s19563_s6 + $0x150] sm:$0xff]  }
 0x57c   :  { %15063 = vmatprep.subr.bf16.mxu0 %v18568_v17  ;;  %13645 = vmatmul.mubr.f32.vlgmr.msra.gmra.mrb[92].mxu1 %v10538_v55  ;;  %v10609_v55 = vunpack.c.l.bf16 %v10680_v4 }
 0x57d   :  { %15425 = vmatpush3.bf16.msra.mxu1 %v18568_v17  ;;  %13647 = vmatprep.mubr.f32.mxu1 %v10541_v0 }
 0x57e   :  { %15427 = vmatprep.subr.bf16.mxu1 %v18582_v57  ;;  %13130 = vmatmul.mubr.msk.f32.gmra.mrb[70].mxu0 %vm4373_vm0, %v13073_v43  ;;  %v10602_v43 = vunpack.c.h.bf16 %v10678_v63 }
 0x580   :  { %13648 = vmatmul.mubr.f32.gmra.mrb[94].mxu1 %v10542_v59  ;;  %v10610_v59 = vunpack.c.h.bf16 %v10680_v4 }
 0x581   :  { %15429 = vmatpush3.bf16.msra.mxu1 %v18582_v57  ;;  %13692 = vmatprep.mubr.f32.mxu1 %v10545_v52  ;;  %v10223_v52 = vld [vmem:[%s19564_s4 + $0x50] sm:$0xff] }
 0x582   :  { %15431 = vmatprep.subr.bf16.mxu1 %v18596_v37 }
 0x585   :  { %15433 = vmatpush3.bf16.msra.mxu1 %v18596_v37 }
 0x586   :  { %15435 = vmatprep.subr.bf16.mxu1 %v18610_v51 }
 0x589   :  { %15437 = vmatpush3.bf16.msra.mxu1 %v18610_v51 }
 0x58a   :  { %15439 = vmatprep.subr.bf16.mxu1 %v18624_v38 }
 0x58d   :  { %15441 = vmatpush3.bf16.msra.mxu1 %v18624_v38 }
 0x58e   :  { %15443 = vmatprep.subr.bf16.mxu1 %v18638_v62 }
 0x58f   :  { %v13166_v20 = vpop.f32.mrb[68].mxu1 }
 0x590   :  { %v4643_v15 = vpop.f32.mrb[69].mxu1 }
 0x591   :  { %13174 = vmatprep.mubr.msk.f32.mxu0 %vm4373_vm0, %v4643_v15  ;;  %15445 = vmatpush3.bf16.msra.mxu1 %v18638_v62 }
 0x592   :  { %13175 = vmatmul.mubr.msk.f32.vlgmr.msra.gmra.mrb[68].mxu0 %vm4373_vm0, %v13166_v20  ;;  %15447 = vmatprep.subr.bf16.mxu1 %v18652_v2  ;;  %v10224_v20 = vld [vmem:[%s19564_s4 + $0x58] sm:$0xff] }
 0x593   :  { %15065 = vmatpush3.bf16.msra.mxu0 %v18568_v17  ;;  %v13169_v29 = vpop.f32.mrb[70].mxu1 }
 0x594   :  { %15067 = vmatprep.subr.bf16.mxu0 %v18582_v57  ;;  %v4653_v5 = vpop.f32.mrb[71].mxu1 }
 0x595   :  { %15449 = vmatpush3.bf16.msra.mxu1 %v18652_v2  ;;  %13177 = vmatprep.mubr.msk.f32.mxu0 %vm4373_vm0, %v4653_v5 }
 0x596   :  { %15451 = vmatprep.subr.bf16.mxu1 %v18666_v9  ;;  %13178 = vmatmul.mubr.msk.f32.gmra.mrb[70].mxu0 %vm4373_vm0, %v13169_v29  ;;  %v15166_v29 = vpack.c.bf16 %v10224_v20, %v10223_v52  ;;  %v10283_v52 = vld [vmem:[%s19564_s4 + $0xb0] sm:$0xff]  ;;  %v10284_v20 = vld [vmem:[%s19564_s4 + $0xb8] sm:$0xff] }
 0x597   :  { %15069 = vmatpush3.bf16.msra.mxu0 %v18582_v57  ;;  %13212 = vmatprep.mubr.f32.mxu0 %v10465_v28 }
 0x598   :  { %15071 = vmatprep.subr.bf16.mxu0 %v18596_v37 }
 0x599   :  { %15453 = vmatpush3.bf16.msra.mxu1 %v18666_v9 }
 0x59a   :  { %15495 = vmatprep.subr.bf16.mxu1 %v18568_v17 }
 0x59b   :  { %15073 = vmatpush3.bf16.msra.mxu0 %v18596_v37 }
 0x59c   :  { %15075 = vmatprep.subr.bf16.mxu0 %v18610_v51  ;;  %13693 = vmatmul.mubr.f32.vlgmr.msra.gmra.mrb[96].mxu1 %v10546_v42  ;;  %v10489_v42 = vunpack.c.l.bf16 %v10650_v56 }
 0x59d   :  { %15497 = vmatpush3.bf16.msra.mxu1 %v18568_v17  ;;  %13695 = vmatprep.mubr.f32.mxu1 %v10549_v53  ;;  %v10233_v53 = vld [vmem:[%s19564_s4 + $0x60] sm:$0xff] }
 0x59e   :  { %15499 = vmatprep.subr.bf16.mxu1 %v18582_v57 }
 0x59f   :  { %15077 = vmatpush3.bf16.msra.mxu0 %v18610_v51 }
 0x5a0   :  { %15079 = vmatprep.subr.bf16.mxu0 %v18624_v38  ;;  %13696 = vmatmul.mubr.f32.gmra.mrb[98].mxu1 %v10550_v11  ;;  %v10651_v11 = vld [vmem:[%s19563_s6 + $0x68] sm:$0xff]  }
 0x5a1   :  { %15501 = vmatpush3.bf16.msra.mxu1 %v18582_v57  ;;  %13788 = vmatprep.mubr.f32.mxu1 %v10561_v50  ;;  %v15202_v50 = vpack.c.bf16 %v10234_v27, %v10233_v53  ;;  %v10293_v53 = vld [vmem:[%s19564_s4 + $0xc0] sm:$0xff]  ;;  %v10294_v27 = vld [vmem:[%s19564_s4 + $0xc8] sm:$0xff] }
 0x5a2   :  { %15503 = vmatprep.subr.bf16.mxu1 %v18596_v37 }
 0x5a3   :  { %15081 = vmatpush3.bf16.msra.mxu0 %v18624_v38 }
 0x5a4   :  { %15083 = vmatprep.subr.bf16.mxu0 %v18638_v62 }
 0x5a5   :  { %15505 = vmatpush3.bf16.msra.mxu1 %v18596_v37 }
 0x5a6   :  { %15507 = vmatprep.subr.bf16.mxu1 %v18610_v51 }
 0x5a7   :  { %15085 = vmatpush3.bf16.msra.mxu0 %v18638_v62 }
 0x5a8   :  { %15087 = vmatprep.subr.bf16.mxu0 %v18652_v2 }
 0x5a9   :  { %15509 = vmatpush3.bf16.msra.mxu1 %v18610_v51 }
 0x5aa   :  { %15511 = vmatprep.subr.bf16.mxu1 %v18624_v38 }
 0x5ab   :  { %15089 = vmatpush3.bf16.msra.mxu0 %v18652_v2 }
 0x5ac   :  { %15091 = vmatprep.subr.bf16.mxu0 %v18666_v9 }
 0x5ad   :  { %15513 = vmatpush3.bf16.msra.mxu1 %v18624_v38 }
 0x5ae   :  { %15515 = vmatprep.subr.bf16.mxu1 %v18638_v62 }
 0x5af   :  { %15093 = vmatpush3.bf16.msra.mxu0 %v18666_v9  ;;  %v18983_v33 = vpop.f32.mrb[72].mxu1 }
 0x5b0   :  { %15095 = vmatprep.subr.bf16.mxu0 %v15094_v49  ;;  %v18985_v48 = vpop.f32.mrb[73].mxu1 }
 0x5b1   :  { %15517 = vmatpush3.bf16.msra.mxu1 %v18638_v62 }
 0x5b2   :  { %13213 = vmatmul.mubr.f32.vlgmr.msra.gmra.mrb[72].mxu0 %v10466_v12  ;;  %15519 = vmatprep.subr.bf16.mxu1 %v18652_v2  ;;  %v10493_v12 = vunpack.c.l.bf16 %v10651_v11 }
 0x5b3   :  { %13215 = vmatprep.mubr.f32.mxu0 %v10469_v8  ;;  %15097 = vmatpush3.bf16.msra.mxu0 %v15094_v49  ;;  %v19012_v41 = vpop.f32.mrb[74].mxu1  ;;  %v10494_v8 = vunpack.c.h.bf16 %v10651_v11  ;;  %v10253_v49 = vld [vmem:[%s19564_s4 + $0x80] sm:$0xff]  ;;  %v15418_v11 = vpack.c.bf16 %v10294_v27, %v10293_v53  ;;  %v10681_v53 = vld [vmem:[%s19563_s6 + $0x158] sm:$0xff]  }
 0x5b4   :  { %15131 = vmatprep.subr.bf16.mxu0 %v19006_v21  ;;  %v19015_v25 = vpop.f32.mrb[75].mxu1  ;;  %v10613_v27 = vunpack.c.l.bf16 %v10681_v53 }
 0x5b5   :  { %15521 = vmatpush3.bf16.msra.mxu1 %v18652_v2 }
 0x5b6   :  { %13216 = vmatmul.mubr.f32.gmra.mrb[74].mxu0 %v10470_v34  ;;  %15523 = vmatprep.subr.bf16.mxu1 %v18666_v9  ;;  %v10243_v34 = vld [vmem:[%s19564_s4 + $0x70] sm:$0xff] }
 0x5b9   :  { %15525 = vmatpush3.bf16.msra.mxu1 %v18666_v9 }
 0x5ba   :  { %15567 = vmatprep.subr.bf16.mxu1 %v18568_v17 }
 0x5bc   :  { %13789 = vmatmul.mubr.f32.vlgmr.msra.gmra.mrb[100].mxu1 %v10562_v22  ;;  %v15238_v22 = vpack.c.bf16 %v10244_v47, %v10243_v34 }
 0x5bd   :  { %15569 = vmatpush3.bf16.msra.mxu1 %v18568_v17  ;;  %13791 = vmatprep.mubr.f32.mxu1 %v10565_v19 }
 0x5be   :  { %15571 = vmatprep.subr.bf16.mxu1 %v18582_v57 }
 0x5c0   :  { %13792 = vmatmul.mubr.f32.gmra.mrb[102].mxu1 %v10566_v6 }
 0x5c1   :  { %15573 = vmatpush3.bf16.msra.mxu1 %v18582_v57  ;;  %13884 = vmatprep.mubr.f32.mxu1 %v10577_v45 }
 0x5c2   :  { %15575 = vmatprep.subr.bf16.mxu1 %v18596_v37 }
 0x5c5   :  { %15577 = vmatpush3.bf16.msra.mxu1 %v18596_v37 }
 0x5c6   :  { %15579 = vmatprep.subr.bf16.mxu1 %v18610_v51 }
 0x5c9   :  { %15581 = vmatpush3.bf16.msra.mxu1 %v18610_v51 }
 0x5ca   :  { %15583 = vmatprep.subr.bf16.mxu1 %v18624_v38 }
 0x5cd   :  { %15585 = vmatpush3.bf16.msra.mxu1 %v18624_v38 }
 0x5ce   :  { %15587 = vmatprep.subr.bf16.mxu1 %v18638_v62 }
 0x5cf   :  { %v19017_v31 = vpop.f32.mrb[76].mxu1 }
 0x5d0   :  { %v19020_v26 = vpop.f32.mrb[77].mxu1 }
 0x5d1   :  { %15589 = vmatpush3.bf16.msra.mxu1 %v18638_v62 }
 0x5d2   :  { %15591 = vmatprep.subr.bf16.mxu1 %v18652_v2 }
 0x5d3   :  { %v13313_v0 = vpop.f32.mrb[78].mxu1 }
 0x5d4   :  { %v5247_v18 = vpop.f32.mrb[79].mxu1 }
 0x5d5   :  { %15593 = vmatpush3.bf16.msra.mxu1 %v18652_v2 }
 0x5d6   :  { %15595 = vmatprep.subr.bf16.mxu1 %v18666_v9 }
 0x5d9   :  { %15597 = vmatpush3.bf16.msra.mxu1 %v18666_v9 }
 0x5da   :  { %15603 = vmatprep.subr.bf16.mxu1 %v18568_v17 }
 0x5dc   :  { %13885 = vmatmul.mubr.f32.vlgmr.msra.gmra.mrb[104].mxu1 %v10578_v16 }
 0x5dd   :  { %15605 = vmatpush3.bf16.msra.mxu1 %v18568_v17  ;;  %13887 = vmatprep.mubr.f32.mxu1 %v10581_v23 }
 0x5de   :  { %15607 = vmatprep.subr.bf16.mxu1 %v18582_v57 }
 0x5e0   :  { %13888 = vmatmul.mubr.f32.gmra.mrb[106].mxu1 %v10582_v58  ;;  %v10254_v58 = vld [vmem:[%s19564_s4 + $0x88] sm:$0xff] }
 0x5e1   :  { %15609 = vmatpush3.bf16.msra.mxu1 %v18582_v57  ;;  %13932 = vmatprep.mubr.f32.mxu1 %v10585_v46  ;;  %v10655_v46 = vld [vmem:[%s19563_s6 + $0x88] sm:$0xff]   ;;  %v15274_v39 = vpack.c.bf16 %v10254_v58, %v10253_v49 }
 0x5e2   :  { %15611 = vmatprep.subr.bf16.mxu1 %v18596_v37  ;;  %v10667_v49 = vld [vmem:[%s19563_s6 + $0xe8] sm:$0xff]  }
 0x5e5   :  { %15613 = vmatpush3.bf16.msra.mxu1 %v18596_v37 }
 0x5e6   :  { %15615 = vmatprep.subr.bf16.mxu1 %v18610_v51 }
 0x5e9   :  { %15617 = vmatpush3.bf16.msra.mxu1 %v18610_v51 }
 0x5ea   :  { %15619 = vmatprep.subr.bf16.mxu1 %v18624_v38 }
 0x5ed   :  { %15621 = vmatpush3.bf16.msra.mxu1 %v18624_v38 }
 0x5ee   :  { %15623 = vmatprep.subr.bf16.mxu1 %v18638_v62 }
 0x5ef   :  { %v13406_v19 = vpop.f32.mrb[80].mxu1 }
 0x5f0   :  { %v5633_v40 = vpop.f32.mrb[81].mxu1 }
 0x5f1   :  { %15625 = vmatpush3.bf16.msra.mxu1 %v18638_v62 }
 0x5f2   :  { %15627 = vmatprep.subr.bf16.mxu1 %v18652_v2 }
 0x5f3   :  { %v13409_v6 = vpop.f32.mrb[82].mxu1 }
 0x5f4   :  { %v5643_v45 = vpop.f32.mrb[83].mxu1 }
 0x5f5   :  { %15629 = vmatpush3.bf16.msra.mxu1 %v18652_v2 }
 0x5f6   :  { %15631 = vmatprep.subr.bf16.mxu1 %v18666_v9 }
 0x5f9   :  { %15633 = vmatpush3.bf16.msra.mxu1 %v18666_v9 }
 0x5fa   :  { %15675 = vmatprep.subr.bf16.mxu1 %v18568_v17 }
 0x5fc   :  { %13933 = vmatmul.mubr.f32.vlgmr.msra.gmra.mrb[108].mxu1 %v10586_v35  ;;  %v10510_v35 = vunpack.c.h.bf16 %v10655_v46 }
 0x5fd   :  { %15677 = vmatpush3.bf16.msra.mxu1 %v18568_v17  ;;  %13935 = vmatprep.mubr.f32.mxu1 %v10589_v32 }
 0x5fe   :  { %15679 = vmatprep.subr.bf16.mxu1 %v18582_v57 }
 0x600   :  { %13936 = vmatmul.mubr.f32.gmra.mrb[110].mxu1 %v10590_v36  ;;  %v10263_v36 = vld [vmem:[%s19564_s4 + $0x90] sm:$0xff] }
 0x601   :  { %15681 = vmatpush3.bf16.msra.mxu1 %v18582_v57  ;;  %14028 = vmatprep.mubr.f32.mxu1 %v10601_v3  ;;  %v10264_v3 = vld [vmem:[%s19564_s4 + $0x98] sm:$0xff] }
 0x602   :  { %15683 = vmatprep.subr.bf16.mxu1 %v18596_v37  ;;  %v15310_v60 = vpack.c.bf16 %v10264_v3, %v10263_v36 }
 0x605   :  { %15685 = vmatpush3.bf16.msra.mxu1 %v18596_v37 }
 0x606   :  { %15687 = vmatprep.subr.bf16.mxu1 %v18610_v51 }
 0x609   :  { %15689 = vmatpush3.bf16.msra.mxu1 %v18610_v51 }
 0x60a   :  { %15691 = vmatprep.subr.bf16.mxu1 %v18624_v38 }
 0x60d   :  { %15693 = vmatpush3.bf16.msra.mxu1 %v18624_v38 }
 0x60e   :  { %15695 = vmatprep.subr.bf16.mxu1 %v18638_v62 }
 0x60f   :  { %v13502_v32 = vpop.f32.mrb[84].mxu1 }
 0x610   :  { %v6029_v63 = vpop.f32.mrb[85].mxu1 }
 0x611   :  { %15697 = vmatpush3.bf16.msra.mxu1 %v18638_v62 }
 0x612   :  { %15699 = vmatprep.subr.bf16.mxu1 %v18652_v2 }
 0x613   :  { %v13505_v14 = vpop.f32.mrb[86].mxu1 }
 0x615   :  { %15701 = vmatpush3.bf16.msra.mxu1 %v18652_v2 }
 0x616   :  { %15703 = vmatprep.subr.bf16.mxu1 %v18666_v9 }
 0x619   :  { %15705 = vmatpush3.bf16.msra.mxu1 %v18666_v9 }
 0x61a   :  { %15711 = vmatprep.subr.bf16.mxu1 %v18568_v17 }
 0x61c   :  { %14029 = vmatmul.mubr.f32.vlgmr.msra.gmra.mrb[112].mxu1 %v10602_v43  ;;  %v10274_v43 = vld [vmem:[%s19564_s4 + $0xa8] sm:$0xff] }
 0x61d   :  { %15713 = vmatpush3.bf16.msra.mxu1 %v18568_v17  ;;  %14031 = vmatprep.mubr.f32.mxu1 %v10605_v44 }
 0x61e   :  { %15715 = vmatprep.subr.bf16.mxu1 %v18582_v57 }
 0x620   :  { %14032 = vmatmul.mubr.f32.gmra.mrb[114].mxu1 %v10606_v10  ;;  %v15346_v10 = vpack.c.bf16 %v10274_v43, %v10273_v13  ;;  %v10333_v13 = vld [vmem:[%s19564_s4 + $0x100] sm:$0xff]  ;;  %v10334_v43 = vld [vmem:[%s19564_s4 + $0x108] sm:$0xff] }
 0x621   :  { %15717 = vmatpush3.bf16.msra.mxu1 %v18582_v57  ;;  %14076 = vmatprep.mubr.f32.mxu1 %v10609_v55 }
 0x622   :  { %15719 = vmatprep.subr.bf16.mxu1 %v18596_v37 }
 0x625   :  { %15721 = vmatpush3.bf16.msra.mxu1 %v18596_v37 }
 0x626   :  { %15723 = vmatprep.subr.bf16.mxu1 %v18610_v51 }
 0x629   :  { %15725 = vmatpush3.bf16.msra.mxu1 %v18610_v51 }
 0x62a   :  { %15727 = vmatprep.subr.bf16.mxu1 %v18624_v38 }
 0x62d   :  { %15729 = vmatpush3.bf16.msra.mxu1 %v18624_v38 }
 0x62e   :  { %15731 = vmatprep.subr.bf16.mxu1 %v18638_v62 }
 0x631   :  { %15733 = vmatpush3.bf16.msra.mxu1 %v18638_v62 }
 0x632   :  { %15735 = vmatprep.subr.bf16.mxu1 %v18652_v2 }
 0x635   :  { %15737 = vmatpush3.bf16.msra.mxu1 %v18652_v2 }
 0x636   :  { %15739 = vmatprep.subr.bf16.mxu1 %v18666_v9 }
 0x639   :  { %15741 = vmatpush3.bf16.msra.mxu1 %v18666_v9 }
 0x63a   :  { %15783 = vmatprep.subr.bf16.mxu1 %v18568_v17 }
 0x63c   :  { %14077 = vmatmul.mubr.f32.vlgmr.msra.gmra.mrb[116].mxu1 %v10610_v59 }
 0x63d   :  { %15785 = vmatpush3.bf16.msra.mxu1 %v18568_v17  ;;  %14079 = vmatprep.mubr.f32.mxu1 %v10613_v27 }
 0x63e   :  { %15787 = vmatprep.subr.bf16.mxu1 %v18582_v57 }
 0x641   :  { %15789 = vmatpush3.bf16.msra.mxu1 %v18582_v57 }
 0x642   :  { %15791 = vmatprep.subr.bf16.mxu1 %v18596_v37 }
 0x645   :  { %15793 = vmatpush3.bf16.msra.mxu1 %v18596_v37 }
 0x646   :  { %15795 = vmatprep.subr.bf16.mxu1 %v18610_v51 }
 0x649   :  { %15797 = vmatpush3.bf16.msra.mxu1 %v18610_v51 }
 0x64a   :  { %15799 = vmatprep.subr.bf16.mxu1 %v18624_v38 }
 0x64d   :  { %15801 = vmatpush3.bf16.msra.mxu1 %v18624_v38 }
 0x64e   :  { %15803 = vmatprep.subr.bf16.mxu1 %v18638_v62 }
 0x651   :  { %15805 = vmatpush3.bf16.msra.mxu1 %v18638_v62 }
 0x652   :  { %15807 = vmatprep.subr.bf16.mxu1 %v18652_v2 }
 0x655   :  { %15809 = vmatpush3.bf16.msra.mxu1 %v18652_v2 }
 0x656   :  { %15811 = vmatprep.subr.bf16.mxu1 %v18666_v9 }
 0x659   :  { %15813 = vmatpush3.bf16.msra.mxu1 %v18666_v9 }
 0x685   :  { %v13214_v15 = vpop.f32.mrb[72].mxu0 }
 0x686   :  { %v4841_v1 = vpop.f32.mrb[73].mxu0 }
 0x687   :  { %13222 = vmatprep.mubr.msk.f32.mxu0 %vm4373_vm0, %v4841_v1  ;;  %v15382_v1 = vpack.c.bf16 %v10284_v20, %v10283_v52  ;;  %v10343_v52 = vld [vmem:[%s19564_s4 + $0x110] sm:$0xff]  ;;  %v10344_v20 = vld [vmem:[%s19564_s4 + $0x118] sm:$0xff] }
 0x688   :  { %13223 = vmatmul.mubr.msk.f32.vlgmr.msra.gmra.mrb[68].mxu0 %vm4373_vm0, %v13214_v15  ;;  %v10661_v15 = vld [vmem:[%s19563_s6 + $0xb8] sm:$0xff]  }
 0x689   :  { %v13217_v28 = vpop.f32.mrb[74].mxu0  ;;  %15133 = vmatpush3.bf16.msra.mxu0 %v19006_v21  ;;  %v6039_v21 = vpop.f32.mrb[87].mxu1 }
 0x68a   :  { %v4851_v5 = vpop.f32.mrb[75].mxu0  ;;  %15167 = vmatprep.subr.bf16.mxu0 %v15166_v29 }
 0x68b   :  { %13225 = vmatprep.mubr.msk.f32.mxu0 %vm4373_vm0, %v4851_v5  ;;  %v10534_v5 = vunpack.c.h.bf16 %v10661_v15 }
 0x68c   :  { %13226 = vmatmul.mubr.msk.f32.gmra.mrb[70].mxu0 %vm4373_vm0, %v13217_v28  ;;  %v10533_v28 = vunpack.c.l.bf16 %v10661_v15  ;;  %v15598_v15 = vpack.c.bf16 %v10344_v20, %v10343_v52  ;;  %v10683_v52 = vld [vmem:[%s19563_s6 + $0x168] sm:$0xff]  }
 0x68d   :  { %13270 = vmatprep.mubr.msk.f32.mxu0 %vm4373_vm0, %v18985_v48  ;;  %v10509_v48 = vunpack.c.l.bf16 %v10655_v46 }
 0x690   :  { %13271 = vmatmul.mubr.msk.f32.vlgmr.msra.gmra.mrb[68].mxu0 %vm4373_vm0, %v18983_v33  ;;  %v10506_v33 = vunpack.c.h.bf16 %v10654_v24  ;;  %v10313_v24 = vld [vmem:[%s19564_s4 + $0xe0] sm:$0xff] }
 0x691   :  { %15169 = vmatpush3.bf16.msra.mxu0 %v15166_v29  ;;  %13273 = vmatprep.mubr.msk.f32.mxu0 %vm4373_vm0, %v19015_v25 }
 0x692   :  { %15171 = vmatprep.subr.bf16.mxu0 %v18568_v17 }
 0x694   :  { %13274 = vmatmul.mubr.msk.f32.gmra.mrb[70].mxu0 %vm4373_vm0, %v19012_v41  ;;  %v13550_v41 = vpop.f32.mrb[88].mxu1 }
 0x695   :  { %13318 = vmatprep.mubr.msk.f32.mxu0 %vm4373_vm0, %v19020_v26  ;;  %v6227_v25 = vpop.f32.mrb[89].mxu1 }
 0x698   :  { %13319 = vmatmul.mubr.msk.f32.vlgmr.msra.gmra.mrb[68].mxu0 %vm4373_vm0, %v19017_v31  ;;  %v13553_v31 = vpop.f32.mrb[90].mxu1 }
 0x699   :  { %15173 = vmatpush3.bf16.msra.mxu0 %v18568_v17  ;;  %13321 = vmatprep.mubr.msk.f32.mxu0 %vm4373_vm0, %v5247_v18  ;;  %v6237_v26 = vpop.f32.mrb[91].mxu1  ;;  %v10660_v18 = vld [vmem:[%s19563_s6 + $0xb0] sm:$0xff]  }
 0x69a   :  { %15175 = vmatprep.subr.bf16.mxu0 %v18582_v57  ;;  %v10529_v59 = vunpack.c.l.bf16 %v10660_v18  ;;  %v10530_v29 = vunpack.c.h.bf16 %v10660_v18  ;;  %v13646_v56 = vpop.f32.mrb[92].mxu1 }
 0x69c   :  { %13322 = vmatmul.mubr.msk.f32.gmra.mrb[70].mxu0 %vm4373_vm0, %v13313_v0 }
 0x69d   :  { %15177 = vmatpush3.bf16.msra.mxu0 %v18582_v57  ;;  %13356 = vmatprep.mubr.f32.mxu0 %v10489_v42  ;;  %v6623_v42 = vpop.f32.mrb[93].mxu1 }
 0x69e   :  { %15179 = vmatprep.subr.bf16.mxu0 %v18596_v37 }
 0x6a1   :  { %15181 = vmatpush3.bf16.msra.mxu0 %v18596_v37 }
 0x6a2   :  { %15183 = vmatprep.subr.bf16.mxu0 %v18610_v51 }
 0x6a5   :  { %15185 = vmatpush3.bf16.msra.mxu0 %v18610_v51 }
 0x6a6   :  { %15187 = vmatprep.subr.bf16.mxu0 %v18624_v38 }
 0x6a9   :  { %15189 = vmatpush3.bf16.msra.mxu0 %v18624_v38 }
 0x6aa   :  { %15191 = vmatprep.subr.bf16.mxu0 %v18638_v62 }
 0x6ad   :  { %15193 = vmatpush3.bf16.msra.mxu0 %v18638_v62 }
 0x6ae   :  { %15195 = vmatprep.subr.bf16.mxu0 %v18652_v2 }
 0x6b1   :  { %15197 = vmatpush3.bf16.msra.mxu0 %v18652_v2 }
 0x6b2   :  { %15199 = vmatprep.subr.bf16.mxu0 %v18666_v9 }
 0x6b5   :  { %15201 = vmatpush3.bf16.msra.mxu0 %v18666_v9 }
 0x6b6   :  { %15203 = vmatprep.subr.bf16.mxu0 %v15202_v50 }
 0x6b8   :  { %13357 = vmatmul.mubr.f32.vlgmr.msra.gmra.mrb[76].mxu0 %v10490_v61 }
 0x6b9   :  { %13359 = vmatprep.mubr.f32.mxu0 %v10493_v12  ;;  %15205 = vmatpush3.bf16.msra.mxu0 %v15202_v50  ;;  %v13649_v50 = vpop.f32.mrb[94].mxu1 }
 0x6ba   :  { %15239 = vmatprep.subr.bf16.mxu0 %v15238_v22  ;;  %v6633_v61 = vpop.f32.mrb[95].mxu1 }
 0x6bb   :  { %v13694_v12 = vpop.f32.mrb[96].mxu1 }
 0x6bc   :  { %13360 = vmatmul.mubr.f32.gmra.mrb[78].mxu0 %v10494_v8  ;;  %v6821_v8 = vpop.f32.mrb[97].mxu1 }
 0x6bd   :  { %v13697_v34 = vpop.f32.mrb[98].mxu1 }
 0x6be   :  { %v6831_v47 = vpop.f32.mrb[99].mxu1 }
 0x78b   :  { %v13358_v30 = vpop.f32.mrb[76].mxu0 }
 0x78c   :  { %v5435_v16 = vpop.f32.mrb[77].mxu0 }
 0x78d   :  { %13366 = vmatprep.mubr.msk.f32.mxu0 %vm4373_vm0, %v5435_v16 }
 0x78e   :  { %13367 = vmatmul.mubr.msk.f32.vlgmr.msra.gmra.mrb[68].mxu0 %vm4373_vm0, %v13358_v30 }
 0x78f   :  { %15241 = vmatpush3.bf16.msra.mxu0 %v15238_v22  ;;  %v13361_v23 = vpop.f32.mrb[78].mxu0  ;;  %v10303_v22 = vld [vmem:[%s19564_s4 + $0xd0] sm:$0xff] }
 0x790   :  { %15243 = vmatprep.subr.bf16.mxu0 %v18568_v17  ;;  %v5445_v54 = vpop.f32.mrb[79].mxu0 }
 0x791   :  { %13369 = vmatprep.mubr.msk.f32.mxu0 %vm4373_vm0, %v5445_v54 }
 0x792   :  { %13370 = vmatmul.mubr.msk.f32.gmra.mrb[70].mxu0 %vm4373_vm0, %v13361_v23  ;;  %v10666_v23 = vld [vmem:[%s19563_s6 + $0xe0] sm:$0xff]  }
 0x793   :  { %13414 = vmatprep.mubr.msk.f32.mxu0 %vm4373_vm0, %v5633_v40  ;;  %v10553_v54 = vunpack.c.l.bf16 %v10666_v23  ;;  %v10554_v46 = vunpack.c.h.bf16 %v10666_v23 }
 0x796   :  { %13415 = vmatmul.mubr.msk.f32.vlgmr.msra.gmra.mrb[68].mxu0 %vm4373_vm0, %v13406_v19  ;;  %v10304_v19 = vld [vmem:[%s19564_s4 + $0xd8] sm:$0xff] }
 0x797   :  { %15245 = vmatpush3.bf16.msra.mxu0 %v18568_v17  ;;  %13417 = vmatprep.mubr.msk.f32.mxu0 %vm4373_vm0, %v5643_v45  ;;  %v15454_v45 = vpack.c.bf16 %v10304_v19, %v10303_v22  ;;  %v10676_v19 = vld [vmem:[%s19563_s6 + $0x130] sm:$0xff]  }
 0x798   :  { %15247 = vmatprep.subr.bf16.mxu0 %v18582_v57  ;;  %v10594_v23 = vunpack.c.h.bf16 %v10676_v19 }
 0x79a   :  { %13418 = vmatmul.mubr.msk.f32.gmra.mrb[70].mxu0 %vm4373_vm0, %v13409_v6 }
 0x79b   :  { %15249 = vmatpush3.bf16.msra.mxu0 %v18582_v57  ;;  %13452 = vmatprep.mubr.f32.mxu0 %v10505_v7  ;;  %v10314_v7 = vld [vmem:[%s19564_s4 + $0xe8] sm:$0xff] }
 0x79c   :  { %15251 = vmatprep.subr.bf16.mxu0 %v18596_v37  ;;  %v15490_v58 = vpack.c.bf16 %v10314_v7, %v10313_v24 }
 0x79f   :  { %15253 = vmatpush3.bf16.msra.mxu0 %v18596_v37 }
 0x7a0   :  { %15255 = vmatprep.subr.bf16.mxu0 %v18610_v51 }
 0x7a3   :  { %15257 = vmatpush3.bf16.msra.mxu0 %v18610_v51 }
 0x7a4   :  { %15259 = vmatprep.subr.bf16.mxu0 %v18624_v38 }
 0x7a7   :  { %15261 = vmatpush3.bf16.msra.mxu0 %v18624_v38 }
 0x7a8   :  { %15263 = vmatprep.subr.bf16.mxu0 %v18638_v62 }
 0x7ab   :  { %15265 = vmatpush3.bf16.msra.mxu0 %v18638_v62 }
 0x7ac   :  { %15267 = vmatprep.subr.bf16.mxu0 %v18652_v2 }
 0x7af   :  { %15269 = vmatpush3.bf16.msra.mxu0 %v18652_v2 }
 0x7b0   :  { %15271 = vmatprep.subr.bf16.mxu0 %v18666_v9 }
 0x7b3   :  { %15273 = vmatpush3.bf16.msra.mxu0 %v18666_v9 }
 0x7b4   :  { %15275 = vmatprep.subr.bf16.mxu0 %v15274_v39 }
 0x7b6   :  { %13453 = vmatmul.mubr.f32.vlgmr.msra.gmra.mrb[80].mxu0 %v10506_v33  ;;  %v10558_v33 = vunpack.c.h.bf16 %v10667_v49 }
 0x7b7   :  { %13455 = vmatprep.mubr.f32.mxu0 %v10509_v48  ;;  %15277 = vmatpush3.bf16.msra.mxu0 %v15274_v39  ;;  %v10557_v39 = vunpack.c.l.bf16 %v10667_v49  ;;  %v10323_v48 = vld [vmem:[%s19564_s4 + $0xf0] sm:$0xff] }
 0x7b8   :  { %15311 = vmatprep.subr.bf16.mxu0 %v15310_v60 }
 0x7ba   :  { %13456 = vmatmul.mubr.f32.gmra.mrb[82].mxu0 %v10510_v35  ;;  %v10324_v35 = vld [vmem:[%s19564_s4 + $0xf8] sm:$0xff] }
 0x889   :  { %v13454_v44 = vpop.f32.mrb[80].mxu0 }
 0x88a   :  { %v5831_v4 = vpop.f32.mrb[81].mxu0 }
 0x88b   :  { %13462 = vmatprep.mubr.msk.f32.mxu0 %vm4373_vm0, %v5831_v4  ;;  %v15562_v4 = vpack.c.bf16 %v10334_v43, %v10333_v13 }
 0x88c   :  { %13463 = vmatmul.mubr.msk.f32.vlgmr.msra.gmra.mrb[68].mxu0 %vm4373_vm0, %v13454_v44  ;;  %v10671_v44 = vld [vmem:[%s19563_s6 + $0x108] sm:$0xff]  }
 0x88d   :  { %v13457_v55 = vpop.f32.mrb[82].mxu0  ;;  %15313 = vmatpush3.bf16.msra.mxu0 %v15310_v60 }
 0x88e   :  { %v5841_v0 = vpop.f32.mrb[83].mxu0  ;;  %15347 = vmatprep.subr.bf16.mxu0 %v15346_v10 }
 0x88f   :  { %13465 = vmatprep.mubr.msk.f32.mxu0 %vm4373_vm0, %v5841_v0  ;;  %v10574_v0 = vunpack.c.h.bf16 %v10671_v44 }
 0x890   :  { %13466 = vmatmul.mubr.msk.f32.gmra.mrb[70].mxu0 %vm4373_vm0, %v13457_v55  ;;  %v10573_v55 = vunpack.c.l.bf16 %v10671_v44 }
 0x891   :  { %13510 = vmatprep.mubr.msk.f32.mxu0 %vm4373_vm0, %v6029_v63  ;;  %v13790_v63 = vpop.f32.mrb[100].mxu1 }
 0x892   :  { %v7217_v36 = vpop.f32.mrb[101].mxu1 }
 0x893   :  { %v13793_v3 = vpop.f32.mrb[102].mxu1 }
 0x894   :  { %13511 = vmatmul.mubr.msk.f32.vlgmr.msra.gmra.mrb[68].mxu0 %vm4373_vm0, %v13502_v32  ;;  %v15526_v32 = vpack.c.bf16 %v10324_v35, %v10323_v48  ;;  %v7227_v60 = vpop.f32.mrb[103].mxu1 }
 0x895   :  { %15349 = vmatpush3.bf16.msra.mxu0 %v15346_v10  ;;  %13513 = vmatprep.mubr.msk.f32.mxu0 %vm4373_vm0, %v6039_v21  ;;  %v13886_v18 = vpop.f32.mrb[104].mxu1 }
 0x896   :  { %15351 = vmatprep.subr.bf16.mxu0 %v18568_v17 }
 0x898   :  { %13514 = vmatmul.mubr.msk.f32.gmra.mrb[70].mxu0 %vm4373_vm0, %v13505_v14 }
 0x899   :  { %13558 = vmatprep.mubr.msk.f32.mxu0 %vm4373_vm0, %v6227_v25 }
 0x89c   :  { %13559 = vmatmul.mubr.msk.f32.vlgmr.msra.gmra.mrb[68].mxu0 %vm4373_vm0, %v13550_v41 }
 0x89d   :  { %15353 = vmatpush3.bf16.msra.mxu0 %v18568_v17  ;;  %13561 = vmatprep.mubr.msk.f32.mxu0 %vm4373_vm0, %v6237_v26 }
 0x89e   :  { %15355 = vmatprep.subr.bf16.mxu0 %v18582_v57 }
 0x8a0   :  { %13562 = vmatmul.mubr.msk.f32.gmra.mrb[70].mxu0 %vm4373_vm0, %v13553_v31  ;;  %v10670_v31 = vld [vmem:[%s19563_s6 + $0x100] sm:$0xff]  }
 0x8a1   :  { %15357 = vmatpush3.bf16.msra.mxu0 %v18582_v57  ;;  %13596 = vmatprep.mubr.f32.mxu0 %v10529_v59  ;;  %v10569_v26 = vunpack.c.l.bf16 %v10670_v31  ;;  %v10570_v10 = vunpack.c.h.bf16 %v10670_v31  ;;  %v7613_v59 = vpop.f32.mrb[105].mxu1  ;;  %v10383_v31 = vld [vmem:[%s19564_s4 + $0x150] sm:$0xff] }
 0x8a2   :  { %15359 = vmatprep.subr.bf16.mxu0 %v18596_v37 }
 0x8a5   :  { %15361 = vmatpush3.bf16.msra.mxu0 %v18596_v37 }
 0x8a6   :  { %15363 = vmatprep.subr.bf16.mxu0 %v18610_v51 }
 0x8a9   :  { %15365 = vmatpush3.bf16.msra.mxu0 %v18610_v51 }
 0x8aa   :  { %15367 = vmatprep.subr.bf16.mxu0 %v18624_v38 }
 0x8ad   :  { %15369 = vmatpush3.bf16.msra.mxu0 %v18624_v38 }
 0x8ae   :  { %15371 = vmatprep.subr.bf16.mxu0 %v18638_v62 }
 0x8b1   :  { %15373 = vmatpush3.bf16.msra.mxu0 %v18638_v62 }
 0x8b2   :  { %15375 = vmatprep.subr.bf16.mxu0 %v18652_v2 }
 0x8b5   :  { %15377 = vmatpush3.bf16.msra.mxu0 %v18652_v2 }
 0x8b6   :  { %15379 = vmatprep.subr.bf16.mxu0 %v18666_v9 }
 0x8b9   :  { %15381 = vmatpush3.bf16.msra.mxu0 %v18666_v9 }
 0x8ba   :  { %15383 = vmatprep.subr.bf16.mxu0 %v15382_v1 }
 0x8bc   :  { %13597 = vmatmul.mubr.f32.vlgmr.msra.gmra.mrb[84].mxu0 %v10530_v29 }
 0x8bd   :  { %13599 = vmatprep.mubr.f32.mxu0 %v10533_v28  ;;  %15385 = vmatpush3.bf16.msra.mxu0 %v15382_v1  ;;  %v13889_v1 = vpop.f32.mrb[106].mxu1 }
 0x8be   :  { %15419 = vmatprep.subr.bf16.mxu0 %v15418_v11  ;;  %v7623_v29 = vpop.f32.mrb[107].mxu1 }
 0x8bf   :  { %v13934_v28 = vpop.f32.mrb[108].mxu1 }
 0x8c0   :  { %13600 = vmatmul.mubr.f32.gmra.mrb[86].mxu0 %v10534_v5  ;;  %v7811_v5 = vpop.f32.mrb[109].mxu1 }
 0x98f   :  { %v13598_v40 = vpop.f32.mrb[84].mxu0 }
 0x990   :  { %v6425_v6 = vpop.f32.mrb[85].mxu0 }
 0x991   :  { %13606 = vmatprep.mubr.msk.f32.mxu0 %vm4373_vm0, %v6425_v6  ;;  %v10363_v6 = vld [vmem:[%s19564_s4 + $0x130] sm:$0xff] }
 0x992   :  { %13607 = vmatmul.mubr.msk.f32.vlgmr.msra.gmra.mrb[68].mxu0 %vm4373_vm0, %v13598_v40  ;;  %v10593_v40 = vunpack.c.l.bf16 %v10676_v19 }
 0x993   :  { %v13601_v30 = vpop.f32.mrb[86].mxu0  ;;  %15421 = vmatpush3.bf16.msra.mxu0 %v15418_v11  ;;  %v10614_v11 = vunpack.c.h.bf16 %v10681_v53 }
 0x994   :  { %v6435_v16 = vpop.f32.mrb[87].mxu0  ;;  %15455 = vmatprep.subr.bf16.mxu0 %v15454_v45 }
 0x995   :  { %13609 = vmatprep.mubr.msk.f32.mxu0 %vm4373_vm0, %v6435_v16  ;;  %14080 = vmatmul.mubr.f32.gmra.mrb[118].mxu1 %v10614_v11 }
 0x996   :  { %13610 = vmatmul.mubr.msk.f32.gmra.mrb[70].mxu0 %vm4373_vm0, %v13601_v30  ;;  %v10677_v30 = vld [vmem:[%s19563_s6 + $0x138] sm:$0xff]  }
 0x997   :  { %13654 = vmatprep.mubr.msk.f32.mxu0 %vm4373_vm0, %v6623_v42  ;;  %v10598_v24 = vunpack.c.h.bf16 %v10677_v30 }
 0x99a   :  { %13655 = vmatmul.mubr.msk.f32.vlgmr.msra.gmra.mrb[68].mxu0 %vm4373_vm0, %v13646_v56  ;;  %v13937_v56 = vpop.f32.mrb[110].mxu1 }
 0x99b   :  { %15457 = vmatpush3.bf16.msra.mxu0 %v15454_v45  ;;  %13657 = vmatprep.mubr.msk.f32.mxu0 %vm4373_vm0, %v6633_v61  ;;  %v7821_v42 = vpop.f32.mrb[111].mxu1  ;;  %v10354_v61 = vld [vmem:[%s19564_s4 + $0x128] sm:$0xff]  ;;  %v10364_v45 = vld [vmem:[%s19564_s4 + $0x138] sm:$0xff] }
 0x99c   :  { %15459 = vmatprep.subr.bf16.mxu0 %v18568_v17  ;;  %v15670_v16 = vpack.c.bf16 %v10364_v45, %v10363_v6  ;;  %v14030_v7 = vpop.f32.mrb[112].mxu1  ;;  %v16015_v45 = vmov 0.0  }
 0x99d   :  { %v8207_v49 = vpop.f32.mrb[113].mxu1 }
 0x99e   :  { %13658 = vmatmul.mubr.msk.f32.gmra.mrb[70].mxu0 %vm4373_vm0, %v13649_v50  ;;  %v10353_v50 = vld [vmem:[%s19564_s4 + $0x120] sm:$0xff] }
 0x99f   :  { %13702 = vmatprep.mubr.msk.f32.mxu0 %vm4373_vm0, %v6821_v8 }
 0x9a2   :  { %13703 = vmatmul.mubr.msk.f32.vlgmr.msra.gmra.mrb[68].mxu0 %vm4373_vm0, %v13694_v12 }
 0x9a3   :  { %15461 = vmatpush3.bf16.msra.mxu0 %v18568_v17  ;;  %13705 = vmatprep.mubr.msk.f32.mxu0 %vm4373_vm0, %v6831_v47 }
 0x9a4   :  { %15463 = vmatprep.subr.bf16.mxu0 %v18582_v57 }
 0x9a6   :  { %13706 = vmatmul.mubr.msk.f32.gmra.mrb[70].mxu0 %vm4373_vm0, %v13697_v34  ;;  %v15634_v34 = vpack.c.bf16 %v10354_v61, %v10353_v50 }
 0x9a7   :  { %15465 = vmatpush3.bf16.msra.mxu0 %v18582_v57  ;;  %13740 = vmatprep.mubr.f32.mxu0 %v10553_v54  ;;  %v10597_v54 = vunpack.c.l.bf16 %v10677_v30  ;;  %v10419_v30 = vld [vmem:[%s19565_s5] ss:$0 sm:$0xff] }
 0x9a8   :  { %15467 = vmatprep.subr.bf16.mxu0 %v18596_v37 }
 0x9ab   :  { %15469 = vmatpush3.bf16.msra.mxu0 %v18596_v37 }
 0x9ac   :  { %15471 = vmatprep.subr.bf16.mxu0 %v18610_v51 }
 0x9af   :  { %15473 = vmatpush3.bf16.msra.mxu0 %v18610_v51 }
 0x9b0   :  { %15475 = vmatprep.subr.bf16.mxu0 %v18624_v38 }
 0x9b3   :  { %15477 = vmatpush3.bf16.msra.mxu0 %v18624_v38 }
 0x9b4   :  { %15479 = vmatprep.subr.bf16.mxu0 %v18638_v62 }
 0x9b7   :  { %15481 = vmatpush3.bf16.msra.mxu0 %v18638_v62 }
 0x9b8   :  { %15483 = vmatprep.subr.bf16.mxu0 %v18652_v2 }
 0x9bb   :  { %15485 = vmatpush3.bf16.msra.mxu0 %v18652_v2 }
 0x9bc   :  { %15487 = vmatprep.subr.bf16.mxu0 %v18666_v9 }
 0x9bf   :  { %15489 = vmatpush3.bf16.msra.mxu0 %v18666_v9 }
 0x9c0   :  { %15491 = vmatprep.subr.bf16.mxu0 %v15490_v58 }
 0x9c2   :  { %13741 = vmatmul.mubr.f32.vlgmr.msra.gmra.mrb[88].mxu0 %v10554_v46  ;;  %v10374_v46 = vld [vmem:[%s19564_s4 + $0x148] sm:$0xff] }
 0x9c3   :  { %13743 = vmatprep.mubr.f32.mxu0 %v10557_v39  ;;  %15493 = vmatpush3.bf16.msra.mxu0 %v15490_v58  ;;  %v10373_v58 = vld [vmem:[%s19564_s4 + $0x140] sm:$0xff] }
 0x9c4   :  { %15527 = vmatprep.subr.bf16.mxu0 %v15526_v32  ;;  %v15706_v39 = vpack.c.bf16 %v10374_v46, %v10373_v58 }
 0x9c6   :  { %13744 = vmatmul.mubr.f32.gmra.mrb[90].mxu0 %v10558_v33  ;;  %v14033_v33 = vpop.f32.mrb[114].mxu1 }
 0x9c7   :  { %v8217_v48 = vpop.f32.mrb[115].mxu1 }
 0x9c8   :  { %v14078_v35 = vpop.f32.mrb[116].mxu1 }
 0xa95   :  { %v13742_v14 = vpop.f32.mrb[88].mxu0 }
 0xa96   :  { %v7019_v21 = vpop.f32.mrb[89].mxu0 }
 0xa97   :  { %13750 = vmatprep.mubr.msk.f32.mxu0 %vm4373_vm0, %v7019_v21  ;;  %v10685_v21 = vld [vmem:[%s19563_s6 + $0x178] sm:$0xff]  }
 0xa98   :  { %13751 = vmatmul.mubr.msk.f32.vlgmr.msra.gmra.mrb[68].mxu0 %vm4373_vm0, %v13742_v14 }
 0xa99   :  { %15529 = vmatpush3.bf16.msra.mxu0 %v15526_v32  ;;  %v13745_v41 = vpop.f32.mrb[90].mxu0  ;;  %v8405_v32 = vpop.f32.mrb[117].mxu1 }
 0xa9a   :  { %15531 = vmatprep.subr.bf16.mxu0 %v18568_v17  ;;  %v7029_v25 = vpop.f32.mrb[91].mxu0 }
 0xa9b   :  { %13753 = vmatprep.mubr.msk.f32.mxu0 %vm4373_vm0, %v7029_v25  ;;  %v10630_v25 = vunpack.c.h.bf16 %v10685_v21 }
 0xa9c   :  { %13754 = vmatmul.mubr.msk.f32.gmra.mrb[70].mxu0 %vm4373_vm0, %v13745_v41  ;;  %v10629_v41 = vunpack.c.l.bf16 %v10685_v21  ;;  %v10433_v21 = vld [vmem:[%s19566_s7 + $0x1c] sm:$0xff]  }
 0xa9d   :  { %13798 = vmatprep.mubr.msk.f32.mxu0 %vm4373_vm0, %v7217_v36 }
 0xaa0   :  { %13799 = vmatmul.mubr.msk.f32.vlgmr.msra.gmra.mrb[68].mxu0 %vm4373_vm0, %v13790_v63  ;;  %v14081_v63 = vpop.f32.mrb[118].mxu1 }
 0xaa1   :  { %15533 = vmatpush3.bf16.msra.mxu0 %v18568_v17  ;;  %13801 = vmatprep.mubr.msk.f32.mxu0 %vm4373_vm0, %v7227_v60  ;;  %v8415_v36 = vpop.f32.mrb[119].mxu1 }
 0xaa2   :  { %15535 = vmatprep.subr.bf16.mxu0 %v18582_v57 }
 0xaa4   :  { %13802 = vmatmul.mubr.msk.f32.gmra.mrb[70].mxu0 %vm4373_vm0, %v13793_v3  ;;  %v10684_v3 = vld [vmem:[%s19563_s6 + $0x170] sm:$0xff]  }
 0xaa5   :  { %15537 = vmatpush3.bf16.msra.mxu0 %v18582_v57  ;;  %13836 = vmatprep.mubr.f32.mxu0 %v10569_v26  ;;  %v10625_v60 = vunpack.c.l.bf16 %v10684_v3  ;;  %v10626_v14 = vunpack.c.h.bf16 %v10684_v3  ;;  %v10384_v26 = vld [vmem:[%s19564_s4 + $0x158] sm:$0xff] }
 0xaa6   :  { %15539 = vmatprep.subr.bf16.mxu0 %v18596_v37  ;;  %v15742_v44 = vpack.c.bf16 %v10384_v26, %v10383_v31  ;;  %v10423_v31 = vld [vmem:[%s19566_s7 + $0x8] sm:$0xff]  }
 0xaa7   :  { %14172 = vmatprep.mubr.f32.mxu1 %v10625_v60  ;;  %v9292_v26 = vunpack.c.l.bf16 %v10423_v31 }
 0xaa8   :  { %14173 = vmatmul.mubr.f32.vlgmr.msra.gmra.mrb[120].mxu1 %v10626_v14 }
 0xaa9   :  { %15541 = vmatpush3.bf16.msra.mxu0 %v18596_v37  ;;  %14175 = vmatprep.mubr.f32.mxu1 %v10629_v41 }
 0xaaa   :  { %15543 = vmatprep.subr.bf16.mxu0 %v18610_v51 }
 0xaac   :  { %14176 = vmatmul.mubr.f32.gmra.mrb[122].mxu1 %v10630_v25  ;;  %v9677_v25 = vunpack.c.l.bf16 %v10433_v21 }
 0xaad   :  { %15545 = vmatpush3.bf16.msra.mxu0 %v18610_v51  ;;  %14244 = vmatprep.mubr.msk.f32.mxu1 %vm16014_vm1, %v16015_v45 }
 0xaae   :  { %15547 = vmatprep.subr.bf16.mxu0 %v18624_v38 }
 0xab1   :  { %15549 = vmatpush3.bf16.msra.mxu0 %v18624_v38 }
 0xab2   :  { %15551 = vmatprep.subr.bf16.mxu0 %v18638_v62 }
 0xab5   :  { %15553 = vmatpush3.bf16.msra.mxu0 %v18638_v62 }
 0xab6   :  { %15555 = vmatprep.subr.bf16.mxu0 %v18652_v2 }
 0xab9   :  { %15557 = vmatpush3.bf16.msra.mxu0 %v18652_v2 }
 0xaba   :  { %15559 = vmatprep.subr.bf16.mxu0 %v18666_v9 }
 0xabd   :  { %15561 = vmatpush3.bf16.msra.mxu0 %v18666_v9 }
 0xabe   :  { %15563 = vmatprep.subr.bf16.mxu0 %v15562_v4 }
 0xac0   :  { %13837 = vmatmul.mubr.f32.vlgmr.msra.gmra.mrb[92].mxu0 %v10570_v10 }
 0xac1   :  { %13839 = vmatprep.mubr.f32.mxu0 %v10573_v55  ;;  %15565 = vmatpush3.bf16.msra.mxu0 %v15562_v4  ;;  %v10682_v55 = vld [vmem:[%s19563_s6 + $0x160] sm:$0xff]  }
 0xac2   :  { %15599 = vmatprep.subr.bf16.mxu0 %v15598_v15 }
 0xac4   :  { %13840 = vmatmul.mubr.f32.gmra.mrb[94].mxu0 %v10574_v0  ;;  %v10617_v0 = vunpack.c.l.bf16 %v10682_v55 }
 0xb93   :  { %v13838_v12 = vpop.f32.mrb[92].mxu0 }
 0xb94   :  { %v7415_v8 = vpop.f32.mrb[93].mxu0 }
 0xb95   :  { %13846 = vmatprep.mubr.msk.f32.mxu0 %vm4373_vm0, %v7415_v8 }
 0xb96   :  { %13847 = vmatmul.mubr.msk.f32.vlgmr.msra.gmra.mrb[68].mxu0 %vm4373_vm0, %v13838_v12 }
 0xb97   :  { %v13841_v47 = vpop.f32.mrb[94].mxu0  ;;  %15601 = vmatpush3.bf16.msra.mxu0 %v15598_v15  ;;  %v10618_v15 = vunpack.c.h.bf16 %v10682_v55  ;;  %v9829_v55 = vld [vmem:[%s19567_s8] sm:$0xff] }
 0xb98   :  { %v7425_v22 = vpop.f32.mrb[95].mxu0  ;;  %15635 = vmatprep.subr.bf16.mxu0 %v15634_v34 }
 0xb99   :  { %13849 = vmatprep.mubr.msk.f32.mxu0 %vm4373_vm0, %v7425_v22 }
 0xb9a   :  { %13850 = vmatmul.mubr.msk.f32.gmra.mrb[70].mxu0 %vm4373_vm0, %v13841_v47 }
 0xb9b   :  { %13894 = vmatprep.mubr.msk.f32.mxu0 %vm4373_vm0, %v7613_v59  ;;  %v10394_v59 = vld [vmem:[%s19564_s4 + $0x168] sm:$0xff] }
 0xb9e   :  { %13895 = vmatmul.mubr.msk.f32.vlgmr.msra.gmra.mrb[68].mxu0 %vm4373_vm0, %v13886_v18  ;;  %v10393_v18 = vld [vmem:[%s19564_s4 + $0x160] sm:$0xff] }
 0xb9f   :  { %15637 = vmatpush3.bf16.msra.mxu0 %v15634_v34  ;;  %13897 = vmatprep.mubr.msk.f32.mxu0 %vm4373_vm0, %v7623_v29  ;;  %v15778_v20 = vpack.c.bf16 %v10394_v59, %v10393_v18  ;;  %v10622_v29 = vunpack.c.h.bf16 %v10683_v52  ;;  %v10686_v34 = vld [vmem:[%s19563_s6 + $0x180] sm:$0xff]   ;;  %v9831_v59 = vld [vmem:[%s19567_s8 + $0x10] sm:$0xff] }
 0xba0   :  { %15639 = vmatprep.subr.bf16.mxu0 %v18568_v17  ;;  %v10633_v47 = vunpack.c.l.bf16 %v10686_v34 }
 0xba2   :  { %13898 = vmatmul.mubr.msk.f32.gmra.mrb[70].mxu0 %vm4373_vm0, %v13889_v1  ;;  %v10621_v1 = vunpack.c.l.bf16 %v10683_v52  ;;  %v9832_v52 = vld [vmem:[%s19567_s8 + $0x18] sm:$0xff] }
 0xba3   :  { %13942 = vmatprep.mubr.msk.f32.mxu0 %vm4373_vm0, %v7811_v5  ;;  %v10404_v5 = vld [vmem:[%s19564_s4 + $0x178] sm:$0xff] }
 0xba6   :  { %13943 = vmatmul.mubr.msk.f32.vlgmr.msra.gmra.mrb[68].mxu0 %vm4373_vm0, %v13934_v28  ;;  %v10403_v28 = vld [vmem:[%s19564_s4 + $0x170] sm:$0xff] }
 0xba7   :  { %15641 = vmatpush3.bf16.msra.mxu0 %v18568_v17  ;;  %13945 = vmatprep.mubr.msk.f32.mxu0 %vm4373_vm0, %v7821_v42  ;;  %v14174_v42 = vpop.f32.mrb[120].mxu1 }
 0xba8   :  { %15643 = vmatprep.subr.bf16.mxu0 %v18582_v57  ;;  %v8801_v53 = vpop.f32.mrb[121].mxu1 }
 0xba9   :  { %v14177_v27 = vpop.f32.mrb[122].mxu1 }
 0xbaa   :  { %13946 = vmatmul.mubr.msk.f32.gmra.mrb[70].mxu0 %vm4373_vm0, %v13937_v56  ;;  %v15814_v56 = vpack.c.bf16 %v10404_v5, %v10403_v28  ;;  %v8811_v11 = vpop.f32.mrb[123].mxu1 }
 0xbab   :  { %15645 = vmatpush3.bf16.msra.mxu0 %v18582_v57  ;;  %13980 = vmatprep.mubr.f32.mxu0 %v10593_v40 }
 0xbac   :  { %15647 = vmatprep.subr.bf16.mxu0 %v18596_v37 }
 0xbaf   :  { %15649 = vmatpush3.bf16.msra.mxu0 %v18596_v37 }
 0xbb0   :  { %15651 = vmatprep.subr.bf16.mxu0 %v18610_v51 }
 0xbb3   :  { %15653 = vmatpush3.bf16.msra.mxu0 %v18610_v51 }
 0xbb4   :  { %15655 = vmatprep.subr.bf16.mxu0 %v18624_v38 }
 0xbb7   :  { %15657 = vmatpush3.bf16.msra.mxu0 %v18624_v38 }
 0xbb8   :  { %15659 = vmatprep.subr.bf16.mxu0 %v18638_v62 }
 0xbbb   :  { %15661 = vmatpush3.bf16.msra.mxu0 %v18638_v62 }
 0xbbc   :  { %15663 = vmatprep.subr.bf16.mxu0 %v18652_v2 }
 0xbbf   :  { %15665 = vmatpush3.bf16.msra.mxu0 %v18652_v2 }
 0xbc0   :  { %15667 = vmatprep.subr.bf16.mxu0 %v18666_v9 }
 0xbc3   :  { %15669 = vmatpush3.bf16.msra.mxu0 %v18666_v9 }
 0xbc4   :  { %15671 = vmatprep.subr.bf16.mxu0 %v15670_v16 }
 0xbc6   :  { %13981 = vmatmul.mubr.f32.vlgmr.msra.gmra.mrb[96].mxu0 %v10594_v23 }
 0xbc7   :  { %13983 = vmatprep.mubr.f32.mxu0 %v10597_v54  ;;  %15673 = vmatpush3.bf16.msra.mxu0 %v15670_v16 }
 0xbc8   :  { %15707 = vmatprep.subr.bf16.mxu0 %v15706_v39 }
 0xbca   :  { %13984 = vmatmul.mubr.f32.gmra.mrb[98].mxu0 %v10598_v24 }
 0xc99   :  { %v13982_v13 = vpop.f32.mrb[96].mxu0 }
 0xc9a   :  { %v8009_v43 = vpop.f32.mrb[97].mxu0 }
 0xc9b   :  { %13990 = vmatprep.mubr.msk.f32.mxu0 %vm4373_vm0, %v8009_v43  ;;  %v10427_v43 = vld [vmem:[%s19566_s7 + $0x10] sm:$0xf] }
 0xc9c   :  { %13991 = vmatmul.mubr.msk.f32.vlgmr.msra.gmra.mrb[68].mxu0 %vm4373_vm0, %v13982_v13  ;;  %v9369_v13 = vunpack.c.h.bf16 %v10423_v31 }
 0xc9d   :  { %v13985_v4 = vpop.f32.mrb[98].mxu0  ;;  %15709 = vmatpush3.bf16.msra.mxu0 %v15706_v39 }
 0xc9e   :  { %v8019_v10 = vpop.f32.mrb[99].mxu0  ;;  %15743 = vmatprep.subr.bf16.mxu0 %v15742_v44 }
 0xc9f   :  { %13993 = vmatprep.mubr.msk.f32.mxu0 %vm4373_vm0, %v8019_v10  ;;  %v9754_v10 = vunpack.c.h.bf16 %v10433_v21 }
 0xca0   :  { %13994 = vmatmul.mubr.msk.f32.gmra.mrb[70].mxu0 %vm4373_vm0, %v13985_v4 }
 0xca1   :  { %14038 = vmatprep.mubr.msk.f32.mxu0 %vm4373_vm0, %v8207_v49 }
 0xca4   :  { %14039 = vmatmul.mubr.msk.f32.vlgmr.msra.gmra.mrb[68].mxu0 %vm4373_vm0, %v14030_v7 }
 0xca5   :  { %15745 = vmatpush3.bf16.msra.mxu0 %v15742_v44  ;;  %14041 = vmatprep.mubr.msk.f32.mxu0 %vm4373_vm0, %v8217_v48  ;;  %v9446_v44 = vunpack.c.l.bf16 %v10427_v43 }
 0xca6   :  { %15747 = vmatprep.subr.bf16.mxu0 %v18568_v17 }
 0xca8   :  { %14042 = vmatmul.mubr.msk.f32.gmra.mrb[70].mxu0 %vm4373_vm0, %v14033_v33 }
 0xca9   :  { %14086 = vmatprep.mubr.msk.f32.mxu0 %vm4373_vm0, %v8405_v32 }
 0xcac   :  { %14087 = vmatmul.mubr.msk.f32.vlgmr.msra.gmra.mrb[68].mxu0 %vm4373_vm0, %v14078_v35 }
 0xcad   :  { %15749 = vmatpush3.bf16.msra.mxu0 %v18568_v17  ;;  %14089 = vmatprep.mubr.msk.f32.mxu0 %vm4373_vm0, %v8415_v36  ;;  %v10429_v36 = vld [vmem:[%s19566_s7 + $0x14] sm:$0xff]  }
 0xcae   :  { %15751 = vmatprep.subr.bf16.mxu0 %v18582_v57  ;;  %v9523_v14 = vunpack.c.l.bf16 %v10429_v36  ;;  %v9600_v4 = vunpack.c.h.bf16 %v10429_v36 }
 0xcb0   :  { %14090 = vmatmul.mubr.msk.f32.gmra.mrb[70].mxu0 %vm4373_vm0, %v14081_v63  ;;  %v9137_v63 = vld [vmem:[%s19566_s7] sm:$0xff]  }
 0xcb1   :  { %15753 = vmatpush3.bf16.msra.mxu0 %v18582_v57  ;;  %14124 = vmatprep.mubr.f32.mxu0 %v10617_v0  ;;  %v9138_v60 = vunpack.c.l.bf16 %v9137_v63  ;;  %v9215_v41 = vunpack.c.h.bf16 %v9137_v63  ;;  %v9830_v0 = vld [vmem:[%s19567_s8 + $0x8] sm:$0xff] }
 0xcb2   :  { %15755 = vmatprep.subr.bf16.mxu0 %v18596_v37  ;;  %v15909_v18 = vpack.c.bf16 %v9830_v0, %v9829_v55 }
 0xcb5   :  { %15757 = vmatpush3.bf16.msra.mxu0 %v18596_v37 }
 0xcb6   :  { %15759 = vmatprep.subr.bf16.mxu0 %v18610_v51 }
 0xcb9   :  { %15761 = vmatpush3.bf16.msra.mxu0 %v18610_v51 }
 0xcba   :  { %15763 = vmatprep.subr.bf16.mxu0 %v18624_v38 }
 0xcbd   :  { %15765 = vmatpush3.bf16.msra.mxu0 %v18624_v38 }
 0xcbe   :  { %15767 = vmatprep.subr.bf16.mxu0 %v18638_v62 }
 0xcc1   :  { %15769 = vmatpush3.bf16.msra.mxu0 %v18638_v62 }
 0xcc2   :  { %15771 = vmatprep.subr.bf16.mxu0 %v18652_v2 }
 0xcc5   :  { %15773 = vmatpush3.bf16.msra.mxu0 %v18652_v2 }
 0xcc6   :  { %15775 = vmatprep.subr.bf16.mxu0 %v18666_v9 }
 0xcc9   :  { %15777 = vmatpush3.bf16.msra.mxu0 %v18666_v9 }
 0xcca   :  { %15779 = vmatprep.subr.bf16.mxu0 %v15778_v20 }
 0xccc   :  { %14125 = vmatmul.mubr.f32.vlgmr.msra.gmra.mrb[100].mxu0 %v10618_v15 }
 0xccd   :  { %14127 = vmatprep.mubr.f32.mxu0 %v10621_v1  ;;  %15781 = vmatpush3.bf16.msra.mxu0 %v15778_v20  ;;  %v15912_v20 = vpack.c.bf16 %v9832_v52, %v9831_v59 }
 0xcce   :  { %15815 = vmatprep.subr.bf16.mxu0 %v15814_v56 }
 0xcd0   :  { %14128 = vmatmul.mubr.f32.gmra.mrb[102].mxu0 %v10622_v29 }
 0xd9f   :  { %v14126_v50 = vpop.f32.mrb[100].mxu0 }
 0xda0   :  { %v8603_v61 = vpop.f32.mrb[101].mxu0 }
 0xda1   :  { %14134 = vmatprep.mubr.msk.f32.mxu0 %vm4373_vm0, %v8603_v61 }
 0xda2   :  { %14135 = vmatmul.mubr.msk.f32.vlgmr.msra.gmra.mrb[68].mxu0 %vm4373_vm0, %v14126_v50 }
 0xda3   :  { %15817 = vmatpush3.bf16.msra.mxu0 %v15814_v56  ;;  %v14129_v12 = vpop.f32.mrb[102].mxu0 }
 0xda4   :  { %15819 = vmatprep.subr.bf16.mxu0 %v18568_v17  ;;  %v8613_v8 = vpop.f32.mrb[103].mxu0 }
 0xda5   :  { %14137 = vmatprep.mubr.msk.f32.mxu0 %vm4373_vm0, %v8613_v8 }
 0xda6   :  { %14138 = vmatmul.mubr.msk.f32.gmra.mrb[70].mxu0 %vm4373_vm0, %v14129_v12 }
 0xda7   :  { %14182 = vmatprep.mubr.msk.f32.mxu0 %vm4373_vm0, %v8801_v53 }
 0xdaa   :  { %14183 = vmatmul.mubr.msk.f32.vlgmr.msra.gmra.mrb[68].mxu0 %vm4373_vm0, %v14174_v42 }
 0xdab   :  { %15821 = vmatpush3.bf16.msra.mxu0 %v18568_v17  ;;  %14185 = vmatprep.mubr.msk.f32.mxu0 %vm4373_vm0, %v8811_v11  ;;  %v10413_v17 = vld [vmem:[%s19564_s4 + $0x180] sm:$0xff] }
 0xdac   :  { %15823 = vmatprep.subr.bf16.mxu0 %v18582_v57 }
 0xdae   :  { %14186 = vmatmul.mubr.msk.f32.gmra.mrb[70].mxu0 %vm4373_vm0, %v14177_v27 }
 0xdaf   :  { %15825 = vmatpush3.bf16.msra.mxu0 %v18582_v57  ;;  %14220 = vmatprep.mubr.f32.mxu0 %v10633_v47  ;;  %v10414_v57 = vld [vmem:[%s19564_s4 + $0x188] sm:$0xff] }
 0xdb0   :  { %15827 = vmatprep.subr.bf16.mxu0 %v18596_v37 }
 0xdb3   :  { %15829 = vmatpush3.bf16.msra.mxu0 %v18596_v37  ;;  %v10687_v37 = vld [vmem:[%s19563_s6 + $0x188] sm:$0xff]  }
 0xdb4   :  { %15831 = vmatprep.subr.bf16.mxu0 %v18610_v51  ;;  %v10638_v22 = vunpack.c.h.bf16 %v10687_v37 }
 0xdb7   :  { %15833 = vmatpush3.bf16.msra.mxu0 %v18610_v51  ;;  %v15850_v51 = vpack.c.bf16 %v10414_v57, %v10413_v17 }
 0xdb8   :  { %15835 = vmatprep.subr.bf16.mxu0 %v18624_v38 }
 0xdbb   :  { %15837 = vmatpush3.bf16.msra.mxu0 %v18624_v38  ;;  %v10634_v38 = vunpack.c.h.bf16 %v10686_v34 }
 0xdbc   :  { %15839 = vmatprep.subr.bf16.mxu0 %v18638_v62 }
 0xdbf   :  { %15841 = vmatpush3.bf16.msra.mxu0 %v18638_v62  ;;  %v10637_v62 = vunpack.c.l.bf16 %v10687_v37 }
 0xdc0   :  { %15843 = vmatprep.subr.bf16.mxu0 %v18652_v2 }
 0xdc3   :  { %15845 = vmatpush3.bf16.msra.mxu0 %v18652_v2 }
 0xdc4   :  { %15847 = vmatprep.subr.bf16.mxu0 %v18666_v9 }
 0xdc7   :  { %15849 = vmatpush3.bf16.msra.mxu0 %v18666_v9  ;;  %v16013_v9 = vmov 0.0|0.0  }
 0xdc8   :  { %15851 = vmatprep.subr.bf16.mxu0 %v15850_v51  ;;  %15854 = vmatprep.subr.bf16.mxu1 %v16013_v9 }
 0xdca   :  { %14221 = vmatmul.mubr.f32.vlgmr.msra.gmra.mrb[104].mxu0 %v10634_v38 }
 0xdcb   :  { %14223 = vmatprep.mubr.f32.mxu0 %v10637_v62  ;;  %15853 = vmatpush3.bf16.msra.mxu0 %v15850_v51 }
 0xdcc   :  { %15884 = vmatprep.subr.bf16.mxu0 %v16013_v9 }
 0xdce   :  { %14224 = vmatmul.mubr.f32.gmra.mrb[106].mxu0 %v10638_v22 }
 0xe9d   :  { %v14222_v19 = vpop.f32.mrb[104].mxu0 }
 0xe9e   :  { %v8999_v40 = vpop.f32.mrb[105].mxu0 }
 0xe9f   :  { %14230 = vmatprep.mubr.msk.f32.mxu0 %vm4373_vm0, %v8999_v40 }
 0xea0   :  { %14231 = vmatmul.mubr.msk.f32.vlgmr.msra.gmra.mrb[68].mxu0 %vm4373_vm0, %v14222_v19 }
 0xea1   :  { %v14225_v2 = vpop.f32.mrb[106].mxu0 }
 0xea2   :  { %v9009_v6 = vpop.f32.mrb[107].mxu0 }
 0xea3   :  { %14233 = vmatprep.mubr.msk.f32.mxu0 %vm4373_vm0, %v9009_v6  ;;  %v10437_v6 = vld [vmem:[%s19568_s9] ss:$0 sm:$0xff] }
 0xea4   :  { %14234 = vmatmul.mubr.msk.f32.gmra.mrb[70].mxu0 %vm4373_vm0, %v14225_v2 }
 0xea5   :  { %14299 = vmatprep.mubr.msk.f32.mxu0 %vm16014_vm1, %v16015_v45 }
 0xf73   :  { %v14232_v16 = vpop.f32.mrb[68].mxu0 }
 0xf74   :  { %v9130_v23 = vadd.f32 %v14232_v16, %v10419_v30  ;;  %v9099_v54 = vpop.f32.mrb[69].mxu0 }
 0xf75   :  { %v9129_v24 = vadd.f32 %v10419_v30, %v9099_v54 }
 0xf76   :  { %v9134_v7 = vmax.f32 %v9130_v23, 0.0 }
 0xf77   :  { %v9133_v49 = vmax.f32 %v9129_v24, 0.0  ;;  %v14235_v58 = vpop.f32.mrb[70].mxu0 }
 0xf78   :  { %v9132_v46 = vadd.f32 %v14235_v58, %v10419_v30  ;;  %v9109_v39 = vpop.f32.mrb[71].mxu0 }
 0xf79   :  { %v19471_v33 = vpack.c.bf16 %v9134_v7, %v9133_v49  ;;  %v9131_v48 = vadd.f32 %v10419_v30, %v9109_v39 }
 0xf7a   :  { %v9136_v35 = vmax.f32 %v9132_v46, 0.0 }
 0xf7b   :  { %v9135_v32 = vmax.f32 %v9131_v48, 0.0  ;;  %15856 = vmatpush3.bf16.msra.mxu1 %v19471_v33  ;;  %15886 = vmatpush3.bf16.msra.mxu0 %v19471_v33 }
 0xf7c   :  { %15857 = vmatprep.subr.bf16.mxu1 %v16013_v9  ;;  %15887 = vmatprep.subr.bf16.mxu0 %v16013_v9 }
 0xf7d   :  { %v15858_v3 = vpack.c.bf16 %v9136_v35, %v9135_v32 }
 0xf7f   :  { %15859 = vmatpush3.bf16.msra.mxu1 %v15858_v3  ;;  %15889 = vmatpush3.bf16.msra.mxu0 %v15858_v3 }
 0xf80   :  { %15860 = vmatprep.subr.bf16.mxu1 %v16013_v9  ;;  %15896 = vmatprep.subr.bf16.mxu0 %v16013_v9 }
 0xf82   :  { %14245 = vmatmul.mubr.msk.f32.vlgmr.msra.gmra.mrb[124].mxu1 %vm9139_vm2, %v9138_v60  ;;  %14300 = vmatmul.mubr.msk.f32.vlgmr.msra.gmra.mrb[108].mxu0 %vm9139_vm2, %v9523_v14 }
 0xf83   :  { %15862 = vmatpush3.bf16.msra.mxu1 %v19471_v33  ;;  %15898 = vmatpush3.bf16.msra.mxu0 %v19471_v33 }
 0xf84   :  { %15863 = vmatprep.subr.bf16.mxu1 %v16013_v9  ;;  %15899 = vmatprep.subr.bf16.mxu0 %v16013_v9 }
 0xf85   :  { %14255 = vmatprep.mubr.msk.f32.mxu1 %vm16014_vm1, %v16015_v45  ;;  %14321 = vmatprep.mubr.msk.f32.mxu0 %vm16014_vm1, %v16015_v45 }
 0xf87   :  { %15865 = vmatpush3.bf16.msra.mxu1 %v15858_v3  ;;  %15901 = vmatpush3.bf16.msra.mxu0 %v15858_v3 }
 0xf88   :  { %15866 = vmatprep.subr.bf16.mxu1 %v16013_v9  ;;  %15908 = vmatprep.subr.bf16.mxu0 %v16013_v9 }
 0xf8a   :  { %14256 = vmatmul.mubr.msk.f32.vlgmr.msra.gmra.mrb[126].mxu1 %vm9139_vm2, %v9215_v41  ;;  %14322 = vmatmul.mubr.msk.f32.vlgmr.msra.gmra.mrb[110].mxu0 %vm9139_vm2, %v9677_v25 }
 0xf8b   :  { %15868 = vmatpush3.bf16.msra.mxu1 %v19471_v33  ;;  %14266 = vmatprep.mubr.msk.f32.mxu1 %vm16014_vm1, %v16015_v45 }
 0xf8c   :  { %15869 = vmatprep.subr.bf16.mxu1 %v16013_v9  ;;  %14343 = vmatprep.mubr.msk.f32.mxu0 %vm16014_vm1, %v16015_v45 }
 0xf8d   :  { %15910 = vmatpush3.bf16.msra.mxu0 %v15909_v18 }
 0xf8e   :  { %15911 = vmatprep.subr.bf16.mxu0 %v16013_v9 }
 0xf8f   :  { %15871 = vmatpush3.bf16.msra.mxu1 %v15858_v3 }
 0xf90   :  { %15872 = vmatprep.subr.bf16.mxu1 %v16013_v9 }
 0xf91   :  { %15913 = vmatpush3.bf16.msra.mxu0 %v15912_v20 }
 0xf92   :  { %14267 = vmatmul.mubr.msk.f32.vlgmr.msra.gmra.mrb[128].mxu1 %vm9139_vm2, %v9292_v26 }
 0xf93   :  { %15874 = vmatpush3.bf16.msra.mxu1 %v19471_v33  ;;  %14277 = vmatprep.mubr.msk.f32.mxu1 %vm16014_vm1, %v16015_v45 }
 0xf94   :  { %15875 = vmatprep.subr.bf16.mxu1 %v16013_v9 }
 0xf97   :  { %15877 = vmatpush3.bf16.msra.mxu1 %v15858_v3 }
 0xf98   :  { %15878 = vmatprep.subr.bf16.mxu1 %v16013_v9 }
 0xf9a   :  { %14278 = vmatmul.mubr.msk.f32.vlgmr.msra.gmra.mrb[130].mxu1 %vm9139_vm2, %v9369_v13 }
 0xf9b   :  { %15880 = vmatpush3.bf16.msra.mxu1 %v19471_v33  ;;  %14288 = vmatprep.mubr.msk.f32.mxu1 %vm16014_vm1, %v16015_v45 }
 0xf9c   :  { %15881 = vmatprep.subr.bf16.mxu1 %v16013_v9 }
 0xf9f   :  { %15883 = vmatpush3.bf16.msra.mxu1 %v15858_v3 }
 0xfa0   :  { %15890 = vmatprep.subr.bf16.mxu1 %v16013_v9 }
 0xfa2   :  { %14289 = vmatmul.mubr.msk.f32.vlgmr.msra.gmra.mrb[132].mxu1 %vm9139_vm2, %v9446_v44 }
 0xfa3   :  { %15892 = vmatpush3.bf16.msra.mxu1 %v19471_v33  ;;  %14310 = vmatprep.mubr.msk.f32.mxu1 %vm16014_vm1, %v16015_v45 }
 0xfa4   :  { %15893 = vmatprep.subr.bf16.mxu1 %v16013_v9 }
 0xfa7   :  { %15895 = vmatpush3.bf16.msra.mxu1 %v15858_v3 }
 0xfa8   :  { %15902 = vmatprep.subr.bf16.mxu1 %v16013_v9 }
 0xfaa   :  { %14311 = vmatmul.mubr.msk.f32.vlgmr.msra.gmra.mrb[134].mxu1 %vm9139_vm2, %v9600_v4 }
 0xfab   :  { %15904 = vmatpush3.bf16.msra.mxu1 %v19471_v33  ;;  %14332 = vmatprep.mubr.msk.f32.mxu1 %vm16014_vm1, %v16015_v45 }
 0xfac   :  { %15905 = vmatprep.subr.bf16.mxu1 %v16013_v9 }
 0xfaf   :  { %15907 = vmatpush3.bf16.msra.mxu1 %v15858_v3 }
 0xfb2   :  { %14333 = vmatmul.mubr.msk.f32.vlgmr.msra.gmra.mrb[136].mxu1 %vm9139_vm2, %v9754_v10 }
0x1055   :  { %v9209_v15 = vpop.f32.mrb[124].mxu1  ;;  %v9593_v1 = vpop.f32.mrb[108].mxu0 }
0x1056   :  { %v14246_v29 = vpop.f32.mrb[125].mxu1  ;;  %v14301_v28 = vpop.f32.mrb[109].mxu0 }
0x105d   :  { %v9285_v5 = vpop.f32.mrb[126].mxu1  ;;  %v9747_v56 = vpop.f32.mrb[110].mxu0 }
0x105e   :  { %v9289_v42 = vmax.f32 %v9209_v15, %v9285_v5  ;;  %v14257_v53 = vpop.f32.mrb[127].mxu1  ;;  %v14323_v27 = vpop.f32.mrb[111].mxu0 }
0x1065   :  { %v9362_v11 = vpop.f32.mrb[128].mxu1 }
0x1066   :  { %v9366_v50 = vmax.f32 %v9289_v42, %v9362_v11  ;;  %v14268_v61 = vpop.f32.mrb[129].mxu1 }
0x106d   :  { %v9439_v12 = vpop.f32.mrb[130].mxu1 }
0x106e   :  { %v9443_v8 = vmax.f32 %v9366_v50, %v9439_v12  ;;  %v14279_v34 = vpop.f32.mrb[131].mxu1 }
0x1075   :  { %v9516_v47 = vpop.f32.mrb[132].mxu1 }
0x1076   :  { %v9520_v17 = vmax.f32 %v9443_v8, %v9516_v47  ;;  %v14290_v57 = vpop.f32.mrb[133].mxu1 }
0x1078   :  { %v9597_v37 = vmax.f32 %v9520_v17, %v9593_v1 }
0x107d   :  { %v9670_v51 = vpop.f32.mrb[134].mxu1 }
0x107e   :  { %v9674_v38 = vmax.f32 %v9597_v37, %v9670_v51  ;;  %v14312_v62 = vpop.f32.mrb[135].mxu1 }
0x1080   :  { %v9751_v22 = vmax.f32 %v9674_v38, %v9747_v56 }
0x1085   :  { %v9824_v19 = vpop.f32.mrb[136].mxu1 }
0x1086   :  { %v9828_v40 = vmax.f32 %v9751_v22, %v9824_v19  ;;  %v14334_v2 = vpop.f32.mrb[137].mxu1 }
0x1088   :  { %14344 = vmatmul.mubr.msk.f32.vlgmr.msra.gmra.mrb[112].mxu0 %vm9139_vm2, %v9828_v40 }
0x115b   :  { %v9909_v9 = vpop.f32.mrb[112].mxu0 }
0x115c   :  { %v9910_v45 = vadd.f32 %v10437_v6, %v9909_v9  ;;  %v14345_v30 = vpop.f32.mrb[113].mxu0 }
0x115e   :  { %9913 = vst [vmem:[%s19569_s10] sm:$0xff] %v9910_v45 }

</bundles_post_ra>
